<compile_context>
chip_gen: v5e
topology: v5e:2x2
jax: 0.10.0
libtpu: 0.0.40
codegen_flags: <defaults>
</compile_context>

<pallas_src>
import jax
import jax.numpy as jnp
from jax import lax
from jax.experimental import pallas as pl
from jax.experimental.pallas import tpu as pltpu


# ------------------------------ small helpers -------------------------------

def _vmem_limit(block_bytes, scratch_bytes=0):
    """Scoped-VMEM limit derived from the per-step footprint (v7x-safe cap)."""
    need = 2 * block_bytes + scratch_bytes + (8 << 20)   # 2x = double buffering
    return int(min(max(need, 24 << 20), 48 << 20))


def _compiler_params(block_bytes, scratch_bytes=0):
    return pltpu.CompilerParams(
        dimension_semantics=("parallel",),
        vmem_limit_bytes=_vmem_limit(block_bytes, scratch_bytes))


# ----------------------------- Pallas kernels ------------------------------

def _conv1x1_bn_relu_kernel(x_ref, w_ref, b_ref, o_ref):
    """o = relu(x @ w + bias); BN scale pre-folded into w.  Full K, no grid-K."""
    acc = jnp.dot(x_ref[0], w_ref[...], preferred_element_type=jnp.float32)
    o_ref[0] = jnp.maximum(acc + b_ref[...], 0.0).astype(o_ref.dtype)


def _make_conv3x3_kernel(stride, Ho, Wo, C):
    """3x3 conv + BN + ReLU with the im2col fused in-kernel.

    stride == 1: x_ref is the spatially pre-padded activation (1, H+2, W+2, C).
    stride == 2: x_ref is the W-pair-folded activation (1, H, W//2, 2*C), where
                 element (0, h, wp, a*C + c) holds x[n, h, 2*wp + a, c].
    patch_ref:   (Ho*Wo, 9*C) f32 VMEM scratch (never touches HBM).
    """
    def kernel(x_ref, w_ref, b_ref, o_ref, patch_ref):
        # Gather the 9 taps of the VMEM-resident activation into the patch
        # matrix.  All slices are plain (unstrided) static slices.
        for io in range(Ho):
            for di in range(3):
                row = x_ref[0, stride * io + di]          # (Win, Ceff)
                for dj in range(3):
                    if stride == 1:
                        win = row[dj:dj + Wo, :]
                    else:
                        q, a = dj // 2, dj % 2            # col 2*(jo+q)+a
                        win = row[q:q + Wo, a * C:(a + 1) * C]
                    t = di * 3 + dj
                    patch_ref[io * Wo:(io + 1) * Wo,
                              t * C:(t + 1) * C] = win.astype(jnp.float32)

        acc = jnp.dot(patch_ref[...].astype(jnp.bfloat16), w_ref[...],
                      preferred_element_type=jnp.float32)
        o_ref[0] = jnp.maximum(acc + b_ref[...], 0.0).astype(o_ref.dtype)

    return kernel


def _maxpool_3x3_s2_kernel(x_ref, o_ref):
    """MaxPool2d(kernel_size=3, stride=2), valid padding.

    x_ref: (1, Hh, 2*Wh, 2*C) where element (0, i, a*Wh + j, b*C + c) holds the
           NHWC input value x[n, 2*i + a, 2*j + b, c]  (H and W pairs folded by
           a free contiguous reshape -> all slices below are unstrided).
    o_ref: (1, Ho, Wo, C)
    """
    _, Ho, Wo, C = o_ref.shape
    Wh = x_ref.shape[2] // 2
    taps = ((0, 0), (0, 1), (1, 0))      # (pair offset, index within pair)
    acc = None
    for dp, a in taps:                   # input rows 2*(io+dp)+a
        for dq, b in taps:               # input cols 2*(jo+dq)+b
            v = x_ref[0, dp:dp + Ho,
                      a * Wh + dq:a * Wh + dq + Wo,
                      b * C:(b + 1) * C]
            acc = v if acc is None else jnp.maximum(acc, v)
    o_ref[0] = acc


# ------------------------------- conv + BN + relu ---------------------------

def conv_bn_relu(x_nhwc, p, stride=1, padding=0, eps=1e-5):
    """ConvBNRelu: Conv2d(bias=False) + BatchNorm2d(eval stats) + ReLU (NHWC)."""
    w, gamma, beta, mean, var = p["w"], p["gamma"], p["beta"], p["mean"], p["var"]
    cout, cin, kh, kw = w.shape
    inv_std = gamma / jnp.sqrt(var + eps)
    bias = (beta - mean * inv_std).astype(jnp.float32).reshape(1, cout)
    # Fold the BN scale into the conv weights (per output channel), bf16 MXU.
    wmat = (jnp.transpose(w, (2, 3, 1, 0)).reshape(kh * kw * cin, cout)
            * inv_std[None, :]).astype(jnp.bfloat16)

    N, H, W, C = x_nhwc.shape
    assert C == cin
    x = x_nhwc.astype(jnp.bfloat16)      # no-op when already bf16

    if kh == 1 and kw == 1:
        assert stride == 1 and padding == 0
        M = H * W
        xf = x.reshape(N, M, C)          # contiguous (free) reshape
        blk = (M * C + C * cout + M * cout) * 2 + 4 * cout
        out = pl.pallas_call(
            _conv1x1_bn_relu_kernel,
            grid=(N,),
            in_specs=[pl.BlockSpec((1, M, C), lambda n: (n, 0, 0)),
                      pl.BlockSpec((C, cout), lambda n: (0, 0)),
                      pl.BlockSpec((1, cout), lambda n: (0, 0))],
            out_specs=pl.BlockSpec((1, M, cout), lambda n: (n, 0, 0)),
            out_shape=jax.ShapeDtypeStruct((N, M, cout), jnp.bfloat16),
            compiler_params=_compiler_params(blk),
            cost_estimate=pl.CostEstimate(
                flops=2 * N * M * C * cout, transcendentals=0,
                bytes_accessed=N * M * (C + cout) * 2 + C * cout * 2),
        )(xf, wmat, bias)
        return out.reshape(N, H, W, cout)

    assert kh == 3 and kw == 3
    if stride == 1:
        assert padding == 1
        Ho, Wo = H, W
        xin = jnp.pad(x, ((0, 0), (1, 1), (1, 1), (0, 0)))   # spatial pad only
        Hin, Win, Ceff = H + 2, W + 2, C
    else:
        assert stride == 2 and padding == 0
        Ho, Wo = (H - 3) // 2 + 1, (W - 3) // 2 + 1
        Wp = W + (W % 2)                  # fold needs even W; pad col never read
        xw = x if Wp == W else jnp.pad(x, ((0, 0), (0, 0), (0, 1), (0, 0)))
        xin = xw.reshape(N, H, Wp // 2, 2 * C)   # free contiguous reshape
        Hin, Win, Ceff = H, Wp // 2, 2 * C

    M, K = Ho * Wo, 9 * C
    kernel = _make_conv3x3_kernel(stride, Ho, Wo, C)
    blk = (Hin * Win * Ceff + K * cout + M * cout) * 2 + 4 * cout
    scratch = M * K * 4
    out = pl.pallas_call(
        kernel,
        grid=(N,),
        in_specs=[pl.BlockSpec((1, Hin, Win, Ceff), lambda n: (n, 0, 0, 0)),
                  pl.BlockSpec((K, cout), lambda n: (0, 0)),
                  pl.BlockSpec((1, cout), lambda n: (0, 0))],
        out_specs=pl.BlockSpec((1, M, cout), lambda n: (n, 0, 0)),
        out_shape=jax.ShapeDtypeStruct((N, M, cout), jnp.bfloat16),
        scratch_shapes=[pltpu.VMEM((M, K), jnp.float32)],
        compiler_params=_compiler_params(blk, scratch),
        cost_estimate=pl.CostEstimate(
            flops=2 * N * M * K * cout, transcendentals=0,
            bytes_accessed=(N * (Hin * Win * Ceff + M * cout) + K * cout) * 2),
    )(xin, wmat, bias)
    return out.reshape(N, Ho, Wo, cout)


# -------------------------------- max pooling -------------------------------

def maxpool_3x3_s2(x_nhwc):
    """MaxPool2d(kernel_size=3, stride=2), no padding (valid)."""
    N, H, W, C = x_nhwc.shape
    Ho = (H - 3) // 2 + 1
    Wo = (W - 3) // 2 + 1
    Hp, Wp = H + (H % 2), W + (W % 2)
    if (Hp, Wp) != (H, W):
        # Pad to even H/W so pairs fold; the padded row/col is never read by
        # any valid 3x3 window, so the fill value is irrelevant.
        x_nhwc = jnp.pad(x_nhwc, ((0, 0), (0, Hp - H), (0, Wp - W), (0, 0)))
    Hh, Wh = Hp // 2, Wp // 2
    xr = x_nhwc.reshape(N, Hh, 2 * Wh, 2 * C)     # free contiguous reshape

    blk = (Hp * Wp * C + Ho * Wo * C) * x_nhwc.dtype.itemsize
    # TODO(synk): add an output-row grid axis for more megacore parallelism at
    # small batch on v7x.
    return pl.pallas_call(
        _maxpool_3x3_s2_kernel,
        grid=(N,),
        in_specs=[pl.BlockSpec((1, Hh, 2 * Wh, 2 * C), lambda n: (n, 0, 0, 0))],
        out_specs=pl.BlockSpec((1, Ho, Wo, C), lambda n: (n, 0, 0, 0)),
        out_shape=jax.ShapeDtypeStruct((N, Ho, Wo, C), x_nhwc.dtype),
        compiler_params=_compiler_params(blk),
    )(xr)


# --------------------------- parameter construction ------------------------

def make_conv_bn_params(key, cin, cout, ksize):
    kw_, kg, kb, km, kv = jax.random.split(key, 5)
    w = jax.random.normal(kw_, (cout, cin, ksize, ksize), jnp.float32) * 0.1
    gamma = 1.0 + 0.1 * jax.random.normal(kg, (cout,), jnp.float32)
    beta = 0.1 * jax.random.normal(kb, (cout,), jnp.float32)
    mean = 0.1 * jax.random.normal(km, (cout,), jnp.float32)
    var = jnp.abs(0.1 * jax.random.normal(kv, (cout,), jnp.float32)) + 0.5
    return dict(w=w, gamma=gamma, beta=beta, mean=mean, var=var)


def make_reduction_a_params(key, in_channels, k, l, m, n):
    ks = jax.random.split(key, 4)
    return dict(
        b2=make_conv_bn_params(ks[0], in_channels, n, 3),
        b3_1=make_conv_bn_params(ks[1], in_channels, k, 1),
        b3_2=make_conv_bn_params(ks[2], k, l, 3),
        b3_3=make_conv_bn_params(ks[3], l, m, 3),
    )


# ------------------------------ ReductionA ---------------------------------

def reduction_a(x_nchw, params):
    """Forward pass. Input NCHW, output NCHW (channel concat [x2, x3, x1])."""
    x = jnp.transpose(x_nchw, (0, 2, 3, 1))                      # -> NHWC
    xb = x.astype(jnp.bfloat16)                                  # cast once

    x1 = maxpool_3x3_s2(x)                                       # branch_1 (f32)
    x2 = conv_bn_relu(xb, params["b2"], stride=2, padding=0)     # branch_2
    y = conv_bn_relu(xb, params["b3_1"], stride=1, padding=0)    # branch_3
    y = conv_bn_relu(y, params["b3_2"], stride=1, padding=1)
    x3 = conv_bn_relu(y, params["b3_3"], stride=2, padding=0)

    # TODO(synk): write each branch directly into channel-offset slices of one
    # preallocated NHWC buffer (out_spec channel offsets) to save this concat pass.
    out = jnp.concatenate(
        [x2.astype(jnp.float32), x3.astype(jnp.float32), x1], axis=-1)
    return jnp.transpose(out, (0, 3, 1, 2))                      # -> NCHW


# ------------------------- pure-JAX reference check ------------------------

def _ref_conv_bn_relu(x_nhwc, p, stride, padding, eps=1e-5):
    w_hwio = jnp.transpose(p["w"], (2, 3, 1, 0))
    y = lax.conv_general_dilated(
        x_nhwc, w_hwio, (stride, stride),
        [(padding, padding), (padding, padding)],
        dimension_numbers=("NHWC", "HWIO", "NHWC"))
    inv_std = p["gamma"] / jnp.sqrt(p["var"] + eps)
    y = y * inv_std + (p["beta"] - p["mean"] * inv_std)
    return jnp.maximum(y, 0.0)


def _ref_reduction_a(x_nchw, params):
    x = jnp.transpose(x_nchw, (0, 2, 3, 1))
    x1 = lax.reduce_window(x, -jnp.inf, lax.max, (1, 3, 3, 1), (1, 2, 2, 1), "VALID")
    x2 = _ref_conv_bn_relu(x, params["b2"], 2, 0)
    y = _ref_conv_bn_relu(x, params["b3_1"], 1, 0)
    y = _ref_conv_bn_relu(y, params["b3_2"], 1, 1)
    x3 = _ref_conv_bn_relu(y, params["b3_3"], 2, 0)
    out = jnp.concatenate([x2, x3, x1], axis=-1)
    return jnp.transpose(out, (0, 3, 1, 2))


# ----------------------------------- main -----------------------------------

if __name__ == "__main__":
    key = jax.random.PRNGKey(0)
    k_x, k_p = jax.random.split(key)

    # Small shapes consistent with the module (scaled-down ReductionA config).
    N, Cin, H, W = 2, 8, 16, 16
    k_, l_, m_, n_ = 8, 8, 8, 16

    x = jax.random.normal(k_x, (N, Cin, H, W), jnp.float32)
    params = make_reduction_a_params(k_p, Cin, k_, l_, m_, n_)

    fwd = jax.jit(reduction_a)
    out = jax.block_until_ready(fwd(x, params))

    # Shape check: spatial 16 -> 7 (stride-2 valid), channels = n + m + Cin
    assert out.shape == (N, n_ + m_ + Cin, 7, 7), out.shape

    ref = jax.block_until_ready(_ref_reduction_a(x, params))
    err = float(jnp.max(jnp.abs(out - ref)))
    # bf16 MXU operands vs. an f32 reference -> relaxed tolerance.
    assert jnp.allclose(out, ref, atol=5e-2, rtol=5e-2), err

    print("KERNEL_OK")
</pallas_src>

<mosaic_0001>
module attributes {stable_mosaic.version = 11 : i64} {
  func.func @_maxpool_3x3_s2_kernel(%arg0: i32, %arg1: memref<1x8x16x16xf32, #tpu.memory_space<vmem>>, %arg2: memref<1x7x7x8xf32, #tpu.memory_space<vmem>>) attributes {dimension_semantics = [#tpu.dimension_semantics<parallel>], iteration_bounds = array<i64: 2>, scalar_prefetch = 0 : i64, scratch_operands = 0 : i64, tpu.core_type = #tpu.core_type<tc>, window_params = [{transform_indices = @transform_0, window_bounds = array<i64: 1, 8, 16, 16>}, {transform_indices = @transform_1, window_bounds = array<i64: 1, 7, 7, 8>}]} {
    %c0 = arith.constant 0 : index
    %c0_0 = arith.constant 0 : index
    %c0_1 = arith.constant 0 : index
    %c0_2 = arith.constant 0 : index
    %0 = vector.load %arg1[%c0, %c0_0, %c0_1, %c0_2] : memref<1x8x16x16xf32, #tpu.memory_space<vmem>>, vector<1x7x7x8xf32>
    %1 = vector.shape_cast %0 : vector<1x7x7x8xf32> to vector<7x7x8xf32>
    %c0_3 = arith.constant 0 : index
    %c0_4 = arith.constant 0 : index
    %c0_5 = arith.constant 0 : index
    %c8 = arith.constant 8 : index
    %2 = vector.load %arg1[%c0_3, %c0_4, %c0_5, %c8] : memref<1x8x16x16xf32, #tpu.memory_space<vmem>>, vector<1x7x7x8xf32>
    %3 = vector.shape_cast %2 : vector<1x7x7x8xf32> to vector<7x7x8xf32>
    %4 = arith.maximumf %1, %3 : vector<7x7x8xf32>
    %c0_6 = arith.constant 0 : index
    %c0_7 = arith.constant 0 : index
    %c1 = arith.constant 1 : index
    %c0_8 = arith.constant 0 : index
    %5 = vector.load %arg1[%c0_6, %c0_7, %c1, %c0_8] : memref<1x8x16x16xf32, #tpu.memory_space<vmem>>, vector<1x7x7x8xf32>
    %6 = vector.shape_cast %5 : vector<1x7x7x8xf32> to vector<7x7x8xf32>
    %7 = arith.maximumf %4, %6 : vector<7x7x8xf32>
    %c0_9 = arith.constant 0 : index
    %c0_10 = arith.constant 0 : index
    %c8_11 = arith.constant 8 : index
    %c0_12 = arith.constant 0 : index
    %8 = vector.load %arg1[%c0_9, %c0_10, %c8_11, %c0_12] : memref<1x8x16x16xf32, #tpu.memory_space<vmem>>, vector<1x7x7x8xf32>
    %9 = vector.shape_cast %8 : vector<1x7x7x8xf32> to vector<7x7x8xf32>
    %10 = arith.maximumf %7, %9 : vector<7x7x8xf32>
    %c0_13 = arith.constant 0 : index
    %c0_14 = arith.constant 0 : index
    %c8_15 = arith.constant 8 : index
    %c8_16 = arith.constant 8 : index
    %11 = vector.load %arg1[%c0_13, %c0_14, %c8_15, %c8_16] : memref<1x8x16x16xf32, #tpu.memory_space<vmem>>, vector<1x7x7x8xf32>
    %12 = vector.shape_cast %11 : vector<1x7x7x8xf32> to vector<7x7x8xf32>
    %13 = arith.maximumf %10, %12 : vector<7x7x8xf32>
    %c0_17 = arith.constant 0 : index
    %c0_18 = arith.constant 0 : index
    %c9 = arith.constant 9 : index
    %c0_19 = arith.constant 0 : index
    %14 = vector.load %arg1[%c0_17, %c0_18, %c9, %c0_19] : memref<1x8x16x16xf32, #tpu.memory_space<vmem>>, vector<1x7x7x8xf32>
    %15 = vector.shape_cast %14 : vector<1x7x7x8xf32> to vector<7x7x8xf32>
    %16 = arith.maximumf %13, %15 : vector<7x7x8xf32>
    %c0_20 = arith.constant 0 : index
    %c1_21 = arith.constant 1 : index
    %c0_22 = arith.constant 0 : index
    %c0_23 = arith.constant 0 : index
    %17 = vector.load %arg1[%c0_20, %c1_21, %c0_22, %c0_23] : memref<1x8x16x16xf32, #tpu.memory_space<vmem>>, vector<1x7x7x8xf32>
    %18 = vector.shape_cast %17 : vector<1x7x7x8xf32> to vector<7x7x8xf32>
    %19 = arith.maximumf %16, %18 : vector<7x7x8xf32>
    %c0_24 = arith.constant 0 : index
    %c1_25 = arith.constant 1 : index
    %c0_26 = arith.constant 0 : index
    %c8_27 = arith.constant 8 : index
    %20 = vector.load %arg1[%c0_24, %c1_25, %c0_26, %c8_27] : memref<1x8x16x16xf32, #tpu.memory_space<vmem>>, vector<1x7x7x8xf32>
    %21 = vector.shape_cast %20 : vector<1x7x7x8xf32> to vector<7x7x8xf32>
    %22 = arith.maximumf %19, %21 : vector<7x7x8xf32>
    %c0_28 = arith.constant 0 : index
    %c1_29 = arith.constant 1 : index
    %c1_30 = arith.constant 1 : index
    %c0_31 = arith.constant 0 : index
    %23 = vector.load %arg1[%c0_28, %c1_29, %c1_30, %c0_31] : memref<1x8x16x16xf32, #tpu.memory_space<vmem>>, vector<1x7x7x8xf32>
    %24 = vector.shape_cast %23 : vector<1x7x7x8xf32> to vector<7x7x8xf32>
    %25 = arith.maximumf %22, %24 : vector<7x7x8xf32>
    %c0_32 = arith.constant 0 : index
    %c0_33 = arith.constant 0 : index
    %c0_34 = arith.constant 0 : index
    %c0_35 = arith.constant 0 : index
    %26 = vector.load %arg2[%c0_32, %c0_33, %c0_34, %c0_35] : memref<1x7x7x8xf32, #tpu.memory_space<vmem>>, vector<1x7x7x8xf32>
    %27 = vector.shape_cast %26 : vector<1x7x7x8xf32> to vector<7x7x8xf32>
    %28 = vector.shape_cast %25 : vector<7x7x8xf32> to vector<1x7x7x8xf32>
    tpu.vector_store %arg2[%c0_32, %c0_33, %c0_34, %c0_35], %28 {strides = array<i32>} : memref<1x7x7x8xf32, #tpu.memory_space<vmem>>, vector<1x7x7x8xf32>,
    return
  }
  func.func @transform_0(%arg0: i32) -> (i32, i32, i32, i32) {
    %c0_i32 = arith.constant 0 : i32
    %c0_i32_0 = arith.constant 0 : i32
    %c0_i32_1 = arith.constant 0 : i32
    %c0_i32_2 = arith.constant 0 : i32
    return %arg0, %c0_i32, %c0_i32_0, %c0_i32_1 : i32, i32, i32, i32
  }
  func.func @transform_1(%arg0: i32) -> (i32, i32, i32, i32) {
    %c0_i32 = arith.constant 0 : i32
    %c0_i32_0 = arith.constant 0 : i32
    %c0_i32_1 = arith.constant 0 : i32
    %c0_i32_2 = arith.constant 0 : i32
    return %arg0, %c0_i32, %c0_i32_0, %c0_i32_1 : i32, i32, i32, i32
  }
}

module attributes {stable_mosaic.version = 11 : i64} {
  func.func @_conv1x1_bn_relu_kernel(%arg0: i32, %arg1: memref<1x256x8xbf16, #tpu.memory_space<vmem>>, %arg2: memref<8x8xbf16, #tpu.memory_space<vmem>>, %arg3: memref<1x8xf32, #tpu.memory_space<vmem>>, %arg4: memref<1x256x8xbf16, #tpu.memory_space<vmem>>) attributes {dimension_semantics = [#tpu.dimension_semantics<parallel>], iteration_bounds = array<i64: 2>, scalar_prefetch = 0 : i64, scratch_operands = 0 : i64, tpu.core_type = #tpu.core_type<tc>, window_params = [{transform_indices = @transform_0, window_bounds = array<i64: 1, 256, 8>}, {pipeline_mode = #tpu.pipeline_mode<synchronous>, transform_indices = @transform_1, window_bounds = array<i64: 8, 8>}, {pipeline_mode = #tpu.pipeline_mode<synchronous>, transform_indices = @transform_2, window_bounds = array<i64: 1, 8>}, {transform_indices = @transform_3, window_bounds = array<i64: 1, 256, 8>}]} {
    %c0 = arith.constant 0 : index
    %c0_0 = arith.constant 0 : index
    %c0_1 = arith.constant 0 : index
    %0 = vector.load %arg1[%c0, %c0_0, %c0_1] : memref<1x256x8xbf16, #tpu.memory_space<vmem>>, vector<1x256x8xbf16>
    %1 = vector.shape_cast %0 : vector<1x256x8xbf16> to vector<256x8xbf16>
    %c0_2 = arith.constant 0 : index
    %c0_3 = arith.constant 0 : index
    %2 = vector.load %arg2[%c0_2, %c0_3] : memref<8x8xbf16, #tpu.memory_space<vmem>>, vector<8x8xbf16>
    %cst = arith.constant dense<0.000000e+00> : vector<256x8xf32>
    %3 = tpu.matmul %1, %2, %cst {dimension_numbers = #tpu.dot_dimension_numbers<[1], [0], [0], [1], [0, 0, 1, 1], [], []>} : vector<256x8xbf16>, vector<8x8xbf16>, vector<256x8xf32> -> vector<256x8xf32>
    %c0_4 = arith.constant 0 : index
    %c0_5 = arith.constant 0 : index
    %4 = vector.load %arg3[%c0_4, %c0_5] : memref<1x8xf32, #tpu.memory_space<vmem>>, vector<1x8xf32>
    %5 = vector.broadcast %4 : vector<1x8xf32> to vector<256x8xf32>
    %6 = arith.addf %3, %5 : vector<256x8xf32>
    %cst_6 = arith.constant 0.000000e+00 : f32
    %7 = vector.broadcast %cst_6 : f32 to vector<256x8xf32>
    %8 = arith.maximumf %6, %7 : vector<256x8xf32>
    %9 = arith.truncf %8 : vector<256x8xf32> to vector<256x8xbf16>
    %c0_7 = arith.constant 0 : index
    %c0_8 = arith.constant 0 : index
    %c0_9 = arith.constant 0 : index
    %10 = vector.load %arg4[%c0_7, %c0_8, %c0_9] : memref<1x256x8xbf16, #tpu.memory_space<vmem>>, vector<1x256x8xbf16>
    %11 = vector.shape_cast %10 : vector<1x256x8xbf16> to vector<256x8xbf16>
    %12 = vector.shape_cast %9 : vector<256x8xbf16> to vector<1x256x8xbf16>
    tpu.vector_store %arg4[%c0_7, %c0_8, %c0_9], %12 {strides = array<i32>} : memref<1x256x8xbf16, #tpu.memory_space<vmem>>, vector<1x256x8xbf16>,
    return
  }
  func.func @transform_0(%arg0: i32) -> (i32, i32, i32) {
    %c0_i32 = arith.constant 0 : i32
    %c0_i32_0 = arith.constant 0 : i32
    %c0_i32_1 = arith.constant 0 : i32
    return %arg0, %c0_i32, %c0_i32_0 : i32, i32, i32
  }
  func.func @transform_1(%arg0: i32) -> (i32, i32) {
    %c0_i32 = arith.constant 0 : i32
    %c0_i32_0 = arith.constant 0 : i32
    %c0_i32_1 = arith.constant 0 : i32
    return %c0_i32, %c0_i32_0 : i32, i32
  }
  func.func @transform_2(%arg0: i32) -> (i32, i32) {
    %c0_i32 = arith.constant 0 : i32
    %c0_i32_0 = arith.constant 0 : i32
    %c0_i32_1 = arith.constant 0 : i32
    return %c0_i32, %c0_i32_0 : i32, i32
  }
  func.func @transform_3(%arg0: i32) -> (i32, i32, i32) {
    %c0_i32 = arith.constant 0 : i32
    %c0_i32_0 = arith.constant 0 : i32
    %c0_i32_1 = arith.constant 0 : i32
    return %arg0, %c0_i32, %c0_i32_0 : i32, i32, i32
  }
}

module attributes {stable_mosaic.version = 11 : i64} {
  func.func @kernel(%arg0: i32, %arg1: memref<1x16x8x16xbf16, #tpu.memory_space<vmem>>, %arg2: memref<72x8xbf16, #tpu.memory_space<vmem>>, %arg3: memref<1x8xf32, #tpu.memory_space<vmem>>, %arg4: memref<1x49x8xbf16, #tpu.memory_space<vmem>>, %arg5: memref<49x72xf32, #tpu.memory_space<vmem>>) attributes {dimension_semantics = [#tpu.dimension_semantics<parallel>], iteration_bounds = array<i64: 2>, scalar_prefetch = 0 : i64, scratch_operands = 1 : i64, tpu.core_type = #tpu.core_type<tc>, window_params = [{transform_indices = @transform_0, window_bounds = array<i64: 1, 16, 8, 16>}, {pipeline_mode = #tpu.pipeline_mode<synchronous>, transform_indices = @transform_1, window_bounds = array<i64: 72, 8>}, {pipeline_mode = #tpu.pipeline_mode<synchronous>, transform_indices = @transform_2, window_bounds = array<i64: 1, 8>}, {transform_indices = @transform_3, window_bounds = array<i64: 1, 49, 8>}]} {
    %c0 = arith.constant 0 : index
    %c0_0 = arith.constant 0 : index
    %c0_1 = arith.constant 0 : index
    %c0_2 = arith.constant 0 : index
    %0 = vector.load %arg1[%c0, %c0_0, %c0_1, %c0_2] : memref<1x16x8x16xbf16, #tpu.memory_space<vmem>>, vector<1x1x8x16xbf16>
    %1 = vector.shape_cast %0 : vector<1x1x8x16xbf16> to vector<8x16xbf16>
    %2 = vector.extract_strided_slice %1 {offsets = [0, 0], sizes = [7, 8], strides = [1, 1]} : vector<8x16xbf16> to vector<7x8xbf16>
    %3 = arith.extf %2 : vector<7x8xbf16> to vector<7x8xf32>
    %c0_3 = arith.constant 0 : index
    %c0_4 = arith.constant 0 : index
    %4 = vector.load %arg5[%c0_3, %c0_4] : memref<49x72xf32, #tpu.memory_space<vmem>>, vector<7x8xf32>
    tpu.vector_store %arg5[%c0_3, %c0_4], %3 {strides = array<i32>} : memref<49x72xf32, #tpu.memory_space<vmem>>, vector<7x8xf32>,
    %5 = vector.extract_strided_slice %1 {offsets = [0, 8], sizes = [7, 8], strides = [1, 1]} : vector<8x16xbf16> to vector<7x8xbf16>
    %6 = arith.extf %5 : vector<7x8xbf16> to vector<7x8xf32>
    %c0_5 = arith.constant 0 : index
    %c8 = arith.constant 8 : index
    %7 = vector.load %arg5[%c0_5, %c8] : memref<49x72xf32, #tpu.memory_space<vmem>>, vector<7x8xf32>
    tpu.vector_store %arg5[%c0_5, %c8], %6 {strides = array<i32>} : memref<49x72xf32, #tpu.memory_space<vmem>>, vector<7x8xf32>,
    %8 = vector.extract_strided_slice %1 {offsets = [1, 0], sizes = [7, 8], strides = [1, 1]} : vector<8x16xbf16> to vector<7x8xbf16>
    %9 = arith.extf %8 : vector<7x8xbf16> to vector<7x8xf32>
    %c0_6 = arith.constant 0 : index
    %c16 = arith.constant 16 : index
    %10 = vector.load %arg5[%c0_6, %c16] : memref<49x72xf32, #tpu.memory_space<vmem>>, vector<7x8xf32>
    tpu.vector_store %arg5[%c0_6, %c16], %9 {strides = array<i32>} : memref<49x72xf32, #tpu.memory_space<vmem>>, vector<7x8xf32>,
    %c0_7 = arith.constant 0 : index
    %c1 = arith.constant 1 : index
    %c0_8 = arith.constant 0 : index
    %c0_9 = arith.constant 0 : index
    %11 = vector.load %arg1[%c0_7, %c1, %c0_8, %c0_9] : memref<1x16x8x16xbf16, #tpu.memory_space<vmem>>, vector<1x1x8x16xbf16>
    %12 = vector.shape_cast %11 : vector<1x1x8x16xbf16> to vector<8x16xbf16>
    %13 = vector.extract_strided_slice %12 {offsets = [0, 0], sizes = [7, 8], strides = [1, 1]} : vector<8x16xbf16> to vector<7x8xbf16>
    %14 = arith.extf %13 : vector<7x8xbf16> to vector<7x8xf32>
    %c0_10 = arith.constant 0 : index
    %c24 = arith.constant 24 : index
    %15 = vector.load %arg5[%c0_10, %c24] : memref<49x72xf32, #tpu.memory_space<vmem>>, vector<7x8xf32>
    tpu.vector_store %arg5[%c0_10, %c24], %14 {strides = array<i32>} : memref<49x72xf32, #tpu.memory_space<vmem>>, vector<7x8xf32>,
    %16 = vector.extract_strided_slice %12 {offsets = [0, 8], sizes = [7, 8], strides = [1, 1]} : vector<8x16xbf16> to vector<7x8xbf16>
    %17 = arith.extf %16 : vector<7x8xbf16> to vector<7x8xf32>
    %c0_11 = arith.constant 0 : index
    %c32 = arith.constant 32 : index
    %18 = vector.load %arg5[%c0_11, %c32] : memref<49x72xf32, #tpu.memory_space<vmem>>, vector<7x8xf32>
    tpu.vector_store %arg5[%c0_11, %c32], %17 {strides = array<i32>} : memref<49x72xf32, #tpu.memory_space<vmem>>, vector<7x8xf32>,
    %19 = vector.extract_strided_slice %12 {offsets = [1, 0], sizes = [7, 8], strides = [1, 1]} : vector<8x16xbf16> to vector<7x8xbf16>
    %20 = arith.extf %19 : vector<7x8xbf16> to vector<7x8xf32>
    %c0_12 = arith.constant 0 : index
    %c40 = arith.constant 40 : index
    %21 = vector.load %arg5[%c0_12, %c40] : memref<49x72xf32, #tpu.memory_space<vmem>>, vector<7x8xf32>
    tpu.vector_store %arg5[%c0_12, %c40], %20 {strides = array<i32>} : memref<49x72xf32, #tpu.memory_space<vmem>>, vector<7x8xf32>,
    %c0_13 = arith.constant 0 : index
    %c2 = arith.constant 2 : index
    %c0_14 = arith.constant 0 : index
    %c0_15 = arith.constant 0 : index
    %22 = vector.load %arg1[%c0_13, %c2, %c0_14, %c0_15] : memref<1x16x8x16xbf16, #tpu.memory_space<vmem>>, vector<1x1x8x16xbf16>
    %23 = vector.shape_cast %22 : vector<1x1x8x16xbf16> to vector<8x16xbf16>
    %24 = vector.extract_strided_slice %23 {offsets = [0, 0], sizes = [7, 8], strides = [1, 1]} : vector<8x16xbf16> to vector<7x8xbf16>
    %25 = arith.extf %24 : vector<7x8xbf16> to vector<7x8xf32>
    %c0_16 = arith.constant 0 : index
    %c48 = arith.constant 48 : index
    %26 = vector.load %arg5[%c0_16, %c48] : memref<49x72xf32, #tpu.memory_space<vmem>>, vector<7x8xf32>
    tpu.vector_store %arg5[%c0_16, %c48], %25 {strides = array<i32>} : memref<49x72xf32, #tpu.memory_space<vmem>>, vector<7x8xf32>,
    %27 = vector.extract_strided_slice %23 {offsets = [0, 8], sizes = [7, 8], strides = [1, 1]} : vector<8x16xbf16> to vector<7x8xbf16>
    %28 = arith.extf %27 : vector<7x8xbf16> to vector<7x8xf32>
    %c0_17 = arith.constant 0 : index
    %c56 = arith.constant 56 : index
    %29 = vector.load %arg5[%c0_17, %c56] : memref<49x72xf32, #tpu.memory_space<vmem>>, vector<7x8xf32>
    tpu.vector_store %arg5[%c0_17, %c56], %28 {strides = array<i32>} : memref<49x72xf32, #tpu.memory_space<vmem>>, vector<7x8xf32>,
    %30 = vector.extract_strided_slice %23 {offsets = [1, 0], sizes = [7, 8], strides = [1, 1]} : vector<8x16xbf16> to vector<7x8xbf16>
    %31 = arith.extf %30 : vector<7x8xbf16> to vector<7x8xf32>
    %c0_18 = arith.constant 0 : index
    %c64 = arith.constant 64 : index
    %32 = vector.load %arg5[%c0_18, %c64] : memref<49x72xf32, #tpu.memory_space<vmem>>, vector<7x8xf32>
    tpu.vector_store %arg5[%c0_18, %c64], %31 {strides = array<i32>} : memref<49x72xf32, #tpu.memory_space<vmem>>, vector<7x8xf32>,
    %c0_19 = arith.constant 0 : index
    %c2_20 = arith.constant 2 : index
    %c0_21 = arith.constant 0 : index
    %c0_22 = arith.constant 0 : index
    %33 = vector.load %arg1[%c0_19, %c2_20, %c0_21, %c0_22] : memref<1x16x8x16xbf16, #tpu.memory_space<vmem>>, vector<1x1x8x16xbf16>
    %34 = vector.shape_cast %33 : vector<1x1x8x16xbf16> to vector<8x16xbf16>
    %35 = vector.extract_strided_slice %34 {offsets = [0, 0], sizes = [7, 8], strides = [1, 1]} : vector<8x16xbf16> to vector<7x8xbf16>
    %36 = arith.extf %35 : vector<7x8xbf16> to vector<7x8xf32>
    %c7 = arith.constant 7 : index
    %c0_23 = arith.constant 0 : index
    %37 = vector.load %arg5[%c7, %c0_23] : memref<49x72xf32, #tpu.memory_space<vmem>>, vector<7x8xf32>
    tpu.vector_store %arg5[%c7, %c0_23], %36 {strides = array<i32>} : memref<49x72xf32, #tpu.memory_space<vmem>>, vector<7x8xf32>,
    %38 = vector.extract_strided_slice %34 {offsets = [0, 8], sizes = [7, 8], strides = [1, 1]} : vector<8x16xbf16> to vector<7x8xbf16>
    %39 = arith.extf %38 : vector<7x8xbf16> to vector<7x8xf32>
    %c7_24 = arith.constant 7 : index
    %c8_25 = arith.constant 8 : index
    %40 = vector.load %arg5[%c7_24, %c8_25] : memref<49x72xf32, #tpu.memory_space<vmem>>, vector<7x8xf32>
    tpu.vector_store %arg5[%c7_24, %c8_25], %39 {strides = array<i32>} : memref<49x72xf32, #tpu.memory_space<vmem>>, vector<7x8xf32>,
    %41 = vector.extract_strided_slice %34 {offsets = [1, 0], sizes = [7, 8], strides = [1, 1]} : vector<8x16xbf16> to vector<7x8xbf16>
    %42 = arith.extf %41 : vector<7x8xbf16> to vector<7x8xf32>
    %c7_26 = arith.constant 7 : index
    %c16_27 = arith.constant 16 : index
    %43 = vector.load %arg5[%c7_26, %c16_27] : memref<49x72xf32, #tpu.memory_space<vmem>>, vector<7x8xf32>
    tpu.vector_store %arg5[%c7_26, %c16_27], %42 {strides = array<i32>} : memref<49x72xf32, #tpu.memory_space<vmem>>, vector<7x8xf32>,
    %c0_28 = arith.constant 0 : index
    %c3 = arith.constant 3 : index
    %c0_29 = arith.constant 0 : index
    %c0_30 = arith.constant 0 : index
    %44 = vector.load %arg1[%c0_28, %c3, %c0_29, %c0_30] : memref<1x16x8x16xbf16, #tpu.memory_space<vmem>>, vector<1x1x8x16xbf16>
    %45 = vector.shape_cast %44 : vector<1x1x8x16xbf16> to vector<8x16xbf16>
    %46 = vector.extract_strided_slice %45 {offsets = [0, 0], sizes = [7, 8], strides = [1, 1]} : vector<8x16xbf16> to vector<7x8xbf16>
    %47 = arith.extf %46 : vector<7x8xbf16> to vector<7x8xf32>
    %c7_31 = arith.constant 7 : index
    %c24_32 = arith.constant 24 : index
    %48 = vector.load %arg5[%c7_31, %c24_32] : memref<49x72xf32, #tpu.memory_space<vmem>>, vector<7x8xf32>
    tpu.vector_store %arg5[%c7_31, %c24_32], %47 {strides = array<i32>} : memref<49x72xf32, #tpu.memory_space<vmem>>, vector<7x8xf32>,
    %49 = vector.extract_strided_slice %45 {offsets = [0, 8], sizes = [7, 8], strides = [1, 1]} : vector<8x16xbf16> to vector<7x8xbf16>
    %50 = arith.extf %49 : vector<7x8xbf16> to vector<7x8xf32>
    %c7_33 = arith.constant 7 : index
    %c32_34 = arith.constant 32 : index
    %51 = vector.load %arg5[%c7_33, %c32_34] : memref<49x72xf32, #tpu.memory_space<vmem>>, vector<7x8xf32>
    tpu.vector_store %arg5[%c7_33, %c32_34], %50 {strides = array<i32>} : memref<49x72xf32, #tpu.memory_space<vmem>>, vector<7x8xf32>,
    %52 = vector.extract_strided_slice %45 {offsets = [1, 0], sizes = [7, 8], strides = [1, 1]} : vector<8x16xbf16> to vector<7x8xbf16>
    %53 = arith.extf %52 : vector<7x8xbf16> to vector<7x8xf32>
    %c7_35 = arith.constant 7 : index
    %c40_36 = arith.constant 40 : index
    %54 = vector.load %arg5[%c7_35, %c40_36] : memref<49x72xf32, #tpu.memory_space<vmem>>, vector<7x8xf32>
    tpu.vector_store %arg5[%c7_35, %c40_36], %53 {strides = array<i32>} : memref<49x72xf32, #tpu.memory_space<vmem>>, vector<7x8xf32>,
    %c0_37 = arith.constant 0 : index
    %c4 = arith.constant 4 : index
    %c0_38 = arith.constant 0 : index
    %c0_39 = arith.constant 0 : index
    %55 = vector.load %arg1[%c0_37, %c4, %c0_38, %c0_39] : memref<1x16x8x16xbf16, #tpu.memory_space<vmem>>, vector<1x1x8x16xbf16>
    %56 = vector.shape_cast %55 : vector<1x1x8x16xbf16> to vector<8x16xbf16>
    %57 = vector.extract_strided_slice %56 {offsets = [0, 0], sizes = [7, 8], strides = [1, 1]} : vector<8x16xbf16> to vector<7x8xbf16>
    %58 = arith.extf %57 : vector<7x8xbf16> to vector<7x8xf32>
    %c7_40 = arith.constant 7 : index
    %c48_41 = arith.constant 48 : index
    %59 = vector.load %arg5[%c7_40, %c48_41] : memref<49x72xf32, #tpu.memory_space<vmem>>, vector<7x8xf32>
    tpu.vector_store %arg5[%c7_40, %c48_41], %58 {strides = array<i32>} : memref<49x72xf32, #tpu.memory_space<vmem>>, vector<7x8xf32>,
    %60 = vector.extract_strided_slice %56 {offsets = [0, 8], sizes = [7, 8], strides = [1, 1]} : vector<8x16xbf16> to vector<7x8xbf16>
    %61 = arith.extf %60 : vector<7x8xbf16> to vector<7x8xf32>
    %c7_42 = arith.constant 7 : index
    %c56_43 = arith.constant 56 : index
    %62 = vector.load %arg5[%c7_42, %c56_43] : memref<49x72xf32, #tpu.memory_space<vmem>>, vector<7x8xf32>
    tpu.vector_store %arg5[%c7_42, %c56_43], %61 {strides = array<i32>} : memref<49x72xf32, #tpu.memory_space<vmem>>, vector<7x8xf32>,
    %63 = vector.extract_strided_slice %56 {offsets = [1, 0], sizes = [7, 8], strides = [1, 1]} : vector<8x16xbf16> to vector<7x8xbf16>
    %64 = arith.extf %63 : vector<7x8xbf16> to vector<7x8xf32>
    %c7_44 = arith.constant 7 : index
    %c64_45 = arith.constant 64 : index
    %65 = vector.load %arg5[%c7_44, %c64_45] : memref<49x72xf32, #tpu.memory_space<vmem>>, vector<7x8xf32>
    tpu.vector_store %arg5[%c7_44, %c64_45], %64 {strides = array<i32>} : memref<49x72xf32, #tpu.memory_space<vmem>>, vector<7x8xf32>,
    %c0_46 = arith.constant 0 : index
    %c4_47 = arith.constant 4 : index
    %c0_48 = arith.constant 0 : index
    %c0_49 = arith.constant 0 : index
    %66 = vector.load %arg1[%c0_46, %c4_47, %c0_48, %c0_49] : memref<1x16x8x16xbf16, #tpu.memory_space<vmem>>, vector<1x1x8x16xbf16>
    %67 = vector.shape_cast %66 : vector<1x1x8x16xbf16> to vector<8x16xbf16>
    %68 = vector.extract_strided_slice %67 {offsets = [0, 0], sizes = [7, 8], strides = [1, 1]} : vector<8x16xbf16> to vector<7x8xbf16>
    %69 = arith.extf %68 : vector<7x8xbf16> to vector<7x8xf32>
    %c14 = arith.constant 14 : index
    %c0_50 = arith.constant 0 : index
    %70 = vector.load %arg5[%c14, %c0_50] : memref<49x72xf32, #tpu.memory_space<vmem>>, vector<7x8xf32>
    tpu.vector_store %arg5[%c14, %c0_50], %69 {strides = array<i32>} : memref<49x72xf32, #tpu.memory_space<vmem>>, vector<7x8xf32>,
    %71 = vector.extract_strided_slice %67 {offsets = [0, 8], sizes = [7, 8], strides = [1, 1]} : vector<8x16xbf16> to vector<7x8xbf16>
    %72 = arith.extf %71 : vector<7x8xbf16> to vector<7x8xf32>
    %c14_51 = arith.constant 14 : index
    %c8_52 = arith.constant 8 : index
    %73 = vector.load %arg5[%c14_51, %c8_52] : memref<49x72xf32, #tpu.memory_space<vmem>>, vector<7x8xf32>
    tpu.vector_store %arg5[%c14_51, %c8_52], %72 {strides = array<i32>} : memref<49x72xf32, #tpu.memory_space<vmem>>, vector<7x8xf32>,
    %74 = vector.extract_strided_slice %67 {offsets = [1, 0], sizes = [7, 8], strides = [1, 1]} : vector<8x16xbf16> to vector<7x8xbf16>
    %75 = arith.extf %74 : vector<7x8xbf16> to vector<7x8xf32>
    %c14_53 = arith.constant 14 : index
    %c16_54 = arith.constant 16 : index
    %76 = vector.load %arg5[%c14_53, %c16_54] : memref<49x72xf32, #tpu.memory_space<vmem>>, vector<7x8xf32>
    tpu.vector_store %arg5[%c14_53, %c16_54], %75 {strides = array<i32>} : memref<49x72xf32, #tpu.memory_space<vmem>>, vector<7x8xf32>,
    %c0_55 = arith.constant 0 : index
    %c5 = arith.constant 5 : index
    %c0_56 = arith.constant 0 : index
    %c0_57 = arith.constant 0 : index
    %77 = vector.load %arg1[%c0_55, %c5, %c0_56, %c0_57] : memref<1x16x8x16xbf16, #tpu.memory_space<vmem>>, vector<1x1x8x16xbf16>
    %78 = vector.shape_cast %77 : vector<1x1x8x16xbf16> to vector<8x16xbf16>
    %79 = vector.extract_strided_slice %78 {offsets = [0, 0], sizes = [7, 8], strides = [1, 1]} : vector<8x16xbf16> to vector<7x8xbf16>
    %80 = arith.extf %79 : vector<7x8xbf16> to vector<7x8xf32>
    %c14_58 = arith.constant 14 : index
    %c24_59 = arith.constant 24 : index
    %81 = vector.load %arg5[%c14_58, %c24_59] : memref<49x72xf32, #tpu.memory_space<vmem>>, vector<7x8xf32>
    tpu.vector_store %arg5[%c14_58, %c24_59], %80 {strides = array<i32>} : memref<49x72xf32, #tpu.memory_space<vmem>>, vector<7x8xf32>,
    %82 = vector.extract_strided_slice %78 {offsets = [0, 8], sizes = [7, 8], strides = [1, 1]} : vector<8x16xbf16> to vector<7x8xbf16>
    %83 = arith.extf %82 : vector<7x8xbf16> to vector<7x8xf32>
    %c14_60 = arith.constant 14 : index
    %c32_61 = arith.constant 32 : index
    %84 = vector.load %arg5[%c14_60, %c32_61] : memref<49x72xf32, #tpu.memory_space<vmem>>, vector<7x8xf32>
    tpu.vector_store %arg5[%c14_60, %c32_61], %83 {strides = array<i32>} : memref<49x72xf32, #tpu.memory_space<vmem>>, vector<7x8xf32>,
    %85 = vector.extract_strided_slice %78 {offsets = [1, 0], sizes = [7, 8], strides = [1, 1]} : vector<8x16xbf16> to vector<7x8xbf16>
    %86 = arith.extf %85 : vector<7x8xbf16> to vector<7x8xf32>
    %c14_62 = arith.constant 14 : index
    %c40_63 = arith.constant 40 : index
    %87 = vector.load %arg5[%c14_62, %c40_63] : memref<49x72xf32, #tpu.memory_space<vmem>>, vector<7x8xf32>
    tpu.vector_store %arg5[%c14_62, %c40_63], %86 {strides = array<i32>} : memref<49x72xf32, #tpu.memory_space<vmem>>, vector<7x8xf32>,
    %c0_64 = arith.constant 0 : index
    %c6 = arith.constant 6 : index
    %c0_65 = arith.constant 0 : index
    %c0_66 = arith.constant 0 : index
    %88 = vector.load %arg1[%c0_64, %c6, %c0_65, %c0_66] : memref<1x16x8x16xbf16, #tpu.memory_space<vmem>>, vector<1x1x8x16xbf16>
    %89 = vector.shape_cast %88 : vector<1x1x8x16xbf16> to vector<8x16xbf16>
    %90 = vector.extract_strided_slice %89 {offsets = [0, 0], sizes = [7, 8], strides = [1, 1]} : vector<8x16xbf16> to vector<7x8xbf16>
    %91 = arith.extf %90 : vector<7x8xbf16> to vector<7x8xf32>
    %c14_67 = arith.constant 14 : index
    %c48_68 = arith.constant 48 : index
    %92 = vector.load %arg5[%c14_67, %c48_68] : memref<49x72xf32, #tpu.memory_space<vmem>>, vector<7x8xf32>
    tpu.vector_store %arg5[%c14_67, %c48_68], %91 {strides = array<i32>} : memref<49x72xf32, #tpu.memory_space<vmem>>, vector<7x8xf32>,
    %93 = vector.extract_strided_slice %89 {offsets = [0, 8], sizes = [7, 8], strides = [1, 1]} : vector<8x16xbf16> to vector<7x8xbf16>
    %94 = arith.extf %93 : vector<7x8xbf16> to vector<7x8xf32>
    %c14_69 = arith.constant 14 : index
    %c56_70 = arith.constant 56 : index
    %95 = vector.load %arg5[%c14_69, %c56_70] : memref<49x72xf32, #tpu.memory_space<vmem>>, vector<7x8xf32>
    tpu.vector_store %arg5[%c14_69, %c56_70], %94 {strides = array<i32>} : memref<49x72xf32, #tpu.memory_space<vmem>>, vector<7x8xf32>,
    %96 = vector.extract_strided_slice %89 {offsets = [1, 0], sizes = [7, 8], strides = [1, 1]} : vector<8x16xbf16> to vector<7x8xbf16>
    %97 = arith.extf %96 : vector<7x8xbf16> to vector<7x8xf32>
    %c14_71 = arith.constant 14 : index
    %c64_72 = arith.constant 64 : index
    %98 = vector.load %arg5[%c14_71, %c64_72] : memref<49x72xf32, #tpu.memory_space<vmem>>, vector<7x8xf32>
    tpu.vector_store %arg5[%c14_71, %c64_72], %97 {strides = array<i32>} : memref<49x72xf32, #tpu.memory_space<vmem>>, vector<7x8xf32>,
    %c0_73 = arith.constant 0 : index
    %c6_74 = arith.constant 6 : index
    %c0_75 = arith.constant 0 : index
    %c0_76 = arith.constant 0 : index
    %99 = vector.load %arg1[%c0_73, %c6_74, %c0_75, %c0_76] : memref<1x16x8x16xbf16, #tpu.memory_space<vmem>>, vector<1x1x8x16xbf16>
    %100 = vector.shape_cast %99 : vector<1x1x8x16xbf16> to vector<8x16xbf16>
    %101 = vector.extract_strided_slice %100 {offsets = [0, 0], sizes = [7, 8], strides = [1, 1]} : vector<8x16xbf16> to vector<7x8xbf16>
    %102 = arith.extf %101 : vector<7x8xbf16> to vector<7x8xf32>
    %c21 = arith.constant 21 : index
    %c0_77 = arith.constant 0 : index
    %103 = vector.load %arg5[%c21, %c0_77] : memref<49x72xf32, #tpu.memory_space<vmem>>, vector<7x8xf32>
    tpu.vector_store %arg5[%c21, %c0_77], %102 {strides = array<i32>} : memref<49x72xf32, #tpu.memory_space<vmem>>, vector<7x8xf32>,
    %104 = vector.extract_strided_slice %100 {offsets = [0, 8], sizes = [7, 8], strides = [1, 1]} : vector<8x16xbf16> to vector<7x8xbf16>
    %105 = arith.extf %104 : vector<7x8xbf16> to vector<7x8xf32>
    %c21_78 = arith.constant 21 : index
    %c8_79 = arith.constant 8 : index
    %106 = vector.load %arg5[%c21_78, %c8_79] : memref<49x72xf32, #tpu.memory_space<vmem>>, vector<7x8xf32>
    tpu.vector_store %arg5[%c21_78, %c8_79], %105 {strides = array<i32>} : memref<49x72xf32, #tpu.memory_space<vmem>>, vector<7x8xf32>,
    %107 = vector.extract_strided_slice %100 {offsets = [1, 0], sizes = [7, 8], strides = [1, 1]} : vector<8x16xbf16> to vector<7x8xbf16>
    %108 = arith.extf %107 : vector<7x8xbf16> to vector<7x8xf32>
    %c21_80 = arith.constant 21 : index
    %c16_81 = arith.constant 16 : index
    %109 = vector.load %arg5[%c21_80, %c16_81] : memref<49x72xf32, #tpu.memory_space<vmem>>, vector<7x8xf32>
    tpu.vector_store %arg5[%c21_80, %c16_81], %108 {strides = array<i32>} : memref<49x72xf32, #tpu.memory_space<vmem>>, vector<7x8xf32>,
    %c0_82 = arith.constant 0 : index
    %c7_83 = arith.constant 7 : index
    %c0_84 = arith.constant 0 : index
    %c0_85 = arith.constant 0 : index
    %110 = vector.load %arg1[%c0_82, %c7_83, %c0_84, %c0_85] : memref<1x16x8x16xbf16, #tpu.memory_space<vmem>>, vector<1x1x8x16xbf16>
    %111 = vector.shape_cast %110 : vector<1x1x8x16xbf16> to vector<8x16xbf16>
    %112 = vector.extract_strided_slice %111 {offsets = [0, 0], sizes = [7, 8], strides = [1, 1]} : vector<8x16xbf16> to vector<7x8xbf16>
    %113 = arith.extf %112 : vector<7x8xbf16> to vector<7x8xf32>
    %c21_86 = arith.constant 21 : index
    %c24_87 = arith.constant 24 : index
    %114 = vector.load %arg5[%c21_86, %c24_87] : memref<49x72xf32, #tpu.memory_space<vmem>>, vector<7x8xf32>
    tpu.vector_store %arg5[%c21_86, %c24_87], %113 {strides = array<i32>} : memref<49x72xf32, #tpu.memory_space<vmem>>, vector<7x8xf32>,
    %115 = vector.extract_strided_slice %111 {offsets = [0, 8], sizes = [7, 8], strides = [1, 1]} : vector<8x16xbf16> to vector<7x8xbf16>
    %116 = arith.extf %115 : vector<7x8xbf16> to vector<7x8xf32>
    %c21_88 = arith.constant 21 : index
    %c32_89 = arith.constant 32 : index
    %117 = vector.load %arg5[%c21_88, %c32_89] : memref<49x72xf32, #tpu.memory_space<vmem>>, vector<7x8xf32>
    tpu.vector_store %arg5[%c21_88, %c32_89], %116 {strides = array<i32>} : memref<49x72xf32, #tpu.memory_space<vmem>>, vector<7x8xf32>,
    %118 = vector.extract_strided_slice %111 {offsets = [1, 0], sizes = [7, 8], strides = [1, 1]} : vector<8x16xbf16> to vector<7x8xbf16>
    %119 = arith.extf %118 : vector<7x8xbf16> to vector<7x8xf32>
    %c21_90 = arith.constant 21 : index
    %c40_91 = arith.constant 40 : index
    %120 = vector.load %arg5[%c21_90, %c40_91] : memref<49x72xf32, #tpu.memory_space<vmem>>, vector<7x8xf32>
    tpu.vector_store %arg5[%c21_90, %c40_91], %119 {strides = array<i32>} : memref<49x72xf32, #tpu.memory_space<vmem>>, vector<7x8xf32>,
    %c0_92 = arith.constant 0 : index
    %c8_93 = arith.constant 8 : index
    %c0_94 = arith.constant 0 : index
    %c0_95 = arith.constant 0 : index
    %121 = vector.load %arg1[%c0_92, %c8_93, %c0_94, %c0_95] : memref<1x16x8x16xbf16, #tpu.memory_space<vmem>>, vector<1x1x8x16xbf16>
    %122 = vector.shape_cast %121 : vector<1x1x8x16xbf16> to vector<8x16xbf16>
    %123 = vector.extract_strided_slice %122 {offsets = [0, 0], sizes = [7, 8], strides = [1, 1]} : vector<8x16xbf16> to vector<7x8xbf16>
    %124 = arith.extf %123 : vector<7x8xbf16> to vector<7x8xf32>
    %c21_96 = arith.constant 21 : index
    %c48_97 = arith.constant 48 : index
    %125 = vector.load %arg5[%c21_96, %c48_97] : memref<49x72xf32, #tpu.memory_space<vmem>>, vector<7x8xf32>
    tpu.vector_store %arg5[%c21_96, %c48_97], %124 {strides = array<i32>} : memref<49x72xf32, #tpu.memory_space<vmem>>, vector<7x8xf32>,
    %126 = vector.extract_strided_slice %122 {offsets = [0, 8], sizes = [7, 8], strides = [1, 1]} : vector<8x16xbf16> to vector<7x8xbf16>
    %127 = arith.extf %126 : vector<7x8xbf16> to vector<7x8xf32>
    %c21_98 = arith.constant 21 : index
    %c56_99 = arith.constant 56 : index
    %128 = vector.load %arg5[%c21_98, %c56_99] : memref<49x72xf32, #tpu.memory_space<vmem>>, vector<7x8xf32>
    tpu.vector_store %arg5[%c21_98, %c56_99], %127 {strides = array<i32>} : memref<49x72xf32, #tpu.memory_space<vmem>>, vector<7x8xf32>,
    %129 = vector.extract_strided_slice %122 {offsets = [1, 0], sizes = [7, 8], strides = [1, 1]} : vector<8x16xbf16> to vector<7x8xbf16>
    %130 = arith.extf %129 : vector<7x8xbf16> to vector<7x8xf32>
    %c21_100 = arith.constant 21 : index
    %c64_101 = arith.constant 64 : index
    %131 = vector.load %arg5[%c21_100, %c64_101] : memref<49x72xf32, #tpu.memory_space<vmem>>, vector<7x8xf32>
    tpu.vector_store %arg5[%c21_100, %c64_101], %130 {strides = array<i32>} : memref<49x72xf32, #tpu.memory_space<vmem>>, vector<7x8xf32>,
    %c0_102 = arith.constant 0 : index
    %c8_103 = arith.constant 8 : index
    %c0_104 = arith.constant 0 : index
    %c0_105 = arith.constant 0 : index
    %132 = vector.load %arg1[%c0_102, %c8_103, %c0_104, %c0_105] : memref<1x16x8x16xbf16, #tpu.memory_space<vmem>>, vector<1x1x8x16xbf16>
    %133 = vector.shape_cast %132 : vector<1x1x8x16xbf16> to vector<8x16xbf16>
    %134 = vector.extract_strided_slice %133 {offsets = [0, 0], sizes = [7, 8], strides = [1, 1]} : vector<8x16xbf16> to vector<7x8xbf16>
    %135 = arith.extf %134 : vector<7x8xbf16> to vector<7x8xf32>
    %c28 = arith.constant 28 : index
    %c0_106 = arith.constant 0 : index
    %136 = vector.load %arg5[%c28, %c0_106] : memref<49x72xf32, #tpu.memory_space<vmem>>, vector<7x8xf32>
    tpu.vector_store %arg5[%c28, %c0_106], %135 {strides = array<i32>} : memref<49x72xf32, #tpu.memory_space<vmem>>, vector<7x8xf32>,
    %137 = vector.extract_strided_slice %133 {offsets = [0, 8], sizes = [7, 8], strides = [1, 1]} : vector<8x16xbf16> to vector<7x8xbf16>
    %138 = arith.extf %137 : vector<7x8xbf16> to vector<7x8xf32>
    %c28_107 = arith.constant 28 : index
    %c8_108 = arith.constant 8 : index
    %139 = vector.load %arg5[%c28_107, %c8_108] : memref<49x72xf32, #tpu.memory_space<vmem>>, vector<7x8xf32>
    tpu.vector_store %arg5[%c28_107, %c8_108], %138 {strides = array<i32>} : memref<49x72xf32, #tpu.memory_space<vmem>>, vector<7x8xf32>,
    %140 = vector.extract_strided_slice %133 {offsets = [1, 0], sizes = [7, 8], strides = [1, 1]} : vector<8x16xbf16> to vector<7x8xbf16>
    %141 = arith.extf %140 : vector<7x8xbf16> to vector<7x8xf32>
    %c28_109 = arith.constant 28 : index
    %c16_110 = arith.constant 16 : index
    %142 = vector.load %arg5[%c28_109, %c16_110] : memref<49x72xf32, #tpu.memory_space<vmem>>, vector<7x8xf32>
    tpu.vector_store %arg5[%c28_109, %c16_110], %141 {strides = array<i32>} : memref<49x72xf32, #tpu.memory_space<vmem>>, vector<7x8xf32>,
    %c0_111 = arith.constant 0 : index
    %c9 = arith.constant 9 : index
    %c0_112 = arith.constant 0 : index
    %c0_113 = arith.constant 0 : index
    %143 = vector.load %arg1[%c0_111, %c9, %c0_112, %c0_113] : memref<1x16x8x16xbf16, #tpu.memory_space<vmem>>, vector<1x1x8x16xbf16>
    %144 = vector.shape_cast %143 : vector<1x1x8x16xbf16> to vector<8x16xbf16>
    %145 = vector.extract_strided_slice %144 {offsets = [0, 0], sizes = [7, 8], strides = [1, 1]} : vector<8x16xbf16> to vector<7x8xbf16>
    %146 = arith.extf %145 : vector<7x8xbf16> to vector<7x8xf32>
    %c28_114 = arith.constant 28 : index
    %c24_115 = arith.constant 24 : index
    %147 = vector.load %arg5[%c28_114, %c24_115] : memref<49x72xf32, #tpu.memory_space<vmem>>, vector<7x8xf32>
    tpu.vector_store %arg5[%c28_114, %c24_115], %146 {strides = array<i32>} : memref<49x72xf32, #tpu.memory_space<vmem>>, vector<7x8xf32>,
    %148 = vector.extract_strided_slice %144 {offsets = [0, 8], sizes = [7, 8], strides = [1, 1]} : vector<8x16xbf16> to vector<7x8xbf16>
    %149 = arith.extf %148 : vector<7x8xbf16> to vector<7x8xf32>
    %c28_116 = arith.constant 28 : index
    %c32_117 = arith.constant 32 : index
    %150 = vector.load %arg5[%c28_116, %c32_117] : memref<49x72xf32, #tpu.memory_space<vmem>>, vector<7x8xf32>
    tpu.vector_store %arg5[%c28_116, %c32_117], %149 {strides = array<i32>} : memref<49x72xf32, #tpu.memory_space<vmem>>, vector<7x8xf32>,
    %151 = vector.extract_strided_slice %144 {offsets = [1, 0], sizes = [7, 8], strides = [1, 1]} : vector<8x16xbf16> to vector<7x8xbf16>
    %152 = arith.extf %151 : vector<7x8xbf16> to vector<7x8xf32>
    %c28_118 = arith.constant 28 : index
    %c40_119 = arith.constant 40 : index
    %153 = vector.load %arg5[%c28_118, %c40_119] : memref<49x72xf32, #tpu.memory_space<vmem>>, vector<7x8xf32>
    tpu.vector_store %arg5[%c28_118, %c40_119], %152 {strides = array<i32>} : memref<49x72xf32, #tpu.memory_space<vmem>>, vector<7x8xf32>,
    %c0_120 = arith.constant 0 : index
    %c10 = arith.constant 10 : index
    %c0_121 = arith.constant 0 : index
    %c0_122 = arith.constant 0 : index
    %154 = vector.load %arg1[%c0_120, %c10, %c0_121, %c0_122] : memref<1x16x8x16xbf16, #tpu.memory_space<vmem>>, vector<1x1x8x16xbf16>
    %155 = vector.shape_cast %154 : vector<1x1x8x16xbf16> to vector<8x16xbf16>
    %156 = vector.extract_strided_slice %155 {offsets = [0, 0], sizes = [7, 8], strides = [1, 1]} : vector<8x16xbf16> to vector<7x8xbf16>
    %157 = arith.extf %156 : vector<7x8xbf16> to vector<7x8xf32>
    %c28_123 = arith.constant 28 : index
    %c48_124 = arith.constant 48 : index
    %158 = vector.load %arg5[%c28_123, %c48_124] : memref<49x72xf32, #tpu.memory_space<vmem>>, vector<7x8xf32>
    tpu.vector_store %arg5[%c28_123, %c48_124], %157 {strides = array<i32>} : memref<49x72xf32, #tpu.memory_space<vmem>>, vector<7x8xf32>,
    %159 = vector.extract_strided_slice %155 {offsets = [0, 8], sizes = [7, 8], strides = [1, 1]} : vector<8x16xbf16> to vector<7x8xbf16>
    %160 = arith.extf %159 : vector<7x8xbf16> to vector<7x8xf32>
    %c28_125 = arith.constant 28 : index
    %c56_126 = arith.constant 56 : index
    %161 = vector.load %arg5[%c28_125, %c56_126] : memref<49x72xf32, #tpu.memory_space<vmem>>, vector<7x8xf32>
    tpu.vector_store %arg5[%c28_125, %c56_126], %160 {strides = array<i32>} : memref<49x72xf32, #tpu.memory_space<vmem>>, vector<7x8xf32>,
    %162 = vector.extract_strided_slice %155 {offsets = [1, 0], sizes = [7, 8], strides = [1, 1]} : vector<8x16xbf16> to vector<7x8xbf16>
    %163 = arith.extf %162 : vector<7x8xbf16> to vector<7x8xf32>
    %c28_127 = arith.constant 28 : index
    %c64_128 = arith.constant 64 : index
    %164 = vector.load %arg5[%c28_127, %c64_128] : memref<49x72xf32, #tpu.memory_space<vmem>>, vector<7x8xf32>
    tpu.vector_store %arg5[%c28_127, %c64_128], %163 {strides = array<i32>} : memref<49x72xf32, #tpu.memory_space<vmem>>, vector<7x8xf32>,
    %c0_129 = arith.constant 0 : index
    %c10_130 = arith.constant 10 : index
    %c0_131 = arith.constant 0 : index
    %c0_132 = arith.constant 0 : index
    %165 = vector.load %arg1[%c0_129, %c10_130, %c0_131, %c0_132] : memref<1x16x8x16xbf16, #tpu.memory_space<vmem>>, vector<1x1x8x16xbf16>
    %166 = vector.shape_cast %165 : vector<1x1x8x16xbf16> to vector<8x16xbf16>
    %167 = vector.extract_strided_slice %166 {offsets = [0, 0], sizes = [7, 8], strides = [1, 1]} : vector<8x16xbf16> to vector<7x8xbf16>
    %168 = arith.extf %167 : vector<7x8xbf16> to vector<7x8xf32>
    %c35 = arith.constant 35 : index
    %c0_133 = arith.constant 0 : index
    %169 = vector.load %arg5[%c35, %c0_133] : memref<49x72xf32, #tpu.memory_space<vmem>>, vector<7x8xf32>
    tpu.vector_store %arg5[%c35, %c0_133], %168 {strides = array<i32>} : memref<49x72xf32, #tpu.memory_space<vmem>>, vector<7x8xf32>,
    %170 = vector.extract_strided_slice %166 {offsets = [0, 8], sizes = [7, 8], strides = [1, 1]} : vector<8x16xbf16> to vector<7x8xbf16>
    %171 = arith.extf %170 : vector<7x8xbf16> to vector<7x8xf32>
    %c35_134 = arith.constant 35 : index
    %c8_135 = arith.constant 8 : index
    %172 = vector.load %arg5[%c35_134, %c8_135] : memref<49x72xf32, #tpu.memory_space<vmem>>, vector<7x8xf32>
    tpu.vector_store %arg5[%c35_134, %c8_135], %171 {strides = array<i32>} : memref<49x72xf32, #tpu.memory_space<vmem>>, vector<7x8xf32>,
    %173 = vector.extract_strided_slice %166 {offsets = [1, 0], sizes = [7, 8], strides = [1, 1]} : vector<8x16xbf16> to vector<7x8xbf16>
    %174 = arith.extf %173 : vector<7x8xbf16> to vector<7x8xf32>
    %c35_136 = arith.constant 35 : index
    %c16_137 = arith.constant 16 : index
    %175 = vector.load %arg5[%c35_136, %c16_137] : memref<49x72xf32, #tpu.memory_space<vmem>>, vector<7x8xf32>
    tpu.vector_store %arg5[%c35_136, %c16_137], %174 {strides = array<i32>} : memref<49x72xf32, #tpu.memory_space<vmem>>, vector<7x8xf32>,
    %c0_138 = arith.constant 0 : index
    %c11 = arith.constant 11 : index
    %c0_139 = arith.constant 0 : index
    %c0_140 = arith.constant 0 : index
    %176 = vector.load %arg1[%c0_138, %c11, %c0_139, %c0_140] : memref<1x16x8x16xbf16, #tpu.memory_space<vmem>>, vector<1x1x8x16xbf16>
    %177 = vector.shape_cast %176 : vector<1x1x8x16xbf16> to vector<8x16xbf16>
    %178 = vector.extract_strided_slice %177 {offsets = [0, 0], sizes = [7, 8], strides = [1, 1]} : vector<8x16xbf16> to vector<7x8xbf16>
    %179 = arith.extf %178 : vector<7x8xbf16> to vector<7x8xf32>
    %c35_141 = arith.constant 35 : index
    %c24_142 = arith.constant 24 : index
    %180 = vector.load %arg5[%c35_141, %c24_142] : memref<49x72xf32, #tpu.memory_space<vmem>>, vector<7x8xf32>
    tpu.vector_store %arg5[%c35_141, %c24_142], %179 {strides = array<i32>} : memref<49x72xf32, #tpu.memory_space<vmem>>, vector<7x8xf32>,
    %181 = vector.extract_strided_slice %177 {offsets = [0, 8], sizes = [7, 8], strides = [1, 1]} : vector<8x16xbf16> to vector<7x8xbf16>
    %182 = arith.extf %181 : vector<7x8xbf16> to vector<7x8xf32>
    %c35_143 = arith.constant 35 : index
    %c32_144 = arith.constant 32 : index
    %183 = vector.load %arg5[%c35_143, %c32_144] : memref<49x72xf32, #tpu.memory_space<vmem>>, vector<7x8xf32>
    tpu.vector_store %arg5[%c35_143, %c32_144], %182 {strides = array<i32>} : memref<49x72xf32, #tpu.memory_space<vmem>>, vector<7x8xf32>,
    %184 = vector.extract_strided_slice %177 {offsets = [1, 0], sizes = [7, 8], strides = [1, 1]} : vector<8x16xbf16> to vector<7x8xbf16>
    %185 = arith.extf %184 : vector<7x8xbf16> to vector<7x8xf32>
    %c35_145 = arith.constant 35 : index
    %c40_146 = arith.constant 40 : index
    %186 = vector.load %arg5[%c35_145, %c40_146] : memref<49x72xf32, #tpu.memory_space<vmem>>, vector<7x8xf32>
    tpu.vector_store %arg5[%c35_145, %c40_146], %185 {strides = array<i32>} : memref<49x72xf32, #tpu.memory_space<vmem>>, vector<7x8xf32>,
    %c0_147 = arith.constant 0 : index
    %c12 = arith.constant 12 : index
    %c0_148 = arith.constant 0 : index
    %c0_149 = arith.constant 0 : index
    %187 = vector.load %arg1[%c0_147, %c12, %c0_148, %c0_149] : memref<1x16x8x16xbf16, #tpu.memory_space<vmem>>, vector<1x1x8x16xbf16>
    %188 = vector.shape_cast %187 : vector<1x1x8x16xbf16> to vector<8x16xbf16>
    %189 = vector.extract_strided_slice %188 {offsets = [0, 0], sizes = [7, 8], strides = [1, 1]} : vector<8x16xbf16> to vector<7x8xbf16>
    %190 = arith.extf %189 : vector<7x8xbf16> to vector<7x8xf32>
    %c35_150 = arith.constant 35 : index
    %c48_151 = arith.constant 48 : index
    %191 = vector.load %arg5[%c35_150, %c48_151] : memref<49x72xf32, #tpu.memory_space<vmem>>, vector<7x8xf32>
    tpu.vector_store %arg5[%c35_150, %c48_151], %190 {strides = array<i32>} : memref<49x72xf32, #tpu.memory_space<vmem>>, vector<7x8xf32>,
    %192 = vector.extract_strided_slice %188 {offsets = [0, 8], sizes = [7, 8], strides = [1, 1]} : vector<8x16xbf16> to vector<7x8xbf16>
    %193 = arith.extf %192 : vector<7x8xbf16> to vector<7x8xf32>
    %c35_152 = arith.constant 35 : index
    %c56_153 = arith.constant 56 : index
    %194 = vector.load %arg5[%c35_152, %c56_153] : memref<49x72xf32, #tpu.memory_space<vmem>>, vector<7x8xf32>
    tpu.vector_store %arg5[%c35_152, %c56_153], %193 {strides = array<i32>} : memref<49x72xf32, #tpu.memory_space<vmem>>, vector<7x8xf32>,
    %195 = vector.extract_strided_slice %188 {offsets = [1, 0], sizes = [7, 8], strides = [1, 1]} : vector<8x16xbf16> to vector<7x8xbf16>
    %196 = arith.extf %195 : vector<7x8xbf16> to vector<7x8xf32>
    %c35_154 = arith.constant 35 : index
    %c64_155 = arith.constant 64 : index
    %197 = vector.load %arg5[%c35_154, %c64_155] : memref<49x72xf32, #tpu.memory_space<vmem>>, vector<7x8xf32>
    tpu.vector_store %arg5[%c35_154, %c64_155], %196 {strides = array<i32>} : memref<49x72xf32, #tpu.memory_space<vmem>>, vector<7x8xf32>,
    %c0_156 = arith.constant 0 : index
    %c12_157 = arith.constant 12 : index
    %c0_158 = arith.constant 0 : index
    %c0_159 = arith.constant 0 : index
    %198 = vector.load %arg1[%c0_156, %c12_157, %c0_158, %c0_159] : memref<1x16x8x16xbf16, #tpu.memory_space<vmem>>, vector<1x1x8x16xbf16>
    %199 = vector.shape_cast %198 : vector<1x1x8x16xbf16> to vector<8x16xbf16>
    %200 = vector.extract_strided_slice %199 {offsets = [0, 0], sizes = [7, 8], strides = [1, 1]} : vector<8x16xbf16> to vector<7x8xbf16>
    %201 = arith.extf %200 : vector<7x8xbf16> to vector<7x8xf32>
    %c42 = arith.constant 42 : index
    %c0_160 = arith.constant 0 : index
    %202 = vector.load %arg5[%c42, %c0_160] : memref<49x72xf32, #tpu.memory_space<vmem>>, vector<7x8xf32>
    tpu.vector_store %arg5[%c42, %c0_160], %201 {strides = array<i32>} : memref<49x72xf32, #tpu.memory_space<vmem>>, vector<7x8xf32>,
    %203 = vector.extract_strided_slice %199 {offsets = [0, 8], sizes = [7, 8], strides = [1, 1]} : vector<8x16xbf16> to vector<7x8xbf16>
    %204 = arith.extf %203 : vector<7x8xbf16> to vector<7x8xf32>
    %c42_161 = arith.constant 42 : index
    %c8_162 = arith.constant 8 : index
    %205 = vector.load %arg5[%c42_161, %c8_162] : memref<49x72xf32, #tpu.memory_space<vmem>>, vector<7x8xf32>
    tpu.vector_store %arg5[%c42_161, %c8_162], %204 {strides = array<i32>} : memref<49x72xf32, #tpu.memory_space<vmem>>, vector<7x8xf32>,
    %206 = vector.extract_strided_slice %199 {offsets = [1, 0], sizes = [7, 8], strides = [1, 1]} : vector<8x16xbf16> to vector<7x8xbf16>
    %207 = arith.extf %206 : vector<7x8xbf16> to vector<7x8xf32>
    %c42_163 = arith.constant 42 : index
    %c16_164 = arith.constant 16 : index
    %208 = vector.load %arg5[%c42_163, %c16_164] : memref<49x72xf32, #tpu.memory_space<vmem>>, vector<7x8xf32>
    tpu.vector_store %arg5[%c42_163, %c16_164], %207 {strides = array<i32>} : memref<49x72xf32, #tpu.memory_space<vmem>>, vector<7x8xf32>,
    %c0_165 = arith.constant 0 : index
    %c13 = arith.constant 13 : index
    %c0_166 = arith.constant 0 : index
    %c0_167 = arith.constant 0 : index
    %209 = vector.load %arg1[%c0_165, %c13, %c0_166, %c0_167] : memref<1x16x8x16xbf16, #tpu.memory_space<vmem>>, vector<1x1x8x16xbf16>
    %210 = vector.shape_cast %209 : vector<1x1x8x16xbf16> to vector<8x16xbf16>
    %211 = vector.extract_strided_slice %210 {offsets = [0, 0], sizes = [7, 8], strides = [1, 1]} : vector<8x16xbf16> to vector<7x8xbf16>
    %212 = arith.extf %211 : vector<7x8xbf16> to vector<7x8xf32>
    %c42_168 = arith.constant 42 : index
    %c24_169 = arith.constant 24 : index
    %213 = vector.load %arg5[%c42_168, %c24_169] : memref<49x72xf32, #tpu.memory_space<vmem>>, vector<7x8xf32>
    tpu.vector_store %arg5[%c42_168, %c24_169], %212 {strides = array<i32>} : memref<49x72xf32, #tpu.memory_space<vmem>>, vector<7x8xf32>,
    %214 = vector.extract_strided_slice %210 {offsets = [0, 8], sizes = [7, 8], strides = [1, 1]} : vector<8x16xbf16> to vector<7x8xbf16>
    %215 = arith.extf %214 : vector<7x8xbf16> to vector<7x8xf32>
    %c42_170 = arith.constant 42 : index
    %c32_171 = arith.constant 32 : index
    %216 = vector.load %arg5[%c42_170, %c32_171] : memref<49x72xf32, #tpu.memory_space<vmem>>, vector<7x8xf32>
    tpu.vector_store %arg5[%c42_170, %c32_171], %215 {strides = array<i32>} : memref<49x72xf32, #tpu.memory_space<vmem>>, vector<7x8xf32>,
    %217 = vector.extract_strided_slice %210 {offsets = [1, 0], sizes = [7, 8], strides = [1, 1]} : vector<8x16xbf16> to vector<7x8xbf16>
    %218 = arith.extf %217 : vector<7x8xbf16> to vector<7x8xf32>
    %c42_172 = arith.constant 42 : index
    %c40_173 = arith.constant 40 : index
    %219 = vector.load %arg5[%c42_172, %c40_173] : memref<49x72xf32, #tpu.memory_space<vmem>>, vector<7x8xf32>
    tpu.vector_store %arg5[%c42_172, %c40_173], %218 {strides = array<i32>} : memref<49x72xf32, #tpu.memory_space<vmem>>, vector<7x8xf32>,
    %c0_174 = arith.constant 0 : index
    %c14_175 = arith.constant 14 : index
    %c0_176 = arith.constant 0 : index
    %c0_177 = arith.constant 0 : index
    %220 = vector.load %arg1[%c0_174, %c14_175, %c0_176, %c0_177] : memref<1x16x8x16xbf16, #tpu.memory_space<vmem>>, vector<1x1x8x16xbf16>
    %221 = vector.shape_cast %220 : vector<1x1x8x16xbf16> to vector<8x16xbf16>
    %222 = vector.extract_strided_slice %221 {offsets = [0, 0], sizes = [7, 8], strides = [1, 1]} : vector<8x16xbf16> to vector<7x8xbf16>
    %223 = arith.extf %222 : vector<7x8xbf16> to vector<7x8xf32>
    %c42_178 = arith.constant 42 : index
    %c48_179 = arith.constant 48 : index
    %224 = vector.load %arg5[%c42_178, %c48_179] : memref<49x72xf32, #tpu.memory_space<vmem>>, vector<7x8xf32>
    tpu.vector_store %arg5[%c42_178, %c48_179], %223 {strides = array<i32>} : memref<49x72xf32, #tpu.memory_space<vmem>>, vector<7x8xf32>,
    %225 = vector.extract_strided_slice %221 {offsets = [0, 8], sizes = [7, 8], strides = [1, 1]} : vector<8x16xbf16> to vector<7x8xbf16>
    %226 = arith.extf %225 : vector<7x8xbf16> to vector<7x8xf32>
    %c42_180 = arith.constant 42 : index
    %c56_181 = arith.constant 56 : index
    %227 = vector.load %arg5[%c42_180, %c56_181] : memref<49x72xf32, #tpu.memory_space<vmem>>, vector<7x8xf32>
    tpu.vector_store %arg5[%c42_180, %c56_181], %226 {strides = array<i32>} : memref<49x72xf32, #tpu.memory_space<vmem>>, vector<7x8xf32>,
    %228 = vector.extract_strided_slice %221 {offsets = [1, 0], sizes = [7, 8], strides = [1, 1]} : vector<8x16xbf16> to vector<7x8xbf16>
    %229 = arith.extf %228 : vector<7x8xbf16> to vector<7x8xf32>
    %c42_182 = arith.constant 42 : index
    %c64_183 = arith.constant 64 : index
    %230 = vector.load %arg5[%c42_182, %c64_183] : memref<49x72xf32, #tpu.memory_space<vmem>>, vector<7x8xf32>
    tpu.vector_store %arg5[%c42_182, %c64_183], %229 {strides = array<i32>} : memref<49x72xf32, #tpu.memory_space<vmem>>, vector<7x8xf32>,
    %c0_184 = arith.constant 0 : index
    %c0_185 = arith.constant 0 : index
    %231 = vector.load %arg5[%c0_184, %c0_185] : memref<49x72xf32, #tpu.memory_space<vmem>>, vector<49x72xf32>
    %232 = arith.truncf %231 : vector<49x72xf32> to vector<49x72xbf16>
    %c0_186 = arith.constant 0 : index
    %c0_187 = arith.constant 0 : index
    %233 = vector.load %arg2[%c0_186, %c0_187] : memref<72x8xbf16, #tpu.memory_space<vmem>>, vector<72x8xbf16>
    %cst = arith.constant dense<0.000000e+00> : vector<49x8xf32>
    %234 = tpu.matmul %232, %233, %cst {dimension_numbers = #tpu.dot_dimension_numbers<[1], [0], [0], [1], [0, 0, 1, 1], [], []>} : vector<49x72xbf16>, vector<72x8xbf16>, vector<49x8xf32> -> vector<49x8xf32>
    %c0_188 = arith.constant 0 : index
    %c0_189 = arith.constant 0 : index
    %235 = vector.load %arg3[%c0_188, %c0_189] : memref<1x8xf32, #tpu.memory_space<vmem>>, vector<1x8xf32>
    %236 = vector.broadcast %235 : vector<1x8xf32> to vector<49x8xf32>
    %237 = arith.addf %234, %236 : vector<49x8xf32>
    %cst_190 = arith.constant 0.000000e+00 : f32
    %238 = vector.broadcast %cst_190 : f32 to vector<49x8xf32>
    %239 = arith.maximumf %237, %238 : vector<49x8xf32>
    %240 = arith.truncf %239 : vector<49x8xf32> to vector<49x8xbf16>
    %c0_191 = arith.constant 0 : index
    %c0_192 = arith.constant 0 : index
    %c0_193 = arith.constant 0 : index
    %241 = vector.load %arg4[%c0_191, %c0_192, %c0_193] : memref<1x49x8xbf16, #tpu.memory_space<vmem>>, vector<1x49x8xbf16>
    %242 = vector.shape_cast %241 : vector<1x49x8xbf16> to vector<49x8xbf16>
    %243 = vector.shape_cast %240 : vector<49x8xbf16> to vector<1x49x8xbf16>
    tpu.vector_store %arg4[%c0_191, %c0_192, %c0_193], %243 {strides = array<i32>} : memref<1x49x8xbf16, #tpu.memory_space<vmem>>, vector<1x49x8xbf16>,
    return
  }
  func.func @transform_0(%arg0: i32) -> (i32, i32, i32, i32) {
    %c0_i32 = arith.constant 0 : i32
    %c0_i32_0 = arith.constant 0 : i32
    %c0_i32_1 = arith.constant 0 : i32
    %c0_i32_2 = arith.constant 0 : i32
    return %arg0, %c0_i32, %c0_i32_0, %c0_i32_1 : i32, i32, i32, i32
  }
  func.func @transform_1(%arg0: i32) -> (i32, i32) {
    %c0_i32 = arith.constant 0 : i32
    %c0_i32_0 = arith.constant 0 : i32
    %c0_i32_1 = arith.constant 0 : i32
    return %c0_i32, %c0_i32_0 : i32, i32
  }
  func.func @transform_2(%arg0: i32) -> (i32, i32) {
    %c0_i32 = arith.constant 0 : i32
    %c0_i32_0 = arith.constant 0 : i32
    %c0_i32_1 = arith.constant 0 : i32
    return %c0_i32, %c0_i32_0 : i32, i32
  }
  func.func @transform_3(%arg0: i32) -> (i32, i32, i32) {
    %c0_i32 = arith.constant 0 : i32
    %c0_i32_0 = arith.constant 0 : i32
    %c0_i32_1 = arith.constant 0 : i32
    return %arg0, %c0_i32, %c0_i32_0 : i32, i32, i32
  }
}

module attributes {stable_mosaic.version = 11 : i64} {
  func.func @kernel(%arg0: i32, %arg1: memref<1x18x18x8xbf16, #tpu.memory_space<vmem>>, %arg2: memref<72x8xbf16, #tpu.memory_space<vmem>>, %arg3: memref<1x8xf32, #tpu.memory_space<vmem>>, %arg4: memref<1x256x8xbf16, #tpu.memory_space<vmem>>, %arg5: memref<256x72xf32, #tpu.memory_space<vmem>>) attributes {dimension_semantics = [#tpu.dimension_semantics<parallel>], iteration_bounds = array<i64: 2>, scalar_prefetch = 0 : i64, scratch_operands = 1 : i64, tpu.core_type = #tpu.core_type<tc>, window_params = [{transform_indices = @transform_0, window_bounds = array<i64: 1, 18, 18, 8>}, {pipeline_mode = #tpu.pipeline_mode<synchronous>, transform_indices = @transform_1, window_bounds = array<i64: 72, 8>}, {pipeline_mode = #tpu.pipeline_mode<synchronous>, transform_indices = @transform_2, window_bounds = array<i64: 1, 8>}, {transform_indices = @transform_3, window_bounds = array<i64: 1, 256, 8>}]} {
    %c0 = arith.constant 0 : index
    %c0_0 = arith.constant 0 : index
    %c0_1 = arith.constant 0 : index
    %c0_2 = arith.constant 0 : index
    %0 = vector.load %arg1[%c0, %c0_0, %c0_1, %c0_2] : memref<1x18x18x8xbf16, #tpu.memory_space<vmem>>, vector<1x1x18x8xbf16>
    %1 = vector.shape_cast %0 : vector<1x1x18x8xbf16> to vector<18x8xbf16>
    %2 = vector.extract_strided_slice %1 {offsets = [0, 0], sizes = [16, 8], strides = [1, 1]} : vector<18x8xbf16> to vector<16x8xbf16>
    %3 = arith.extf %2 : vector<16x8xbf16> to vector<16x8xf32>
    %c0_3 = arith.constant 0 : index
    %c0_4 = arith.constant 0 : index
    %4 = vector.load %arg5[%c0_3, %c0_4] : memref<256x72xf32, #tpu.memory_space<vmem>>, vector<16x8xf32>
    tpu.vector_store %arg5[%c0_3, %c0_4], %3 {strides = array<i32>} : memref<256x72xf32, #tpu.memory_space<vmem>>, vector<16x8xf32>,
    %5 = vector.extract_strided_slice %1 {offsets = [1, 0], sizes = [16, 8], strides = [1, 1]} : vector<18x8xbf16> to vector<16x8xbf16>
    %6 = arith.extf %5 : vector<16x8xbf16> to vector<16x8xf32>
    %c0_5 = arith.constant 0 : index
    %c8 = arith.constant 8 : index
    %7 = vector.load %arg5[%c0_5, %c8] : memref<256x72xf32, #tpu.memory_space<vmem>>, vector<16x8xf32>
    tpu.vector_store %arg5[%c0_5, %c8], %6 {strides = array<i32>} : memref<256x72xf32, #tpu.memory_space<vmem>>, vector<16x8xf32>,
    %8 = vector.extract_strided_slice %1 {offsets = [2, 0], sizes = [16, 8], strides = [1, 1]} : vector<18x8xbf16> to vector<16x8xbf16>
    %9 = arith.extf %8 : vector<16x8xbf16> to vector<16x8xf32>
    %c0_6 = arith.constant 0 : index
    %c16 = arith.constant 16 : index
    %10 = vector.load %arg5[%c0_6, %c16] : memref<256x72xf32, #tpu.memory_space<vmem>>, vector<16x8xf32>
    tpu.vector_store %arg5[%c0_6, %c16], %9 {strides = array<i32>} : memref<256x72xf32, #tpu.memory_space<vmem>>, vector<16x8xf32>,
    %c0_7 = arith.constant 0 : index
    %c1 = arith.constant 1 : index
    %c0_8 = arith.constant 0 : index
    %c0_9 = arith.constant 0 : index
    %11 = vector.load %arg1[%c0_7, %c1, %c0_8, %c0_9] : memref<1x18x18x8xbf16, #tpu.memory_space<vmem>>, vector<1x1x18x8xbf16>
    %12 = vector.shape_cast %11 : vector<1x1x18x8xbf16> to vector<18x8xbf16>
    %13 = vector.extract_strided_slice %12 {offsets = [0, 0], sizes = [16, 8], strides = [1, 1]} : vector<18x8xbf16> to vector<16x8xbf16>
    %14 = arith.extf %13 : vector<16x8xbf16> to vector<16x8xf32>
    %c0_10 = arith.constant 0 : index
    %c24 = arith.constant 24 : index
    %15 = vector.load %arg5[%c0_10, %c24] : memref<256x72xf32, #tpu.memory_space<vmem>>, vector<16x8xf32>
    tpu.vector_store %arg5[%c0_10, %c24], %14 {strides = array<i32>} : memref<256x72xf32, #tpu.memory_space<vmem>>, vector<16x8xf32>,
    %16 = vector.extract_strided_slice %12 {offsets = [1, 0], sizes = [16, 8], strides = [1, 1]} : vector<18x8xbf16> to vector<16x8xbf16>
    %17 = arith.extf %16 : vector<16x8xbf16> to vector<16x8xf32>
    %c0_11 = arith.constant 0 : index
    %c32 = arith.constant 32 : index
    %18 = vector.load %arg5[%c0_11, %c32] : memref<256x72xf32, #tpu.memory_space<vmem>>, vector<16x8xf32>
    tpu.vector_store %arg5[%c0_11, %c32], %17 {strides = array<i32>} : memref<256x72xf32, #tpu.memory_space<vmem>>, vector<16x8xf32>,
    %19 = vector.extract_strided_slice %12 {offsets = [2, 0], sizes = [16, 8], strides = [1, 1]} : vector<18x8xbf16> to vector<16x8xbf16>
    %20 = arith.extf %19 : vector<16x8xbf16> to vector<16x8xf32>
    %c0_12 = arith.constant 0 : index
    %c40 = arith.constant 40 : index
    %21 = vector.load %arg5[%c0_12, %c40] : memref<256x72xf32, #tpu.memory_space<vmem>>, vector<16x8xf32>
    tpu.vector_store %arg5[%c0_12, %c40], %20 {strides = array<i32>} : memref<256x72xf32, #tpu.memory_space<vmem>>, vector<16x8xf32>,
    %c0_13 = arith.constant 0 : index
    %c2 = arith.constant 2 : index
    %c0_14 = arith.constant 0 : index
    %c0_15 = arith.constant 0 : index
    %22 = vector.load %arg1[%c0_13, %c2, %c0_14, %c0_15] : memref<1x18x18x8xbf16, #tpu.memory_space<vmem>>, vector<1x1x18x8xbf16>
    %23 = vector.shape_cast %22 : vector<1x1x18x8xbf16> to vector<18x8xbf16>
    %24 = vector.extract_strided_slice %23 {offsets = [0, 0], sizes = [16, 8], strides = [1, 1]} : vector<18x8xbf16> to vector<16x8xbf16>
    %25 = arith.extf %24 : vector<16x8xbf16> to vector<16x8xf32>
    %c0_16 = arith.constant 0 : index
    %c48 = arith.constant 48 : index
    %26 = vector.load %arg5[%c0_16, %c48] : memref<256x72xf32, #tpu.memory_space<vmem>>, vector<16x8xf32>
    tpu.vector_store %arg5[%c0_16, %c48], %25 {strides = array<i32>} : memref<256x72xf32, #tpu.memory_space<vmem>>, vector<16x8xf32>,
    %27 = vector.extract_strided_slice %23 {offsets = [1, 0], sizes = [16, 8], strides = [1, 1]} : vector<18x8xbf16> to vector<16x8xbf16>
    %28 = arith.extf %27 : vector<16x8xbf16> to vector<16x8xf32>
    %c0_17 = arith.constant 0 : index
    %c56 = arith.constant 56 : index
    %29 = vector.load %arg5[%c0_17, %c56] : memref<256x72xf32, #tpu.memory_space<vmem>>, vector<16x8xf32>
    tpu.vector_store %arg5[%c0_17, %c56], %28 {strides = array<i32>} : memref<256x72xf32, #tpu.memory_space<vmem>>, vector<16x8xf32>,
    %30 = vector.extract_strided_slice %23 {offsets = [2, 0], sizes = [16, 8], strides = [1, 1]} : vector<18x8xbf16> to vector<16x8xbf16>
    %31 = arith.extf %30 : vector<16x8xbf16> to vector<16x8xf32>
    %c0_18 = arith.constant 0 : index
    %c64 = arith.constant 64 : index
    %32 = vector.load %arg5[%c0_18, %c64] : memref<256x72xf32, #tpu.memory_space<vmem>>, vector<16x8xf32>
    tpu.vector_store %arg5[%c0_18, %c64], %31 {strides = array<i32>} : memref<256x72xf32, #tpu.memory_space<vmem>>, vector<16x8xf32>,
    %c0_19 = arith.constant 0 : index
    %c1_20 = arith.constant 1 : index
    %c0_21 = arith.constant 0 : index
    %c0_22 = arith.constant 0 : index
    %33 = vector.load %arg1[%c0_19, %c1_20, %c0_21, %c0_22] : memref<1x18x18x8xbf16, #tpu.memory_space<vmem>>, vector<1x1x18x8xbf16>
    %34 = vector.shape_cast %33 : vector<1x1x18x8xbf16> to vector<18x8xbf16>
    %35 = vector.extract_strided_slice %34 {offsets = [0, 0], sizes = [16, 8], strides = [1, 1]} : vector<18x8xbf16> to vector<16x8xbf16>
    %36 = arith.extf %35 : vector<16x8xbf16> to vector<16x8xf32>
    %c16_23 = arith.constant 16 : index
    %c0_24 = arith.constant 0 : index
    %37 = vector.load %arg5[%c16_23, %c0_24] : memref<256x72xf32, #tpu.memory_space<vmem>>, vector<16x8xf32>
    tpu.vector_store %arg5[%c16_23, %c0_24], %36 {strides = array<i32>} : memref<256x72xf32, #tpu.memory_space<vmem>>, vector<16x8xf32>,
    %38 = vector.extract_strided_slice %34 {offsets = [1, 0], sizes = [16, 8], strides = [1, 1]} : vector<18x8xbf16> to vector<16x8xbf16>
    %39 = arith.extf %38 : vector<16x8xbf16> to vector<16x8xf32>
    %c16_25 = arith.constant 16 : index
    %c8_26 = arith.constant 8 : index
    %40 = vector.load %arg5[%c16_25, %c8_26] : memref<256x72xf32, #tpu.memory_space<vmem>>, vector<16x8xf32>
    tpu.vector_store %arg5[%c16_25, %c8_26], %39 {strides = array<i32>} : memref<256x72xf32, #tpu.memory_space<vmem>>, vector<16x8xf32>,
    %41 = vector.extract_strided_slice %34 {offsets = [2, 0], sizes = [16, 8], strides = [1, 1]} : vector<18x8xbf16> to vector<16x8xbf16>
    %42 = arith.extf %41 : vector<16x8xbf16> to vector<16x8xf32>
    %c16_27 = arith.constant 16 : index
    %c16_28 = arith.constant 16 : index
    %43 = vector.load %arg5[%c16_27, %c16_28] : memref<256x72xf32, #tpu.memory_space<vmem>>, vector<16x8xf32>
    tpu.vector_store %arg5[%c16_27, %c16_28], %42 {strides = array<i32>} : memref<256x72xf32, #tpu.memory_space<vmem>>, vector<16x8xf32>,
    %c0_29 = arith.constant 0 : index
    %c2_30 = arith.constant 2 : index
    %c0_31 = arith.constant 0 : index
    %c0_32 = arith.constant 0 : index
    %44 = vector.load %arg1[%c0_29, %c2_30, %c0_31, %c0_32] : memref<1x18x18x8xbf16, #tpu.memory_space<vmem>>, vector<1x1x18x8xbf16>
    %45 = vector.shape_cast %44 : vector<1x1x18x8xbf16> to vector<18x8xbf16>
    %46 = vector.extract_strided_slice %45 {offsets = [0, 0], sizes = [16, 8], strides = [1, 1]} : vector<18x8xbf16> to vector<16x8xbf16>
    %47 = arith.extf %46 : vector<16x8xbf16> to vector<16x8xf32>
    %c16_33 = arith.constant 16 : index
    %c24_34 = arith.constant 24 : index
    %48 = vector.load %arg5[%c16_33, %c24_34] : memref<256x72xf32, #tpu.memory_space<vmem>>, vector<16x8xf32>
    tpu.vector_store %arg5[%c16_33, %c24_34], %47 {strides = array<i32>} : memref<256x72xf32, #tpu.memory_space<vmem>>, vector<16x8xf32>,
    %49 = vector.extract_strided_slice %45 {offsets = [1, 0], sizes = [16, 8], strides = [1, 1]} : vector<18x8xbf16> to vector<16x8xbf16>
    %50 = arith.extf %49 : vector<16x8xbf16> to vector<16x8xf32>
    %c16_35 = arith.constant 16 : index
    %c32_36 = arith.constant 32 : index
    %51 = vector.load %arg5[%c16_35, %c32_36] : memref<256x72xf32, #tpu.memory_space<vmem>>, vector<16x8xf32>
    tpu.vector_store %arg5[%c16_35, %c32_36], %50 {strides = array<i32>} : memref<256x72xf32, #tpu.memory_space<vmem>>, vector<16x8xf32>,
    %52 = vector.extract_strided_slice %45 {offsets = [2, 0], sizes = [16, 8], strides = [1, 1]} : vector<18x8xbf16> to vector<16x8xbf16>
    %53 = arith.extf %52 : vector<16x8xbf16> to vector<16x8xf32>
    %c16_37 = arith.constant 16 : index
    %c40_38 = arith.constant 40 : index
    %54 = vector.load %arg5[%c16_37, %c40_38] : memref<256x72xf32, #tpu.memory_space<vmem>>, vector<16x8xf32>
    tpu.vector_store %arg5[%c16_37, %c40_38], %53 {strides = array<i32>} : memref<256x72xf32, #tpu.memory_space<vmem>>, vector<16x8xf32>,
    %c0_39 = arith.constant 0 : index
    %c3 = arith.constant 3 : index
    %c0_40 = arith.constant 0 : index
    %c0_41 = arith.constant 0 : index
    %55 = vector.load %arg1[%c0_39, %c3, %c0_40, %c0_41] : memref<1x18x18x8xbf16, #tpu.memory_space<vmem>>, vector<1x1x18x8xbf16>
    %56 = vector.shape_cast %55 : vector<1x1x18x8xbf16> to vector<18x8xbf16>
    %57 = vector.extract_strided_slice %56 {offsets = [0, 0], sizes = [16, 8], strides = [1, 1]} : vector<18x8xbf16> to vector<16x8xbf16>
    %58 = arith.extf %57 : vector<16x8xbf16> to vector<16x8xf32>
    %c16_42 = arith.constant 16 : index
    %c48_43 = arith.constant 48 : index
    %59 = vector.load %arg5[%c16_42, %c48_43] : memref<256x72xf32, #tpu.memory_space<vmem>>, vector<16x8xf32>
    tpu.vector_store %arg5[%c16_42, %c48_43], %58 {strides = array<i32>} : memref<256x72xf32, #tpu.memory_space<vmem>>, vector<16x8xf32>,
    %60 = vector.extract_strided_slice %56 {offsets = [1, 0], sizes = [16, 8], strides = [1, 1]} : vector<18x8xbf16> to vector<16x8xbf16>
    %61 = arith.extf %60 : vector<16x8xbf16> to vector<16x8xf32>
    %c16_44 = arith.constant 16 : index
    %c56_45 = arith.constant 56 : index
    %62 = vector.load %arg5[%c16_44, %c56_45] : memref<256x72xf32, #tpu.memory_space<vmem>>, vector<16x8xf32>
    tpu.vector_store %arg5[%c16_44, %c56_45], %61 {strides = array<i32>} : memref<256x72xf32, #tpu.memory_space<vmem>>, vector<16x8xf32>,
    %63 = vector.extract_strided_slice %56 {offsets = [2, 0], sizes = [16, 8], strides = [1, 1]} : vector<18x8xbf16> to vector<16x8xbf16>
    %64 = arith.extf %63 : vector<16x8xbf16> to vector<16x8xf32>
    %c16_46 = arith.constant 16 : index
    %c64_47 = arith.constant 64 : index
    %65 = vector.load %arg5[%c16_46, %c64_47] : memref<256x72xf32, #tpu.memory_space<vmem>>, vector<16x8xf32>
    tpu.vector_store %arg5[%c16_46, %c64_47], %64 {strides = array<i32>} : memref<256x72xf32, #tpu.memory_space<vmem>>, vector<16x8xf32>,
    %c0_48 = arith.constant 0 : index
    %c2_49 = arith.constant 2 : index
    %c0_50 = arith.constant 0 : index
    %c0_51 = arith.constant 0 : index
    %66 = vector.load %arg1[%c0_48, %c2_49, %c0_50, %c0_51] : memref<1x18x18x8xbf16, #tpu.memory_space<vmem>>, vector<1x1x18x8xbf16>
    %67 = vector.shape_cast %66 : vector<1x1x18x8xbf16> to vector<18x8xbf16>
    %68 = vector.extract_strided_slice %67 {offsets = [0, 0], sizes = [16, 8], strides = [1, 1]} : vector<18x8xbf16> to vector<16x8xbf16>
    %69 = arith.extf %68 : vector<16x8xbf16> to vector<16x8xf32>
    %c32_52 = arith.constant 32 : index
    %c0_53 = arith.constant 0 : index
    %70 = vector.load %arg5[%c32_52, %c0_53] : memref<256x72xf32, #tpu.memory_space<vmem>>, vector<16x8xf32>
    tpu.vector_store %arg5[%c32_52, %c0_53], %69 {strides = array<i32>} : memref<256x72xf32, #tpu.memory_space<vmem>>, vector<16x8xf32>,
    %71 = vector.extract_strided_slice %67 {offsets = [1, 0], sizes = [16, 8], strides = [1, 1]} : vector<18x8xbf16> to vector<16x8xbf16>
    %72 = arith.extf %71 : vector<16x8xbf16> to vector<16x8xf32>
    %c32_54 = arith.constant 32 : index
    %c8_55 = arith.constant 8 : index
    %73 = vector.load %arg5[%c32_54, %c8_55] : memref<256x72xf32, #tpu.memory_space<vmem>>, vector<16x8xf32>
    tpu.vector_store %arg5[%c32_54, %c8_55], %72 {strides = array<i32>} : memref<256x72xf32, #tpu.memory_space<vmem>>, vector<16x8xf32>,
    %74 = vector.extract_strided_slice %67 {offsets = [2, 0], sizes = [16, 8], strides = [1, 1]} : vector<18x8xbf16> to vector<16x8xbf16>
    %75 = arith.extf %74 : vector<16x8xbf16> to vector<16x8xf32>
    %c32_56 = arith.constant 32 : index
    %c16_57 = arith.constant 16 : index
    %76 = vector.load %arg5[%c32_56, %c16_57] : memref<256x72xf32, #tpu.memory_space<vmem>>, vector<16x8xf32>
    tpu.vector_store %arg5[%c32_56, %c16_57], %75 {strides = array<i32>} : memref<256x72xf32, #tpu.memory_space<vmem>>, vector<16x8xf32>,
    %c0_58 = arith.constant 0 : index
    %c3_59 = arith.constant 3 : index
    %c0_60 = arith.constant 0 : index
    %c0_61 = arith.constant 0 : index
    %77 = vector.load %arg1[%c0_58, %c3_59, %c0_60, %c0_61] : memref<1x18x18x8xbf16, #tpu.memory_space<vmem>>, vector<1x1x18x8xbf16>
    %78 = vector.shape_cast %77 : vector<1x1x18x8xbf16> to vector<18x8xbf16>
    %79 = vector.extract_strided_slice %78 {offsets = [0, 0], sizes = [16, 8], strides = [1, 1]} : vector<18x8xbf16> to vector<16x8xbf16>
    %80 = arith.extf %79 : vector<16x8xbf16> to vector<16x8xf32>
    %c32_62 = arith.constant 32 : index
    %c24_63 = arith.constant 24 : index
    %81 = vector.load %arg5[%c32_62, %c24_63] : memref<256x72xf32, #tpu.memory_space<vmem>>, vector<16x8xf32>
    tpu.vector_store %arg5[%c32_62, %c24_63], %80 {strides = array<i32>} : memref<256x72xf32, #tpu.memory_space<vmem>>, vector<16x8xf32>,
    %82 = vector.extract_strided_slice %78 {offsets = [1, 0], sizes = [16, 8], strides = [1, 1]} : vector<18x8xbf16> to vector<16x8xbf16>
    %83 = arith.extf %82 : vector<16x8xbf16> to vector<16x8xf32>
    %c32_64 = arith.constant 32 : index
    %c32_65 = arith.constant 32 : index
    %84 = vector.load %arg5[%c32_64, %c32_65] : memref<256x72xf32, #tpu.memory_space<vmem>>, vector<16x8xf32>
    tpu.vector_store %arg5[%c32_64, %c32_65], %83 {strides = array<i32>} : memref<256x72xf32, #tpu.memory_space<vmem>>, vector<16x8xf32>,
    %85 = vector.extract_strided_slice %78 {offsets = [2, 0], sizes = [16, 8], strides = [1, 1]} : vector<18x8xbf16> to vector<16x8xbf16>
    %86 = arith.extf %85 : vector<16x8xbf16> to vector<16x8xf32>
    %c32_66 = arith.constant 32 : index
    %c40_67 = arith.constant 40 : index
    %87 = vector.load %arg5[%c32_66, %c40_67] : memref<256x72xf32, #tpu.memory_space<vmem>>, vector<16x8xf32>
    tpu.vector_store %arg5[%c32_66, %c40_67], %86 {strides = array<i32>} : memref<256x72xf32, #tpu.memory_space<vmem>>, vector<16x8xf32>,
    %c0_68 = arith.constant 0 : index
    %c4 = arith.constant 4 : index
    %c0_69 = arith.constant 0 : index
    %c0_70 = arith.constant 0 : index
    %88 = vector.load %arg1[%c0_68, %c4, %c0_69, %c0_70] : memref<1x18x18x8xbf16, #tpu.memory_space<vmem>>, vector<1x1x18x8xbf16>
    %89 = vector.shape_cast %88 : vector<1x1x18x8xbf16> to vector<18x8xbf16>
    %90 = vector.extract_strided_slice %89 {offsets = [0, 0], sizes = [16, 8], strides = [1, 1]} : vector<18x8xbf16> to vector<16x8xbf16>
    %91 = arith.extf %90 : vector<16x8xbf16> to vector<16x8xf32>
    %c32_71 = arith.constant 32 : index
    %c48_72 = arith.constant 48 : index
    %92 = vector.load %arg5[%c32_71, %c48_72] : memref<256x72xf32, #tpu.memory_space<vmem>>, vector<16x8xf32>
    tpu.vector_store %arg5[%c32_71, %c48_72], %91 {strides = array<i32>} : memref<256x72xf32, #tpu.memory_space<vmem>>, vector<16x8xf32>,
    %93 = vector.extract_strided_slice %89 {offsets = [1, 0], sizes = [16, 8], strides = [1, 1]} : vector<18x8xbf16> to vector<16x8xbf16>
    %94 = arith.extf %93 : vector<16x8xbf16> to vector<16x8xf32>
    %c32_73 = arith.constant 32 : index
    %c56_74 = arith.constant 56 : index
    %95 = vector.load %arg5[%c32_73, %c56_74] : memref<256x72xf32, #tpu.memory_space<vmem>>, vector<16x8xf32>
    tpu.vector_store %arg5[%c32_73, %c56_74], %94 {strides = array<i32>} : memref<256x72xf32, #tpu.memory_space<vmem>>, vector<16x8xf32>,
    %96 = vector.extract_strided_slice %89 {offsets = [2, 0], sizes = [16, 8], strides = [1, 1]} : vector<18x8xbf16> to vector<16x8xbf16>
    %97 = arith.extf %96 : vector<16x8xbf16> to vector<16x8xf32>
    %c32_75 = arith.constant 32 : index
    %c64_76 = arith.constant 64 : index
    %98 = vector.load %arg5[%c32_75, %c64_76] : memref<256x72xf32, #tpu.memory_space<vmem>>, vector<16x8xf32>
    tpu.vector_store %arg5[%c32_75, %c64_76], %97 {strides = array<i32>} : memref<256x72xf32, #tpu.memory_space<vmem>>, vector<16x8xf32>,
    %c0_77 = arith.constant 0 : index
    %c3_78 = arith.constant 3 : index
    %c0_79 = arith.constant 0 : index
    %c0_80 = arith.constant 0 : index
    %99 = vector.load %arg1[%c0_77, %c3_78, %c0_79, %c0_80] : memref<1x18x18x8xbf16, #tpu.memory_space<vmem>>, vector<1x1x18x8xbf16>
    %100 = vector.shape_cast %99 : vector<1x1x18x8xbf16> to vector<18x8xbf16>
    %101 = vector.extract_strided_slice %100 {offsets = [0, 0], sizes = [16, 8], strides = [1, 1]} : vector<18x8xbf16> to vector<16x8xbf16>
    %102 = arith.extf %101 : vector<16x8xbf16> to vector<16x8xf32>
    %c48_81 = arith.constant 48 : index
    %c0_82 = arith.constant 0 : index
    %103 = vector.load %arg5[%c48_81, %c0_82] : memref<256x72xf32, #tpu.memory_space<vmem>>, vector<16x8xf32>
    tpu.vector_store %arg5[%c48_81, %c0_82], %102 {strides = array<i32>} : memref<256x72xf32, #tpu.memory_space<vmem>>, vector<16x8xf32>,
    %104 = vector.extract_strided_slice %100 {offsets = [1, 0], sizes = [16, 8], strides = [1, 1]} : vector<18x8xbf16> to vector<16x8xbf16>
    %105 = arith.extf %104 : vector<16x8xbf16> to vector<16x8xf32>
    %c48_83 = arith.constant 48 : index
    %c8_84 = arith.constant 8 : index
    %106 = vector.load %arg5[%c48_83, %c8_84] : memref<256x72xf32, #tpu.memory_space<vmem>>, vector<16x8xf32>
    tpu.vector_store %arg5[%c48_83, %c8_84], %105 {strides = array<i32>} : memref<256x72xf32, #tpu.memory_space<vmem>>, vector<16x8xf32>,
    %107 = vector.extract_strided_slice %100 {offsets = [2, 0], sizes = [16, 8], strides = [1, 1]} : vector<18x8xbf16> to vector<16x8xbf16>
    %108 = arith.extf %107 : vector<16x8xbf16> to vector<16x8xf32>
    %c48_85 = arith.constant 48 : index
    %c16_86 = arith.constant 16 : index
    %109 = vector.load %arg5[%c48_85, %c16_86] : memref<256x72xf32, #tpu.memory_space<vmem>>, vector<16x8xf32>
    tpu.vector_store %arg5[%c48_85, %c16_86], %108 {strides = array<i32>} : memref<256x72xf32, #tpu.memory_space<vmem>>, vector<16x8xf32>,
    %c0_87 = arith.constant 0 : index
    %c4_88 = arith.constant 4 : index
    %c0_89 = arith.constant 0 : index
    %c0_90 = arith.constant 0 : index
    %110 = vector.load %arg1[%c0_87, %c4_88, %c0_89, %c0_90] : memref<1x18x18x8xbf16, #tpu.memory_space<vmem>>, vector<1x1x18x8xbf16>
    %111 = vector.shape_cast %110 : vector<1x1x18x8xbf16> to vector<18x8xbf16>
    %112 = vector.extract_strided_slice %111 {offsets = [0, 0], sizes = [16, 8], strides = [1, 1]} : vector<18x8xbf16> to vector<16x8xbf16>
    %113 = arith.extf %112 : vector<16x8xbf16> to vector<16x8xf32>
    %c48_91 = arith.constant 48 : index
    %c24_92 = arith.constant 24 : index
    %114 = vector.load %arg5[%c48_91, %c24_92] : memref<256x72xf32, #tpu.memory_space<vmem>>, vector<16x8xf32>
    tpu.vector_store %arg5[%c48_91, %c24_92], %113 {strides = array<i32>} : memref<256x72xf32, #tpu.memory_space<vmem>>, vector<16x8xf32>,
    %115 = vector.extract_strided_slice %111 {offsets = [1, 0], sizes = [16, 8], strides = [1, 1]} : vector<18x8xbf16> to vector<16x8xbf16>
    %116 = arith.extf %115 : vector<16x8xbf16> to vector<16x8xf32>
    %c48_93 = arith.constant 48 : index
    %c32_94 = arith.constant 32 : index
    %117 = vector.load %arg5[%c48_93, %c32_94] : memref<256x72xf32, #tpu.memory_space<vmem>>, vector<16x8xf32>
    tpu.vector_store %arg5[%c48_93, %c32_94], %116 {strides = array<i32>} : memref<256x72xf32, #tpu.memory_space<vmem>>, vector<16x8xf32>,
    %118 = vector.extract_strided_slice %111 {offsets = [2, 0], sizes = [16, 8], strides = [1, 1]} : vector<18x8xbf16> to vector<16x8xbf16>
    %119 = arith.extf %118 : vector<16x8xbf16> to vector<16x8xf32>
    %c48_95 = arith.constant 48 : index
    %c40_96 = arith.constant 40 : index
    %120 = vector.load %arg5[%c48_95, %c40_96] : memref<256x72xf32, #tpu.memory_space<vmem>>, vector<16x8xf32>
    tpu.vector_store %arg5[%c48_95, %c40_96], %119 {strides = array<i32>} : memref<256x72xf32, #tpu.memory_space<vmem>>, vector<16x8xf32>,
    %c0_97 = arith.constant 0 : index
    %c5 = arith.constant 5 : index
    %c0_98 = arith.constant 0 : index
    %c0_99 = arith.constant 0 : index
    %121 = vector.load %arg1[%c0_97, %c5, %c0_98, %c0_99] : memref<1x18x18x8xbf16, #tpu.memory_space<vmem>>, vector<1x1x18x8xbf16>
    %122 = vector.shape_cast %121 : vector<1x1x18x8xbf16> to vector<18x8xbf16>
    %123 = vector.extract_strided_slice %122 {offsets = [0, 0], sizes = [16, 8], strides = [1, 1]} : vector<18x8xbf16> to vector<16x8xbf16>
    %124 = arith.extf %123 : vector<16x8xbf16> to vector<16x8xf32>
    %c48_100 = arith.constant 48 : index
    %c48_101 = arith.constant 48 : index
    %125 = vector.load %arg5[%c48_100, %c48_101] : memref<256x72xf32, #tpu.memory_space<vmem>>, vector<16x8xf32>
    tpu.vector_store %arg5[%c48_100, %c48_101], %124 {strides = array<i32>} : memref<256x72xf32, #tpu.memory_space<vmem>>, vector<16x8xf32>,
    %126 = vector.extract_strided_slice %122 {offsets = [1, 0], sizes = [16, 8], strides = [1, 1]} : vector<18x8xbf16> to vector<16x8xbf16>
    %127 = arith.extf %126 : vector<16x8xbf16> to vector<16x8xf32>
    %c48_102 = arith.constant 48 : index
    %c56_103 = arith.constant 56 : index
    %128 = vector.load %arg5[%c48_102, %c56_103] : memref<256x72xf32, #tpu.memory_space<vmem>>, vector<16x8xf32>
    tpu.vector_store %arg5[%c48_102, %c56_103], %127 {strides = array<i32>} : memref<256x72xf32, #tpu.memory_space<vmem>>, vector<16x8xf32>,
    %129 = vector.extract_strided_slice %122 {offsets = [2, 0], sizes = [16, 8], strides = [1, 1]} : vector<18x8xbf16> to vector<16x8xbf16>
    %130 = arith.extf %129 : vector<16x8xbf16> to vector<16x8xf32>
    %c48_104 = arith.constant 48 : index
    %c64_105 = arith.constant 64 : index
    %131 = vector.load %arg5[%c48_104, %c64_105] : memref<256x72xf32, #tpu.memory_space<vmem>>, vector<16x8xf32>
    tpu.vector_store %arg5[%c48_104, %c64_105], %130 {strides = array<i32>} : memref<256x72xf32, #tpu.memory_space<vmem>>, vector<16x8xf32>,
    %c0_106 = arith.constant 0 : index
    %c4_107 = arith.constant 4 : index
    %c0_108 = arith.constant 0 : index
    %c0_109 = arith.constant 0 : index
    %132 = vector.load %arg1[%c0_106, %c4_107, %c0_108, %c0_109] : memref<1x18x18x8xbf16, #tpu.memory_space<vmem>>, vector<1x1x18x8xbf16>
    %133 = vector.shape_cast %132 : vector<1x1x18x8xbf16> to vector<18x8xbf16>
    %134 = vector.extract_strided_slice %133 {offsets = [0, 0], sizes = [16, 8], strides = [1, 1]} : vector<18x8xbf16> to vector<16x8xbf16>
    %135 = arith.extf %134 : vector<16x8xbf16> to vector<16x8xf32>
    %c64_110 = arith.constant 64 : index
    %c0_111 = arith.constant 0 : index
    %136 = vector.load %arg5[%c64_110, %c0_111] : memref<256x72xf32, #tpu.memory_space<vmem>>, vector<16x8xf32>
    tpu.vector_store %arg5[%c64_110, %c0_111], %135 {strides = array<i32>} : memref<256x72xf32, #tpu.memory_space<vmem>>, vector<16x8xf32>,
    %137 = vector.extract_strided_slice %133 {offsets = [1, 0], sizes = [16, 8], strides = [1, 1]} : vector<18x8xbf16> to vector<16x8xbf16>
    %138 = arith.extf %137 : vector<16x8xbf16> to vector<16x8xf32>
    %c64_112 = arith.constant 64 : index
    %c8_113 = arith.constant 8 : index
    %139 = vector.load %arg5[%c64_112, %c8_113] : memref<256x72xf32, #tpu.memory_space<vmem>>, vector<16x8xf32>
    tpu.vector_store %arg5[%c64_112, %c8_113], %138 {strides = array<i32>} : memref<256x72xf32, #tpu.memory_space<vmem>>, vector<16x8xf32>,
    %140 = vector.extract_strided_slice %133 {offsets = [2, 0], sizes = [16, 8], strides = [1, 1]} : vector<18x8xbf16> to vector<16x8xbf16>
    %141 = arith.extf %140 : vector<16x8xbf16> to vector<16x8xf32>
    %c64_114 = arith.constant 64 : index
    %c16_115 = arith.constant 16 : index
    %142 = vector.load %arg5[%c64_114, %c16_115] : memref<256x72xf32, #tpu.memory_space<vmem>>, vector<16x8xf32>
    tpu.vector_store %arg5[%c64_114, %c16_115], %141 {strides = array<i32>} : memref<256x72xf32, #tpu.memory_space<vmem>>, vector<16x8xf32>,
    %c0_116 = arith.constant 0 : index
    %c5_117 = arith.constant 5 : index
    %c0_118 = arith.constant 0 : index
    %c0_119 = arith.constant 0 : index
    %143 = vector.load %arg1[%c0_116, %c5_117, %c0_118, %c0_119] : memref<1x18x18x8xbf16, #tpu.memory_space<vmem>>, vector<1x1x18x8xbf16>
    %144 = vector.shape_cast %143 : vector<1x1x18x8xbf16> to vector<18x8xbf16>
    %145 = vector.extract_strided_slice %144 {offsets = [0, 0], sizes = [16, 8], strides = [1, 1]} : vector<18x8xbf16> to vector<16x8xbf16>
    %146 = arith.extf %145 : vector<16x8xbf16> to vector<16x8xf32>
    %c64_120 = arith.constant 64 : index
    %c24_121 = arith.constant 24 : index
    %147 = vector.load %arg5[%c64_120, %c24_121] : memref<256x72xf32, #tpu.memory_space<vmem>>, vector<16x8xf32>
    tpu.vector_store %arg5[%c64_120, %c24_121], %146 {strides = array<i32>} : memref<256x72xf32, #tpu.memory_space<vmem>>, vector<16x8xf32>,
    %148 = vector.extract_strided_slice %144 {offsets = [1, 0], sizes = [16, 8], strides = [1, 1]} : vector<18x8xbf16> to vector<16x8xbf16>
    %149 = arith.extf %148 : vector<16x8xbf16> to vector<16x8xf32>
    %c64_122 = arith.constant 64 : index
    %c32_123 = arith.constant 32 : index
    %150 = vector.load %arg5[%c64_122, %c32_123] : memref<256x72xf32, #tpu.memory_space<vmem>>, vector<16x8xf32>
    tpu.vector_store %arg5[%c64_122, %c32_123], %149 {strides = array<i32>} : memref<256x72xf32, #tpu.memory_space<vmem>>, vector<16x8xf32>,
    %151 = vector.extract_strided_slice %144 {offsets = [2, 0], sizes = [16, 8], strides = [1, 1]} : vector<18x8xbf16> to vector<16x8xbf16>
    %152 = arith.extf %151 : vector<16x8xbf16> to vector<16x8xf32>
    %c64_124 = arith.constant 64 : index
    %c40_125 = arith.constant 40 : index
    %153 = vector.load %arg5[%c64_124, %c40_125] : memref<256x72xf32, #tpu.memory_space<vmem>>, vector<16x8xf32>
    tpu.vector_store %arg5[%c64_124, %c40_125], %152 {strides = array<i32>} : memref<256x72xf32, #tpu.memory_space<vmem>>, vector<16x8xf32>,
    %c0_126 = arith.constant 0 : index
    %c6 = arith.constant 6 : index
    %c0_127 = arith.constant 0 : index
    %c0_128 = arith.constant 0 : index
    %154 = vector.load %arg1[%c0_126, %c6, %c0_127, %c0_128] : memref<1x18x18x8xbf16, #tpu.memory_space<vmem>>, vector<1x1x18x8xbf16>
    %155 = vector.shape_cast %154 : vector<1x1x18x8xbf16> to vector<18x8xbf16>
    %156 = vector.extract_strided_slice %155 {offsets = [0, 0], sizes = [16, 8], strides = [1, 1]} : vector<18x8xbf16> to vector<16x8xbf16>
    %157 = arith.extf %156 : vector<16x8xbf16> to vector<16x8xf32>
    %c64_129 = arith.constant 64 : index
    %c48_130 = arith.constant 48 : index
    %158 = vector.load %arg5[%c64_129, %c48_130] : memref<256x72xf32, #tpu.memory_space<vmem>>, vector<16x8xf32>
    tpu.vector_store %arg5[%c64_129, %c48_130], %157 {strides = array<i32>} : memref<256x72xf32, #tpu.memory_space<vmem>>, vector<16x8xf32>,
    %159 = vector.extract_strided_slice %155 {offsets = [1, 0], sizes = [16, 8], strides = [1, 1]} : vector<18x8xbf16> to vector<16x8xbf16>
    %160 = arith.extf %159 : vector<16x8xbf16> to vector<16x8xf32>
    %c64_131 = arith.constant 64 : index
    %c56_132 = arith.constant 56 : index
    %161 = vector.load %arg5[%c64_131, %c56_132] : memref<256x72xf32, #tpu.memory_space<vmem>>, vector<16x8xf32>
    tpu.vector_store %arg5[%c64_131, %c56_132], %160 {strides = array<i32>} : memref<256x72xf32, #tpu.memory_space<vmem>>, vector<16x8xf32>,
    %162 = vector.extract_strided_slice %155 {offsets = [2, 0], sizes = [16, 8], strides = [1, 1]} : vector<18x8xbf16> to vector<16x8xbf16>
    %163 = arith.extf %162 : vector<16x8xbf16> to vector<16x8xf32>
    %c64_133 = arith.constant 64 : index
    %c64_134 = arith.constant 64 : index
    %164 = vector.load %arg5[%c64_133, %c64_134] : memref<256x72xf32, #tpu.memory_space<vmem>>, vector<16x8xf32>
    tpu.vector_store %arg5[%c64_133, %c64_134], %163 {strides = array<i32>} : memref<256x72xf32, #tpu.memory_space<vmem>>, vector<16x8xf32>,
    %c0_135 = arith.constant 0 : index
    %c5_136 = arith.constant 5 : index
    %c0_137 = arith.constant 0 : index
    %c0_138 = arith.constant 0 : index
    %165 = vector.load %arg1[%c0_135, %c5_136, %c0_137, %c0_138] : memref<1x18x18x8xbf16, #tpu.memory_space<vmem>>, vector<1x1x18x8xbf16>
    %166 = vector.shape_cast %165 : vector<1x1x18x8xbf16> to vector<18x8xbf16>
    %167 = vector.extract_strided_slice %166 {offsets = [0, 0], sizes = [16, 8], strides = [1, 1]} : vector<18x8xbf16> to vector<16x8xbf16>
    %168 = arith.extf %167 : vector<16x8xbf16> to vector<16x8xf32>
    %c80 = arith.constant 80 : index
    %c0_139 = arith.constant 0 : index
    %169 = vector.load %arg5[%c80, %c0_139] : memref<256x72xf32, #tpu.memory_space<vmem>>, vector<16x8xf32>
    tpu.vector_store %arg5[%c80, %c0_139], %168 {strides = array<i32>} : memref<256x72xf32, #tpu.memory_space<vmem>>, vector<16x8xf32>,
    %170 = vector.extract_strided_slice %166 {offsets = [1, 0], sizes = [16, 8], strides = [1, 1]} : vector<18x8xbf16> to vector<16x8xbf16>
    %171 = arith.extf %170 : vector<16x8xbf16> to vector<16x8xf32>
    %c80_140 = arith.constant 80 : index
    %c8_141 = arith.constant 8 : index
    %172 = vector.load %arg5[%c80_140, %c8_141] : memref<256x72xf32, #tpu.memory_space<vmem>>, vector<16x8xf32>
    tpu.vector_store %arg5[%c80_140, %c8_141], %171 {strides = array<i32>} : memref<256x72xf32, #tpu.memory_space<vmem>>, vector<16x8xf32>,
    %173 = vector.extract_strided_slice %166 {offsets = [2, 0], sizes = [16, 8], strides = [1, 1]} : vector<18x8xbf16> to vector<16x8xbf16>
    %174 = arith.extf %173 : vector<16x8xbf16> to vector<16x8xf32>
    %c80_142 = arith.constant 80 : index
    %c16_143 = arith.constant 16 : index
    %175 = vector.load %arg5[%c80_142, %c16_143] : memref<256x72xf32, #tpu.memory_space<vmem>>, vector<16x8xf32>
    tpu.vector_store %arg5[%c80_142, %c16_143], %174 {strides = array<i32>} : memref<256x72xf32, #tpu.memory_space<vmem>>, vector<16x8xf32>,
    %c0_144 = arith.constant 0 : index
    %c6_145 = arith.constant 6 : index
    %c0_146 = arith.constant 0 : index
    %c0_147 = arith.constant 0 : index
    %176 = vector.load %arg1[%c0_144, %c6_145, %c0_146, %c0_147] : memref<1x18x18x8xbf16, #tpu.memory_space<vmem>>, vector<1x1x18x8xbf16>
    %177 = vector.shape_cast %176 : vector<1x1x18x8xbf16> to vector<18x8xbf16>
    %178 = vector.extract_strided_slice %177 {offsets = [0, 0], sizes = [16, 8], strides = [1, 1]} : vector<18x8xbf16> to vector<16x8xbf16>
    %179 = arith.extf %178 : vector<16x8xbf16> to vector<16x8xf32>
    %c80_148 = arith.constant 80 : index
    %c24_149 = arith.constant 24 : index
    %180 = vector.load %arg5[%c80_148, %c24_149] : memref<256x72xf32, #tpu.memory_space<vmem>>, vector<16x8xf32>
    tpu.vector_store %arg5[%c80_148, %c24_149], %179 {strides = array<i32>} : memref<256x72xf32, #tpu.memory_space<vmem>>, vector<16x8xf32>,
    %181 = vector.extract_strided_slice %177 {offsets = [1, 0], sizes = [16, 8], strides = [1, 1]} : vector<18x8xbf16> to vector<16x8xbf16>
    %182 = arith.extf %181 : vector<16x8xbf16> to vector<16x8xf32>
    %c80_150 = arith.constant 80 : index
    %c32_151 = arith.constant 32 : index
    %183 = vector.load %arg5[%c80_150, %c32_151] : memref<256x72xf32, #tpu.memory_space<vmem>>, vector<16x8xf32>
    tpu.vector_store %arg5[%c80_150, %c32_151], %182 {strides = array<i32>} : memref<256x72xf32, #tpu.memory_space<vmem>>, vector<16x8xf32>,
    %184 = vector.extract_strided_slice %177 {offsets = [2, 0], sizes = [16, 8], strides = [1, 1]} : vector<18x8xbf16> to vector<16x8xbf16>
    %185 = arith.extf %184 : vector<16x8xbf16> to vector<16x8xf32>
    %c80_152 = arith.constant 80 : index
    %c40_153 = arith.constant 40 : index
    %186 = vector.load %arg5[%c80_152, %c40_153] : memref<256x72xf32, #tpu.memory_space<vmem>>, vector<16x8xf32>
    tpu.vector_store %arg5[%c80_152, %c40_153], %185 {strides = array<i32>} : memref<256x72xf32, #tpu.memory_space<vmem>>, vector<16x8xf32>,
    %c0_154 = arith.constant 0 : index
    %c7 = arith.constant 7 : index
    %c0_155 = arith.constant 0 : index
    %c0_156 = arith.constant 0 : index
    %187 = vector.load %arg1[%c0_154, %c7, %c0_155, %c0_156] : memref<1x18x18x8xbf16, #tpu.memory_space<vmem>>, vector<1x1x18x8xbf16>
    %188 = vector.shape_cast %187 : vector<1x1x18x8xbf16> to vector<18x8xbf16>
    %189 = vector.extract_strided_slice %188 {offsets = [0, 0], sizes = [16, 8], strides = [1, 1]} : vector<18x8xbf16> to vector<16x8xbf16>
    %190 = arith.extf %189 : vector<16x8xbf16> to vector<16x8xf32>
    %c80_157 = arith.constant 80 : index
    %c48_158 = arith.constant 48 : index
    %191 = vector.load %arg5[%c80_157, %c48_158] : memref<256x72xf32, #tpu.memory_space<vmem>>, vector<16x8xf32>
    tpu.vector_store %arg5[%c80_157, %c48_158], %190 {strides = array<i32>} : memref<256x72xf32, #tpu.memory_space<vmem>>, vector<16x8xf32>,
    %192 = vector.extract_strided_slice %188 {offsets = [1, 0], sizes = [16, 8], strides = [1, 1]} : vector<18x8xbf16> to vector<16x8xbf16>
    %193 = arith.extf %192 : vector<16x8xbf16> to vector<16x8xf32>
    %c80_159 = arith.constant 80 : index
    %c56_160 = arith.constant 56 : index
    %194 = vector.load %arg5[%c80_159, %c56_160] : memref<256x72xf32, #tpu.memory_space<vmem>>, vector<16x8xf32>
    tpu.vector_store %arg5[%c80_159, %c56_160], %193 {strides = array<i32>} : memref<256x72xf32, #tpu.memory_space<vmem>>, vector<16x8xf32>,
    %195 = vector.extract_strided_slice %188 {offsets = [2, 0], sizes = [16, 8], strides = [1, 1]} : vector<18x8xbf16> to vector<16x8xbf16>
    %196 = arith.extf %195 : vector<16x8xbf16> to vector<16x8xf32>
    %c80_161 = arith.constant 80 : index
    %c64_162 = arith.constant 64 : index
    %197 = vector.load %arg5[%c80_161, %c64_162] : memref<256x72xf32, #tpu.memory_space<vmem>>, vector<16x8xf32>
    tpu.vector_store %arg5[%c80_161, %c64_162], %196 {strides = array<i32>} : memref<256x72xf32, #tpu.memory_space<vmem>>, vector<16x8xf32>,
    %c0_163 = arith.constant 0 : index
    %c6_164 = arith.constant 6 : index
    %c0_165 = arith.constant 0 : index
    %c0_166 = arith.constant 0 : index
    %198 = vector.load %arg1[%c0_163, %c6_164, %c0_165, %c0_166] : memref<1x18x18x8xbf16, #tpu.memory_space<vmem>>, vector<1x1x18x8xbf16>
    %199 = vector.shape_cast %198 : vector<1x1x18x8xbf16> to vector<18x8xbf16>
    %200 = vector.extract_strided_slice %199 {offsets = [0, 0], sizes = [16, 8], strides = [1, 1]} : vector<18x8xbf16> to vector<16x8xbf16>
    %201 = arith.extf %200 : vector<16x8xbf16> to vector<16x8xf32>
    %c96 = arith.constant 96 : index
    %c0_167 = arith.constant 0 : index
    %202 = vector.load %arg5[%c96, %c0_167] : memref<256x72xf32, #tpu.memory_space<vmem>>, vector<16x8xf32>
    tpu.vector_store %arg5[%c96, %c0_167], %201 {strides = array<i32>} : memref<256x72xf32, #tpu.memory_space<vmem>>, vector<16x8xf32>,
    %203 = vector.extract_strided_slice %199 {offsets = [1, 0], sizes = [16, 8], strides = [1, 1]} : vector<18x8xbf16> to vector<16x8xbf16>
    %204 = arith.extf %203 : vector<16x8xbf16> to vector<16x8xf32>
    %c96_168 = arith.constant 96 : index
    %c8_169 = arith.constant 8 : index
    %205 = vector.load %arg5[%c96_168, %c8_169] : memref<256x72xf32, #tpu.memory_space<vmem>>, vector<16x8xf32>
    tpu.vector_store %arg5[%c96_168, %c8_169], %204 {strides = array<i32>} : memref<256x72xf32, #tpu.memory_space<vmem>>, vector<16x8xf32>,
    %206 = vector.extract_strided_slice %199 {offsets = [2, 0], sizes = [16, 8], strides = [1, 1]} : vector<18x8xbf16> to vector<16x8xbf16>
    %207 = arith.extf %206 : vector<16x8xbf16> to vector<16x8xf32>
    %c96_170 = arith.constant 96 : index
    %c16_171 = arith.constant 16 : index
    %208 = vector.load %arg5[%c96_170, %c16_171] : memref<256x72xf32, #tpu.memory_space<vmem>>, vector<16x8xf32>
    tpu.vector_store %arg5[%c96_170, %c16_171], %207 {strides = array<i32>} : memref<256x72xf32, #tpu.memory_space<vmem>>, vector<16x8xf32>,
    %c0_172 = arith.constant 0 : index
    %c7_173 = arith.constant 7 : index
    %c0_174 = arith.constant 0 : index
    %c0_175 = arith.constant 0 : index
    %209 = vector.load %arg1[%c0_172, %c7_173, %c0_174, %c0_175] : memref<1x18x18x8xbf16, #tpu.memory_space<vmem>>, vector<1x1x18x8xbf16>
    %210 = vector.shape_cast %209 : vector<1x1x18x8xbf16> to vector<18x8xbf16>
    %211 = vector.extract_strided_slice %210 {offsets = [0, 0], sizes = [16, 8], strides = [1, 1]} : vector<18x8xbf16> to vector<16x8xbf16>
    %212 = arith.extf %211 : vector<16x8xbf16> to vector<16x8xf32>
    %c96_176 = arith.constant 96 : index
    %c24_177 = arith.constant 24 : index
    %213 = vector.load %arg5[%c96_176, %c24_177] : memref<256x72xf32, #tpu.memory_space<vmem>>, vector<16x8xf32>
    tpu.vector_store %arg5[%c96_176, %c24_177], %212 {strides = array<i32>} : memref<256x72xf32, #tpu.memory_space<vmem>>, vector<16x8xf32>,
    %214 = vector.extract_strided_slice %210 {offsets = [1, 0], sizes = [16, 8], strides = [1, 1]} : vector<18x8xbf16> to vector<16x8xbf16>
    %215 = arith.extf %214 : vector<16x8xbf16> to vector<16x8xf32>
    %c96_178 = arith.constant 96 : index
    %c32_179 = arith.constant 32 : index
    %216 = vector.load %arg5[%c96_178, %c32_179] : memref<256x72xf32, #tpu.memory_space<vmem>>, vector<16x8xf32>
    tpu.vector_store %arg5[%c96_178, %c32_179], %215 {strides = array<i32>} : memref<256x72xf32, #tpu.memory_space<vmem>>, vector<16x8xf32>,
    %217 = vector.extract_strided_slice %210 {offsets = [2, 0], sizes = [16, 8], strides = [1, 1]} : vector<18x8xbf16> to vector<16x8xbf16>
    %218 = arith.extf %217 : vector<16x8xbf16> to vector<16x8xf32>
    %c96_180 = arith.constant 96 : index
    %c40_181 = arith.constant 40 : index
    %219 = vector.load %arg5[%c96_180, %c40_181] : memref<256x72xf32, #tpu.memory_space<vmem>>, vector<16x8xf32>
    tpu.vector_store %arg5[%c96_180, %c40_181], %218 {strides = array<i32>} : memref<256x72xf32, #tpu.memory_space<vmem>>, vector<16x8xf32>,
    %c0_182 = arith.constant 0 : index
    %c8_183 = arith.constant 8 : index
    %c0_184 = arith.constant 0 : index
    %c0_185 = arith.constant 0 : index
    %220 = vector.load %arg1[%c0_182, %c8_183, %c0_184, %c0_185] : memref<1x18x18x8xbf16, #tpu.memory_space<vmem>>, vector<1x1x18x8xbf16>
    %221 = vector.shape_cast %220 : vector<1x1x18x8xbf16> to vector<18x8xbf16>
    %222 = vector.extract_strided_slice %221 {offsets = [0, 0], sizes = [16, 8], strides = [1, 1]} : vector<18x8xbf16> to vector<16x8xbf16>
    %223 = arith.extf %222 : vector<16x8xbf16> to vector<16x8xf32>
    %c96_186 = arith.constant 96 : index
    %c48_187 = arith.constant 48 : index
    %224 = vector.load %arg5[%c96_186, %c48_187] : memref<256x72xf32, #tpu.memory_space<vmem>>, vector<16x8xf32>
    tpu.vector_store %arg5[%c96_186, %c48_187], %223 {strides = array<i32>} : memref<256x72xf32, #tpu.memory_space<vmem>>, vector<16x8xf32>,
    %225 = vector.extract_strided_slice %221 {offsets = [1, 0], sizes = [16, 8], strides = [1, 1]} : vector<18x8xbf16> to vector<16x8xbf16>
    %226 = arith.extf %225 : vector<16x8xbf16> to vector<16x8xf32>
    %c96_188 = arith.constant 96 : index
    %c56_189 = arith.constant 56 : index
    %227 = vector.load %arg5[%c96_188, %c56_189] : memref<256x72xf32, #tpu.memory_space<vmem>>, vector<16x8xf32>
    tpu.vector_store %arg5[%c96_188, %c56_189], %226 {strides = array<i32>} : memref<256x72xf32, #tpu.memory_space<vmem>>, vector<16x8xf32>,
    %228 = vector.extract_strided_slice %221 {offsets = [2, 0], sizes = [16, 8], strides = [1, 1]} : vector<18x8xbf16> to vector<16x8xbf16>
    %229 = arith.extf %228 : vector<16x8xbf16> to vector<16x8xf32>
    %c96_190 = arith.constant 96 : index
    %c64_191 = arith.constant 64 : index
    %230 = vector.load %arg5[%c96_190, %c64_191] : memref<256x72xf32, #tpu.memory_space<vmem>>, vector<16x8xf32>
    tpu.vector_store %arg5[%c96_190, %c64_191], %229 {strides = array<i32>} : memref<256x72xf32, #tpu.memory_space<vmem>>, vector<16x8xf32>,
    %c0_192 = arith.constant 0 : index
    %c7_193 = arith.constant 7 : index
    %c0_194 = arith.constant 0 : index
    %c0_195 = arith.constant 0 : index
    %231 = vector.load %arg1[%c0_192, %c7_193, %c0_194, %c0_195] : memref<1x18x18x8xbf16, #tpu.memory_space<vmem>>, vector<1x1x18x8xbf16>
    %232 = vector.shape_cast %231 : vector<1x1x18x8xbf16> to vector<18x8xbf16>
    %233 = vector.extract_strided_slice %232 {offsets = [0, 0], sizes = [16, 8], strides = [1, 1]} : vector<18x8xbf16> to vector<16x8xbf16>
    %234 = arith.extf %233 : vector<16x8xbf16> to vector<16x8xf32>
    %c112 = arith.constant 112 : index
    %c0_196 = arith.constant 0 : index
    %235 = vector.load %arg5[%c112, %c0_196] : memref<256x72xf32, #tpu.memory_space<vmem>>, vector<16x8xf32>
    tpu.vector_store %arg5[%c112, %c0_196], %234 {strides = array<i32>} : memref<256x72xf32, #tpu.memory_space<vmem>>, vector<16x8xf32>,
    %236 = vector.extract_strided_slice %232 {offsets = [1, 0], sizes = [16, 8], strides = [1, 1]} : vector<18x8xbf16> to vector<16x8xbf16>
    %237 = arith.extf %236 : vector<16x8xbf16> to vector<16x8xf32>
    %c112_197 = arith.constant 112 : index
    %c8_198 = arith.constant 8 : index
    %238 = vector.load %arg5[%c112_197, %c8_198] : memref<256x72xf32, #tpu.memory_space<vmem>>, vector<16x8xf32>
    tpu.vector_store %arg5[%c112_197, %c8_198], %237 {strides = array<i32>} : memref<256x72xf32, #tpu.memory_space<vmem>>, vector<16x8xf32>,
    %239 = vector.extract_strided_slice %232 {offsets = [2, 0], sizes = [16, 8], strides = [1, 1]} : vector<18x8xbf16> to vector<16x8xbf16>
    %240 = arith.extf %239 : vector<16x8xbf16> to vector<16x8xf32>
    %c112_199 = arith.constant 112 : index
    %c16_200 = arith.constant 16 : index
    %241 = vector.load %arg5[%c112_199, %c16_200] : memref<256x72xf32, #tpu.memory_space<vmem>>, vector<16x8xf32>
    tpu.vector_store %arg5[%c112_199, %c16_200], %240 {strides = array<i32>} : memref<256x72xf32, #tpu.memory_space<vmem>>, vector<16x8xf32>,
    %c0_201 = arith.constant 0 : index
    %c8_202 = arith.constant 8 : index
    %c0_203 = arith.constant 0 : index
    %c0_204 = arith.constant 0 : index
    %242 = vector.load %arg1[%c0_201, %c8_202, %c0_203, %c0_204] : memref<1x18x18x8xbf16, #tpu.memory_space<vmem>>, vector<1x1x18x8xbf16>
    %243 = vector.shape_cast %242 : vector<1x1x18x8xbf16> to vector<18x8xbf16>
    %244 = vector.extract_strided_slice %243 {offsets = [0, 0], sizes = [16, 8], strides = [1, 1]} : vector<18x8xbf16> to vector<16x8xbf16>
    %245 = arith.extf %244 : vector<16x8xbf16> to vector<16x8xf32>
    %c112_205 = arith.constant 112 : index
    %c24_206 = arith.constant 24 : index
    %246 = vector.load %arg5[%c112_205, %c24_206] : memref<256x72xf32, #tpu.memory_space<vmem>>, vector<16x8xf32>
    tpu.vector_store %arg5[%c112_205, %c24_206], %245 {strides = array<i32>} : memref<256x72xf32, #tpu.memory_space<vmem>>, vector<16x8xf32>,
    %247 = vector.extract_strided_slice %243 {offsets = [1, 0], sizes = [16, 8], strides = [1, 1]} : vector<18x8xbf16> to vector<16x8xbf16>
    %248 = arith.extf %247 : vector<16x8xbf16> to vector<16x8xf32>
    %c112_207 = arith.constant 112 : index
    %c32_208 = arith.constant 32 : index
    %249 = vector.load %arg5[%c112_207, %c32_208] : memref<256x72xf32, #tpu.memory_space<vmem>>, vector<16x8xf32>
    tpu.vector_store %arg5[%c112_207, %c32_208], %248 {strides = array<i32>} : memref<256x72xf32, #tpu.memory_space<vmem>>, vector<16x8xf32>,
    %250 = vector.extract_strided_slice %243 {offsets = [2, 0], sizes = [16, 8], strides = [1, 1]} : vector<18x8xbf16> to vector<16x8xbf16>
    %251 = arith.extf %250 : vector<16x8xbf16> to vector<16x8xf32>
    %c112_209 = arith.constant 112 : index
    %c40_210 = arith.constant 40 : index
    %252 = vector.load %arg5[%c112_209, %c40_210] : memref<256x72xf32, #tpu.memory_space<vmem>>, vector<16x8xf32>
    tpu.vector_store %arg5[%c112_209, %c40_210], %251 {strides = array<i32>} : memref<256x72xf32, #tpu.memory_space<vmem>>, vector<16x8xf32>,
    %c0_211 = arith.constant 0 : index
    %c9 = arith.constant 9 : index
    %c0_212 = arith.constant 0 : index
    %c0_213 = arith.constant 0 : index
    %253 = vector.load %arg1[%c0_211, %c9, %c0_212, %c0_213] : memref<1x18x18x8xbf16, #tpu.memory_space<vmem>>, vector<1x1x18x8xbf16>
    %254 = vector.shape_cast %253 : vector<1x1x18x8xbf16> to vector<18x8xbf16>
    %255 = vector.extract_strided_slice %254 {offsets = [0, 0], sizes = [16, 8], strides = [1, 1]} : vector<18x8xbf16> to vector<16x8xbf16>
    %256 = arith.extf %255 : vector<16x8xbf16> to vector<16x8xf32>
    %c112_214 = arith.constant 112 : index
    %c48_215 = arith.constant 48 : index
    %257 = vector.load %arg5[%c112_214, %c48_215] : memref<256x72xf32, #tpu.memory_space<vmem>>, vector<16x8xf32>
    tpu.vector_store %arg5[%c112_214, %c48_215], %256 {strides = array<i32>} : memref<256x72xf32, #tpu.memory_space<vmem>>, vector<16x8xf32>,
    %258 = vector.extract_strided_slice %254 {offsets = [1, 0], sizes = [16, 8], strides = [1, 1]} : vector<18x8xbf16> to vector<16x8xbf16>
    %259 = arith.extf %258 : vector<16x8xbf16> to vector<16x8xf32>
    %c112_216 = arith.constant 112 : index
    %c56_217 = arith.constant 56 : index
    %260 = vector.load %arg5[%c112_216, %c56_217] : memref<256x72xf32, #tpu.memory_space<vmem>>, vector<16x8xf32>
    tpu.vector_store %arg5[%c112_216, %c56_217], %259 {strides = array<i32>} : memref<256x72xf32, #tpu.memory_space<vmem>>, vector<16x8xf32>,
    %261 = vector.extract_strided_slice %254 {offsets = [2, 0], sizes = [16, 8], strides = [1, 1]} : vector<18x8xbf16> to vector<16x8xbf16>
    %262 = arith.extf %261 : vector<16x8xbf16> to vector<16x8xf32>
    %c112_218 = arith.constant 112 : index
    %c64_219 = arith.constant 64 : index
    %263 = vector.load %arg5[%c112_218, %c64_219] : memref<256x72xf32, #tpu.memory_space<vmem>>, vector<16x8xf32>
    tpu.vector_store %arg5[%c112_218, %c64_219], %262 {strides = array<i32>} : memref<256x72xf32, #tpu.memory_space<vmem>>, vector<16x8xf32>,
    %c0_220 = arith.constant 0 : index
    %c8_221 = arith.constant 8 : index
    %c0_222 = arith.constant 0 : index
    %c0_223 = arith.constant 0 : index
    %264 = vector.load %arg1[%c0_220, %c8_221, %c0_222, %c0_223] : memref<1x18x18x8xbf16, #tpu.memory_space<vmem>>, vector<1x1x18x8xbf16>
    %265 = vector.shape_cast %264 : vector<1x1x18x8xbf16> to vector<18x8xbf16>
    %266 = vector.extract_strided_slice %265 {offsets = [0, 0], sizes = [16, 8], strides = [1, 1]} : vector<18x8xbf16> to vector<16x8xbf16>
    %267 = arith.extf %266 : vector<16x8xbf16> to vector<16x8xf32>
    %c128 = arith.constant 128 : index
    %c0_224 = arith.constant 0 : index
    %268 = vector.load %arg5[%c128, %c0_224] : memref<256x72xf32, #tpu.memory_space<vmem>>, vector<16x8xf32>
    tpu.vector_store %arg5[%c128, %c0_224], %267 {strides = array<i32>} : memref<256x72xf32, #tpu.memory_space<vmem>>, vector<16x8xf32>,
    %269 = vector.extract_strided_slice %265 {offsets = [1, 0], sizes = [16, 8], strides = [1, 1]} : vector<18x8xbf16> to vector<16x8xbf16>
    %270 = arith.extf %269 : vector<16x8xbf16> to vector<16x8xf32>
    %c128_225 = arith.constant 128 : index
    %c8_226 = arith.constant 8 : index
    %271 = vector.load %arg5[%c128_225, %c8_226] : memref<256x72xf32, #tpu.memory_space<vmem>>, vector<16x8xf32>
    tpu.vector_store %arg5[%c128_225, %c8_226], %270 {strides = array<i32>} : memref<256x72xf32, #tpu.memory_space<vmem>>, vector<16x8xf32>,
    %272 = vector.extract_strided_slice %265 {offsets = [2, 0], sizes = [16, 8], strides = [1, 1]} : vector<18x8xbf16> to vector<16x8xbf16>
    %273 = arith.extf %272 : vector<16x8xbf16> to vector<16x8xf32>
    %c128_227 = arith.constant 128 : index
    %c16_228 = arith.constant 16 : index
    %274 = vector.load %arg5[%c128_227, %c16_228] : memref<256x72xf32, #tpu.memory_space<vmem>>, vector<16x8xf32>
    tpu.vector_store %arg5[%c128_227, %c16_228], %273 {strides = array<i32>} : memref<256x72xf32, #tpu.memory_space<vmem>>, vector<16x8xf32>,
    %c0_229 = arith.constant 0 : index
    %c9_230 = arith.constant 9 : index
    %c0_231 = arith.constant 0 : index
    %c0_232 = arith.constant 0 : index
    %275 = vector.load %arg1[%c0_229, %c9_230, %c0_231, %c0_232] : memref<1x18x18x8xbf16, #tpu.memory_space<vmem>>, vector<1x1x18x8xbf16>
    %276 = vector.shape_cast %275 : vector<1x1x18x8xbf16> to vector<18x8xbf16>
    %277 = vector.extract_strided_slice %276 {offsets = [0, 0], sizes = [16, 8], strides = [1, 1]} : vector<18x8xbf16> to vector<16x8xbf16>
    %278 = arith.extf %277 : vector<16x8xbf16> to vector<16x8xf32>
    %c128_233 = arith.constant 128 : index
    %c24_234 = arith.constant 24 : index
    %279 = vector.load %arg5[%c128_233, %c24_234] : memref<256x72xf32, #tpu.memory_space<vmem>>, vector<16x8xf32>
    tpu.vector_store %arg5[%c128_233, %c24_234], %278 {strides = array<i32>} : memref<256x72xf32, #tpu.memory_space<vmem>>, vector<16x8xf32>,
    %280 = vector.extract_strided_slice %276 {offsets = [1, 0], sizes = [16, 8], strides = [1, 1]} : vector<18x8xbf16> to vector<16x8xbf16>
    %281 = arith.extf %280 : vector<16x8xbf16> to vector<16x8xf32>
    %c128_235 = arith.constant 128 : index
    %c32_236 = arith.constant 32 : index
    %282 = vector.load %arg5[%c128_235, %c32_236] : memref<256x72xf32, #tpu.memory_space<vmem>>, vector<16x8xf32>
    tpu.vector_store %arg5[%c128_235, %c32_236], %281 {strides = array<i32>} : memref<256x72xf32, #tpu.memory_space<vmem>>, vector<16x8xf32>,
    %283 = vector.extract_strided_slice %276 {offsets = [2, 0], sizes = [16, 8], strides = [1, 1]} : vector<18x8xbf16> to vector<16x8xbf16>
    %284 = arith.extf %283 : vector<16x8xbf16> to vector<16x8xf32>
    %c128_237 = arith.constant 128 : index
    %c40_238 = arith.constant 40 : index
    %285 = vector.load %arg5[%c128_237, %c40_238] : memref<256x72xf32, #tpu.memory_space<vmem>>, vector<16x8xf32>
    tpu.vector_store %arg5[%c128_237, %c40_238], %284 {strides = array<i32>} : memref<256x72xf32, #tpu.memory_space<vmem>>, vector<16x8xf32>,
    %c0_239 = arith.constant 0 : index
    %c10 = arith.constant 10 : index
    %c0_240 = arith.constant 0 : index
    %c0_241 = arith.constant 0 : index
    %286 = vector.load %arg1[%c0_239, %c10, %c0_240, %c0_241] : memref<1x18x18x8xbf16, #tpu.memory_space<vmem>>, vector<1x1x18x8xbf16>
    %287 = vector.shape_cast %286 : vector<1x1x18x8xbf16> to vector<18x8xbf16>
    %288 = vector.extract_strided_slice %287 {offsets = [0, 0], sizes = [16, 8], strides = [1, 1]} : vector<18x8xbf16> to vector<16x8xbf16>
    %289 = arith.extf %288 : vector<16x8xbf16> to vector<16x8xf32>
    %c128_242 = arith.constant 128 : index
    %c48_243 = arith.constant 48 : index
    %290 = vector.load %arg5[%c128_242, %c48_243] : memref<256x72xf32, #tpu.memory_space<vmem>>, vector<16x8xf32>
    tpu.vector_store %arg5[%c128_242, %c48_243], %289 {strides = array<i32>} : memref<256x72xf32, #tpu.memory_space<vmem>>, vector<16x8xf32>,
    %291 = vector.extract_strided_slice %287 {offsets = [1, 0], sizes = [16, 8], strides = [1, 1]} : vector<18x8xbf16> to vector<16x8xbf16>
    %292 = arith.extf %291 : vector<16x8xbf16> to vector<16x8xf32>
    %c128_244 = arith.constant 128 : index
    %c56_245 = arith.constant 56 : index
    %293 = vector.load %arg5[%c128_244, %c56_245] : memref<256x72xf32, #tpu.memory_space<vmem>>, vector<16x8xf32>
    tpu.vector_store %arg5[%c128_244, %c56_245], %292 {strides = array<i32>} : memref<256x72xf32, #tpu.memory_space<vmem>>, vector<16x8xf32>,
    %294 = vector.extract_strided_slice %287 {offsets = [2, 0], sizes = [16, 8], strides = [1, 1]} : vector<18x8xbf16> to vector<16x8xbf16>
    %295 = arith.extf %294 : vector<16x8xbf16> to vector<16x8xf32>
    %c128_246 = arith.constant 128 : index
    %c64_247 = arith.constant 64 : index
    %296 = vector.load %arg5[%c128_246, %c64_247] : memref<256x72xf32, #tpu.memory_space<vmem>>, vector<16x8xf32>
    tpu.vector_store %arg5[%c128_246, %c64_247], %295 {strides = array<i32>} : memref<256x72xf32, #tpu.memory_space<vmem>>, vector<16x8xf32>,
    %c0_248 = arith.constant 0 : index
    %c9_249 = arith.constant 9 : index
    %c0_250 = arith.constant 0 : index
    %c0_251 = arith.constant 0 : index
    %297 = vector.load %arg1[%c0_248, %c9_249, %c0_250, %c0_251] : memref<1x18x18x8xbf16, #tpu.memory_space<vmem>>, vector<1x1x18x8xbf16>
    %298 = vector.shape_cast %297 : vector<1x1x18x8xbf16> to vector<18x8xbf16>
    %299 = vector.extract_strided_slice %298 {offsets = [0, 0], sizes = [16, 8], strides = [1, 1]} : vector<18x8xbf16> to vector<16x8xbf16>
    %300 = arith.extf %299 : vector<16x8xbf16> to vector<16x8xf32>
    %c144 = arith.constant 144 : index
    %c0_252 = arith.constant 0 : index
    %301 = vector.load %arg5[%c144, %c0_252] : memref<256x72xf32, #tpu.memory_space<vmem>>, vector<16x8xf32>
    tpu.vector_store %arg5[%c144, %c0_252], %300 {strides = array<i32>} : memref<256x72xf32, #tpu.memory_space<vmem>>, vector<16x8xf32>,
    %302 = vector.extract_strided_slice %298 {offsets = [1, 0], sizes = [16, 8], strides = [1, 1]} : vector<18x8xbf16> to vector<16x8xbf16>
    %303 = arith.extf %302 : vector<16x8xbf16> to vector<16x8xf32>
    %c144_253 = arith.constant 144 : index
    %c8_254 = arith.constant 8 : index
    %304 = vector.load %arg5[%c144_253, %c8_254] : memref<256x72xf32, #tpu.memory_space<vmem>>, vector<16x8xf32>
    tpu.vector_store %arg5[%c144_253, %c8_254], %303 {strides = array<i32>} : memref<256x72xf32, #tpu.memory_space<vmem>>, vector<16x8xf32>,
    %305 = vector.extract_strided_slice %298 {offsets = [2, 0], sizes = [16, 8], strides = [1, 1]} : vector<18x8xbf16> to vector<16x8xbf16>
    %306 = arith.extf %305 : vector<16x8xbf16> to vector<16x8xf32>
    %c144_255 = arith.constant 144 : index
    %c16_256 = arith.constant 16 : index
    %307 = vector.load %arg5[%c144_255, %c16_256] : memref<256x72xf32, #tpu.memory_space<vmem>>, vector<16x8xf32>
    tpu.vector_store %arg5[%c144_255, %c16_256], %306 {strides = array<i32>} : memref<256x72xf32, #tpu.memory_space<vmem>>, vector<16x8xf32>,
    %c0_257 = arith.constant 0 : index
    %c10_258 = arith.constant 10 : index
    %c0_259 = arith.constant 0 : index
    %c0_260 = arith.constant 0 : index
    %308 = vector.load %arg1[%c0_257, %c10_258, %c0_259, %c0_260] : memref<1x18x18x8xbf16, #tpu.memory_space<vmem>>, vector<1x1x18x8xbf16>
    %309 = vector.shape_cast %308 : vector<1x1x18x8xbf16> to vector<18x8xbf16>
    %310 = vector.extract_strided_slice %309 {offsets = [0, 0], sizes = [16, 8], strides = [1, 1]} : vector<18x8xbf16> to vector<16x8xbf16>
    %311 = arith.extf %310 : vector<16x8xbf16> to vector<16x8xf32>
    %c144_261 = arith.constant 144 : index
    %c24_262 = arith.constant 24 : index
    %312 = vector.load %arg5[%c144_261, %c24_262] : memref<256x72xf32, #tpu.memory_space<vmem>>, vector<16x8xf32>
    tpu.vector_store %arg5[%c144_261, %c24_262], %311 {strides = array<i32>} : memref<256x72xf32, #tpu.memory_space<vmem>>, vector<16x8xf32>,
    %313 = vector.extract_strided_slice %309 {offsets = [1, 0], sizes = [16, 8], strides = [1, 1]} : vector<18x8xbf16> to vector<16x8xbf16>
    %314 = arith.extf %313 : vector<16x8xbf16> to vector<16x8xf32>
    %c144_263 = arith.constant 144 : index
    %c32_264 = arith.constant 32 : index
    %315 = vector.load %arg5[%c144_263, %c32_264] : memref<256x72xf32, #tpu.memory_space<vmem>>, vector<16x8xf32>
    tpu.vector_store %arg5[%c144_263, %c32_264], %314 {strides = array<i32>} : memref<256x72xf32, #tpu.memory_space<vmem>>, vector<16x8xf32>,
    %316 = vector.extract_strided_slice %309 {offsets = [2, 0], sizes = [16, 8], strides = [1, 1]} : vector<18x8xbf16> to vector<16x8xbf16>
    %317 = arith.extf %316 : vector<16x8xbf16> to vector<16x8xf32>
    %c144_265 = arith.constant 144 : index
    %c40_266 = arith.constant 40 : index
    %318 = vector.load %arg5[%c144_265, %c40_266] : memref<256x72xf32, #tpu.memory_space<vmem>>, vector<16x8xf32>
    tpu.vector_store %arg5[%c144_265, %c40_266], %317 {strides = array<i32>} : memref<256x72xf32, #tpu.memory_space<vmem>>, vector<16x8xf32>,
    %c0_267 = arith.constant 0 : index
    %c11 = arith.constant 11 : index
    %c0_268 = arith.constant 0 : index
    %c0_269 = arith.constant 0 : index
    %319 = vector.load %arg1[%c0_267, %c11, %c0_268, %c0_269] : memref<1x18x18x8xbf16, #tpu.memory_space<vmem>>, vector<1x1x18x8xbf16>
    %320 = vector.shape_cast %319 : vector<1x1x18x8xbf16> to vector<18x8xbf16>
    %321 = vector.extract_strided_slice %320 {offsets = [0, 0], sizes = [16, 8], strides = [1, 1]} : vector<18x8xbf16> to vector<16x8xbf16>
    %322 = arith.extf %321 : vector<16x8xbf16> to vector<16x8xf32>
    %c144_270 = arith.constant 144 : index
    %c48_271 = arith.constant 48 : index
    %323 = vector.load %arg5[%c144_270, %c48_271] : memref<256x72xf32, #tpu.memory_space<vmem>>, vector<16x8xf32>
    tpu.vector_store %arg5[%c144_270, %c48_271], %322 {strides = array<i32>} : memref<256x72xf32, #tpu.memory_space<vmem>>, vector<16x8xf32>,
    %324 = vector.extract_strided_slice %320 {offsets = [1, 0], sizes = [16, 8], strides = [1, 1]} : vector<18x8xbf16> to vector<16x8xbf16>
    %325 = arith.extf %324 : vector<16x8xbf16> to vector<16x8xf32>
    %c144_272 = arith.constant 144 : index
    %c56_273 = arith.constant 56 : index
    %326 = vector.load %arg5[%c144_272, %c56_273] : memref<256x72xf32, #tpu.memory_space<vmem>>, vector<16x8xf32>
    tpu.vector_store %arg5[%c144_272, %c56_273], %325 {strides = array<i32>} : memref<256x72xf32, #tpu.memory_space<vmem>>, vector<16x8xf32>,
    %327 = vector.extract_strided_slice %320 {offsets = [2, 0], sizes = [16, 8], strides = [1, 1]} : vector<18x8xbf16> to vector<16x8xbf16>
    %328 = arith.extf %327 : vector<16x8xbf16> to vector<16x8xf32>
    %c144_274 = arith.constant 144 : index
    %c64_275 = arith.constant 64 : index
    %329 = vector.load %arg5[%c144_274, %c64_275] : memref<256x72xf32, #tpu.memory_space<vmem>>, vector<16x8xf32>
    tpu.vector_store %arg5[%c144_274, %c64_275], %328 {strides = array<i32>} : memref<256x72xf32, #tpu.memory_space<vmem>>, vector<16x8xf32>,
    %c0_276 = arith.constant 0 : index
    %c10_277 = arith.constant 10 : index
    %c0_278 = arith.constant 0 : index
    %c0_279 = arith.constant 0 : index
    %330 = vector.load %arg1[%c0_276, %c10_277, %c0_278, %c0_279] : memref<1x18x18x8xbf16, #tpu.memory_space<vmem>>, vector<1x1x18x8xbf16>
    %331 = vector.shape_cast %330 : vector<1x1x18x8xbf16> to vector<18x8xbf16>
    %332 = vector.extract_strided_slice %331 {offsets = [0, 0], sizes = [16, 8], strides = [1, 1]} : vector<18x8xbf16> to vector<16x8xbf16>
    %333 = arith.extf %332 : vector<16x8xbf16> to vector<16x8xf32>
    %c160 = arith.constant 160 : index
    %c0_280 = arith.constant 0 : index
    %334 = vector.load %arg5[%c160, %c0_280] : memref<256x72xf32, #tpu.memory_space<vmem>>, vector<16x8xf32>
    tpu.vector_store %arg5[%c160, %c0_280], %333 {strides = array<i32>} : memref<256x72xf32, #tpu.memory_space<vmem>>, vector<16x8xf32>,
    %335 = vector.extract_strided_slice %331 {offsets = [1, 0], sizes = [16, 8], strides = [1, 1]} : vector<18x8xbf16> to vector<16x8xbf16>
    %336 = arith.extf %335 : vector<16x8xbf16> to vector<16x8xf32>
    %c160_281 = arith.constant 160 : index
    %c8_282 = arith.constant 8 : index
    %337 = vector.load %arg5[%c160_281, %c8_282] : memref<256x72xf32, #tpu.memory_space<vmem>>, vector<16x8xf32>
    tpu.vector_store %arg5[%c160_281, %c8_282], %336 {strides = array<i32>} : memref<256x72xf32, #tpu.memory_space<vmem>>, vector<16x8xf32>,
    %338 = vector.extract_strided_slice %331 {offsets = [2, 0], sizes = [16, 8], strides = [1, 1]} : vector<18x8xbf16> to vector<16x8xbf16>
    %339 = arith.extf %338 : vector<16x8xbf16> to vector<16x8xf32>
    %c160_283 = arith.constant 160 : index
    %c16_284 = arith.constant 16 : index
    %340 = vector.load %arg5[%c160_283, %c16_284] : memref<256x72xf32, #tpu.memory_space<vmem>>, vector<16x8xf32>
    tpu.vector_store %arg5[%c160_283, %c16_284], %339 {strides = array<i32>} : memref<256x72xf32, #tpu.memory_space<vmem>>, vector<16x8xf32>,
    %c0_285 = arith.constant 0 : index
    %c11_286 = arith.constant 11 : index
    %c0_287 = arith.constant 0 : index
    %c0_288 = arith.constant 0 : index
    %341 = vector.load %arg1[%c0_285, %c11_286, %c0_287, %c0_288] : memref<1x18x18x8xbf16, #tpu.memory_space<vmem>>, vector<1x1x18x8xbf16>
    %342 = vector.shape_cast %341 : vector<1x1x18x8xbf16> to vector<18x8xbf16>
    %343 = vector.extract_strided_slice %342 {offsets = [0, 0], sizes = [16, 8], strides = [1, 1]} : vector<18x8xbf16> to vector<16x8xbf16>
    %344 = arith.extf %343 : vector<16x8xbf16> to vector<16x8xf32>
    %c160_289 = arith.constant 160 : index
    %c24_290 = arith.constant 24 : index
    %345 = vector.load %arg5[%c160_289, %c24_290] : memref<256x72xf32, #tpu.memory_space<vmem>>, vector<16x8xf32>
    tpu.vector_store %arg5[%c160_289, %c24_290], %344 {strides = array<i32>} : memref<256x72xf32, #tpu.memory_space<vmem>>, vector<16x8xf32>,
    %346 = vector.extract_strided_slice %342 {offsets = [1, 0], sizes = [16, 8], strides = [1, 1]} : vector<18x8xbf16> to vector<16x8xbf16>
    %347 = arith.extf %346 : vector<16x8xbf16> to vector<16x8xf32>
    %c160_291 = arith.constant 160 : index
    %c32_292 = arith.constant 32 : index
    %348 = vector.load %arg5[%c160_291, %c32_292] : memref<256x72xf32, #tpu.memory_space<vmem>>, vector<16x8xf32>
    tpu.vector_store %arg5[%c160_291, %c32_292], %347 {strides = array<i32>} : memref<256x72xf32, #tpu.memory_space<vmem>>, vector<16x8xf32>,
    %349 = vector.extract_strided_slice %342 {offsets = [2, 0], sizes = [16, 8], strides = [1, 1]} : vector<18x8xbf16> to vector<16x8xbf16>
    %350 = arith.extf %349 : vector<16x8xbf16> to vector<16x8xf32>
    %c160_293 = arith.constant 160 : index
    %c40_294 = arith.constant 40 : index
    %351 = vector.load %arg5[%c160_293, %c40_294] : memref<256x72xf32, #tpu.memory_space<vmem>>, vector<16x8xf32>
    tpu.vector_store %arg5[%c160_293, %c40_294], %350 {strides = array<i32>} : memref<256x72xf32, #tpu.memory_space<vmem>>, vector<16x8xf32>,
    %c0_295 = arith.constant 0 : index
    %c12 = arith.constant 12 : index
    %c0_296 = arith.constant 0 : index
    %c0_297 = arith.constant 0 : index
    %352 = vector.load %arg1[%c0_295, %c12, %c0_296, %c0_297] : memref<1x18x18x8xbf16, #tpu.memory_space<vmem>>, vector<1x1x18x8xbf16>
    %353 = vector.shape_cast %352 : vector<1x1x18x8xbf16> to vector<18x8xbf16>
    %354 = vector.extract_strided_slice %353 {offsets = [0, 0], sizes = [16, 8], strides = [1, 1]} : vector<18x8xbf16> to vector<16x8xbf16>
    %355 = arith.extf %354 : vector<16x8xbf16> to vector<16x8xf32>
    %c160_298 = arith.constant 160 : index
    %c48_299 = arith.constant 48 : index
    %356 = vector.load %arg5[%c160_298, %c48_299] : memref<256x72xf32, #tpu.memory_space<vmem>>, vector<16x8xf32>
    tpu.vector_store %arg5[%c160_298, %c48_299], %355 {strides = array<i32>} : memref<256x72xf32, #tpu.memory_space<vmem>>, vector<16x8xf32>,
    %357 = vector.extract_strided_slice %353 {offsets = [1, 0], sizes = [16, 8], strides = [1, 1]} : vector<18x8xbf16> to vector<16x8xbf16>
    %358 = arith.extf %357 : vector<16x8xbf16> to vector<16x8xf32>
    %c160_300 = arith.constant 160 : index
    %c56_301 = arith.constant 56 : index
    %359 = vector.load %arg5[%c160_300, %c56_301] : memref<256x72xf32, #tpu.memory_space<vmem>>, vector<16x8xf32>
    tpu.vector_store %arg5[%c160_300, %c56_301], %358 {strides = array<i32>} : memref<256x72xf32, #tpu.memory_space<vmem>>, vector<16x8xf32>,
    %360 = vector.extract_strided_slice %353 {offsets = [2, 0], sizes = [16, 8], strides = [1, 1]} : vector<18x8xbf16> to vector<16x8xbf16>
    %361 = arith.extf %360 : vector<16x8xbf16> to vector<16x8xf32>
    %c160_302 = arith.constant 160 : index
    %c64_303 = arith.constant 64 : index
    %362 = vector.load %arg5[%c160_302, %c64_303] : memref<256x72xf32, #tpu.memory_space<vmem>>, vector<16x8xf32>
    tpu.vector_store %arg5[%c160_302, %c64_303], %361 {strides = array<i32>} : memref<256x72xf32, #tpu.memory_space<vmem>>, vector<16x8xf32>,
    %c0_304 = arith.constant 0 : index
    %c11_305 = arith.constant 11 : index
    %c0_306 = arith.constant 0 : index
    %c0_307 = arith.constant 0 : index
    %363 = vector.load %arg1[%c0_304, %c11_305, %c0_306, %c0_307] : memref<1x18x18x8xbf16, #tpu.memory_space<vmem>>, vector<1x1x18x8xbf16>
    %364 = vector.shape_cast %363 : vector<1x1x18x8xbf16> to vector<18x8xbf16>
    %365 = vector.extract_strided_slice %364 {offsets = [0, 0], sizes = [16, 8], strides = [1, 1]} : vector<18x8xbf16> to vector<16x8xbf16>
    %366 = arith.extf %365 : vector<16x8xbf16> to vector<16x8xf32>
    %c176 = arith.constant 176 : index
    %c0_308 = arith.constant 0 : index
    %367 = vector.load %arg5[%c176, %c0_308] : memref<256x72xf32, #tpu.memory_space<vmem>>, vector<16x8xf32>
    tpu.vector_store %arg5[%c176, %c0_308], %366 {strides = array<i32>} : memref<256x72xf32, #tpu.memory_space<vmem>>, vector<16x8xf32>,
    %368 = vector.extract_strided_slice %364 {offsets = [1, 0], sizes = [16, 8], strides = [1, 1]} : vector<18x8xbf16> to vector<16x8xbf16>
    %369 = arith.extf %368 : vector<16x8xbf16> to vector<16x8xf32>
    %c176_309 = arith.constant 176 : index
    %c8_310 = arith.constant 8 : index
    %370 = vector.load %arg5[%c176_309, %c8_310] : memref<256x72xf32, #tpu.memory_space<vmem>>, vector<16x8xf32>
    tpu.vector_store %arg5[%c176_309, %c8_310], %369 {strides = array<i32>} : memref<256x72xf32, #tpu.memory_space<vmem>>, vector<16x8xf32>,
    %371 = vector.extract_strided_slice %364 {offsets = [2, 0], sizes = [16, 8], strides = [1, 1]} : vector<18x8xbf16> to vector<16x8xbf16>
    %372 = arith.extf %371 : vector<16x8xbf16> to vector<16x8xf32>
    %c176_311 = arith.constant 176 : index
    %c16_312 = arith.constant 16 : index
    %373 = vector.load %arg5[%c176_311, %c16_312] : memref<256x72xf32, #tpu.memory_space<vmem>>, vector<16x8xf32>
    tpu.vector_store %arg5[%c176_311, %c16_312], %372 {strides = array<i32>} : memref<256x72xf32, #tpu.memory_space<vmem>>, vector<16x8xf32>,
    %c0_313 = arith.constant 0 : index
    %c12_314 = arith.constant 12 : index
    %c0_315 = arith.constant 0 : index
    %c0_316 = arith.constant 0 : index
    %374 = vector.load %arg1[%c0_313, %c12_314, %c0_315, %c0_316] : memref<1x18x18x8xbf16, #tpu.memory_space<vmem>>, vector<1x1x18x8xbf16>
    %375 = vector.shape_cast %374 : vector<1x1x18x8xbf16> to vector<18x8xbf16>
    %376 = vector.extract_strided_slice %375 {offsets = [0, 0], sizes = [16, 8], strides = [1, 1]} : vector<18x8xbf16> to vector<16x8xbf16>
    %377 = arith.extf %376 : vector<16x8xbf16> to vector<16x8xf32>
    %c176_317 = arith.constant 176 : index
    %c24_318 = arith.constant 24 : index
    %378 = vector.load %arg5[%c176_317, %c24_318] : memref<256x72xf32, #tpu.memory_space<vmem>>, vector<16x8xf32>
    tpu.vector_store %arg5[%c176_317, %c24_318], %377 {strides = array<i32>} : memref<256x72xf32, #tpu.memory_space<vmem>>, vector<16x8xf32>,
    %379 = vector.extract_strided_slice %375 {offsets = [1, 0], sizes = [16, 8], strides = [1, 1]} : vector<18x8xbf16> to vector<16x8xbf16>
    %380 = arith.extf %379 : vector<16x8xbf16> to vector<16x8xf32>
    %c176_319 = arith.constant 176 : index
    %c32_320 = arith.constant 32 : index
    %381 = vector.load %arg5[%c176_319, %c32_320] : memref<256x72xf32, #tpu.memory_space<vmem>>, vector<16x8xf32>
    tpu.vector_store %arg5[%c176_319, %c32_320], %380 {strides = array<i32>} : memref<256x72xf32, #tpu.memory_space<vmem>>, vector<16x8xf32>,
    %382 = vector.extract_strided_slice %375 {offsets = [2, 0], sizes = [16, 8], strides = [1, 1]} : vector<18x8xbf16> to vector<16x8xbf16>
    %383 = arith.extf %382 : vector<16x8xbf16> to vector<16x8xf32>
    %c176_321 = arith.constant 176 : index
    %c40_322 = arith.constant 40 : index
    %384 = vector.load %arg5[%c176_321, %c40_322] : memref<256x72xf32, #tpu.memory_space<vmem>>, vector<16x8xf32>
    tpu.vector_store %arg5[%c176_321, %c40_322], %383 {strides = array<i32>} : memref<256x72xf32, #tpu.memory_space<vmem>>, vector<16x8xf32>,
    %c0_323 = arith.constant 0 : index
    %c13 = arith.constant 13 : index
    %c0_324 = arith.constant 0 : index
    %c0_325 = arith.constant 0 : index
    %385 = vector.load %arg1[%c0_323, %c13, %c0_324, %c0_325] : memref<1x18x18x8xbf16, #tpu.memory_space<vmem>>, vector<1x1x18x8xbf16>
    %386 = vector.shape_cast %385 : vector<1x1x18x8xbf16> to vector<18x8xbf16>
    %387 = vector.extract_strided_slice %386 {offsets = [0, 0], sizes = [16, 8], strides = [1, 1]} : vector<18x8xbf16> to vector<16x8xbf16>
    %388 = arith.extf %387 : vector<16x8xbf16> to vector<16x8xf32>
    %c176_326 = arith.constant 176 : index
    %c48_327 = arith.constant 48 : index
    %389 = vector.load %arg5[%c176_326, %c48_327] : memref<256x72xf32, #tpu.memory_space<vmem>>, vector<16x8xf32>
    tpu.vector_store %arg5[%c176_326, %c48_327], %388 {strides = array<i32>} : memref<256x72xf32, #tpu.memory_space<vmem>>, vector<16x8xf32>,
    %390 = vector.extract_strided_slice %386 {offsets = [1, 0], sizes = [16, 8], strides = [1, 1]} : vector<18x8xbf16> to vector<16x8xbf16>
    %391 = arith.extf %390 : vector<16x8xbf16> to vector<16x8xf32>
    %c176_328 = arith.constant 176 : index
    %c56_329 = arith.constant 56 : index
    %392 = vector.load %arg5[%c176_328, %c56_329] : memref<256x72xf32, #tpu.memory_space<vmem>>, vector<16x8xf32>
    tpu.vector_store %arg5[%c176_328, %c56_329], %391 {strides = array<i32>} : memref<256x72xf32, #tpu.memory_space<vmem>>, vector<16x8xf32>,
    %393 = vector.extract_strided_slice %386 {offsets = [2, 0], sizes = [16, 8], strides = [1, 1]} : vector<18x8xbf16> to vector<16x8xbf16>
    %394 = arith.extf %393 : vector<16x8xbf16> to vector<16x8xf32>
    %c176_330 = arith.constant 176 : index
    %c64_331 = arith.constant 64 : index
    %395 = vector.load %arg5[%c176_330, %c64_331] : memref<256x72xf32, #tpu.memory_space<vmem>>, vector<16x8xf32>
    tpu.vector_store %arg5[%c176_330, %c64_331], %394 {strides = array<i32>} : memref<256x72xf32, #tpu.memory_space<vmem>>, vector<16x8xf32>,
    %c0_332 = arith.constant 0 : index
    %c12_333 = arith.constant 12 : index
    %c0_334 = arith.constant 0 : index
    %c0_335 = arith.constant 0 : index
    %396 = vector.load %arg1[%c0_332, %c12_333, %c0_334, %c0_335] : memref<1x18x18x8xbf16, #tpu.memory_space<vmem>>, vector<1x1x18x8xbf16>
    %397 = vector.shape_cast %396 : vector<1x1x18x8xbf16> to vector<18x8xbf16>
    %398 = vector.extract_strided_slice %397 {offsets = [0, 0], sizes = [16, 8], strides = [1, 1]} : vector<18x8xbf16> to vector<16x8xbf16>
    %399 = arith.extf %398 : vector<16x8xbf16> to vector<16x8xf32>
    %c192 = arith.constant 192 : index
    %c0_336 = arith.constant 0 : index
    %400 = vector.load %arg5[%c192, %c0_336] : memref<256x72xf32, #tpu.memory_space<vmem>>, vector<16x8xf32>
    tpu.vector_store %arg5[%c192, %c0_336], %399 {strides = array<i32>} : memref<256x72xf32, #tpu.memory_space<vmem>>, vector<16x8xf32>,
    %401 = vector.extract_strided_slice %397 {offsets = [1, 0], sizes = [16, 8], strides = [1, 1]} : vector<18x8xbf16> to vector<16x8xbf16>
    %402 = arith.extf %401 : vector<16x8xbf16> to vector<16x8xf32>
    %c192_337 = arith.constant 192 : index
    %c8_338 = arith.constant 8 : index
    %403 = vector.load %arg5[%c192_337, %c8_338] : memref<256x72xf32, #tpu.memory_space<vmem>>, vector<16x8xf32>
    tpu.vector_store %arg5[%c192_337, %c8_338], %402 {strides = array<i32>} : memref<256x72xf32, #tpu.memory_space<vmem>>, vector<16x8xf32>,
    %404 = vector.extract_strided_slice %397 {offsets = [2, 0], sizes = [16, 8], strides = [1, 1]} : vector<18x8xbf16> to vector<16x8xbf16>
    %405 = arith.extf %404 : vector<16x8xbf16> to vector<16x8xf32>
    %c192_339 = arith.constant 192 : index
    %c16_340 = arith.constant 16 : index
    %406 = vector.load %arg5[%c192_339, %c16_340] : memref<256x72xf32, #tpu.memory_space<vmem>>, vector<16x8xf32>
    tpu.vector_store %arg5[%c192_339, %c16_340], %405 {strides = array<i32>} : memref<256x72xf32, #tpu.memory_space<vmem>>, vector<16x8xf32>,
    %c0_341 = arith.constant 0 : index
    %c13_342 = arith.constant 13 : index
    %c0_343 = arith.constant 0 : index
    %c0_344 = arith.constant 0 : index
    %407 = vector.load %arg1[%c0_341, %c13_342, %c0_343, %c0_344] : memref<1x18x18x8xbf16, #tpu.memory_space<vmem>>, vector<1x1x18x8xbf16>
    %408 = vector.shape_cast %407 : vector<1x1x18x8xbf16> to vector<18x8xbf16>
    %409 = vector.extract_strided_slice %408 {offsets = [0, 0], sizes = [16, 8], strides = [1, 1]} : vector<18x8xbf16> to vector<16x8xbf16>
    %410 = arith.extf %409 : vector<16x8xbf16> to vector<16x8xf32>
    %c192_345 = arith.constant 192 : index
    %c24_346 = arith.constant 24 : index
    %411 = vector.load %arg5[%c192_345, %c24_346] : memref<256x72xf32, #tpu.memory_space<vmem>>, vector<16x8xf32>
    tpu.vector_store %arg5[%c192_345, %c24_346], %410 {strides = array<i32>} : memref<256x72xf32, #tpu.memory_space<vmem>>, vector<16x8xf32>,
    %412 = vector.extract_strided_slice %408 {offsets = [1, 0], sizes = [16, 8], strides = [1, 1]} : vector<18x8xbf16> to vector<16x8xbf16>
    %413 = arith.extf %412 : vector<16x8xbf16> to vector<16x8xf32>
    %c192_347 = arith.constant 192 : index
    %c32_348 = arith.constant 32 : index
    %414 = vector.load %arg5[%c192_347, %c32_348] : memref<256x72xf32, #tpu.memory_space<vmem>>, vector<16x8xf32>
    tpu.vector_store %arg5[%c192_347, %c32_348], %413 {strides = array<i32>} : memref<256x72xf32, #tpu.memory_space<vmem>>, vector<16x8xf32>,
    %415 = vector.extract_strided_slice %408 {offsets = [2, 0], sizes = [16, 8], strides = [1, 1]} : vector<18x8xbf16> to vector<16x8xbf16>
    %416 = arith.extf %415 : vector<16x8xbf16> to vector<16x8xf32>
    %c192_349 = arith.constant 192 : index
    %c40_350 = arith.constant 40 : index
    %417 = vector.load %arg5[%c192_349, %c40_350] : memref<256x72xf32, #tpu.memory_space<vmem>>, vector<16x8xf32>
    tpu.vector_store %arg5[%c192_349, %c40_350], %416 {strides = array<i32>} : memref<256x72xf32, #tpu.memory_space<vmem>>, vector<16x8xf32>,
    %c0_351 = arith.constant 0 : index
    %c14 = arith.constant 14 : index
    %c0_352 = arith.constant 0 : index
    %c0_353 = arith.constant 0 : index
    %418 = vector.load %arg1[%c0_351, %c14, %c0_352, %c0_353] : memref<1x18x18x8xbf16, #tpu.memory_space<vmem>>, vector<1x1x18x8xbf16>
    %419 = vector.shape_cast %418 : vector<1x1x18x8xbf16> to vector<18x8xbf16>
    %420 = vector.extract_strided_slice %419 {offsets = [0, 0], sizes = [16, 8], strides = [1, 1]} : vector<18x8xbf16> to vector<16x8xbf16>
    %421 = arith.extf %420 : vector<16x8xbf16> to vector<16x8xf32>
    %c192_354 = arith.constant 192 : index
    %c48_355 = arith.constant 48 : index
    %422 = vector.load %arg5[%c192_354, %c48_355] : memref<256x72xf32, #tpu.memory_space<vmem>>, vector<16x8xf32>
    tpu.vector_store %arg5[%c192_354, %c48_355], %421 {strides = array<i32>} : memref<256x72xf32, #tpu.memory_space<vmem>>, vector<16x8xf32>,
    %423 = vector.extract_strided_slice %419 {offsets = [1, 0], sizes = [16, 8], strides = [1, 1]} : vector<18x8xbf16> to vector<16x8xbf16>
    %424 = arith.extf %423 : vector<16x8xbf16> to vector<16x8xf32>
    %c192_356 = arith.constant 192 : index
    %c56_357 = arith.constant 56 : index
    %425 = vector.load %arg5[%c192_356, %c56_357] : memref<256x72xf32, #tpu.memory_space<vmem>>, vector<16x8xf32>
    tpu.vector_store %arg5[%c192_356, %c56_357], %424 {strides = array<i32>} : memref<256x72xf32, #tpu.memory_space<vmem>>, vector<16x8xf32>,
    %426 = vector.extract_strided_slice %419 {offsets = [2, 0], sizes = [16, 8], strides = [1, 1]} : vector<18x8xbf16> to vector<16x8xbf16>
    %427 = arith.extf %426 : vector<16x8xbf16> to vector<16x8xf32>
    %c192_358 = arith.constant 192 : index
    %c64_359 = arith.constant 64 : index
    %428 = vector.load %arg5[%c192_358, %c64_359] : memref<256x72xf32, #tpu.memory_space<vmem>>, vector<16x8xf32>
    tpu.vector_store %arg5[%c192_358, %c64_359], %427 {strides = array<i32>} : memref<256x72xf32, #tpu.memory_space<vmem>>, vector<16x8xf32>,
    %c0_360 = arith.constant 0 : index
    %c13_361 = arith.constant 13 : index
    %c0_362 = arith.constant 0 : index
    %c0_363 = arith.constant 0 : index
    %429 = vector.load %arg1[%c0_360, %c13_361, %c0_362, %c0_363] : memref<1x18x18x8xbf16, #tpu.memory_space<vmem>>, vector<1x1x18x8xbf16>
    %430 = vector.shape_cast %429 : vector<1x1x18x8xbf16> to vector<18x8xbf16>
    %431 = vector.extract_strided_slice %430 {offsets = [0, 0], sizes = [16, 8], strides = [1, 1]} : vector<18x8xbf16> to vector<16x8xbf16>
    %432 = arith.extf %431 : vector<16x8xbf16> to vector<16x8xf32>
    %c208 = arith.constant 208 : index
    %c0_364 = arith.constant 0 : index
    %433 = vector.load %arg5[%c208, %c0_364] : memref<256x72xf32, #tpu.memory_space<vmem>>, vector<16x8xf32>
    tpu.vector_store %arg5[%c208, %c0_364], %432 {strides = array<i32>} : memref<256x72xf32, #tpu.memory_space<vmem>>, vector<16x8xf32>,
    %434 = vector.extract_strided_slice %430 {offsets = [1, 0], sizes = [16, 8], strides = [1, 1]} : vector<18x8xbf16> to vector<16x8xbf16>
    %435 = arith.extf %434 : vector<16x8xbf16> to vector<16x8xf32>
    %c208_365 = arith.constant 208 : index
    %c8_366 = arith.constant 8 : index
    %436 = vector.load %arg5[%c208_365, %c8_366] : memref<256x72xf32, #tpu.memory_space<vmem>>, vector<16x8xf32>
    tpu.vector_store %arg5[%c208_365, %c8_366], %435 {strides = array<i32>} : memref<256x72xf32, #tpu.memory_space<vmem>>, vector<16x8xf32>,
    %437 = vector.extract_strided_slice %430 {offsets = [2, 0], sizes = [16, 8], strides = [1, 1]} : vector<18x8xbf16> to vector<16x8xbf16>
    %438 = arith.extf %437 : vector<16x8xbf16> to vector<16x8xf32>
    %c208_367 = arith.constant 208 : index
    %c16_368 = arith.constant 16 : index
    %439 = vector.load %arg5[%c208_367, %c16_368] : memref<256x72xf32, #tpu.memory_space<vmem>>, vector<16x8xf32>
    tpu.vector_store %arg5[%c208_367, %c16_368], %438 {strides = array<i32>} : memref<256x72xf32, #tpu.memory_space<vmem>>, vector<16x8xf32>,
    %c0_369 = arith.constant 0 : index
    %c14_370 = arith.constant 14 : index
    %c0_371 = arith.constant 0 : index
    %c0_372 = arith.constant 0 : index
    %440 = vector.load %arg1[%c0_369, %c14_370, %c0_371, %c0_372] : memref<1x18x18x8xbf16, #tpu.memory_space<vmem>>, vector<1x1x18x8xbf16>
    %441 = vector.shape_cast %440 : vector<1x1x18x8xbf16> to vector<18x8xbf16>
    %442 = vector.extract_strided_slice %441 {offsets = [0, 0], sizes = [16, 8], strides = [1, 1]} : vector<18x8xbf16> to vector<16x8xbf16>
    %443 = arith.extf %442 : vector<16x8xbf16> to vector<16x8xf32>
    %c208_373 = arith.constant 208 : index
    %c24_374 = arith.constant 24 : index
    %444 = vector.load %arg5[%c208_373, %c24_374] : memref<256x72xf32, #tpu.memory_space<vmem>>, vector<16x8xf32>
    tpu.vector_store %arg5[%c208_373, %c24_374], %443 {strides = array<i32>} : memref<256x72xf32, #tpu.memory_space<vmem>>, vector<16x8xf32>,
    %445 = vector.extract_strided_slice %441 {offsets = [1, 0], sizes = [16, 8], strides = [1, 1]} : vector<18x8xbf16> to vector<16x8xbf16>
    %446 = arith.extf %445 : vector<16x8xbf16> to vector<16x8xf32>
    %c208_375 = arith.constant 208 : index
    %c32_376 = arith.constant 32 : index
    %447 = vector.load %arg5[%c208_375, %c32_376] : memref<256x72xf32, #tpu.memory_space<vmem>>, vector<16x8xf32>
    tpu.vector_store %arg5[%c208_375, %c32_376], %446 {strides = array<i32>} : memref<256x72xf32, #tpu.memory_space<vmem>>, vector<16x8xf32>,
    %448 = vector.extract_strided_slice %441 {offsets = [2, 0], sizes = [16, 8], strides = [1, 1]} : vector<18x8xbf16> to vector<16x8xbf16>
    %449 = arith.extf %448 : vector<16x8xbf16> to vector<16x8xf32>
    %c208_377 = arith.constant 208 : index
    %c40_378 = arith.constant 40 : index
    %450 = vector.load %arg5[%c208_377, %c40_378] : memref<256x72xf32, #tpu.memory_space<vmem>>, vector<16x8xf32>
    tpu.vector_store %arg5[%c208_377, %c40_378], %449 {strides = array<i32>} : memref<256x72xf32, #tpu.memory_space<vmem>>, vector<16x8xf32>,
    %c0_379 = arith.constant 0 : index
    %c15 = arith.constant 15 : index
    %c0_380 = arith.constant 0 : index
    %c0_381 = arith.constant 0 : index
    %451 = vector.load %arg1[%c0_379, %c15, %c0_380, %c0_381] : memref<1x18x18x8xbf16, #tpu.memory_space<vmem>>, vector<1x1x18x8xbf16>
    %452 = vector.shape_cast %451 : vector<1x1x18x8xbf16> to vector<18x8xbf16>
    %453 = vector.extract_strided_slice %452 {offsets = [0, 0], sizes = [16, 8], strides = [1, 1]} : vector<18x8xbf16> to vector<16x8xbf16>
    %454 = arith.extf %453 : vector<16x8xbf16> to vector<16x8xf32>
    %c208_382 = arith.constant 208 : index
    %c48_383 = arith.constant 48 : index
    %455 = vector.load %arg5[%c208_382, %c48_383] : memref<256x72xf32, #tpu.memory_space<vmem>>, vector<16x8xf32>
    tpu.vector_store %arg5[%c208_382, %c48_383], %454 {strides = array<i32>} : memref<256x72xf32, #tpu.memory_space<vmem>>, vector<16x8xf32>,
    %456 = vector.extract_strided_slice %452 {offsets = [1, 0], sizes = [16, 8], strides = [1, 1]} : vector<18x8xbf16> to vector<16x8xbf16>
    %457 = arith.extf %456 : vector<16x8xbf16> to vector<16x8xf32>
    %c208_384 = arith.constant 208 : index
    %c56_385 = arith.constant 56 : index
    %458 = vector.load %arg5[%c208_384, %c56_385] : memref<256x72xf32, #tpu.memory_space<vmem>>, vector<16x8xf32>
    tpu.vector_store %arg5[%c208_384, %c56_385], %457 {strides = array<i32>} : memref<256x72xf32, #tpu.memory_space<vmem>>, vector<16x8xf32>,
    %459 = vector.extract_strided_slice %452 {offsets = [2, 0], sizes = [16, 8], strides = [1, 1]} : vector<18x8xbf16> to vector<16x8xbf16>
    %460 = arith.extf %459 : vector<16x8xbf16> to vector<16x8xf32>
    %c208_386 = arith.constant 208 : index
    %c64_387 = arith.constant 64 : index
    %461 = vector.load %arg5[%c208_386, %c64_387] : memref<256x72xf32, #tpu.memory_space<vmem>>, vector<16x8xf32>
    tpu.vector_store %arg5[%c208_386, %c64_387], %460 {strides = array<i32>} : memref<256x72xf32, #tpu.memory_space<vmem>>, vector<16x8xf32>,
    %c0_388 = arith.constant 0 : index
    %c14_389 = arith.constant 14 : index
    %c0_390 = arith.constant 0 : index
    %c0_391 = arith.constant 0 : index
    %462 = vector.load %arg1[%c0_388, %c14_389, %c0_390, %c0_391] : memref<1x18x18x8xbf16, #tpu.memory_space<vmem>>, vector<1x1x18x8xbf16>
    %463 = vector.shape_cast %462 : vector<1x1x18x8xbf16> to vector<18x8xbf16>
    %464 = vector.extract_strided_slice %463 {offsets = [0, 0], sizes = [16, 8], strides = [1, 1]} : vector<18x8xbf16> to vector<16x8xbf16>
    %465 = arith.extf %464 : vector<16x8xbf16> to vector<16x8xf32>
    %c224 = arith.constant 224 : index
    %c0_392 = arith.constant 0 : index
    %466 = vector.load %arg5[%c224, %c0_392] : memref<256x72xf32, #tpu.memory_space<vmem>>, vector<16x8xf32>
    tpu.vector_store %arg5[%c224, %c0_392], %465 {strides = array<i32>} : memref<256x72xf32, #tpu.memory_space<vmem>>, vector<16x8xf32>,
    %467 = vector.extract_strided_slice %463 {offsets = [1, 0], sizes = [16, 8], strides = [1, 1]} : vector<18x8xbf16> to vector<16x8xbf16>
    %468 = arith.extf %467 : vector<16x8xbf16> to vector<16x8xf32>
    %c224_393 = arith.constant 224 : index
    %c8_394 = arith.constant 8 : index
    %469 = vector.load %arg5[%c224_393, %c8_394] : memref<256x72xf32, #tpu.memory_space<vmem>>, vector<16x8xf32>
    tpu.vector_store %arg5[%c224_393, %c8_394], %468 {strides = array<i32>} : memref<256x72xf32, #tpu.memory_space<vmem>>, vector<16x8xf32>,
    %470 = vector.extract_strided_slice %463 {offsets = [2, 0], sizes = [16, 8], strides = [1, 1]} : vector<18x8xbf16> to vector<16x8xbf16>
    %471 = arith.extf %470 : vector<16x8xbf16> to vector<16x8xf32>
    %c224_395 = arith.constant 224 : index
    %c16_396 = arith.constant 16 : index
    %472 = vector.load %arg5[%c224_395, %c16_396] : memref<256x72xf32, #tpu.memory_space<vmem>>, vector<16x8xf32>
    tpu.vector_store %arg5[%c224_395, %c16_396], %471 {strides = array<i32>} : memref<256x72xf32, #tpu.memory_space<vmem>>, vector<16x8xf32>,
    %c0_397 = arith.constant 0 : index
    %c15_398 = arith.constant 15 : index
    %c0_399 = arith.constant 0 : index
    %c0_400 = arith.constant 0 : index
    %473 = vector.load %arg1[%c0_397, %c15_398, %c0_399, %c0_400] : memref<1x18x18x8xbf16, #tpu.memory_space<vmem>>, vector<1x1x18x8xbf16>
    %474 = vector.shape_cast %473 : vector<1x1x18x8xbf16> to vector<18x8xbf16>
    %475 = vector.extract_strided_slice %474 {offsets = [0, 0], sizes = [16, 8], strides = [1, 1]} : vector<18x8xbf16> to vector<16x8xbf16>
    %476 = arith.extf %475 : vector<16x8xbf16> to vector<16x8xf32>
    %c224_401 = arith.constant 224 : index
    %c24_402 = arith.constant 24 : index
    %477 = vector.load %arg5[%c224_401, %c24_402] : memref<256x72xf32, #tpu.memory_space<vmem>>, vector<16x8xf32>
    tpu.vector_store %arg5[%c224_401, %c24_402], %476 {strides = array<i32>} : memref<256x72xf32, #tpu.memory_space<vmem>>, vector<16x8xf32>,
    %478 = vector.extract_strided_slice %474 {offsets = [1, 0], sizes = [16, 8], strides = [1, 1]} : vector<18x8xbf16> to vector<16x8xbf16>
    %479 = arith.extf %478 : vector<16x8xbf16> to vector<16x8xf32>
    %c224_403 = arith.constant 224 : index
    %c32_404 = arith.constant 32 : index
    %480 = vector.load %arg5[%c224_403, %c32_404] : memref<256x72xf32, #tpu.memory_space<vmem>>, vector<16x8xf32>
    tpu.vector_store %arg5[%c224_403, %c32_404], %479 {strides = array<i32>} : memref<256x72xf32, #tpu.memory_space<vmem>>, vector<16x8xf32>,
    %481 = vector.extract_strided_slice %474 {offsets = [2, 0], sizes = [16, 8], strides = [1, 1]} : vector<18x8xbf16> to vector<16x8xbf16>
    %482 = arith.extf %481 : vector<16x8xbf16> to vector<16x8xf32>
    %c224_405 = arith.constant 224 : index
    %c40_406 = arith.constant 40 : index
    %483 = vector.load %arg5[%c224_405, %c40_406] : memref<256x72xf32, #tpu.memory_space<vmem>>, vector<16x8xf32>
    tpu.vector_store %arg5[%c224_405, %c40_406], %482 {strides = array<i32>} : memref<256x72xf32, #tpu.memory_space<vmem>>, vector<16x8xf32>,
    %c0_407 = arith.constant 0 : index
    %c16_408 = arith.constant 16 : index
    %c0_409 = arith.constant 0 : index
    %c0_410 = arith.constant 0 : index
    %484 = vector.load %arg1[%c0_407, %c16_408, %c0_409, %c0_410] : memref<1x18x18x8xbf16, #tpu.memory_space<vmem>>, vector<1x1x18x8xbf16>
    %485 = vector.shape_cast %484 : vector<1x1x18x8xbf16> to vector<18x8xbf16>
    %486 = vector.extract_strided_slice %485 {offsets = [0, 0], sizes = [16, 8], strides = [1, 1]} : vector<18x8xbf16> to vector<16x8xbf16>
    %487 = arith.extf %486 : vector<16x8xbf16> to vector<16x8xf32>
    %c224_411 = arith.constant 224 : index
    %c48_412 = arith.constant 48 : index
    %488 = vector.load %arg5[%c224_411, %c48_412] : memref<256x72xf32, #tpu.memory_space<vmem>>, vector<16x8xf32>
    tpu.vector_store %arg5[%c224_411, %c48_412], %487 {strides = array<i32>} : memref<256x72xf32, #tpu.memory_space<vmem>>, vector<16x8xf32>,
    %489 = vector.extract_strided_slice %485 {offsets = [1, 0], sizes = [16, 8], strides = [1, 1]} : vector<18x8xbf16> to vector<16x8xbf16>
    %490 = arith.extf %489 : vector<16x8xbf16> to vector<16x8xf32>
    %c224_413 = arith.constant 224 : index
    %c56_414 = arith.constant 56 : index
    %491 = vector.load %arg5[%c224_413, %c56_414] : memref<256x72xf32, #tpu.memory_space<vmem>>, vector<16x8xf32>
    tpu.vector_store %arg5[%c224_413, %c56_414], %490 {strides = array<i32>} : memref<256x72xf32, #tpu.memory_space<vmem>>, vector<16x8xf32>,
    %492 = vector.extract_strided_slice %485 {offsets = [2, 0], sizes = [16, 8], strides = [1, 1]} : vector<18x8xbf16> to vector<16x8xbf16>
    %493 = arith.extf %492 : vector<16x8xbf16> to vector<16x8xf32>
    %c224_415 = arith.constant 224 : index
    %c64_416 = arith.constant 64 : index
    %494 = vector.load %arg5[%c224_415, %c64_416] : memref<256x72xf32, #tpu.memory_space<vmem>>, vector<16x8xf32>
    tpu.vector_store %arg5[%c224_415, %c64_416], %493 {strides = array<i32>} : memref<256x72xf32, #tpu.memory_space<vmem>>, vector<16x8xf32>,
    %c0_417 = arith.constant 0 : index
    %c15_418 = arith.constant 15 : index
    %c0_419 = arith.constant 0 : index
    %c0_420 = arith.constant 0 : index
    %495 = vector.load %arg1[%c0_417, %c15_418, %c0_419, %c0_420] : memref<1x18x18x8xbf16, #tpu.memory_space<vmem>>, vector<1x1x18x8xbf16>
    %496 = vector.shape_cast %495 : vector<1x1x18x8xbf16> to vector<18x8xbf16>
    %497 = vector.extract_strided_slice %496 {offsets = [0, 0], sizes = [16, 8], strides = [1, 1]} : vector<18x8xbf16> to vector<16x8xbf16>
    %498 = arith.extf %497 : vector<16x8xbf16> to vector<16x8xf32>
    %c240 = arith.constant 240 : index
    %c0_421 = arith.constant 0 : index
    %499 = vector.load %arg5[%c240, %c0_421] : memref<256x72xf32, #tpu.memory_space<vmem>>, vector<16x8xf32>
    tpu.vector_store %arg5[%c240, %c0_421], %498 {strides = array<i32>} : memref<256x72xf32, #tpu.memory_space<vmem>>, vector<16x8xf32>,
    %500 = vector.extract_strided_slice %496 {offsets = [1, 0], sizes = [16, 8], strides = [1, 1]} : vector<18x8xbf16> to vector<16x8xbf16>
    %501 = arith.extf %500 : vector<16x8xbf16> to vector<16x8xf32>
    %c240_422 = arith.constant 240 : index
    %c8_423 = arith.constant 8 : index
    %502 = vector.load %arg5[%c240_422, %c8_423] : memref<256x72xf32, #tpu.memory_space<vmem>>, vector<16x8xf32>
    tpu.vector_store %arg5[%c240_422, %c8_423], %501 {strides = array<i32>} : memref<256x72xf32, #tpu.memory_space<vmem>>, vector<16x8xf32>,
    %503 = vector.extract_strided_slice %496 {offsets = [2, 0], sizes = [16, 8], strides = [1, 1]} : vector<18x8xbf16> to vector<16x8xbf16>
    %504 = arith.extf %503 : vector<16x8xbf16> to vector<16x8xf32>
    %c240_424 = arith.constant 240 : index
    %c16_425 = arith.constant 16 : index
    %505 = vector.load %arg5[%c240_424, %c16_425] : memref<256x72xf32, #tpu.memory_space<vmem>>, vector<16x8xf32>
    tpu.vector_store %arg5[%c240_424, %c16_425], %504 {strides = array<i32>} : memref<256x72xf32, #tpu.memory_space<vmem>>, vector<16x8xf32>,
    %c0_426 = arith.constant 0 : index
    %c16_427 = arith.constant 16 : index
    %c0_428 = arith.constant 0 : index
    %c0_429 = arith.constant 0 : index
    %506 = vector.load %arg1[%c0_426, %c16_427, %c0_428, %c0_429] : memref<1x18x18x8xbf16, #tpu.memory_space<vmem>>, vector<1x1x18x8xbf16>
    %507 = vector.shape_cast %506 : vector<1x1x18x8xbf16> to vector<18x8xbf16>
    %508 = vector.extract_strided_slice %507 {offsets = [0, 0], sizes = [16, 8], strides = [1, 1]} : vector<18x8xbf16> to vector<16x8xbf16>
    %509 = arith.extf %508 : vector<16x8xbf16> to vector<16x8xf32>
    %c240_430 = arith.constant 240 : index
    %c24_431 = arith.constant 24 : index
    %510 = vector.load %arg5[%c240_430, %c24_431] : memref<256x72xf32, #tpu.memory_space<vmem>>, vector<16x8xf32>
    tpu.vector_store %arg5[%c240_430, %c24_431], %509 {strides = array<i32>} : memref<256x72xf32, #tpu.memory_space<vmem>>, vector<16x8xf32>,
    %511 = vector.extract_strided_slice %507 {offsets = [1, 0], sizes = [16, 8], strides = [1, 1]} : vector<18x8xbf16> to vector<16x8xbf16>
    %512 = arith.extf %511 : vector<16x8xbf16> to vector<16x8xf32>
    %c240_432 = arith.constant 240 : index
    %c32_433 = arith.constant 32 : index
    %513 = vector.load %arg5[%c240_432, %c32_433] : memref<256x72xf32, #tpu.memory_space<vmem>>, vector<16x8xf32>
    tpu.vector_store %arg5[%c240_432, %c32_433], %512 {strides = array<i32>} : memref<256x72xf32, #tpu.memory_space<vmem>>, vector<16x8xf32>,
    %514 = vector.extract_strided_slice %507 {offsets = [2, 0], sizes = [16, 8], strides = [1, 1]} : vector<18x8xbf16> to vector<16x8xbf16>
    %515 = arith.extf %514 : vector<16x8xbf16> to vector<16x8xf32>
    %c240_434 = arith.constant 240 : index
    %c40_435 = arith.constant 40 : index
    %516 = vector.load %arg5[%c240_434, %c40_435] : memref<256x72xf32, #tpu.memory_space<vmem>>, vector<16x8xf32>
    tpu.vector_store %arg5[%c240_434, %c40_435], %515 {strides = array<i32>} : memref<256x72xf32, #tpu.memory_space<vmem>>, vector<16x8xf32>,
    %c0_436 = arith.constant 0 : index
    %c17 = arith.constant 17 : index
    %c0_437 = arith.constant 0 : index
    %c0_438 = arith.constant 0 : index
    %517 = vector.load %arg1[%c0_436, %c17, %c0_437, %c0_438] : memref<1x18x18x8xbf16, #tpu.memory_space<vmem>>, vector<1x1x18x8xbf16>
    %518 = vector.shape_cast %517 : vector<1x1x18x8xbf16> to vector<18x8xbf16>
    %519 = vector.extract_strided_slice %518 {offsets = [0, 0], sizes = [16, 8], strides = [1, 1]} : vector<18x8xbf16> to vector<16x8xbf16>
    %520 = arith.extf %519 : vector<16x8xbf16> to vector<16x8xf32>
    %c240_439 = arith.constant 240 : index
    %c48_440 = arith.constant 48 : index
    %521 = vector.load %arg5[%c240_439, %c48_440] : memref<256x72xf32, #tpu.memory_space<vmem>>, vector<16x8xf32>
    tpu.vector_store %arg5[%c240_439, %c48_440], %520 {strides = array<i32>} : memref<256x72xf32, #tpu.memory_space<vmem>>, vector<16x8xf32>,
    %522 = vector.extract_strided_slice %518 {offsets = [1, 0], sizes = [16, 8], strides = [1, 1]} : vector<18x8xbf16> to vector<16x8xbf16>
    %523 = arith.extf %522 : vector<16x8xbf16> to vector<16x8xf32>
    %c240_441 = arith.constant 240 : index
    %c56_442 = arith.constant 56 : index
    %524 = vector.load %arg5[%c240_441, %c56_442] : memref<256x72xf32, #tpu.memory_space<vmem>>, vector<16x8xf32>
    tpu.vector_store %arg5[%c240_441, %c56_442], %523 {strides = array<i32>} : memref<256x72xf32, #tpu.memory_space<vmem>>, vector<16x8xf32>,
    %525 = vector.extract_strided_slice %518 {offsets = [2, 0], sizes = [16, 8], strides = [1, 1]} : vector<18x8xbf16> to vector<16x8xbf16>
    %526 = arith.extf %525 : vector<16x8xbf16> to vector<16x8xf32>
    %c240_443 = arith.constant 240 : index
    %c64_444 = arith.constant 64 : index
    %527 = vector.load %arg5[%c240_443, %c64_444] : memref<256x72xf32, #tpu.memory_space<vmem>>, vector<16x8xf32>
    tpu.vector_store %arg5[%c240_443, %c64_444], %526 {strides = array<i32>} : memref<256x72xf32, #tpu.memory_space<vmem>>, vector<16x8xf32>,
    %c0_445 = arith.constant 0 : index
    %c0_446 = arith.constant 0 : index
    %528 = vector.load %arg5[%c0_445, %c0_446] : memref<256x72xf32, #tpu.memory_space<vmem>>, vector<256x72xf32>
    %529 = arith.truncf %528 : vector<256x72xf32> to vector<256x72xbf16>
    %c0_447 = arith.constant 0 : index
    %c0_448 = arith.constant 0 : index
    %530 = vector.load %arg2[%c0_447, %c0_448] : memref<72x8xbf16, #tpu.memory_space<vmem>>, vector<72x8xbf16>
    %cst = arith.constant dense<0.000000e+00> : vector<256x8xf32>
    %531 = tpu.matmul %529, %530, %cst {dimension_numbers = #tpu.dot_dimension_numbers<[1], [0], [0], [1], [0, 0, 1, 1], [], []>} : vector<256x72xbf16>, vector<72x8xbf16>, vector<256x8xf32> -> vector<256x8xf32>
    %c0_449 = arith.constant 0 : index
    %c0_450 = arith.constant 0 : index
    %532 = vector.load %arg3[%c0_449, %c0_450] : memref<1x8xf32, #tpu.memory_space<vmem>>, vector<1x8xf32>
    %533 = vector.broadcast %532 : vector<1x8xf32> to vector<256x8xf32>
    %534 = arith.addf %531, %533 : vector<256x8xf32>
    %cst_451 = arith.constant 0.000000e+00 : f32
    %535 = vector.broadcast %cst_451 : f32 to vector<256x8xf32>
    %536 = arith.maximumf %534, %535 : vector<256x8xf32>
    %537 = arith.truncf %536 : vector<256x8xf32> to vector<256x8xbf16>
    %c0_452 = arith.constant 0 : index
    %c0_453 = arith.constant 0 : index
    %c0_454 = arith.constant 0 : index
    %538 = vector.load %arg4[%c0_452, %c0_453, %c0_454] : memref<1x256x8xbf16, #tpu.memory_space<vmem>>, vector<1x256x8xbf16>
    %539 = vector.shape_cast %538 : vector<1x256x8xbf16> to vector<256x8xbf16>
    %540 = vector.shape_cast %537 : vector<256x8xbf16> to vector<1x256x8xbf16>
    tpu.vector_store %arg4[%c0_452, %c0_453, %c0_454], %540 {strides = array<i32>} : memref<1x256x8xbf16, #tpu.memory_space<vmem>>, vector<1x256x8xbf16>,
    return
  }
  func.func @transform_0(%arg0: i32) -> (i32, i32, i32, i32) {
    %c0_i32 = arith.constant 0 : i32
    %c0_i32_0 = arith.constant 0 : i32
    %c0_i32_1 = arith.constant 0 : i32
    %c0_i32_2 = arith.constant 0 : i32
    return %arg0, %c0_i32, %c0_i32_0, %c0_i32_1 : i32, i32, i32, i32
  }
  func.func @transform_1(%arg0: i32) -> (i32, i32) {
    %c0_i32 = arith.constant 0 : i32
    %c0_i32_0 = arith.constant 0 : i32
    %c0_i32_1 = arith.constant 0 : i32
    return %c0_i32, %c0_i32_0 : i32, i32
  }
  func.func @transform_2(%arg0: i32) -> (i32, i32) {
    %c0_i32 = arith.constant 0 : i32
    %c0_i32_0 = arith.constant 0 : i32
    %c0_i32_1 = arith.constant 0 : i32
    return %c0_i32, %c0_i32_0 : i32, i32
  }
  func.func @transform_3(%arg0: i32) -> (i32, i32, i32) {
    %c0_i32 = arith.constant 0 : i32
    %c0_i32_0 = arith.constant 0 : i32
    %c0_i32_1 = arith.constant 0 : i32
    return %arg0, %c0_i32, %c0_i32_0 : i32, i32, i32
  }
}

module attributes {stable_mosaic.version = 11 : i64} {
  func.func @kernel(%arg0: i32, %arg1: memref<1x16x8x16xbf16, #tpu.memory_space<vmem>>, %arg2: memref<72x16xbf16, #tpu.memory_space<vmem>>, %arg3: memref<1x16xf32, #tpu.memory_space<vmem>>, %arg4: memref<1x49x16xbf16, #tpu.memory_space<vmem>>, %arg5: memref<49x72xf32, #tpu.memory_space<vmem>>) attributes {dimension_semantics = [#tpu.dimension_semantics<parallel>], iteration_bounds = array<i64: 2>, scalar_prefetch = 0 : i64, scratch_operands = 1 : i64, tpu.core_type = #tpu.core_type<tc>, window_params = [{transform_indices = @transform_0, window_bounds = array<i64: 1, 16, 8, 16>}, {pipeline_mode = #tpu.pipeline_mode<synchronous>, transform_indices = @transform_1, window_bounds = array<i64: 72, 16>}, {pipeline_mode = #tpu.pipeline_mode<synchronous>, transform_indices = @transform_2, window_bounds = array<i64: 1, 16>}, {transform_indices = @transform_3, window_bounds = array<i64: 1, 49, 16>}]} {
    %c0 = arith.constant 0 : index
    %c0_0 = arith.constant 0 : index
    %c0_1 = arith.constant 0 : index
    %c0_2 = arith.constant 0 : index
    %0 = vector.load %arg1[%c0, %c0_0, %c0_1, %c0_2] : memref<1x16x8x16xbf16, #tpu.memory_space<vmem>>, vector<1x1x8x16xbf16>
    %1 = vector.shape_cast %0 : vector<1x1x8x16xbf16> to vector<8x16xbf16>
    %2 = vector.extract_strided_slice %1 {offsets = [0, 0], sizes = [7, 8], strides = [1, 1]} : vector<8x16xbf16> to vector<7x8xbf16>
    %3 = arith.extf %2 : vector<7x8xbf16> to vector<7x8xf32>
    %c0_3 = arith.constant 0 : index
    %c0_4 = arith.constant 0 : index
    %4 = vector.load %arg5[%c0_3, %c0_4] : memref<49x72xf32, #tpu.memory_space<vmem>>, vector<7x8xf32>
    tpu.vector_store %arg5[%c0_3, %c0_4], %3 {strides = array<i32>} : memref<49x72xf32, #tpu.memory_space<vmem>>, vector<7x8xf32>,
    %5 = vector.extract_strided_slice %1 {offsets = [0, 8], sizes = [7, 8], strides = [1, 1]} : vector<8x16xbf16> to vector<7x8xbf16>
    %6 = arith.extf %5 : vector<7x8xbf16> to vector<7x8xf32>
    %c0_5 = arith.constant 0 : index
    %c8 = arith.constant 8 : index
    %7 = vector.load %arg5[%c0_5, %c8] : memref<49x72xf32, #tpu.memory_space<vmem>>, vector<7x8xf32>
    tpu.vector_store %arg5[%c0_5, %c8], %6 {strides = array<i32>} : memref<49x72xf32, #tpu.memory_space<vmem>>, vector<7x8xf32>,
    %8 = vector.extract_strided_slice %1 {offsets = [1, 0], sizes = [7, 8], strides = [1, 1]} : vector<8x16xbf16> to vector<7x8xbf16>
    %9 = arith.extf %8 : vector<7x8xbf16> to vector<7x8xf32>
    %c0_6 = arith.constant 0 : index
    %c16 = arith.constant 16 : index
    %10 = vector.load %arg5[%c0_6, %c16] : memref<49x72xf32, #tpu.memory_space<vmem>>, vector<7x8xf32>
    tpu.vector_store %arg5[%c0_6, %c16], %9 {strides = array<i32>} : memref<49x72xf32, #tpu.memory_space<vmem>>, vector<7x8xf32>,
    %c0_7 = arith.constant 0 : index
    %c1 = arith.constant 1 : index
    %c0_8 = arith.constant 0 : index
    %c0_9 = arith.constant 0 : index
    %11 = vector.load %arg1[%c0_7, %c1, %c0_8, %c0_9] : memref<1x16x8x16xbf16, #tpu.memory_space<vmem>>, vector<1x1x8x16xbf16>
    %12 = vector.shape_cast %11 : vector<1x1x8x16xbf16> to vector<8x16xbf16>
    %13 = vector.extract_strided_slice %12 {offsets = [0, 0], sizes = [7, 8], strides = [1, 1]} : vector<8x16xbf16> to vector<7x8xbf16>
    %14 = arith.extf %13 : vector<7x8xbf16> to vector<7x8xf32>
    %c0_10 = arith.constant 0 : index
    %c24 = arith.constant 24 : index
    %15 = vector.load %arg5[%c0_10, %c24] : memref<49x72xf32, #tpu.memory_space<vmem>>, vector<7x8xf32>
    tpu.vector_store %arg5[%c0_10, %c24], %14 {strides = array<i32>} : memref<49x72xf32, #tpu.memory_space<vmem>>, vector<7x8xf32>,
    %16 = vector.extract_strided_slice %12 {offsets = [0, 8], sizes = [7, 8], strides = [1, 1]} : vector<8x16xbf16> to vector<7x8xbf16>
    %17 = arith.extf %16 : vector<7x8xbf16> to vector<7x8xf32>
    %c0_11 = arith.constant 0 : index
    %c32 = arith.constant 32 : index
    %18 = vector.load %arg5[%c0_11, %c32] : memref<49x72xf32, #tpu.memory_space<vmem>>, vector<7x8xf32>
    tpu.vector_store %arg5[%c0_11, %c32], %17 {strides = array<i32>} : memref<49x72xf32, #tpu.memory_space<vmem>>, vector<7x8xf32>,
    %19 = vector.extract_strided_slice %12 {offsets = [1, 0], sizes = [7, 8], strides = [1, 1]} : vector<8x16xbf16> to vector<7x8xbf16>
    %20 = arith.extf %19 : vector<7x8xbf16> to vector<7x8xf32>
    %c0_12 = arith.constant 0 : index
    %c40 = arith.constant 40 : index
    %21 = vector.load %arg5[%c0_12, %c40] : memref<49x72xf32, #tpu.memory_space<vmem>>, vector<7x8xf32>
    tpu.vector_store %arg5[%c0_12, %c40], %20 {strides = array<i32>} : memref<49x72xf32, #tpu.memory_space<vmem>>, vector<7x8xf32>,
    %c0_13 = arith.constant 0 : index
    %c2 = arith.constant 2 : index
    %c0_14 = arith.constant 0 : index
    %c0_15 = arith.constant 0 : index
    %22 = vector.load %arg1[%c0_13, %c2, %c0_14, %c0_15] : memref<1x16x8x16xbf16, #tpu.memory_space<vmem>>, vector<1x1x8x16xbf16>
    %23 = vector.shape_cast %22 : vector<1x1x8x16xbf16> to vector<8x16xbf16>
    %24 = vector.extract_strided_slice %23 {offsets = [0, 0], sizes = [7, 8], strides = [1, 1]} : vector<8x16xbf16> to vector<7x8xbf16>
    %25 = arith.extf %24 : vector<7x8xbf16> to vector<7x8xf32>
    %c0_16 = arith.constant 0 : index
    %c48 = arith.constant 48 : index
    %26 = vector.load %arg5[%c0_16, %c48] : memref<49x72xf32, #tpu.memory_space<vmem>>, vector<7x8xf32>
    tpu.vector_store %arg5[%c0_16, %c48], %25 {strides = array<i32>} : memref<49x72xf32, #tpu.memory_space<vmem>>, vector<7x8xf32>,
    %27 = vector.extract_strided_slice %23 {offsets = [0, 8], sizes = [7, 8], strides = [1, 1]} : vector<8x16xbf16> to vector<7x8xbf16>
    %28 = arith.extf %27 : vector<7x8xbf16> to vector<7x8xf32>
    %c0_17 = arith.constant 0 : index
    %c56 = arith.constant 56 : index
    %29 = vector.load %arg5[%c0_17, %c56] : memref<49x72xf32, #tpu.memory_space<vmem>>, vector<7x8xf32>
    tpu.vector_store %arg5[%c0_17, %c56], %28 {strides = array<i32>} : memref<49x72xf32, #tpu.memory_space<vmem>>, vector<7x8xf32>,
    %30 = vector.extract_strided_slice %23 {offsets = [1, 0], sizes = [7, 8], strides = [1, 1]} : vector<8x16xbf16> to vector<7x8xbf16>
    %31 = arith.extf %30 : vector<7x8xbf16> to vector<7x8xf32>
    %c0_18 = arith.constant 0 : index
    %c64 = arith.constant 64 : index
    %32 = vector.load %arg5[%c0_18, %c64] : memref<49x72xf32, #tpu.memory_space<vmem>>, vector<7x8xf32>
    tpu.vector_store %arg5[%c0_18, %c64], %31 {strides = array<i32>} : memref<49x72xf32, #tpu.memory_space<vmem>>, vector<7x8xf32>,
    %c0_19 = arith.constant 0 : index
    %c2_20 = arith.constant 2 : index
    %c0_21 = arith.constant 0 : index
    %c0_22 = arith.constant 0 : index
    %33 = vector.load %arg1[%c0_19, %c2_20, %c0_21, %c0_22] : memref<1x16x8x16xbf16, #tpu.memory_space<vmem>>, vector<1x1x8x16xbf16>
    %34 = vector.shape_cast %33 : vector<1x1x8x16xbf16> to vector<8x16xbf16>
    %35 = vector.extract_strided_slice %34 {offsets = [0, 0], sizes = [7, 8], strides = [1, 1]} : vector<8x16xbf16> to vector<7x8xbf16>
    %36 = arith.extf %35 : vector<7x8xbf16> to vector<7x8xf32>
    %c7 = arith.constant 7 : index
    %c0_23 = arith.constant 0 : index
    %37 = vector.load %arg5[%c7, %c0_23] : memref<49x72xf32, #tpu.memory_space<vmem>>, vector<7x8xf32>
    tpu.vector_store %arg5[%c7, %c0_23], %36 {strides = array<i32>} : memref<49x72xf32, #tpu.memory_space<vmem>>, vector<7x8xf32>,
    %38 = vector.extract_strided_slice %34 {offsets = [0, 8], sizes = [7, 8], strides = [1, 1]} : vector<8x16xbf16> to vector<7x8xbf16>
    %39 = arith.extf %38 : vector<7x8xbf16> to vector<7x8xf32>
    %c7_24 = arith.constant 7 : index
    %c8_25 = arith.constant 8 : index
    %40 = vector.load %arg5[%c7_24, %c8_25] : memref<49x72xf32, #tpu.memory_space<vmem>>, vector<7x8xf32>
    tpu.vector_store %arg5[%c7_24, %c8_25], %39 {strides = array<i32>} : memref<49x72xf32, #tpu.memory_space<vmem>>, vector<7x8xf32>,
    %41 = vector.extract_strided_slice %34 {offsets = [1, 0], sizes = [7, 8], strides = [1, 1]} : vector<8x16xbf16> to vector<7x8xbf16>
    %42 = arith.extf %41 : vector<7x8xbf16> to vector<7x8xf32>
    %c7_26 = arith.constant 7 : index
    %c16_27 = arith.constant 16 : index
    %43 = vector.load %arg5[%c7_26, %c16_27] : memref<49x72xf32, #tpu.memory_space<vmem>>, vector<7x8xf32>
    tpu.vector_store %arg5[%c7_26, %c16_27], %42 {strides = array<i32>} : memref<49x72xf32, #tpu.memory_space<vmem>>, vector<7x8xf32>,
    %c0_28 = arith.constant 0 : index
    %c3 = arith.constant 3 : index
    %c0_29 = arith.constant 0 : index
    %c0_30 = arith.constant 0 : index
    %44 = vector.load %arg1[%c0_28, %c3, %c0_29, %c0_30] : memref<1x16x8x16xbf16, #tpu.memory_space<vmem>>, vector<1x1x8x16xbf16>
    %45 = vector.shape_cast %44 : vector<1x1x8x16xbf16> to vector<8x16xbf16>
    %46 = vector.extract_strided_slice %45 {offsets = [0, 0], sizes = [7, 8], strides = [1, 1]} : vector<8x16xbf16> to vector<7x8xbf16>
    %47 = arith.extf %46 : vector<7x8xbf16> to vector<7x8xf32>
    %c7_31 = arith.constant 7 : index
    %c24_32 = arith.constant 24 : index
    %48 = vector.load %arg5[%c7_31, %c24_32] : memref<49x72xf32, #tpu.memory_space<vmem>>, vector<7x8xf32>
    tpu.vector_store %arg5[%c7_31, %c24_32], %47 {strides = array<i32>} : memref<49x72xf32, #tpu.memory_space<vmem>>, vector<7x8xf32>,
    %49 = vector.extract_strided_slice %45 {offsets = [0, 8], sizes = [7, 8], strides = [1, 1]} : vector<8x16xbf16> to vector<7x8xbf16>
    %50 = arith.extf %49 : vector<7x8xbf16> to vector<7x8xf32>
    %c7_33 = arith.constant 7 : index
    %c32_34 = arith.constant 32 : index
    %51 = vector.load %arg5[%c7_33, %c32_34] : memref<49x72xf32, #tpu.memory_space<vmem>>, vector<7x8xf32>
    tpu.vector_store %arg5[%c7_33, %c32_34], %50 {strides = array<i32>} : memref<49x72xf32, #tpu.memory_space<vmem>>, vector<7x8xf32>,
    %52 = vector.extract_strided_slice %45 {offsets = [1, 0], sizes = [7, 8], strides = [1, 1]} : vector<8x16xbf16> to vector<7x8xbf16>
    %53 = arith.extf %52 : vector<7x8xbf16> to vector<7x8xf32>
    %c7_35 = arith.constant 7 : index
    %c40_36 = arith.constant 40 : index
    %54 = vector.load %arg5[%c7_35, %c40_36] : memref<49x72xf32, #tpu.memory_space<vmem>>, vector<7x8xf32>
    tpu.vector_store %arg5[%c7_35, %c40_36], %53 {strides = array<i32>} : memref<49x72xf32, #tpu.memory_space<vmem>>, vector<7x8xf32>,
    %c0_37 = arith.constant 0 : index
    %c4 = arith.constant 4 : index
    %c0_38 = arith.constant 0 : index
    %c0_39 = arith.constant 0 : index
    %55 = vector.load %arg1[%c0_37, %c4, %c0_38, %c0_39] : memref<1x16x8x16xbf16, #tpu.memory_space<vmem>>, vector<1x1x8x16xbf16>
    %56 = vector.shape_cast %55 : vector<1x1x8x16xbf16> to vector<8x16xbf16>
    %57 = vector.extract_strided_slice %56 {offsets = [0, 0], sizes = [7, 8], strides = [1, 1]} : vector<8x16xbf16> to vector<7x8xbf16>
    %58 = arith.extf %57 : vector<7x8xbf16> to vector<7x8xf32>
    %c7_40 = arith.constant 7 : index
    %c48_41 = arith.constant 48 : index
    %59 = vector.load %arg5[%c7_40, %c48_41] : memref<49x72xf32, #tpu.memory_space<vmem>>, vector<7x8xf32>
    tpu.vector_store %arg5[%c7_40, %c48_41], %58 {strides = array<i32>} : memref<49x72xf32, #tpu.memory_space<vmem>>, vector<7x8xf32>,
    %60 = vector.extract_strided_slice %56 {offsets = [0, 8], sizes = [7, 8], strides = [1, 1]} : vector<8x16xbf16> to vector<7x8xbf16>
    %61 = arith.extf %60 : vector<7x8xbf16> to vector<7x8xf32>
    %c7_42 = arith.constant 7 : index
    %c56_43 = arith.constant 56 : index
    %62 = vector.load %arg5[%c7_42, %c56_43] : memref<49x72xf32, #tpu.memory_space<vmem>>, vector<7x8xf32>
    tpu.vector_store %arg5[%c7_42, %c56_43], %61 {strides = array<i32>} : memref<49x72xf32, #tpu.memory_space<vmem>>, vector<7x8xf32>,
    %63 = vector.extract_strided_slice %56 {offsets = [1, 0], sizes = [7, 8], strides = [1, 1]} : vector<8x16xbf16> to vector<7x8xbf16>
    %64 = arith.extf %63 : vector<7x8xbf16> to vector<7x8xf32>
    %c7_44 = arith.constant 7 : index
    %c64_45 = arith.constant 64 : index
    %65 = vector.load %arg5[%c7_44, %c64_45] : memref<49x72xf32, #tpu.memory_space<vmem>>, vector<7x8xf32>
    tpu.vector_store %arg5[%c7_44, %c64_45], %64 {strides = array<i32>} : memref<49x72xf32, #tpu.memory_space<vmem>>, vector<7x8xf32>,
    %c0_46 = arith.constant 0 : index
    %c4_47 = arith.constant 4 : index
    %c0_48 = arith.constant 0 : index
    %c0_49 = arith.constant 0 : index
    %66 = vector.load %arg1[%c0_46, %c4_47, %c0_48, %c0_49] : memref<1x16x8x16xbf16, #tpu.memory_space<vmem>>, vector<1x1x8x16xbf16>
    %67 = vector.shape_cast %66 : vector<1x1x8x16xbf16> to vector<8x16xbf16>
    %68 = vector.extract_strided_slice %67 {offsets = [0, 0], sizes = [7, 8], strides = [1, 1]} : vector<8x16xbf16> to vector<7x8xbf16>
    %69 = arith.extf %68 : vector<7x8xbf16> to vector<7x8xf32>
    %c14 = arith.constant 14 : index
    %c0_50 = arith.constant 0 : index
    %70 = vector.load %arg5[%c14, %c0_50] : memref<49x72xf32, #tpu.memory_space<vmem>>, vector<7x8xf32>
    tpu.vector_store %arg5[%c14, %c0_50], %69 {strides = array<i32>} : memref<49x72xf32, #tpu.memory_space<vmem>>, vector<7x8xf32>,
    %71 = vector.extract_strided_slice %67 {offsets = [0, 8], sizes = [7, 8], strides = [1, 1]} : vector<8x16xbf16> to vector<7x8xbf16>
    %72 = arith.extf %71 : vector<7x8xbf16> to vector<7x8xf32>
    %c14_51 = arith.constant 14 : index
    %c8_52 = arith.constant 8 : index
    %73 = vector.load %arg5[%c14_51, %c8_52] : memref<49x72xf32, #tpu.memory_space<vmem>>, vector<7x8xf32>
    tpu.vector_store %arg5[%c14_51, %c8_52], %72 {strides = array<i32>} : memref<49x72xf32, #tpu.memory_space<vmem>>, vector<7x8xf32>,
    %74 = vector.extract_strided_slice %67 {offsets = [1, 0], sizes = [7, 8], strides = [1, 1]} : vector<8x16xbf16> to vector<7x8xbf16>
    %75 = arith.extf %74 : vector<7x8xbf16> to vector<7x8xf32>
    %c14_53 = arith.constant 14 : index
    %c16_54 = arith.constant 16 : index
    %76 = vector.load %arg5[%c14_53, %c16_54] : memref<49x72xf32, #tpu.memory_space<vmem>>, vector<7x8xf32>
    tpu.vector_store %arg5[%c14_53, %c16_54], %75 {strides = array<i32>} : memref<49x72xf32, #tpu.memory_space<vmem>>, vector<7x8xf32>,
    %c0_55 = arith.constant 0 : index
    %c5 = arith.constant 5 : index
    %c0_56 = arith.constant 0 : index
    %c0_57 = arith.constant 0 : index
    %77 = vector.load %arg1[%c0_55, %c5, %c0_56, %c0_57] : memref<1x16x8x16xbf16, #tpu.memory_space<vmem>>, vector<1x1x8x16xbf16>
    %78 = vector.shape_cast %77 : vector<1x1x8x16xbf16> to vector<8x16xbf16>
    %79 = vector.extract_strided_slice %78 {offsets = [0, 0], sizes = [7, 8], strides = [1, 1]} : vector<8x16xbf16> to vector<7x8xbf16>
    %80 = arith.extf %79 : vector<7x8xbf16> to vector<7x8xf32>
    %c14_58 = arith.constant 14 : index
    %c24_59 = arith.constant 24 : index
    %81 = vector.load %arg5[%c14_58, %c24_59] : memref<49x72xf32, #tpu.memory_space<vmem>>, vector<7x8xf32>
    tpu.vector_store %arg5[%c14_58, %c24_59], %80 {strides = array<i32>} : memref<49x72xf32, #tpu.memory_space<vmem>>, vector<7x8xf32>,
    %82 = vector.extract_strided_slice %78 {offsets = [0, 8], sizes = [7, 8], strides = [1, 1]} : vector<8x16xbf16> to vector<7x8xbf16>
    %83 = arith.extf %82 : vector<7x8xbf16> to vector<7x8xf32>
    %c14_60 = arith.constant 14 : index
    %c32_61 = arith.constant 32 : index
    %84 = vector.load %arg5[%c14_60, %c32_61] : memref<49x72xf32, #tpu.memory_space<vmem>>, vector<7x8xf32>
    tpu.vector_store %arg5[%c14_60, %c32_61], %83 {strides = array<i32>} : memref<49x72xf32, #tpu.memory_space<vmem>>, vector<7x8xf32>,
    %85 = vector.extract_strided_slice %78 {offsets = [1, 0], sizes = [7, 8], strides = [1, 1]} : vector<8x16xbf16> to vector<7x8xbf16>
    %86 = arith.extf %85 : vector<7x8xbf16> to vector<7x8xf32>
    %c14_62 = arith.constant 14 : index
    %c40_63 = arith.constant 40 : index
    %87 = vector.load %arg5[%c14_62, %c40_63] : memref<49x72xf32, #tpu.memory_space<vmem>>, vector<7x8xf32>
    tpu.vector_store %arg5[%c14_62, %c40_63], %86 {strides = array<i32>} : memref<49x72xf32, #tpu.memory_space<vmem>>, vector<7x8xf32>,
    %c0_64 = arith.constant 0 : index
    %c6 = arith.constant 6 : index
    %c0_65 = arith.constant 0 : index
    %c0_66 = arith.constant 0 : index
    %88 = vector.load %arg1[%c0_64, %c6, %c0_65, %c0_66] : memref<1x16x8x16xbf16, #tpu.memory_space<vmem>>, vector<1x1x8x16xbf16>
    %89 = vector.shape_cast %88 : vector<1x1x8x16xbf16> to vector<8x16xbf16>
    %90 = vector.extract_strided_slice %89 {offsets = [0, 0], sizes = [7, 8], strides = [1, 1]} : vector<8x16xbf16> to vector<7x8xbf16>
    %91 = arith.extf %90 : vector<7x8xbf16> to vector<7x8xf32>
    %c14_67 = arith.constant 14 : index
    %c48_68 = arith.constant 48 : index
    %92 = vector.load %arg5[%c14_67, %c48_68] : memref<49x72xf32, #tpu.memory_space<vmem>>, vector<7x8xf32>
    tpu.vector_store %arg5[%c14_67, %c48_68], %91 {strides = array<i32>} : memref<49x72xf32, #tpu.memory_space<vmem>>, vector<7x8xf32>,
    %93 = vector.extract_strided_slice %89 {offsets = [0, 8], sizes = [7, 8], strides = [1, 1]} : vector<8x16xbf16> to vector<7x8xbf16>
    %94 = arith.extf %93 : vector<7x8xbf16> to vector<7x8xf32>
    %c14_69 = arith.constant 14 : index
    %c56_70 = arith.constant 56 : index
    %95 = vector.load %arg5[%c14_69, %c56_70] : memref<49x72xf32, #tpu.memory_space<vmem>>, vector<7x8xf32>
    tpu.vector_store %arg5[%c14_69, %c56_70], %94 {strides = array<i32>} : memref<49x72xf32, #tpu.memory_space<vmem>>, vector<7x8xf32>,
    %96 = vector.extract_strided_slice %89 {offsets = [1, 0], sizes = [7, 8], strides = [1, 1]} : vector<8x16xbf16> to vector<7x8xbf16>
    %97 = arith.extf %96 : vector<7x8xbf16> to vector<7x8xf32>
    %c14_71 = arith.constant 14 : index
    %c64_72 = arith.constant 64 : index
    %98 = vector.load %arg5[%c14_71, %c64_72] : memref<49x72xf32, #tpu.memory_space<vmem>>, vector<7x8xf32>
    tpu.vector_store %arg5[%c14_71, %c64_72], %97 {strides = array<i32>} : memref<49x72xf32, #tpu.memory_space<vmem>>, vector<7x8xf32>,
    %c0_73 = arith.constant 0 : index
    %c6_74 = arith.constant 6 : index
    %c0_75 = arith.constant 0 : index
    %c0_76 = arith.constant 0 : index
    %99 = vector.load %arg1[%c0_73, %c6_74, %c0_75, %c0_76] : memref<1x16x8x16xbf16, #tpu.memory_space<vmem>>, vector<1x1x8x16xbf16>
    %100 = vector.shape_cast %99 : vector<1x1x8x16xbf16> to vector<8x16xbf16>
    %101 = vector.extract_strided_slice %100 {offsets = [0, 0], sizes = [7, 8], strides = [1, 1]} : vector<8x16xbf16> to vector<7x8xbf16>
    %102 = arith.extf %101 : vector<7x8xbf16> to vector<7x8xf32>
    %c21 = arith.constant 21 : index
    %c0_77 = arith.constant 0 : index
    %103 = vector.load %arg5[%c21, %c0_77] : memref<49x72xf32, #tpu.memory_space<vmem>>, vector<7x8xf32>
    tpu.vector_store %arg5[%c21, %c0_77], %102 {strides = array<i32>} : memref<49x72xf32, #tpu.memory_space<vmem>>, vector<7x8xf32>,
    %104 = vector.extract_strided_slice %100 {offsets = [0, 8], sizes = [7, 8], strides = [1, 1]} : vector<8x16xbf16> to vector<7x8xbf16>
    %105 = arith.extf %104 : vector<7x8xbf16> to vector<7x8xf32>
    %c21_78 = arith.constant 21 : index
    %c8_79 = arith.constant 8 : index
    %106 = vector.load %arg5[%c21_78, %c8_79] : memref<49x72xf32, #tpu.memory_space<vmem>>, vector<7x8xf32>
    tpu.vector_store %arg5[%c21_78, %c8_79], %105 {strides = array<i32>} : memref<49x72xf32, #tpu.memory_space<vmem>>, vector<7x8xf32>,
    %107 = vector.extract_strided_slice %100 {offsets = [1, 0], sizes = [7, 8], strides = [1, 1]} : vector<8x16xbf16> to vector<7x8xbf16>
    %108 = arith.extf %107 : vector<7x8xbf16> to vector<7x8xf32>
    %c21_80 = arith.constant 21 : index
    %c16_81 = arith.constant 16 : index
    %109 = vector.load %arg5[%c21_80, %c16_81] : memref<49x72xf32, #tpu.memory_space<vmem>>, vector<7x8xf32>
    tpu.vector_store %arg5[%c21_80, %c16_81], %108 {strides = array<i32>} : memref<49x72xf32, #tpu.memory_space<vmem>>, vector<7x8xf32>,
    %c0_82 = arith.constant 0 : index
    %c7_83 = arith.constant 7 : index
    %c0_84 = arith.constant 0 : index
    %c0_85 = arith.constant 0 : index
    %110 = vector.load %arg1[%c0_82, %c7_83, %c0_84, %c0_85] : memref<1x16x8x16xbf16, #tpu.memory_space<vmem>>, vector<1x1x8x16xbf16>
    %111 = vector.shape_cast %110 : vector<1x1x8x16xbf16> to vector<8x16xbf16>
    %112 = vector.extract_strided_slice %111 {offsets = [0, 0], sizes = [7, 8], strides = [1, 1]} : vector<8x16xbf16> to vector<7x8xbf16>
    %113 = arith.extf %112 : vector<7x8xbf16> to vector<7x8xf32>
    %c21_86 = arith.constant 21 : index
    %c24_87 = arith.constant 24 : index
    %114 = vector.load %arg5[%c21_86, %c24_87] : memref<49x72xf32, #tpu.memory_space<vmem>>, vector<7x8xf32>
    tpu.vector_store %arg5[%c21_86, %c24_87], %113 {strides = array<i32>} : memref<49x72xf32, #tpu.memory_space<vmem>>, vector<7x8xf32>,
    %115 = vector.extract_strided_slice %111 {offsets = [0, 8], sizes = [7, 8], strides = [1, 1]} : vector<8x16xbf16> to vector<7x8xbf16>
    %116 = arith.extf %115 : vector<7x8xbf16> to vector<7x8xf32>
    %c21_88 = arith.constant 21 : index
    %c32_89 = arith.constant 32 : index
    %117 = vector.load %arg5[%c21_88, %c32_89] : memref<49x72xf32, #tpu.memory_space<vmem>>, vector<7x8xf32>
    tpu.vector_store %arg5[%c21_88, %c32_89], %116 {strides = array<i32>} : memref<49x72xf32, #tpu.memory_space<vmem>>, vector<7x8xf32>,
    %118 = vector.extract_strided_slice %111 {offsets = [1, 0], sizes = [7, 8], strides = [1, 1]} : vector<8x16xbf16> to vector<7x8xbf16>
    %119 = arith.extf %118 : vector<7x8xbf16> to vector<7x8xf32>
    %c21_90 = arith.constant 21 : index
    %c40_91 = arith.constant 40 : index
    %120 = vector.load %arg5[%c21_90, %c40_91] : memref<49x72xf32, #tpu.memory_space<vmem>>, vector<7x8xf32>
    tpu.vector_store %arg5[%c21_90, %c40_91], %119 {strides = array<i32>} : memref<49x72xf32, #tpu.memory_space<vmem>>, vector<7x8xf32>,
    %c0_92 = arith.constant 0 : index
    %c8_93 = arith.constant 8 : index
    %c0_94 = arith.constant 0 : index
    %c0_95 = arith.constant 0 : index
    %121 = vector.load %arg1[%c0_92, %c8_93, %c0_94, %c0_95] : memref<1x16x8x16xbf16, #tpu.memory_space<vmem>>, vector<1x1x8x16xbf16>
    %122 = vector.shape_cast %121 : vector<1x1x8x16xbf16> to vector<8x16xbf16>
    %123 = vector.extract_strided_slice %122 {offsets = [0, 0], sizes = [7, 8], strides = [1, 1]} : vector<8x16xbf16> to vector<7x8xbf16>
    %124 = arith.extf %123 : vector<7x8xbf16> to vector<7x8xf32>
    %c21_96 = arith.constant 21 : index
    %c48_97 = arith.constant 48 : index
    %125 = vector.load %arg5[%c21_96, %c48_97] : memref<49x72xf32, #tpu.memory_space<vmem>>, vector<7x8xf32>
    tpu.vector_store %arg5[%c21_96, %c48_97], %124 {strides = array<i32>} : memref<49x72xf32, #tpu.memory_space<vmem>>, vector<7x8xf32>,
    %126 = vector.extract_strided_slice %122 {offsets = [0, 8], sizes = [7, 8], strides = [1, 1]} : vector<8x16xbf16> to vector<7x8xbf16>
    %127 = arith.extf %126 : vector<7x8xbf16> to vector<7x8xf32>
    %c21_98 = arith.constant 21 : index
    %c56_99 = arith.constant 56 : index
    %128 = vector.load %arg5[%c21_98, %c56_99] : memref<49x72xf32, #tpu.memory_space<vmem>>, vector<7x8xf32>
    tpu.vector_store %arg5[%c21_98, %c56_99], %127 {strides = array<i32>} : memref<49x72xf32, #tpu.memory_space<vmem>>, vector<7x8xf32>,
    %129 = vector.extract_strided_slice %122 {offsets = [1, 0], sizes = [7, 8], strides = [1, 1]} : vector<8x16xbf16> to vector<7x8xbf16>
    %130 = arith.extf %129 : vector<7x8xbf16> to vector<7x8xf32>
    %c21_100 = arith.constant 21 : index
    %c64_101 = arith.constant 64 : index
    %131 = vector.load %arg5[%c21_100, %c64_101] : memref<49x72xf32, #tpu.memory_space<vmem>>, vector<7x8xf32>
    tpu.vector_store %arg5[%c21_100, %c64_101], %130 {strides = array<i32>} : memref<49x72xf32, #tpu.memory_space<vmem>>, vector<7x8xf32>,
    %c0_102 = arith.constant 0 : index
    %c8_103 = arith.constant 8 : index
    %c0_104 = arith.constant 0 : index
    %c0_105 = arith.constant 0 : index
    %132 = vector.load %arg1[%c0_102, %c8_103, %c0_104, %c0_105] : memref<1x16x8x16xbf16, #tpu.memory_space<vmem>>, vector<1x1x8x16xbf16>
    %133 = vector.shape_cast %132 : vector<1x1x8x16xbf16> to vector<8x16xbf16>
    %134 = vector.extract_strided_slice %133 {offsets = [0, 0], sizes = [7, 8], strides = [1, 1]} : vector<8x16xbf16> to vector<7x8xbf16>
    %135 = arith.extf %134 : vector<7x8xbf16> to vector<7x8xf32>
    %c28 = arith.constant 28 : index
    %c0_106 = arith.constant 0 : index
    %136 = vector.load %arg5[%c28, %c0_106] : memref<49x72xf32, #tpu.memory_space<vmem>>, vector<7x8xf32>
    tpu.vector_store %arg5[%c28, %c0_106], %135 {strides = array<i32>} : memref<49x72xf32, #tpu.memory_space<vmem>>, vector<7x8xf32>,
    %137 = vector.extract_strided_slice %133 {offsets = [0, 8], sizes = [7, 8], strides = [1, 1]} : vector<8x16xbf16> to vector<7x8xbf16>
    %138 = arith.extf %137 : vector<7x8xbf16> to vector<7x8xf32>
    %c28_107 = arith.constant 28 : index
    %c8_108 = arith.constant 8 : index
    %139 = vector.load %arg5[%c28_107, %c8_108] : memref<49x72xf32, #tpu.memory_space<vmem>>, vector<7x8xf32>
    tpu.vector_store %arg5[%c28_107, %c8_108], %138 {strides = array<i32>} : memref<49x72xf32, #tpu.memory_space<vmem>>, vector<7x8xf32>,
    %140 = vector.extract_strided_slice %133 {offsets = [1, 0], sizes = [7, 8], strides = [1, 1]} : vector<8x16xbf16> to vector<7x8xbf16>
    %141 = arith.extf %140 : vector<7x8xbf16> to vector<7x8xf32>
    %c28_109 = arith.constant 28 : index
    %c16_110 = arith.constant 16 : index
    %142 = vector.load %arg5[%c28_109, %c16_110] : memref<49x72xf32, #tpu.memory_space<vmem>>, vector<7x8xf32>
    tpu.vector_store %arg5[%c28_109, %c16_110], %141 {strides = array<i32>} : memref<49x72xf32, #tpu.memory_space<vmem>>, vector<7x8xf32>,
    %c0_111 = arith.constant 0 : index
    %c9 = arith.constant 9 : index
    %c0_112 = arith.constant 0 : index
    %c0_113 = arith.constant 0 : index
    %143 = vector.load %arg1[%c0_111, %c9, %c0_112, %c0_113] : memref<1x16x8x16xbf16, #tpu.memory_space<vmem>>, vector<1x1x8x16xbf16>
    %144 = vector.shape_cast %143 : vector<1x1x8x16xbf16> to vector<8x16xbf16>
    %145 = vector.extract_strided_slice %144 {offsets = [0, 0], sizes = [7, 8], strides = [1, 1]} : vector<8x16xbf16> to vector<7x8xbf16>
    %146 = arith.extf %145 : vector<7x8xbf16> to vector<7x8xf32>
    %c28_114 = arith.constant 28 : index
    %c24_115 = arith.constant 24 : index
    %147 = vector.load %arg5[%c28_114, %c24_115] : memref<49x72xf32, #tpu.memory_space<vmem>>, vector<7x8xf32>
    tpu.vector_store %arg5[%c28_114, %c24_115], %146 {strides = array<i32>} : memref<49x72xf32, #tpu.memory_space<vmem>>, vector<7x8xf32>,
    %148 = vector.extract_strided_slice %144 {offsets = [0, 8], sizes = [7, 8], strides = [1, 1]} : vector<8x16xbf16> to vector<7x8xbf16>
    %149 = arith.extf %148 : vector<7x8xbf16> to vector<7x8xf32>
    %c28_116 = arith.constant 28 : index
    %c32_117 = arith.constant 32 : index
    %150 = vector.load %arg5[%c28_116, %c32_117] : memref<49x72xf32, #tpu.memory_space<vmem>>, vector<7x8xf32>
    tpu.vector_store %arg5[%c28_116, %c32_117], %149 {strides = array<i32>} : memref<49x72xf32, #tpu.memory_space<vmem>>, vector<7x8xf32>,
    %151 = vector.extract_strided_slice %144 {offsets = [1, 0], sizes = [7, 8], strides = [1, 1]} : vector<8x16xbf16> to vector<7x8xbf16>
    %152 = arith.extf %151 : vector<7x8xbf16> to vector<7x8xf32>
    %c28_118 = arith.constant 28 : index
    %c40_119 = arith.constant 40 : index
    %153 = vector.load %arg5[%c28_118, %c40_119] : memref<49x72xf32, #tpu.memory_space<vmem>>, vector<7x8xf32>
    tpu.vector_store %arg5[%c28_118, %c40_119], %152 {strides = array<i32>} : memref<49x72xf32, #tpu.memory_space<vmem>>, vector<7x8xf32>,
    %c0_120 = arith.constant 0 : index
    %c10 = arith.constant 10 : index
    %c0_121 = arith.constant 0 : index
    %c0_122 = arith.constant 0 : index
    %154 = vector.load %arg1[%c0_120, %c10, %c0_121, %c0_122] : memref<1x16x8x16xbf16, #tpu.memory_space<vmem>>, vector<1x1x8x16xbf16>
    %155 = vector.shape_cast %154 : vector<1x1x8x16xbf16> to vector<8x16xbf16>
    %156 = vector.extract_strided_slice %155 {offsets = [0, 0], sizes = [7, 8], strides = [1, 1]} : vector<8x16xbf16> to vector<7x8xbf16>
    %157 = arith.extf %156 : vector<7x8xbf16> to vector<7x8xf32>
    %c28_123 = arith.constant 28 : index
    %c48_124 = arith.constant 48 : index
    %158 = vector.load %arg5[%c28_123, %c48_124] : memref<49x72xf32, #tpu.memory_space<vmem>>, vector<7x8xf32>
    tpu.vector_store %arg5[%c28_123, %c48_124], %157 {strides = array<i32>} : memref<49x72xf32, #tpu.memory_space<vmem>>, vector<7x8xf32>,
    %159 = vector.extract_strided_slice %155 {offsets = [0, 8], sizes = [7, 8], strides = [1, 1]} : vector<8x16xbf16> to vector<7x8xbf16>
    %160 = arith.extf %159 : vector<7x8xbf16> to vector<7x8xf32>
    %c28_125 = arith.constant 28 : index
    %c56_126 = arith.constant 56 : index
    %161 = vector.load %arg5[%c28_125, %c56_126] : memref<49x72xf32, #tpu.memory_space<vmem>>, vector<7x8xf32>
    tpu.vector_store %arg5[%c28_125, %c56_126], %160 {strides = array<i32>} : memref<49x72xf32, #tpu.memory_space<vmem>>, vector<7x8xf32>,
    %162 = vector.extract_strided_slice %155 {offsets = [1, 0], sizes = [7, 8], strides = [1, 1]} : vector<8x16xbf16> to vector<7x8xbf16>
    %163 = arith.extf %162 : vector<7x8xbf16> to vector<7x8xf32>
    %c28_127 = arith.constant 28 : index
    %c64_128 = arith.constant 64 : index
    %164 = vector.load %arg5[%c28_127, %c64_128] : memref<49x72xf32, #tpu.memory_space<vmem>>, vector<7x8xf32>
    tpu.vector_store %arg5[%c28_127, %c64_128], %163 {strides = array<i32>} : memref<49x72xf32, #tpu.memory_space<vmem>>, vector<7x8xf32>,
    %c0_129 = arith.constant 0 : index
    %c10_130 = arith.constant 10 : index
    %c0_131 = arith.constant 0 : index
    %c0_132 = arith.constant 0 : index
    %165 = vector.load %arg1[%c0_129, %c10_130, %c0_131, %c0_132] : memref<1x16x8x16xbf16, #tpu.memory_space<vmem>>, vector<1x1x8x16xbf16>
    %166 = vector.shape_cast %165 : vector<1x1x8x16xbf16> to vector<8x16xbf16>
    %167 = vector.extract_strided_slice %166 {offsets = [0, 0], sizes = [7, 8], strides = [1, 1]} : vector<8x16xbf16> to vector<7x8xbf16>
    %168 = arith.extf %167 : vector<7x8xbf16> to vector<7x8xf32>
    %c35 = arith.constant 35 : index
    %c0_133 = arith.constant 0 : index
    %169 = vector.load %arg5[%c35, %c0_133] : memref<49x72xf32, #tpu.memory_space<vmem>>, vector<7x8xf32>
    tpu.vector_store %arg5[%c35, %c0_133], %168 {strides = array<i32>} : memref<49x72xf32, #tpu.memory_space<vmem>>, vector<7x8xf32>,
    %170 = vector.extract_strided_slice %166 {offsets = [0, 8], sizes = [7, 8], strides = [1, 1]} : vector<8x16xbf16> to vector<7x8xbf16>
    %171 = arith.extf %170 : vector<7x8xbf16> to vector<7x8xf32>
    %c35_134 = arith.constant 35 : index
    %c8_135 = arith.constant 8 : index
    %172 = vector.load %arg5[%c35_134, %c8_135] : memref<49x72xf32, #tpu.memory_space<vmem>>, vector<7x8xf32>
    tpu.vector_store %arg5[%c35_134, %c8_135], %171 {strides = array<i32>} : memref<49x72xf32, #tpu.memory_space<vmem>>, vector<7x8xf32>,
    %173 = vector.extract_strided_slice %166 {offsets = [1, 0], sizes = [7, 8], strides = [1, 1]} : vector<8x16xbf16> to vector<7x8xbf16>
    %174 = arith.extf %173 : vector<7x8xbf16> to vector<7x8xf32>
    %c35_136 = arith.constant 35 : index
    %c16_137 = arith.constant 16 : index
    %175 = vector.load %arg5[%c35_136, %c16_137] : memref<49x72xf32, #tpu.memory_space<vmem>>, vector<7x8xf32>
    tpu.vector_store %arg5[%c35_136, %c16_137], %174 {strides = array<i32>} : memref<49x72xf32, #tpu.memory_space<vmem>>, vector<7x8xf32>,
    %c0_138 = arith.constant 0 : index
    %c11 = arith.constant 11 : index
    %c0_139 = arith.constant 0 : index
    %c0_140 = arith.constant 0 : index
    %176 = vector.load %arg1[%c0_138, %c11, %c0_139, %c0_140] : memref<1x16x8x16xbf16, #tpu.memory_space<vmem>>, vector<1x1x8x16xbf16>
    %177 = vector.shape_cast %176 : vector<1x1x8x16xbf16> to vector<8x16xbf16>
    %178 = vector.extract_strided_slice %177 {offsets = [0, 0], sizes = [7, 8], strides = [1, 1]} : vector<8x16xbf16> to vector<7x8xbf16>
    %179 = arith.extf %178 : vector<7x8xbf16> to vector<7x8xf32>
    %c35_141 = arith.constant 35 : index
    %c24_142 = arith.constant 24 : index
    %180 = vector.load %arg5[%c35_141, %c24_142] : memref<49x72xf32, #tpu.memory_space<vmem>>, vector<7x8xf32>
    tpu.vector_store %arg5[%c35_141, %c24_142], %179 {strides = array<i32>} : memref<49x72xf32, #tpu.memory_space<vmem>>, vector<7x8xf32>,
    %181 = vector.extract_strided_slice %177 {offsets = [0, 8], sizes = [7, 8], strides = [1, 1]} : vector<8x16xbf16> to vector<7x8xbf16>
    %182 = arith.extf %181 : vector<7x8xbf16> to vector<7x8xf32>
    %c35_143 = arith.constant 35 : index
    %c32_144 = arith.constant 32 : index
    %183 = vector.load %arg5[%c35_143, %c32_144] : memref<49x72xf32, #tpu.memory_space<vmem>>, vector<7x8xf32>
    tpu.vector_store %arg5[%c35_143, %c32_144], %182 {strides = array<i32>} : memref<49x72xf32, #tpu.memory_space<vmem>>, vector<7x8xf32>,
    %184 = vector.extract_strided_slice %177 {offsets = [1, 0], sizes = [7, 8], strides = [1, 1]} : vector<8x16xbf16> to vector<7x8xbf16>
    %185 = arith.extf %184 : vector<7x8xbf16> to vector<7x8xf32>
    %c35_145 = arith.constant 35 : index
    %c40_146 = arith.constant 40 : index
    %186 = vector.load %arg5[%c35_145, %c40_146] : memref<49x72xf32, #tpu.memory_space<vmem>>, vector<7x8xf32>
    tpu.vector_store %arg5[%c35_145, %c40_146], %185 {strides = array<i32>} : memref<49x72xf32, #tpu.memory_space<vmem>>, vector<7x8xf32>,
    %c0_147 = arith.constant 0 : index
    %c12 = arith.constant 12 : index
    %c0_148 = arith.constant 0 : index
    %c0_149 = arith.constant 0 : index
    %187 = vector.load %arg1[%c0_147, %c12, %c0_148, %c0_149] : memref<1x16x8x16xbf16, #tpu.memory_space<vmem>>, vector<1x1x8x16xbf16>
    %188 = vector.shape_cast %187 : vector<1x1x8x16xbf16> to vector<8x16xbf16>
    %189 = vector.extract_strided_slice %188 {offsets = [0, 0], sizes = [7, 8], strides = [1, 1]} : vector<8x16xbf16> to vector<7x8xbf16>
    %190 = arith.extf %189 : vector<7x8xbf16> to vector<7x8xf32>
    %c35_150 = arith.constant 35 : index
    %c48_151 = arith.constant 48 : index
    %191 = vector.load %arg5[%c35_150, %c48_151] : memref<49x72xf32, #tpu.memory_space<vmem>>, vector<7x8xf32>
    tpu.vector_store %arg5[%c35_150, %c48_151], %190 {strides = array<i32>} : memref<49x72xf32, #tpu.memory_space<vmem>>, vector<7x8xf32>,
    %192 = vector.extract_strided_slice %188 {offsets = [0, 8], sizes = [7, 8], strides = [1, 1]} : vector<8x16xbf16> to vector<7x8xbf16>
    %193 = arith.extf %192 : vector<7x8xbf16> to vector<7x8xf32>
    %c35_152 = arith.constant 35 : index
    %c56_153 = arith.constant 56 : index
    %194 = vector.load %arg5[%c35_152, %c56_153] : memref<49x72xf32, #tpu.memory_space<vmem>>, vector<7x8xf32>
    tpu.vector_store %arg5[%c35_152, %c56_153], %193 {strides = array<i32>} : memref<49x72xf32, #tpu.memory_space<vmem>>, vector<7x8xf32>,
    %195 = vector.extract_strided_slice %188 {offsets = [1, 0], sizes = [7, 8], strides = [1, 1]} : vector<8x16xbf16> to vector<7x8xbf16>
    %196 = arith.extf %195 : vector<7x8xbf16> to vector<7x8xf32>
    %c35_154 = arith.constant 35 : index
    %c64_155 = arith.constant 64 : index
    %197 = vector.load %arg5[%c35_154, %c64_155] : memref<49x72xf32, #tpu.memory_space<vmem>>, vector<7x8xf32>
    tpu.vector_store %arg5[%c35_154, %c64_155], %196 {strides = array<i32>} : memref<49x72xf32, #tpu.memory_space<vmem>>, vector<7x8xf32>,
    %c0_156 = arith.constant 0 : index
    %c12_157 = arith.constant 12 : index
    %c0_158 = arith.constant 0 : index
    %c0_159 = arith.constant 0 : index
    %198 = vector.load %arg1[%c0_156, %c12_157, %c0_158, %c0_159] : memref<1x16x8x16xbf16, #tpu.memory_space<vmem>>, vector<1x1x8x16xbf16>
    %199 = vector.shape_cast %198 : vector<1x1x8x16xbf16> to vector<8x16xbf16>
    %200 = vector.extract_strided_slice %199 {offsets = [0, 0], sizes = [7, 8], strides = [1, 1]} : vector<8x16xbf16> to vector<7x8xbf16>
    %201 = arith.extf %200 : vector<7x8xbf16> to vector<7x8xf32>
    %c42 = arith.constant 42 : index
    %c0_160 = arith.constant 0 : index
    %202 = vector.load %arg5[%c42, %c0_160] : memref<49x72xf32, #tpu.memory_space<vmem>>, vector<7x8xf32>
    tpu.vector_store %arg5[%c42, %c0_160], %201 {strides = array<i32>} : memref<49x72xf32, #tpu.memory_space<vmem>>, vector<7x8xf32>,
    %203 = vector.extract_strided_slice %199 {offsets = [0, 8], sizes = [7, 8], strides = [1, 1]} : vector<8x16xbf16> to vector<7x8xbf16>
    %204 = arith.extf %203 : vector<7x8xbf16> to vector<7x8xf32>
    %c42_161 = arith.constant 42 : index
    %c8_162 = arith.constant 8 : index
    %205 = vector.load %arg5[%c42_161, %c8_162] : memref<49x72xf32, #tpu.memory_space<vmem>>, vector<7x8xf32>
    tpu.vector_store %arg5[%c42_161, %c8_162], %204 {strides = array<i32>} : memref<49x72xf32, #tpu.memory_space<vmem>>, vector<7x8xf32>,
    %206 = vector.extract_strided_slice %199 {offsets = [1, 0], sizes = [7, 8], strides = [1, 1]} : vector<8x16xbf16> to vector<7x8xbf16>
    %207 = arith.extf %206 : vector<7x8xbf16> to vector<7x8xf32>
    %c42_163 = arith.constant 42 : index
    %c16_164 = arith.constant 16 : index
    %208 = vector.load %arg5[%c42_163, %c16_164] : memref<49x72xf32, #tpu.memory_space<vmem>>, vector<7x8xf32>
    tpu.vector_store %arg5[%c42_163, %c16_164], %207 {strides = array<i32>} : memref<49x72xf32, #tpu.memory_space<vmem>>, vector<7x8xf32>,
    %c0_165 = arith.constant 0 : index
    %c13 = arith.constant 13 : index
    %c0_166 = arith.constant 0 : index
    %c0_167 = arith.constant 0 : index
    %209 = vector.load %arg1[%c0_165, %c13, %c0_166, %c0_167] : memref<1x16x8x16xbf16, #tpu.memory_space<vmem>>, vector<1x1x8x16xbf16>
    %210 = vector.shape_cast %209 : vector<1x1x8x16xbf16> to vector<8x16xbf16>
    %211 = vector.extract_strided_slice %210 {offsets = [0, 0], sizes = [7, 8], strides = [1, 1]} : vector<8x16xbf16> to vector<7x8xbf16>
    %212 = arith.extf %211 : vector<7x8xbf16> to vector<7x8xf32>
    %c42_168 = arith.constant 42 : index
    %c24_169 = arith.constant 24 : index
    %213 = vector.load %arg5[%c42_168, %c24_169] : memref<49x72xf32, #tpu.memory_space<vmem>>, vector<7x8xf32>
    tpu.vector_store %arg5[%c42_168, %c24_169], %212 {strides = array<i32>} : memref<49x72xf32, #tpu.memory_space<vmem>>, vector<7x8xf32>,
    %214 = vector.extract_strided_slice %210 {offsets = [0, 8], sizes = [7, 8], strides = [1, 1]} : vector<8x16xbf16> to vector<7x8xbf16>
    %215 = arith.extf %214 : vector<7x8xbf16> to vector<7x8xf32>
    %c42_170 = arith.constant 42 : index
    %c32_171 = arith.constant 32 : index
    %216 = vector.load %arg5[%c42_170, %c32_171] : memref<49x72xf32, #tpu.memory_space<vmem>>, vector<7x8xf32>
    tpu.vector_store %arg5[%c42_170, %c32_171], %215 {strides = array<i32>} : memref<49x72xf32, #tpu.memory_space<vmem>>, vector<7x8xf32>,
    %217 = vector.extract_strided_slice %210 {offsets = [1, 0], sizes = [7, 8], strides = [1, 1]} : vector<8x16xbf16> to vector<7x8xbf16>
    %218 = arith.extf %217 : vector<7x8xbf16> to vector<7x8xf32>
    %c42_172 = arith.constant 42 : index
    %c40_173 = arith.constant 40 : index
    %219 = vector.load %arg5[%c42_172, %c40_173] : memref<49x72xf32, #tpu.memory_space<vmem>>, vector<7x8xf32>
    tpu.vector_store %arg5[%c42_172, %c40_173], %218 {strides = array<i32>} : memref<49x72xf32, #tpu.memory_space<vmem>>, vector<7x8xf32>,
    %c0_174 = arith.constant 0 : index
    %c14_175 = arith.constant 14 : index
    %c0_176 = arith.constant 0 : index
    %c0_177 = arith.constant 0 : index
    %220 = vector.load %arg1[%c0_174, %c14_175, %c0_176, %c0_177] : memref<1x16x8x16xbf16, #tpu.memory_space<vmem>>, vector<1x1x8x16xbf16>
    %221 = vector.shape_cast %220 : vector<1x1x8x16xbf16> to vector<8x16xbf16>
    %222 = vector.extract_strided_slice %221 {offsets = [0, 0], sizes = [7, 8], strides = [1, 1]} : vector<8x16xbf16> to vector<7x8xbf16>
    %223 = arith.extf %222 : vector<7x8xbf16> to vector<7x8xf32>
    %c42_178 = arith.constant 42 : index
    %c48_179 = arith.constant 48 : index
    %224 = vector.load %arg5[%c42_178, %c48_179] : memref<49x72xf32, #tpu.memory_space<vmem>>, vector<7x8xf32>
    tpu.vector_store %arg5[%c42_178, %c48_179], %223 {strides = array<i32>} : memref<49x72xf32, #tpu.memory_space<vmem>>, vector<7x8xf32>,
    %225 = vector.extract_strided_slice %221 {offsets = [0, 8], sizes = [7, 8], strides = [1, 1]} : vector<8x16xbf16> to vector<7x8xbf16>
    %226 = arith.extf %225 : vector<7x8xbf16> to vector<7x8xf32>
    %c42_180 = arith.constant 42 : index
    %c56_181 = arith.constant 56 : index
    %227 = vector.load %arg5[%c42_180, %c56_181] : memref<49x72xf32, #tpu.memory_space<vmem>>, vector<7x8xf32>
    tpu.vector_store %arg5[%c42_180, %c56_181], %226 {strides = array<i32>} : memref<49x72xf32, #tpu.memory_space<vmem>>, vector<7x8xf32>,
    %228 = vector.extract_strided_slice %221 {offsets = [1, 0], sizes = [7, 8], strides = [1, 1]} : vector<8x16xbf16> to vector<7x8xbf16>
    %229 = arith.extf %228 : vector<7x8xbf16> to vector<7x8xf32>
    %c42_182 = arith.constant 42 : index
    %c64_183 = arith.constant 64 : index
    %230 = vector.load %arg5[%c42_182, %c64_183] : memref<49x72xf32, #tpu.memory_space<vmem>>, vector<7x8xf32>
    tpu.vector_store %arg5[%c42_182, %c64_183], %229 {strides = array<i32>} : memref<49x72xf32, #tpu.memory_space<vmem>>, vector<7x8xf32>,
    %c0_184 = arith.constant 0 : index
    %c0_185 = arith.constant 0 : index
    %231 = vector.load %arg5[%c0_184, %c0_185] : memref<49x72xf32, #tpu.memory_space<vmem>>, vector<49x72xf32>
    %232 = arith.truncf %231 : vector<49x72xf32> to vector<49x72xbf16>
    %c0_186 = arith.constant 0 : index
    %c0_187 = arith.constant 0 : index
    %233 = vector.load %arg2[%c0_186, %c0_187] : memref<72x16xbf16, #tpu.memory_space<vmem>>, vector<72x16xbf16>
    %cst = arith.constant dense<0.000000e+00> : vector<49x16xf32>
    %234 = tpu.matmul %232, %233, %cst {dimension_numbers = #tpu.dot_dimension_numbers<[1], [0], [0], [1], [0, 0, 1, 1], [], []>} : vector<49x72xbf16>, vector<72x16xbf16>, vector<49x16xf32> -> vector<49x16xf32>
    %c0_188 = arith.constant 0 : index
    %c0_189 = arith.constant 0 : index
    %235 = vector.load %arg3[%c0_188, %c0_189] : memref<1x16xf32, #tpu.memory_space<vmem>>, vector<1x16xf32>
    %236 = vector.broadcast %235 : vector<1x16xf32> to vector<49x16xf32>
    %237 = arith.addf %234, %236 : vector<49x16xf32>
    %cst_190 = arith.constant 0.000000e+00 : f32
    %238 = vector.broadcast %cst_190 : f32 to vector<49x16xf32>
    %239 = arith.maximumf %237, %238 : vector<49x16xf32>
    %240 = arith.truncf %239 : vector<49x16xf32> to vector<49x16xbf16>
    %c0_191 = arith.constant 0 : index
    %c0_192 = arith.constant 0 : index
    %c0_193 = arith.constant 0 : index
    %241 = vector.load %arg4[%c0_191, %c0_192, %c0_193] : memref<1x49x16xbf16, #tpu.memory_space<vmem>>, vector<1x49x16xbf16>
    %242 = vector.shape_cast %241 : vector<1x49x16xbf16> to vector<49x16xbf16>
    %243 = vector.shape_cast %240 : vector<49x16xbf16> to vector<1x49x16xbf16>
    tpu.vector_store %arg4[%c0_191, %c0_192, %c0_193], %243 {strides = array<i32>} : memref<1x49x16xbf16, #tpu.memory_space<vmem>>, vector<1x49x16xbf16>,
    return
  }
  func.func @transform_0(%arg0: i32) -> (i32, i32, i32, i32) {
    %c0_i32 = arith.constant 0 : i32
    %c0_i32_0 = arith.constant 0 : i32
    %c0_i32_1 = arith.constant 0 : i32
    %c0_i32_2 = arith.constant 0 : i32
    return %arg0, %c0_i32, %c0_i32_0, %c0_i32_1 : i32, i32, i32, i32
  }
  func.func @transform_1(%arg0: i32) -> (i32, i32) {
    %c0_i32 = arith.constant 0 : i32
    %c0_i32_0 = arith.constant 0 : i32
    %c0_i32_1 = arith.constant 0 : i32
    return %c0_i32, %c0_i32_0 : i32, i32
  }
  func.func @transform_2(%arg0: i32) -> (i32, i32) {
    %c0_i32 = arith.constant 0 : i32
    %c0_i32_0 = arith.constant 0 : i32
    %c0_i32_1 = arith.constant 0 : i32
    return %c0_i32, %c0_i32_0 : i32, i32
  }
  func.func @transform_3(%arg0: i32) -> (i32, i32, i32) {
    %c0_i32 = arith.constant 0 : i32
    %c0_i32_0 = arith.constant 0 : i32
    %c0_i32_1 = arith.constant 0 : i32
    return %arg0, %c0_i32, %c0_i32_0 : i32, i32, i32
  }
}

</mosaic_0001>

<bundles_post_ra>
// kernel: reduction_a.5
= control target key start
LH: loop header
LB: loop body
LE: loop exit
PB: predicated region body
PF: predicated region fallthrough
CT: control target
= control target key end

     0   :  { %s417_s6 = smov 0   ;;  %s589_s0 = inlined_call_operand.vmem [shape: f32[2,8,16,16], index: 0, kind: input, shape index: {}]   ;;  %s590_s1 = inlined_call_operand.vmem [shape: f32[2,7,7,8], index: 1, kind: output, shape index: {}]  }
   0x1 LB: > { %s363_s7 = sadd.s32 4294967295, %s404_s6   ;;  %p367_p0 = scmp.ge.s32.totalorder %s404_s6, 1  ;;  %s404_s6 = sphi %s417_s6, %s11_s6  }
   0x2   : > { %p87_p1 = scmp.lt.s32.totalorder %s404_s6, 3 }
   0x4   : > { %p88_p2 = pnand %p367_p0, %p87_p1 }
   0x5   : > { %p107_p3 = scmp.lt.s32.totalorder (!%p88_p2), %s363_s7, 1  ;;  %s406_s12 = smov (!%p88_p2), 120  }
   0x6   : > { %91 = sbr.rel (%p88_p2) target bundleno = 184 (0xb8), region = 24 }
   0xb   : > { %s592_s7 = smov (!%p107_p3, %s363_s7), 1  ;;  %vm300_vm0 = vcmask 63488  }
   0xc   : > { %s387_s8 = sshll.u32 %s592_s7, 7  ;;  %s388_s13 = smul.u32 56, %s592_s7 }
   0xd   : > { %s431_s11 = scalar_lea.vmem %s589_s0, %s387_s8 }
   0xe   : > { %v434_v0 = vld [vmem:[%s431_s11 + $0x20] sm:$0x7f]  ;;  %v120_v3 = vld [vmem:[%s431_s11 + $0x30] sm:$0x7f]  ;;  %v173_v6 = vld [vmem:[%s431_s11 + $0x8] sm:$0x7f]  ;;  %s542_s16 = scalar_lea.vmem %s590_s1, %s388_s13 }
   0xf   : > { %v117_v1 = vld [vmem:[%s431_s11] sm:$0x7f]  ;;  %135 = vrot.lane.b32.xlu1 %v434_v0, %s406_s12  ;;  %v447_v4 = vld [vmem:[%s431_s11 + $0x10] sm:$0x7f]  ;;  %v462_v8 = vld [vmem:[%s431_s11 + $0x18] sm:$0x7f] }
  0x10   : > { %v438_v2 = vld [vmem:[%s431_s11 + $0x40] sm:$0x7f]  ;;  %131 = vrot.lane.b32.xlu0 %v117_v1, %s406_s12  ;;  %v450_v5 = vld [vmem:[%s431_s11 + $0x50] sm:$0x7f]  ;;  %v470_v9 = vld [vmem:[%s431_s11 + $0x38] sm:$0x7f] }
  0x11   : > { %139 = vrot.lane.b32.xlu2 %v438_v2, %s406_s12  ;;  %v459_v7 = vld [vmem:[%s431_s11 + $0x60] sm:$0x7f]  ;;  %v473_v10 = vld [vmem:[%s431_s11 + $0x28] sm:$0x7f]  ;;  %v488_v13 = vld [vmem:[%s431_s11 + $0x58] sm:$0x7f] }
  0x12   : > { %v476_v11 = vld [vmem:[%s431_s11 + $0x48] sm:$0x7f]  ;;  %v371_v14 = vld [vmem:[%s431_s11 + $0x10] sm:$0x7f]  ;;  %v500_v16 = vld [vmem:[%s431_s11 + $0x20] sm:$0x7f] }
  0x13   : > { %v485_v12 = vld [vmem:[%s431_s11 + $0x68] sm:$0x7f]  ;;  %v497_v15 = vld [vmem:[%s431_s11 + $0x30] sm:$0x7f]  ;;  %v374_v17 = vld [vmem:[%s431_s11 + $0x40] sm:$0x7f] }
  0x14   : > { %v509_v18 = vld [vmem:[%s431_s11 + $0x60] sm:$0x7f]  ;;  %v512_v19 = vld [vmem:[%s431_s11 + $0x50] sm:$0x7f]  ;;  %v222_v36 = vld [vmem:[%s431_s11 + $0x9] sm:$0x7f] }
  0x15   : > { %v515_v20 = vld [vmem:[%s431_s11 + $0x70] sm:$0x7f]  ;;  %v159_v28 = vld [vmem:[%s431_s11 + $0x1] sm:$0x7f]  ;;  %v225_v53 = vld [vmem:[%s431_s11 + $0x39] sm:$0x7f] }
  0x16   : > { %v162_v35 = vld [vmem:[%s431_s11 + $0x31] sm:$0x7f]  ;;  %v161_v46 = vld [vmem:[%s431_s11 + $0x21] sm:$0x7f] }
  0x17   : > { %137 = vrot.lane.b32.xlu1 %v120_v3, %s406_s12  ;;  %v160_v43 = vld [vmem:[%s431_s11 + $0x11] sm:$0x7f]  ;;  %v165_v52 = vld [vmem:[%s431_s11 + $0x61] sm:$0x7f] }
  0x18   : > { %133 = vrot.lane.b32.xlu0 %v447_v4, %s406_s12  ;;  %v378_v47 = vld [vmem:[%s431_s11 + $0x11] sm:$0x7f]  ;;  %v163_v61 = vld [vmem:[%s431_s11 + $0x41] sm:$0x7f] }
  0x19   : > { %141 = vrot.lane.b32.xlu2 %v450_v5, %s406_s12 }
  0x1f   : > { %194 = vrot.lane.b32.xlu1 %v173_v6, %s406_s12 }
  0x20   : > { %143 = vrot.lane.b32.xlu0 %v459_v7, %s406_s12 }
  0x21   : > { %196 = vrot.lane.b32.xlu2 %v462_v8, %s406_s12 }
  0x27   : > { %200 = vrot.lane.b32.xlu1 %v470_v9, %s406_s12 }
  0x28   : > { %198 = vrot.lane.b32.xlu0 %v473_v10, %s406_s12 }
  0x29   : > { %202 = vrot.lane.b32.xlu2 %v476_v11, %s406_s12 }
  0x2f   : > { %206 = vrot.lane.b32.xlu1 %v485_v12, %s406_s12 }
  0x30   : > { %204 = vrot.lane.b32.xlu0 %v488_v13, %s406_s12 }
  0x31   : > { %258 = vrot.lane.b32.xlu2 %v371_v14, %s406_s12 }
  0x37   : > { %262 = vrot.lane.b32.xlu1 %v497_v15, %s406_s12 }
  0x38   : > { %260 = vrot.lane.b32.xlu0 %v500_v16, %s406_s12 }
  0x39   : > { %264 = vrot.lane.b32.xlu2 %v374_v17, %s406_s12 }
  0x3f   : > { %268 = vrot.lane.b32.xlu1 %v509_v18, %s406_s12 }
  0x40   : > { %266 = vrot.lane.b32.xlu0 %v512_v19, %s406_s12 }
  0x41   : > { %270 = vrot.lane.b32.xlu2 %v515_v20, %s406_s12 }
  0x6b   : > { %v140_v21 = vpop.permute.xlu2 %139 }
  0x6c   : > { %v156_v59 = vmax.f32 %v438_v2, %v140_v21  ;;  %v381_v2 = vld [vmem:[%s431_s11 + $0x41] sm:$0x7f] }
  0x73   : > { %v523_v22 = vpop.permute.xlu2 %141 }
  0x7b   : > { %v197_v23 = vpop.permute.xlu2 %196 }
  0x81   : > { %v136_v24 = vpop.permute.xlu1 %135 }
  0x82   : > { %v132_v25 = vpop.permute.xlu0 %131  ;;  %v154_v44 = vmax.f32 %v434_v0, %v136_v24  ;;  %v224_v24 = vld [vmem:[%s431_s11 + $0x29] sm:$0x7f] }
  0x83   : > { %v152_v26 = vmax.f32 %v117_v1, %v132_v25  ;;  %v525_v27 = vpop.permute.xlu2 %202  ;;  %v157_v1 = vmax.f32 %v450_v5, %v523_v22  ;;  %v228_v25 = vld [vmem:[%s431_s11 + $0x69] sm:$0x7f] }
  0x84   : > { %v168_v56 = vmax.f32 %v154_v44, %v161_v46 }
  0x85   : > { %v166_v31 = vmax.f32 %v152_v26, %v159_v28 }
  0x87   : > { %v180_v33 = vmax.f32 %v166_v31, %v173_v6  ;;  %v170_v6 = vmax.f32 %v156_v59, %v163_v61 }
  0x89   : > { %v138_v29 = vpop.permute.xlu1 %137 }
  0x8a   : > { %v134_v30 = vpop.permute.xlu0 %133  ;;  %v155_v32 = vmax.f32 %v120_v3, %v138_v29  ;;  %v182_v3 = vmax.f32 %v168_v56, %v473_v10  ;;  %v223_v29 = vld [vmem:[%s431_s11 + $0x19] sm:$0x7f] }
  0x8b   : > { %v259_v34 = vpop.permute.xlu2 %258  ;;  %v153_v41 = vmax.f32 %v447_v4, %v134_v30 }
  0x8c   : > { %v169_v40 = vmax.f32 %v155_v32, %v162_v35  ;;  %v384_v35 = vld [vmem:[%s431_s11 + $0x71] sm:$0x7f] }
  0x8d   : > { %v167_v48 = vmax.f32 %v153_v41, %v160_v43  ;;  %v380_v41 = vld [vmem:[%s431_s11 + $0x31] sm:$0x7f] }
  0x8e   : > { %v183_v51 = vmax.f32 %v169_v40, %v470_v9  ;;  %v227_v40 = vld [vmem:[%s431_s11 + $0x59] sm:$0x7f] }
  0x8f   : > { %v181_v62 = vmax.f32 %v167_v48, %v462_v8 }
  0x91   : > { %v195_v37 = vpop.permute.xlu1 %194  ;;  %v216_v8 = vmax.f32 %v181_v62, %v197_v23 }
  0x92   : > { %v144_v38 = vpop.permute.xlu0 %143  ;;  %v215_v39 = vmax.f32 %v180_v33, %v195_v37 }
  0x93   : > { %v158_v49 = vmax.f32 %v459_v7, %v144_v38  ;;  %v265_v60 = vpop.permute.xlu2 %264  ;;  %v164_v7 = vld [vmem:[%s431_s11 + $0x51] sm:$0x7f]  ;;  %v230_v23 = vmax.f32 %v216_v8, %v223_v29 }
  0x94   : > { %v229_v42 = vmax.f32 %v215_v39, %v222_v36  ;;  %v171_v5 = vmax.f32 %v157_v1, %v164_v7  ;;  %v226_v36 = vld [vmem:[%s431_s11 + $0x49] sm:$0x7f] }
  0x95   : > { %v172_v63 = vmax.f32 %v158_v49, %v165_v52  ;;  %v245_v39 = vmax.f32 %v230_v23, %v500_v16  ;;  %v383_v49 = vld [vmem:[%s431_s11 + $0x61] sm:$0x7f] }
  0x96   : > { %v244_v45 = vmax.f32 %v229_v42, %v371_v14  ;;  %v185_v32 = vmax.f32 %v171_v5, %v488_v13  ;;  %v379_v13 = vld [vmem:[%s431_s11 + $0x21] sm:$0x7f] }
  0x97   : > { %v186_v21 = vmax.f32 %v172_v63, %v485_v12 }
  0x98   : > { %v279_v50 = vmax.f32 %v244_v45, %v259_v34 }
  0x99   : > { %v201_v54 = vpop.permute.xlu1 %200 }
  0x9a   : > { %v199_v55 = vpop.permute.xlu0 %198  ;;  %v293_v57 = vmax.f32 %v279_v50, %v378_v47  ;;  %v218_v58 = vmax.f32 %v183_v51, %v201_v54  ;;  %v382_v51 = vld [vmem:[%s431_s11 + $0x51] sm:$0x7f] }
  0x9b   : > { %v217_v9 = vmax.f32 %v182_v3, %v199_v55  ;;  %v271_v31 = vpop.permute.xlu2 %270 }
  0x9c   : > { %301 = vst.msk [vmem:[%s542_s16] sm:$0x7f] %vm300_vm0, %v293_v57  ;;  %v232_v0 = vmax.f32 %v218_v58, %v225_v53 }
  0x9d   : > { %v231_v30 = vmax.f32 %v217_v9, %v224_v24 }
  0x9e   : > { %v247_v4 = vmax.f32 %v232_v0, %v374_v17  ;;  %v184_v17 = vmax.f32 %v170_v6, %v476_v11 }
  0x9f   : > { %v246_v11 = vmax.f32 %v231_v30, %v497_v15 }
  0xa0   : > { %v282_v14 = vmax.f32 %v247_v4, %v265_v60  ;;  %v219_v34 = vmax.f32 %v184_v17, %v525_v27 }
  0xa1   : > { %v207_v26 = vpop.permute.xlu1 %206 }
  0xa2   : > { %v205_v28 = vpop.permute.xlu0 %204  ;;  %v296_v22 = vmax.f32 %v282_v14, %v381_v2  ;;  %v221_v10 = vmax.f32 %v186_v21, %v207_v26  ;;  %v233_v45 = vmax.f32 %v219_v34, %v226_v36 }
  0xa3   : > { %v220_v37 = vmax.f32 %v185_v32, %v205_v28 }
  0xa4   : > { %304 = vst.msk [vmem:[%s542_s16 + $0x18] sm:$0x7f] %vm300_vm0, %v296_v22  ;;  %v235_v12 = vmax.f32 %v221_v10, %v228_v25  ;;  %v248_v48 = vmax.f32 %v233_v45, %v512_v19 }
  0xa5   : > { %v234_v46 = vmax.f32 %v220_v37, %v227_v40 }
  0xa6   : > { %v250_v33 = vmax.f32 %v235_v12, %v515_v20 }
  0xa7   : > { %v249_v16 = vmax.f32 %v234_v46, %v509_v18 }
  0xa8   : > { %v285_v38 = vmax.f32 %v250_v33, %v271_v31 }
  0xa9   : > { %v263_v42 = vpop.permute.xlu1 %262 }
  0xaa   : > { %v261_v20 = vpop.permute.xlu0 %260  ;;  %v299_v43 = vmax.f32 %v285_v38, %v384_v35  ;;  %v281_v27 = vmax.f32 %v246_v11, %v263_v42 }
  0xab   : > { %v280_v44 = vmax.f32 %v245_v39, %v261_v20 }
  0xac   : > { %307 = vst.msk [vmem:[%s542_s16 + $0x30] sm:$0x7f] %vm300_vm0, %v299_v43  ;;  %v295_v15 = vmax.f32 %v281_v27, %v380_v41 }
  0xad   : > { %v294_v47 = vmax.f32 %v280_v44, %v379_v13 }
  0xae   : > { %303 = vst.msk [vmem:[%s542_s16 + $0x10] sm:$0x7f] %vm300_vm0, %v295_v15 }
  0xaf   : > { %302 = vst.msk [vmem:[%s542_s16 + $0x8] sm:$0x7f] %vm300_vm0, %v294_v47 }
  0xb1   : > { %v269_v50 = vpop.permute.xlu1 %268 }
  0xb2   : > { %v267_v52 = vpop.permute.xlu0 %266  ;;  %v284_v53 = vmax.f32 %v249_v16, %v269_v50 }
  0xb3   : > { %v283_v54 = vmax.f32 %v248_v48, %v267_v52 }
  0xb4   : > { %v298_v55 = vmax.f32 %v284_v53, %v383_v49 }
  0xb5   : > { %v297_v56 = vmax.f32 %v283_v54, %v382_v51 }
  0xb6   : > { %306 = vst.msk [vmem:[%s542_s16 + $0x28] sm:$0x7f] %vm300_vm0, %v298_v55 }
  0xb7   : > { %305 = vst.msk [vmem:[%s542_s16 + $0x20] sm:$0x7f] %vm300_vm0, %v297_v56 }
  0xb8 PF: > { %s11_s6 = sadd.s32 1, %s404_s6  }
  0xb9   : > { %p8_p4 = scmp.ge.s32.totalorder %s11_s6, 4  }
  0xbb   :  { %10 = sbr.rel (!%p8_p4) target bundleno = 1 (0x1), region = 55 }

// kernel: reduction_a.7
= control target key start
LH: loop header
LB: loop body
LE: loop exit
PB: predicated region body
PF: predicated region fallthrough
CT: control target
= control target key end

     0   :  { %s732_s12 = smov 0   ;;  %s878_s0 = inlined_call_operand.vmem [shape: bf16[2,256,8], index: 0, kind: input, shape index: {}]   ;;  %s879_s1 = inlined_call_operand.vmem [shape: bf16[8,8], index: 1, kind: input, shape index: {}]   ;;  %s880_s2 = inlined_call_operand.vmem [shape: f32[1,8], index: 2, kind: input, shape index: {}]   ;;  %s881_s3 = inlined_call_operand.vmem [shape: bf16[2,256,8], index: 3, kind: output, shape index: {}]  }
   0x1 LB: > { %s583_s13 = sadd.s32 4294967295, %s710_s12   ;;  %p587_p0 = scmp.ge.s32.totalorder %s710_s12, 1  ;;  %s710_s12 = sphi %s732_s12, %s13_s12  }
   0x2   : > { %p137_p1 = scmp.lt.s32.totalorder %s710_s12, 3 }
   0x4   : > { %p138_p2 = pnand %p587_p0, %p137_p1 }
   0x5   : > { %p161_p3 = scmp.lt.s32.totalorder (!%p138_p2), %s583_s13, 1 }
   0x6   : > { %141 = sbr.rel (%p138_p2) target bundleno = 213 (0xd5), region = 32 }
   0xb   : > { %v204_v0 = vld [vmem:[%s879_s1] sm:$0xf]  ;;  %vm338_vm0 = vcmask 1043456   ;;  %s883_s13 = smov (!%p161_p3, %s583_s13), 1  ;;  %vm289_vm1 = vcmask 64512   ;;  %vm495_vm2 = vcmask 60416  }
   0xc   : > { %v340_v1 = vsel %vm338_vm0, %v204_v0, 0  ;;  %s674_s16 = sshll.u32 %s883_s13, 7  ;;  %v770_v18 = vld [vmem:[%s880_s2] ss:$0 sm:$0xff] }
   0xd   : > { %349 = vmatpush.bf16.msra.mxu0 %v340_v1  ;;  %692 = vmatpush.bf16.msra.mxu1 %v340_v1  ;;  %s165_s19 = scalar_lea.vmem %s878_s0, %s674_s16  ;;  %s779_s24 = scalar_lea.vmem %s881_s3, %s674_s16 }
   0xe   : > { %693 = vmatpush.bf16.msra.mxu2 %v340_v1  ;;  %694 = vmatpush.bf16.msra.mxu3 %v340_v1  ;;  %v676_v2 = vld [vmem:[%s165_s19] sm:$0xff]  ;;  %v677_v6 = vld [vmem:[%s165_s19 + $0x8] sm:$0xff]  ;;  %v678_v10 = vld [vmem:[%s165_s19 + $0x10] sm:$0xff] }
   0xf   : > { %v680_v3 = vld [vmem:[%s165_s19 + $0x20] sm:$0xff]  ;;  %v681_v7 = vld [vmem:[%s165_s19 + $0x28] sm:$0xff]  ;;  %v682_v11 = vld [vmem:[%s165_s19 + $0x30] sm:$0xff] }
  0x10   : > { %v684_v4 = vld [vmem:[%s165_s19 + $0x40] sm:$0xff]  ;;  %656 = vmatmul.msk.bf16.vlgmr.msra.gmra.mxu0 %vm289_vm1, %v676_v2  ;;  %660 = vmatmul.msk.bf16.vlgmr.msra.gmra.mxu1 %vm289_vm1, %v680_v3  ;;  %v685_v8 = vld [vmem:[%s165_s19 + $0x48] sm:$0xff]  ;;  %v686_v12 = vld [vmem:[%s165_s19 + $0x50] sm:$0xff] }
  0x11   : > { %v688_v5 = vld [vmem:[%s165_s19 + $0x60] sm:$0xff]  ;;  %664 = vmatmul.msk.bf16.vlgmr.msra.gmra.mxu2 %vm289_vm1, %v684_v4  ;;  %v689_v9 = vld [vmem:[%s165_s19 + $0x68] sm:$0xff]  ;;  %v690_v13 = vld [vmem:[%s165_s19 + $0x70] sm:$0xff] }
  0x12   : > { %668 = vmatmul.msk.bf16.vlgmr.msra.gmra.mxu3 %vm289_vm1, %v688_v5  ;;  %v679_v14 = vld [vmem:[%s165_s19 + $0x18] sm:$0xff] }
  0x13   : > { %v683_v15 = vld [vmem:[%s165_s19 + $0x38] sm:$0xff] }
  0x14   : > { %v687_v16 = vld [vmem:[%s165_s19 + $0x58] sm:$0xff] }
  0x15   : > { %v691_v17 = vld [vmem:[%s165_s19 + $0x78] sm:$0xff] }
  0x20   : > { %657 = vmatmul.msk.bf16.gmra.mxu0 %vm289_vm1, %v677_v6  ;;  %661 = vmatmul.msk.bf16.gmra.mxu1 %vm289_vm1, %v681_v7 }
  0x21   : > { %665 = vmatmul.msk.bf16.gmra.mxu2 %vm289_vm1, %v685_v8 }
  0x22   : > { %669 = vmatmul.msk.bf16.gmra.mxu3 %vm289_vm1, %v689_v9 }
  0x30   : > { %658 = vmatmul.msk.bf16.gmra.mxu0 %vm289_vm1, %v678_v10  ;;  %662 = vmatmul.msk.bf16.gmra.mxu1 %vm289_vm1, %v682_v11 }
  0x31   : > { %666 = vmatmul.msk.bf16.gmra.mxu2 %vm289_vm1, %v686_v12 }
  0x32   : > { %670 = vmatmul.msk.bf16.gmra.mxu3 %vm289_vm1, %v690_v13 }
  0x40   : > { %659 = vmatmul.msk.bf16.gmra.mxu0 %vm289_vm1, %v679_v14  ;;  %663 = vmatmul.msk.bf16.gmra.mxu1 %vm289_vm1, %v683_v15 }
  0x41   : > { %667 = vmatmul.msk.bf16.gmra.mxu2 %vm289_vm1, %v687_v16 }
  0x42   : > { %671 = vmatmul.msk.bf16.gmra.mxu3 %vm289_vm1, %v691_v17 }
  0x8d   : > { %v351_v19 = vpop.f32.mrf.mxu0  ;;  %v371_v20 = vpop.f32.mrf.mxu1 }
  0x8e   : > { %v352_v21 = vadd.f32 %v770_v18, %v351_v19  ;;  %v372_v22 = vadd.f32 %v770_v18, %v371_v20 }
  0x90   : > { %v431_v23 = vmax.f32 %v352_v21, 0.0  ;;  %v439_v24 = vmax.f32 %v372_v22, 0.0 }
  0x92   : > { %v463_v25 = vpack.c.bf16 %v431_v23, %v431_v23  ;;  %v471_v26 = vpack.c.bf16 %v439_v24, %v439_v24 }
  0x94   : > { %496 = vst.msk [vmem:[%s779_s24] sm:$0xf] %vm495_vm2, %v463_v25  ;;  %v391_v27 = vpop.f32.mrf.mxu2 }
  0x95   : > { %v411_v28 = vpop.f32.mrf.mxu3  ;;  %504 = vst.msk [vmem:[%s779_s24 + $0x20] sm:$0xf] %vm495_vm2, %v471_v26  ;;  %v392_v29 = vadd.f32 %v770_v18, %v391_v27  ;;  %v353_v31 = vpop.f32.mrf.mxu0 }
  0x96   : > { %v412_v30 = vadd.f32 %v770_v18, %v411_v28  ;;  %v373_v32 = vpop.f32.mrf.mxu1  ;;  %v354_v33 = vadd.f32 %v770_v18, %v353_v31 }
  0x97   : > { %v374_v34 = vadd.f32 %v770_v18, %v373_v32  ;;  %v447_v35 = vmax.f32 %v392_v29, 0.0 }
  0x98   : > { %v455_v36 = vmax.f32 %v412_v30, 0.0  ;;  %v432_v37 = vmax.f32 %v354_v33, 0.0 }
  0x99   : > { %v440_v38 = vmax.f32 %v374_v34, 0.0  ;;  %v479_v39 = vpack.c.bf16 %v447_v35, %v447_v35 }
  0x9a   : > { %v487_v40 = vpack.c.bf16 %v455_v36, %v455_v36  ;;  %v464_v41 = vpack.c.bf16 %v432_v37, %v432_v37 }
  0x9b   : > { %v472_v42 = vpack.c.bf16 %v440_v38, %v440_v38  ;;  %512 = vst.msk [vmem:[%s779_s24 + $0x40] sm:$0xf] %vm495_vm2, %v479_v39 }
  0x9c   : > { %520 = vst.msk [vmem:[%s779_s24 + $0x60] sm:$0xf] %vm495_vm2, %v487_v40  ;;  %v393_v43 = vpop.f32.mrf.mxu2 }
  0x9d   : > { %v413_v44 = vpop.f32.mrf.mxu3  ;;  %497 = vst.msk [vmem:[%s779_s24 + $0x4] sm:$0xf] %vm495_vm2, %v464_v41  ;;  %v394_v45 = vadd.f32 %v770_v18, %v393_v43  ;;  %v356_v47 = vpop.f32.mrf.mxu0 }
  0x9e   : > { %v414_v46 = vadd.f32 %v770_v18, %v413_v44  ;;  %v376_v48 = vpop.f32.mrf.mxu1  ;;  %505 = vst.msk [vmem:[%s779_s24 + $0x24] sm:$0xf] %vm495_vm2, %v472_v42  ;;  %v357_v49 = vadd.f32 %v770_v18, %v356_v47 }
  0x9f   : > { %v377_v50 = vadd.f32 %v770_v18, %v376_v48  ;;  %v448_v51 = vmax.f32 %v394_v45, 0.0 }
  0xa0   : > { %v456_v52 = vmax.f32 %v414_v46, 0.0  ;;  %v433_v53 = vmax.f32 %v357_v49, 0.0 }
  0xa1   : > { %v441_v54 = vmax.f32 %v377_v50, 0.0  ;;  %v480_v55 = vpack.c.bf16 %v448_v51, %v448_v51 }
  0xa2   : > { %v488_v56 = vpack.c.bf16 %v456_v52, %v456_v52  ;;  %v465_v57 = vpack.c.bf16 %v433_v53, %v433_v53 }
  0xa3   : > { %v473_v58 = vpack.c.bf16 %v441_v54, %v441_v54  ;;  %513 = vst.msk [vmem:[%s779_s24 + $0x44] sm:$0xf] %vm495_vm2, %v480_v55 }
  0xa4   : > { %521 = vst.msk [vmem:[%s779_s24 + $0x64] sm:$0xf] %vm495_vm2, %v488_v56  ;;  %v396_v59 = vpop.f32.mrf.mxu2 }
  0xa5   : > { %v416_v60 = vpop.f32.mrf.mxu3  ;;  %498 = vst.msk [vmem:[%s779_s24 + $0x8] sm:$0xf] %vm495_vm2, %v465_v57  ;;  %v397_v61 = vadd.f32 %v770_v18, %v396_v59  ;;  %v358_v63 = vpop.f32.mrf.mxu0 }
  0xa6   : > { %v417_v62 = vadd.f32 %v770_v18, %v416_v60  ;;  %v378_v0 = vpop.f32.mrf.mxu1  ;;  %506 = vst.msk [vmem:[%s779_s24 + $0x28] sm:$0xf] %vm495_vm2, %v473_v58  ;;  %v359_v1 = vadd.f32 %v770_v18, %v358_v63 }
  0xa7   : > { %v379_v2 = vadd.f32 %v770_v18, %v378_v0  ;;  %v449_v3 = vmax.f32 %v397_v61, 0.0 }
  0xa8   : > { %v457_v4 = vmax.f32 %v417_v62, 0.0  ;;  %v434_v5 = vmax.f32 %v359_v1, 0.0 }
  0xa9   : > { %v442_v6 = vmax.f32 %v379_v2, 0.0  ;;  %v481_v7 = vpack.c.bf16 %v449_v3, %v449_v3 }
  0xaa   : > { %v489_v8 = vpack.c.bf16 %v457_v4, %v457_v4  ;;  %v466_v9 = vpack.c.bf16 %v434_v5, %v434_v5 }
  0xab   : > { %v474_v10 = vpack.c.bf16 %v442_v6, %v442_v6  ;;  %514 = vst.msk [vmem:[%s779_s24 + $0x48] sm:$0xf] %vm495_vm2, %v481_v7 }
  0xac   : > { %522 = vst.msk [vmem:[%s779_s24 + $0x68] sm:$0xf] %vm495_vm2, %v489_v8  ;;  %v398_v11 = vpop.f32.mrf.mxu2 }
  0xad   : > { %v418_v12 = vpop.f32.mrf.mxu3  ;;  %499 = vst.msk [vmem:[%s779_s24 + $0xc] sm:$0xf] %vm495_vm2, %v466_v9  ;;  %v399_v13 = vadd.f32 %v770_v18, %v398_v11  ;;  %v361_v15 = vpop.f32.mrf.mxu0 }
  0xae   : > { %v419_v14 = vadd.f32 %v770_v18, %v418_v12  ;;  %v381_v16 = vpop.f32.mrf.mxu1  ;;  %507 = vst.msk [vmem:[%s779_s24 + $0x2c] sm:$0xf] %vm495_vm2, %v474_v10  ;;  %v362_v17 = vadd.f32 %v770_v18, %v361_v15 }
  0xaf   : > { %v382_v19 = vadd.f32 %v770_v18, %v381_v16  ;;  %v450_v20 = vmax.f32 %v399_v13, 0.0 }
  0xb0   : > { %v458_v21 = vmax.f32 %v419_v14, 0.0  ;;  %v435_v22 = vmax.f32 %v362_v17, 0.0 }
  0xb1   : > { %v443_v23 = vmax.f32 %v382_v19, 0.0  ;;  %v482_v24 = vpack.c.bf16 %v450_v20, %v450_v20 }
  0xb2   : > { %v490_v25 = vpack.c.bf16 %v458_v21, %v458_v21  ;;  %v467_v26 = vpack.c.bf16 %v435_v22, %v435_v22 }
  0xb3   : > { %v475_v27 = vpack.c.bf16 %v443_v23, %v443_v23  ;;  %515 = vst.msk [vmem:[%s779_s24 + $0x4c] sm:$0xf] %vm495_vm2, %v482_v24 }
  0xb4   : > { %523 = vst.msk [vmem:[%s779_s24 + $0x6c] sm:$0xf] %vm495_vm2, %v490_v25  ;;  %v401_v28 = vpop.f32.mrf.mxu2 }
  0xb5   : > { %v421_v29 = vpop.f32.mrf.mxu3  ;;  %500 = vst.msk [vmem:[%s779_s24 + $0x10] sm:$0xf] %vm495_vm2, %v467_v26  ;;  %v402_v30 = vadd.f32 %v770_v18, %v401_v28  ;;  %v363_v32 = vpop.f32.mrf.mxu0 }
  0xb6   : > { %v422_v31 = vadd.f32 %v770_v18, %v421_v29  ;;  %v383_v33 = vpop.f32.mrf.mxu1  ;;  %508 = vst.msk [vmem:[%s779_s24 + $0x30] sm:$0xf] %vm495_vm2, %v475_v27  ;;  %v364_v34 = vadd.f32 %v770_v18, %v363_v32 }
  0xb7   : > { %v384_v35 = vadd.f32 %v770_v18, %v383_v33  ;;  %v451_v36 = vmax.f32 %v402_v30, 0.0 }
  0xb8   : > { %v459_v37 = vmax.f32 %v422_v31, 0.0  ;;  %v436_v38 = vmax.f32 %v364_v34, 0.0 }
  0xb9   : > { %v444_v39 = vmax.f32 %v384_v35, 0.0  ;;  %v483_v40 = vpack.c.bf16 %v451_v36, %v451_v36 }
  0xba   : > { %v491_v41 = vpack.c.bf16 %v459_v37, %v459_v37  ;;  %v468_v42 = vpack.c.bf16 %v436_v38, %v436_v38 }
  0xbb   : > { %v476_v43 = vpack.c.bf16 %v444_v39, %v444_v39  ;;  %516 = vst.msk [vmem:[%s779_s24 + $0x50] sm:$0xf] %vm495_vm2, %v483_v40 }
  0xbc   : > { %524 = vst.msk [vmem:[%s779_s24 + $0x70] sm:$0xf] %vm495_vm2, %v491_v41  ;;  %v403_v44 = vpop.f32.mrf.mxu2 }
  0xbd   : > { %v423_v45 = vpop.f32.mrf.mxu3  ;;  %501 = vst.msk [vmem:[%s779_s24 + $0x14] sm:$0xf] %vm495_vm2, %v468_v42  ;;  %v404_v46 = vadd.f32 %v770_v18, %v403_v44  ;;  %v366_v48 = vpop.f32.mrf.mxu0 }
  0xbe   : > { %v424_v47 = vadd.f32 %v770_v18, %v423_v45  ;;  %v386_v49 = vpop.f32.mrf.mxu1  ;;  %509 = vst.msk [vmem:[%s779_s24 + $0x34] sm:$0xf] %vm495_vm2, %v476_v43  ;;  %v367_v50 = vadd.f32 %v770_v18, %v366_v48 }
  0xbf   : > { %v387_v51 = vadd.f32 %v770_v18, %v386_v49  ;;  %v452_v52 = vmax.f32 %v404_v46, 0.0 }
  0xc0   : > { %v460_v53 = vmax.f32 %v424_v47, 0.0  ;;  %v437_v54 = vmax.f32 %v367_v50, 0.0 }
  0xc1   : > { %v445_v55 = vmax.f32 %v387_v51, 0.0  ;;  %v484_v56 = vpack.c.bf16 %v452_v52, %v452_v52 }
  0xc2   : > { %v492_v57 = vpack.c.bf16 %v460_v53, %v460_v53  ;;  %v469_v58 = vpack.c.bf16 %v437_v54, %v437_v54 }
  0xc3   : > { %v477_v59 = vpack.c.bf16 %v445_v55, %v445_v55  ;;  %517 = vst.msk [vmem:[%s779_s24 + $0x54] sm:$0xf] %vm495_vm2, %v484_v56 }
  0xc4   : > { %525 = vst.msk [vmem:[%s779_s24 + $0x74] sm:$0xf] %vm495_vm2, %v492_v57  ;;  %v406_v60 = vpop.f32.mrf.mxu2 }
  0xc5   : > { %v426_v61 = vpop.f32.mrf.mxu3  ;;  %502 = vst.msk [vmem:[%s779_s24 + $0x18] sm:$0xf] %vm495_vm2, %v469_v58  ;;  %v407_v62 = vadd.f32 %v770_v18, %v406_v60  ;;  %v368_v0 = vpop.f32.mrf.mxu0 }
  0xc6   : > { %v427_v63 = vadd.f32 %v770_v18, %v426_v61  ;;  %v388_v1 = vpop.f32.mrf.mxu1  ;;  %510 = vst.msk [vmem:[%s779_s24 + $0x38] sm:$0xf] %vm495_vm2, %v477_v59  ;;  %v369_v2 = vadd.f32 %v770_v18, %v368_v0 }
  0xc7   : > { %v389_v3 = vadd.f32 %v770_v18, %v388_v1  ;;  %v453_v4 = vmax.f32 %v407_v62, 0.0 }
  0xc8   : > { %v461_v5 = vmax.f32 %v427_v63, 0.0  ;;  %v438_v6 = vmax.f32 %v369_v2, 0.0 }
  0xc9   : > { %v446_v7 = vmax.f32 %v389_v3, 0.0  ;;  %v485_v8 = vpack.c.bf16 %v453_v4, %v453_v4 }
  0xca   : > { %v493_v9 = vpack.c.bf16 %v461_v5, %v461_v5  ;;  %v470_v10 = vpack.c.bf16 %v438_v6, %v438_v6 }
  0xcb   : > { %v478_v11 = vpack.c.bf16 %v446_v7, %v446_v7  ;;  %518 = vst.msk [vmem:[%s779_s24 + $0x58] sm:$0xf] %vm495_vm2, %v485_v8 }
  0xcc   : > { %526 = vst.msk [vmem:[%s779_s24 + $0x78] sm:$0xf] %vm495_vm2, %v493_v9  ;;  %v408_v12 = vpop.f32.mrf.mxu2 }
  0xcd   : > { %v428_v13 = vpop.f32.mrf.mxu3  ;;  %503 = vst.msk [vmem:[%s779_s24 + $0x1c] sm:$0xf] %vm495_vm2, %v470_v10  ;;  %v409_v14 = vadd.f32 %v770_v18, %v408_v12 }
  0xce   : > { %v429_v15 = vadd.f32 %v770_v18, %v428_v13  ;;  %511 = vst.msk [vmem:[%s779_s24 + $0x3c] sm:$0xf] %vm495_vm2, %v478_v11 }
  0xcf   : > { %v454_v16 = vmax.f32 %v409_v14, 0.0 }
  0xd0   : > { %v462_v17 = vmax.f32 %v429_v15, 0.0 }
  0xd1   : > { %v486_v19 = vpack.c.bf16 %v454_v16, %v454_v16 }
  0xd2   : > { %v494_v20 = vpack.c.bf16 %v462_v17, %v462_v17 }
  0xd3   : > { %519 = vst.msk [vmem:[%s779_s24 + $0x5c] sm:$0xf] %vm495_vm2, %v486_v19 }
  0xd4   : > { %527 = vst.msk [vmem:[%s779_s24 + $0x7c] sm:$0xf] %vm495_vm2, %v494_v20 }
  0xd5 PF: > { %s13_s12 = sadd.s32 1, %s710_s12  }
  0xd6   : > { %p10_p4 = scmp.ge.s32.totalorder %s13_s12, 4  }
  0xd8   :  { %12 = sbr.rel (!%p10_p4) target bundleno = 1 (0x1), region = 62 }

// kernel: reduction_a.9
= control target key start
LH: loop header
LB: loop body
LE: loop exit
PB: predicated region body
PF: predicated region fallthrough
CT: control target
= control target key end

     0   :  { %s797_s12 = smov 0   ;;  %s964_s0 = inlined_call_operand.vmem [shape: bf16[2,16,8,16], index: 0, kind: input, shape index: {}]   ;;  %s965_s1 = inlined_call_operand.vmem [shape: bf16[72,8], index: 1, kind: input, shape index: {}]   ;;  %s966_s2 = inlined_call_operand.vmem [shape: f32[1,8], index: 2, kind: input, shape index: {}]   ;;  %s967_s3 = inlined_call_operand.vmem [shape: bf16[2,49,8], index: 3, kind: output, shape index: {}]  }
   0x1 LB: > { %s604_s13 = sadd.s32 4294967295, %s770_s12   ;;  %p608_p0 = scmp.ge.s32.totalorder %s770_s12, 1  ;;  %s770_s12 = sphi %s797_s12, %s13_s12  }
   0x2   : > { %p137_p1 = scmp.lt.s32.totalorder %s770_s12, 3 }
   0x4   : > { %p138_p2 = pnand %p608_p0, %p137_p1 }
   0x5   : > { %p161_p3 = scmp.lt.s32.totalorder (!%p138_p2), %s604_s13, 1  ;;  %s772_s18 = smov (!%p138_p2), 24  }
   0x6   : > { %141 = sbr.rel (%p138_p2) target bundleno = 337 (0x151), region = 32  ;;  %s773_s19 = smov (!%p138_p2), 16  }
   0x7   : > { %s774_s20 = smov (!%p138_p2), 40   ;;  %s775_s21 = smov (!%p138_p2), 48  }
   0x8   : > { %s776_s22 = smov (!%p138_p2), 64  }
   0xb   : > { %s969_s13 = smov (!%p161_p3, %s604_s13), 1  ;;  %vm174_vm0 = vcmask 63488   ;;  %vm176_vm1 = vcmask 129088   ;;  %v445_v46 = vld [vmem:[%s965_s1 + $0x20] sm:$0xf]  ;;  %vm490_vm2 = vcmask 1043456  }
   0xc   : > { %s654_s14 = sshll.u32 %s969_s13, 6  ;;  %v467_v47 = vunpack.c.l.b16 %v445_v46  ;;  %v658_v51 = vld [vmem:[%s965_s1 + $0x18] sm:$0xff]  ;;  %vm182_vm3 = vcmask 195713   ;;  %v657_v54 = vld [vmem:[%s965_s1 + $0x10] sm:$0xff]  ;;  %v656_v57 = vld [vmem:[%s965_s1 + $0x8] sm:$0xff]  ;;  %vm191_vm4 = vcmask 260288  }
   0xd   : > { %s811_s17 = scalar_lea.vmem %s964_s0, %s654_s14  ;;  %vm193_vm5 = vcmask 325888   ;;  %vm198_vm6 = vcmask 392513   ;;  %vm207_vm7 = vcmask 457088   ;;  %vm209_vm8 = vcmask 522688   ;;  %s674_s6 = smul.u32 28, %s969_s13 }
   0xe   : > { %v624_v0 = vld [vmem:[%s811_s17 + $0x24] sm:$0xff]   ;;  %v627_v1 = vld [vmem:[%s811_s17 + $0x2c] sm:$0xff]   ;;  %v623_v2 = vld [vmem:[%s811_s17 + $0x20] sm:$0xf]  ;;  %v472_v48 = vpack.c.b16 %v467_v47, %v467_v47  ;;  %vm214_vm9 = vcmask 589313   ;;  %vm477_vm10 = vcmask 588800  }
   0xf   : > { %v332_v3 = vunpack.c.l.bf16 %v624_v0  ;;  %v367_v4 = vunpack.c.l.bf16 %v627_v1  ;;  %v816_v5 = vunpack.c.l.bf16 %v623_v2  ;;  %v818_v6 = vunpack.c.h.bf16 %v624_v0  ;;  %v172_v7 = vld [vmem:[%s811_s17] sm:$0xf]  ;;  %v612_v8 = vld [vmem:[%s811_s17 + $0x4] sm:$0xff]   ;;  %v630_v9 = vld [vmem:[%s811_s17 + $0x34] sm:$0xff]   ;;  %s945_s11 = scalar_lea.vmem %s967_s3, %s674_s6 }
  0x10   : > { %v620_v10 = vld [vmem:[%s811_s17 + $0x18] sm:$0xff]   ;;  %v828_v13 = vunpack.c.l.bf16 %v172_v7  ;;  %v832_v14 = vunpack.c.h.bf16 %v627_v1  ;;  %v186_v15 = vunpack.c.l.bf16 %v612_v8  ;;  %v402_v16 = vunpack.c.l.bf16 %v630_v9  ;;  %v614_v18 = vld [vmem:[%s811_s17 + $0x8] sm:$0xf]  ;;  %v615_v19 = vld [vmem:[%s811_s17 + $0xc] sm:$0xff]  }
  0x11   : > { %v698_v11 = vpack.i.bf16 %v367_v4, %v332_v3  ;;  %358 = vst.msk [vmem:[#allocation2 + $0x23] sm:$0x7f] %vm174_vm0, %v818_v6  ;;  %v688_v12 = vpack.i.bf16 %v818_v6, %v816_v5  ;;  %v287_v17 = vunpack.c.l.bf16 %v620_v10  ;;  %v217_v20 = vunpack.c.l.bf16 %v614_v18  ;;  %v625_v24 = vld [vmem:[%s811_s17 + $0x28] sm:$0xf]  ;;  %v628_v25 = vld [vmem:[%s811_s17 + $0x30] sm:$0xf] }
  0x12   : > { %323 = vst.msk [vmem:[#allocation2 + $0x1c] sm:$0x7f] %vm174_vm0, %v816_v5  ;;  %v252_v21 = vunpack.c.h.bf16 %v615_v19  ;;  %v703_v22 = vpack.i.bf16 %v186_v15, %v402_v16  ;;  %v693_v23 = vpack.i.bf16 %v828_v13, %v832_v14  ;;  %v202_v26 = vunpack.c.h.bf16 %v612_v8  ;;  %v618_v33 = vld [vmem:[%s811_s17 + $0x14] sm:$0xff]   ;;  %v616_v38 = vld [vmem:[%s811_s17 + $0x10] sm:$0xf]  ;;  %v655_v0 = vld [vmem:[%s965_s1] sm:$0xff] }
  0x13   : > { %699 = vrot.lane.b32.xlu1 %v698_v11, %s772_s18  ;;  %689 = vrot.lane.b32.xlu0 %v688_v12, %s773_s19  ;;  %175 = vst.msk [vmem:[#allocation2] sm:$0x7f] %vm174_vm0, %v828_v13  ;;  %v415_v27 = vunpack.c.h.bf16 %v630_v9  ;;  %v345_v28 = vunpack.c.l.bf16 %v625_v24  ;;  %v380_v29 = vunpack.c.l.bf16 %v628_v25  ;;  %v227_v34 = vunpack.c.l.bf16 %v615_v19  ;;  %v622_v42 = vld [vmem:[%s811_s17 + $0x20] sm:$0xf] }
  0x14   : > { %393 = vst.msk [vmem:[#allocation2 + $0x2a] sm:$0x7f] %vm174_vm0, %v832_v14  ;;  %709 = vrot.lane.b32.xlu2 %v698_v11, %s774_s20  ;;  %v728_v32 = vpack.i.bf16 %v252_v21, %v217_v20  ;;  %v262_v35 = vunpack.c.l.bf16 %v618_v33  ;;  %v297_v36 = vunpack.c.h.bf16 %v620_v10  ;;  %v240_v39 = vunpack.c.l.bf16 %v616_v38 }
  0x15   : > { %288 = vst.msk [vmem:[#allocation2 + $0x15] sm:$0x7f] %vm174_vm0, %v287_v17  ;;  %v723_v30 = vpack.i.bf16 %v202_v26, %v415_v27  ;;  %v718_v31 = vpack.i.bf16 %v380_v29, %v345_v28  ;;  %v275_v40 = vunpack.c.h.bf16 %v618_v33  ;;  %v310_v43 = vunpack.c.l.bf16 %v622_v42 }
  0x16   : > { %218 = vst.msk [vmem:[#allocation2 + $0x7] sm:$0x7f] %vm174_vm0, %v217_v20  ;;  %v743_v37 = vpack.i.bf16 %v262_v35, %v227_v34  ;;  %v492_v49 = vsel %vm490_vm2, %v472_v48, 0  ;;  %vm543_vm11 = vcmask 57344   ;;  %vm544_vm12 = vsmask.f32 256 }
  0x17   : > { %253 = vst.msk [vmem:[#allocation2 + $0xe] sm:$0x7f] %vm174_vm0, %v252_v21  ;;  %v753_v41 = vpack.i.bf16 %v275_v40, %v240_v39  ;;  %660 = vmatpush.bf16.msra.mxu2 %v492_v49  ;;  %661 = vmatpush.bf16.msra.mxu3 %v492_v49  ;;  %vm545_vm13 = vmand %vm543_vm11, %vm544_vm12  ;;  %vm536_vm14 = vcmask 60416  }
  0x18   : > { %359 = vst.msk [vmem:[#allocation2 + $0x23] sm:$0x7f] %vm176_vm1, %v818_v6  ;;  %497 = vmatpush.bf16.msra.mxu0 %v492_v49  ;;  %659 = vmatpush.bf16.msra.mxu1 %v492_v49  ;;  %v763_v49 = vld [vmem:[%s966_s2] ss:$0 sm:$0xff] }
  0x19   : > { %324 = vst.msk [vmem:[#allocation2 + $0x1c] sm:$0x7f] %vm176_vm1, %v816_v5 }
  0x1a   : > { %177 = vst.msk [vmem:[#allocation2] sm:$0x7f] %vm176_vm1, %v828_v13 }
  0x1b   : > { %704 = vrot.lane.b32.xlu1 %v703_v22, %s772_s18  ;;  %694 = vrot.lane.b32.xlu0 %v693_v23, %s773_s19  ;;  %219 = vst.msk [vmem:[#allocation2 + $0x7] sm:$0x7f] %vm176_vm1, %v217_v20 }
  0x1c   : > { %714 = vrot.lane.b32.xlu2 %v703_v22, %s774_s20  ;;  %254 = vst.msk [vmem:[#allocation2 + $0xe] sm:$0x7f] %vm176_vm1, %v252_v21  ;;  %663 = vmatpush.bf16.msra.mxu2 %v658_v51 }
  0x1d   : > { %289 = vst.msk [vmem:[#allocation2 + $0x15] sm:$0x7f] %vm176_vm1, %v287_v17  ;;  %664 = vmatpush.bf16.msra.mxu3 %v658_v51  ;;  %498 = vmatpush.bf16.msra.mxu0 %v658_v51 }
  0x1e   : > { %394 = vst.msk [vmem:[#allocation2 + $0x2a] sm:$0x7f] %vm176_vm1, %v832_v14  ;;  %662 = vmatpush.bf16.msra.mxu1 %v658_v51 }
  0x20   : > { %666 = vmatpush.bf16.msra.mxu2 %v657_v54 }
  0x21   : > { %667 = vmatpush.bf16.msra.mxu3 %v657_v54  ;;  %499 = vmatpush.bf16.msra.mxu0 %v657_v54 }
  0x22   : > { %665 = vmatpush.bf16.msra.mxu1 %v657_v54 }
  0x23   : > { %724 = vrot.lane.b32.xlu1 %v723_v30, %s775_s21  ;;  %719 = vrot.lane.b32.xlu0 %v718_v31, %s775_s21 }
  0x24   : > { %729 = vrot.lane.b32.xlu2 %v728_v32, %s773_s19  ;;  %669 = vmatpush.bf16.msra.mxu2 %v656_v57 }
  0x25   : > { %670 = vmatpush.bf16.msra.mxu3 %v656_v57  ;;  %500 = vmatpush.bf16.msra.mxu0 %v656_v57 }
  0x26   : > { %668 = vmatpush.bf16.msra.mxu1 %v656_v57 }
  0x28   : > { %672 = vmatpush.bf16.msra.mxu2 %v655_v0 }
  0x29   : > { %673 = vmatpush.bf16.msra.mxu3 %v655_v0  ;;  %501 = vmatpush.bf16.msra.mxu0 %v655_v0 }
  0x2a   : > { %671 = vmatpush.bf16.msra.mxu1 %v655_v0 }
  0x2b   : > { %734 = vrot.lane.b32.xlu1 %v718_v31, %s776_s22  ;;  %291 = vrot.lane.b32.xlu0 %v287_v17, %s773_s19 }
  0x2c   : > { %739 = vrot.lane.b32.xlu2 %v723_v30, %s776_s22 }
  0x33   : > { %299 = vrot.lane.b32.xlu1 %v297_v36, %s772_s18  ;;  %744 = vrot.lane.b32.xlu0 %v743_v37, %s772_s18 }
  0x34   : > { %749 = vrot.lane.b32.xlu2 %v743_v37, %s774_s20 }
  0x3b   : > { %754 = vrot.lane.b32.xlu1 %v753_v41, %s775_s21  ;;  %304 = vrot.lane.b32.xlu0 %v297_v36, %s774_s20 }
  0x3c   : > { %312 = vrot.lane.b32.xlu2 %v310_v43, %s775_s21 }
  0x43   : > { %317 = vrot.lane.b32.xlu1 %v310_v43, %s776_s22  ;;  %759 = vrot.lane.b32.xlu0 %v753_v41, %s776_s22 }
  0x6e   : > { %v710_v44 = vpop.permute.xlu2 %709 }
  0x6f   : > { %v711_v62 = vunpack.i.l.bf16 %v710_v44  ;;  %v712_v63 = vunpack.i.h.bf16 %v710_v44 }
  0x76   : > { %v866_v45 = vpop.permute.xlu2 %714 }
  0x77   : > { %v717_v7 = vunpack.i.h.bf16 %v866_v45  ;;  %v716_v8 = vunpack.i.l.bf16 %v866_v45 }
  0x7e   : > { %v730_v50 = vpop.permute.xlu2 %729 }
  0x7f   : > { %v732_v52 = vunpack.i.h.bf16 %v730_v50  ;;  %v731_v53 = vunpack.i.l.bf16 %v730_v50 }
  0x81   : > { %259 = vst.msk [vmem:[#allocation2 + $0xd] sm:$0xfe] %vm182_vm3, %v732_v52 }
  0x82   : > { %224 = vst.msk [vmem:[#allocation2 + $0x6] sm:$0xfe] %vm182_vm3, %v731_v53 }
  0x85   : > { %v700_v55 = vpop.permute.xlu1 %699  ;;  %v690_v56 = vpop.permute.xlu0 %689 }
  0x86   : > { %v702_v58 = vunpack.i.h.bf16 %v700_v55  ;;  %v692_v59 = vunpack.i.h.bf16 %v690_v56  ;;  %v691_v60 = vunpack.i.l.bf16 %v690_v56  ;;  %v701_v61 = vunpack.i.l.bf16 %v700_v55  ;;  %v740_v15 = vpop.permute.xlu2 %739  ;;  %v546_v55 = vld [vmem:[%s945_s11 + $0x18] sm:$0x1] }
  0x87   : > { %v742_v16 = vunpack.i.h.bf16 %v740_v15  ;;  %v741_v17 = vunpack.i.l.bf16 %v740_v15 }
  0x88   : > { %364 = vst.msk [vmem:[#allocation2 + $0x22] sm:$0xfe] %vm182_vm3, %v692_v59 }
  0x89   : > { %372 = vst.msk [vmem:[#allocation2 + $0x23] sm:$0x7f] %vm191_vm4, %v702_v58 }
  0x8a   : > { %329 = vst.msk [vmem:[#allocation2 + $0x1b] sm:$0xfe] %vm182_vm3, %v691_v60 }
  0x8b   : > { %337 = vst.msk [vmem:[#allocation2 + $0x1c] sm:$0x7f] %vm191_vm4, %v701_v61 }
  0x8c   : > { %338 = vst.msk [vmem:[#allocation2 + $0x1c] sm:$0x7f] %vm193_vm5, %v701_v61 }
  0x8d   : > { %v705_v1 = vpop.permute.xlu1 %704  ;;  %v695_v2 = vpop.permute.xlu0 %694  ;;  %373 = vst.msk [vmem:[#allocation2 + $0x23] sm:$0x7f] %vm193_vm5, %v702_v58 }
  0x8e   : > { %v707_v3 = vunpack.i.h.bf16 %v705_v1  ;;  %v697_v4 = vunpack.i.h.bf16 %v695_v2  ;;  %v696_v5 = vunpack.i.l.bf16 %v695_v2  ;;  %342 = vst.msk [vmem:[#allocation2 + $0x1b] sm:$0xfe] %vm198_vm6, %v711_v62  ;;  %v706_v6 = vunpack.i.l.bf16 %v705_v1  ;;  %v750_v22 = vpop.permute.xlu2 %749 }
  0x8f   : > { %377 = vst.msk [vmem:[#allocation2 + $0x22] sm:$0xfe] %vm198_vm6, %v712_v63  ;;  %v751_v28 = vunpack.i.l.bf16 %v750_v22  ;;  %v752_v30 = vunpack.i.h.bf16 %v750_v22 }
  0x90   : > { %183 = vst.msk [vmem:[#allocation2 - $0x1] sm:$0xfe] %vm182_vm3, %v697_v4 }
  0x91   : > { %192 = vst.msk [vmem:[#allocation2] sm:$0x7f] %vm191_vm4, %v707_v3 }
  0x92   : > { %399 = vst.msk [vmem:[#allocation2 + $0x29] sm:$0xfe] %vm182_vm3, %v696_v5 }
  0x93   : > { %407 = vst.msk [vmem:[#allocation2 + $0x2a] sm:$0x7f] %vm191_vm4, %v706_v6 }
  0x94   : > { %194 = vst.msk [vmem:[#allocation2] sm:$0x7f] %vm193_vm5, %v707_v3 }
  0x95   : > { %v725_v9 = vpop.permute.xlu1 %724  ;;  %199 = vst.msk [vmem:[#allocation2 - $0x1] sm:$0xfe] %vm198_vm6, %v717_v7  ;;  %v720_v10 = vpop.permute.xlu0 %719 }
  0x96   : > { %v727_v11 = vunpack.i.h.bf16 %v725_v9  ;;  %v726_v12 = vunpack.i.l.bf16 %v725_v9  ;;  %408 = vst.msk [vmem:[#allocation2 + $0x2a] sm:$0x7f] %vm193_vm5, %v706_v6  ;;  %v722_v13 = vunpack.i.h.bf16 %v720_v10  ;;  %v721_v14 = vunpack.i.l.bf16 %v720_v10  ;;  %v313_v34 = vpop.permute.xlu2 %312 }
  0x97   : > { %412 = vst.msk [vmem:[#allocation2 + $0x29] sm:$0xfe] %vm198_vm6, %v716_v8 }
  0x98   : > { %208 = vst.msk [vmem:[#allocation2] sm:$0x7f] %vm207_vm7, %v727_v11 }
  0x99   : > { %210 = vst.msk [vmem:[#allocation2] sm:$0x7f] %vm209_vm8, %v727_v11 }
  0x9a   : > { %420 = vst.msk [vmem:[#allocation2 + $0x2a] sm:$0x7f] %vm207_vm7, %v726_v12 }
  0x9b   : > { %421 = vst.msk [vmem:[#allocation2 + $0x2a] sm:$0x7f] %vm209_vm8, %v726_v12 }
  0x9c   : > { %385 = vst.msk [vmem:[#allocation2 + $0x23] sm:$0x7f] %vm207_vm7, %v722_v13 }
  0x9d   : > { %386 = vst.msk [vmem:[#allocation2 + $0x23] sm:$0x7f] %vm209_vm8, %v722_v13  ;;  %v735_v18 = vpop.permute.xlu1 %734  ;;  %v292_v19 = vpop.permute.xlu0 %291 }
  0x9e   : > { %350 = vst.msk [vmem:[#allocation2 + $0x1c] sm:$0x7f] %vm207_vm7, %v721_v14  ;;  %v736_v20 = vunpack.i.l.bf16 %v735_v18  ;;  %v737_v21 = vunpack.i.h.bf16 %v735_v18 }
  0x9f   : > { %351 = vst.msk [vmem:[#allocation2 + $0x1c] sm:$0x7f] %vm209_vm8, %v721_v14 }
  0xa0   : > { %215 = vst.msk [vmem:[#allocation2 - $0x1] sm:$0xfe] %vm214_vm9, %v742_v16 }
  0xa1   : > { %425 = vst.msk [vmem:[#allocation2 + $0x29] sm:$0xfe] %vm214_vm9, %v741_v17 }
  0xa2   : > { %355 = vst.msk [vmem:[#allocation2 + $0x1b] sm:$0xfe] %vm214_vm9, %v736_v20 }
  0xa3   : > { %390 = vst.msk [vmem:[#allocation2 + $0x22] sm:$0xfe] %vm214_vm9, %v737_v21 }
  0xa4   : > { %294 = vst.msk [vmem:[#allocation2 + $0x14] sm:$0xfe] %vm182_vm3, %v292_v19 }
  0xa5   : > { %v300_v23 = vpop.permute.xlu1 %299  ;;  %v745_v24 = vpop.permute.xlu0 %744 }
  0xa6   : > { %302 = vst.msk [vmem:[#allocation2 + $0x15] sm:$0x7f] %vm191_vm4, %v300_v23  ;;  %v747_v25 = vunpack.i.h.bf16 %v745_v24  ;;  %v746_v26 = vunpack.i.l.bf16 %v745_v24 }
  0xa7   : > { %303 = vst.msk [vmem:[#allocation2 + $0x15] sm:$0x7f] %vm193_vm5, %v300_v23 }
  0xa8   : > { %267 = vst.msk [vmem:[#allocation2 + $0xe] sm:$0x7f] %vm191_vm4, %v747_v25  ;;  %v432_v27 = vld [vmem:[#allocation2 + $0x30] sm:$0x1] }
  0xa9   : > { %268 = vst.msk [vmem:[#allocation2 + $0xe] sm:$0x7f] %vm193_vm5, %v747_v25  ;;  %v436_v29 = vpack.c.bf16 %v432_v27, %v432_v27 }
  0xaa   : > { %232 = vst.msk [vmem:[#allocation2 + $0x7] sm:$0x7f] %vm191_vm4, %v746_v26  ;;  %v430_v31 = vld [vmem:[#allocation2 + $0x20] sm:$0xff]  ;;  %v431_v32 = vld [vmem:[#allocation2 + $0x28] sm:$0xff] }
  0xab   : > { %233 = vst.msk [vmem:[#allocation2 + $0x7] sm:$0x7f] %vm193_vm5, %v746_v26  ;;  %v435_v33 = vpack.c.bf16 %v431_v32, %v430_v31  ;;  %651 = vmatmul.msk.bf16.vlgmr.msra.gmra.mxu3 %vm477_vm10, %v436_v29 }
  0xac   : > { %237 = vst.msk [vmem:[#allocation2 + $0x6] sm:$0xfe] %vm198_vm6, %v751_v28 }
  0xad   : > { %650 = vmatmul.msk.bf16.vlgmr.msra.gmra.mxu2 %vm477_vm10, %v435_v33  ;;  %272 = vst.msk [vmem:[#allocation2 + $0xd] sm:$0xfe] %vm198_vm6, %v752_v30  ;;  %v755_v35 = vpop.permute.xlu1 %754  ;;  %v305_v36 = vpop.permute.xlu0 %304 }
  0xae   : > { %v757_v37 = vunpack.i.h.bf16 %v755_v35  ;;  %v756_v38 = vunpack.i.l.bf16 %v755_v35  ;;  %307 = vst.msk [vmem:[#allocation2 + $0x14] sm:$0xfe] %vm198_vm6, %v305_v36 }
  0xaf   : > { %315 = vst.msk [vmem:[#allocation2 + $0x15] sm:$0x7f] %vm207_vm7, %v313_v34 }
  0xb0   : > { %245 = vst.msk [vmem:[#allocation2 + $0x7] sm:$0x7f] %vm207_vm7, %v756_v38 }
  0xb1   : > { %246 = vst.msk [vmem:[#allocation2 + $0x7] sm:$0x7f] %vm209_vm8, %v756_v38 }
  0xb2   : > { %280 = vst.msk [vmem:[#allocation2 + $0xe] sm:$0x7f] %vm207_vm7, %v757_v37 }
  0xb3   : > { %281 = vst.msk [vmem:[#allocation2 + $0xe] sm:$0x7f] %vm209_vm8, %v757_v37 }
  0xb4   : > { %316 = vst.msk [vmem:[#allocation2 + $0x15] sm:$0x7f] %vm209_vm8, %v313_v34 }
  0xb5   : > { %v318_v39 = vpop.permute.xlu1 %317  ;;  %v760_v40 = vpop.permute.xlu0 %759 }
  0xb6   : > { %320 = vst.msk [vmem:[#allocation2 + $0x14] sm:$0xfe] %vm214_vm9, %v318_v39  ;;  %v762_v41 = vunpack.i.h.bf16 %v760_v40  ;;  %v761_v42 = vunpack.i.l.bf16 %v760_v40 }
  0xb8   : > { %250 = vst.msk [vmem:[#allocation2 + $0x6] sm:$0xfe] %vm214_vm9, %v761_v42 }
  0xb9   : > { %285 = vst.msk [vmem:[#allocation2 + $0xd] sm:$0xfe] %vm214_vm9, %v762_v41 }
  0xbd   : > { %v429_v46 = vld [vmem:[#allocation2 + $0x18] sm:$0xff] }
  0xbf   : > { %v426_v43 = vld [vmem:[#allocation2] sm:$0xff] }
  0xc0   : > { %v427_v44 = vld [vmem:[#allocation2 + $0x8] sm:$0xff]  ;;  %v428_v45 = vld [vmem:[#allocation2 + $0x10] sm:$0xff] }
  0xc1   : > { %v433_v47 = vpack.c.bf16 %v427_v44, %v426_v43  ;;  %v434_v48 = vpack.c.bf16 %v429_v46, %v428_v45 }
  0xc3   : > { %648 = vmatmul.msk.bf16.vlgmr.msra.gmra.mxu0 %vm477_vm10, %v433_v47  ;;  %649 = vmatmul.msk.bf16.vlgmr.msra.gmra.mxu1 %vm477_vm10, %v434_v48 }
 0x12e   : > { %v518_v50 = vpop.f32.mrf.mxu3 }
 0x12f   : > { %v519_v51 = vadd.f32 %v763_v49, %v518_v50 }
 0x130   : > { %v513_v52 = vpop.f32.mrf.mxu2 }
 0x131   : > { %v514_v53 = vadd.f32 %v763_v49, %v513_v52  ;;  %v528_v54 = vmax.f32 %v519_v51, 0.0 }
 0x133   : > { %v526_v56 = vmax.f32 %v514_v53, 0.0  ;;  %v535_v57 = vpack.c.bf16 %v528_v54, %v528_v54 }
 0x135   : > { %v533_v58 = vpack.c.bf16 %v526_v56, %v526_v56  ;;  %v547_v59 = vsel %vm545_vm13, %v535_v57, %v546_v55 }
 0x136   : > { %548 = vst [vmem:[%s945_s11 + $0x18] sm:$0x1] %v547_v59  ;;  %v520_v60 = vpop.f32.mrf.mxu3 }
 0x137   : > { %541 = vst.msk [vmem:[%s945_s11 + $0x10] sm:$0xf] %vm536_vm14, %v533_v58 }
 0x138   : > { %v515_v61 = vpop.f32.mrf.mxu2 }
 0x139   : > { %v516_v62 = vadd.f32 %v763_v49, %v515_v61 }
 0x13b   : > { %v527_v63 = vmax.f32 %v516_v62, 0.0 }
 0x13d   : > { %v534_v0 = vpack.c.bf16 %v527_v63, %v527_v63 }
 0x13f   : > { %542 = vst.msk [vmem:[%s945_s11 + $0x14] sm:$0xf] %vm536_vm14, %v534_v0 }
 0x140   : > { %v503_v1 = vpop.f32.mrf.mxu0  ;;  %v508_v2 = vpop.f32.mrf.mxu1 }
 0x141   : > { %v504_v3 = vadd.f32 %v763_v49, %v503_v1  ;;  %v509_v4 = vadd.f32 %v763_v49, %v508_v2 }
 0x143   : > { %v522_v5 = vmax.f32 %v504_v3, 0.0  ;;  %v524_v6 = vmax.f32 %v509_v4, 0.0 }
 0x145   : > { %v529_v7 = vpack.c.bf16 %v522_v5, %v522_v5  ;;  %v531_v8 = vpack.c.bf16 %v524_v6, %v524_v6 }
 0x147   : > { %537 = vst.msk [vmem:[%s945_s11] sm:$0xf] %vm536_vm14, %v529_v7 }
 0x148   : > { %539 = vst.msk [vmem:[%s945_s11 + $0x8] sm:$0xf] %vm536_vm14, %v531_v8  ;;  %v505_v9 = vpop.f32.mrf.mxu0  ;;  %v510_v10 = vpop.f32.mrf.mxu1 }
 0x149   : > { %v506_v11 = vadd.f32 %v763_v49, %v505_v9  ;;  %v511_v12 = vadd.f32 %v763_v49, %v510_v10 }
 0x14b   : > { %v523_v13 = vmax.f32 %v506_v11, 0.0  ;;  %v525_v14 = vmax.f32 %v511_v12, 0.0 }
 0x14d   : > { %v530_v15 = vpack.c.bf16 %v523_v13, %v523_v13  ;;  %v532_v16 = vpack.c.bf16 %v525_v14, %v525_v14 }
 0x14f   : > { %538 = vst.msk [vmem:[%s945_s11 + $0x4] sm:$0xf] %vm536_vm14, %v530_v15 }
 0x150   : > { %540 = vst.msk [vmem:[%s945_s11 + $0xc] sm:$0xf] %vm536_vm14, %v532_v16 }
 0x151 PF: > { %s13_s12 = sadd.s32 1, %s770_s12  }
 0x152   : > { %p10_p4 = scmp.ge.s32.totalorder %s13_s12, 4  }
 0x154   :  { %12 = sbr.rel (!%p10_p4) target bundleno = 1 (0x1), region = 76 }

// kernel: reduction_a.6
= control target key start
LH: loop header
LB: loop body
LE: loop exit
PB: predicated region body
PF: predicated region fallthrough
CT: control target
= control target key end

     0   :  { %s797_s12 = smov 0   ;;  %s964_s0 = inlined_call_operand.vmem [shape: bf16[2,16,8,16], index: 0, kind: input, shape index: {}]   ;;  %s965_s1 = inlined_call_operand.vmem [shape: bf16[72,16], index: 1, kind: input, shape index: {}]   ;;  %s966_s2 = inlined_call_operand.vmem [shape: f32[1,16], index: 2, kind: input, shape index: {}]   ;;  %s967_s3 = inlined_call_operand.vmem [shape: bf16[2,49,16], index: 3, kind: output, shape index: {}]  }
   0x1 LB: > { %s604_s13 = sadd.s32 4294967295, %s770_s12   ;;  %p608_p0 = scmp.ge.s32.totalorder %s770_s12, 1  ;;  %s770_s12 = sphi %s797_s12, %s13_s12  }
   0x2   : > { %p137_p1 = scmp.lt.s32.totalorder %s770_s12, 3 }
   0x4   : > { %p138_p2 = pnand %p608_p0, %p137_p1 }
   0x5   : > { %p161_p3 = scmp.lt.s32.totalorder (!%p138_p2), %s604_s13, 1  ;;  %s772_s18 = smov (!%p138_p2), 24  }
   0x6   : > { %141 = sbr.rel (%p138_p2) target bundleno = 337 (0x151), region = 32  ;;  %s773_s19 = smov (!%p138_p2), 16  }
   0x7   : > { %s774_s20 = smov (!%p138_p2), 40   ;;  %s775_s21 = smov (!%p138_p2), 48  }
   0x8   : > { %s776_s22 = smov (!%p138_p2), 64  }
   0xb   : > { %s969_s13 = smov (!%p161_p3, %s604_s13), 1  ;;  %vm174_vm0 = vcmask 63488   ;;  %vm176_vm1 = vcmask 129088   ;;  %v445_v46 = vld [vmem:[%s965_s1 + $0x20] sm:$0xf]  ;;  %vm490_vm2 = vcmask 1043456  }
   0xc   : > { %s654_s14 = sshll.u32 %s969_s13, 6  ;;  %v467_v47 = vunpack.c.l.b16 %v445_v46  ;;  %v658_v51 = vld [vmem:[%s965_s1 + $0x18] sm:$0xff]  ;;  %vm182_vm3 = vcmask 195713   ;;  %v657_v54 = vld [vmem:[%s965_s1 + $0x10] sm:$0xff]  ;;  %v656_v57 = vld [vmem:[%s965_s1 + $0x8] sm:$0xff]  ;;  %vm191_vm4 = vcmask 260288  }
   0xd   : > { %s811_s17 = scalar_lea.vmem %s964_s0, %s654_s14  ;;  %vm193_vm5 = vcmask 325888   ;;  %vm198_vm6 = vcmask 392513   ;;  %vm207_vm7 = vcmask 457088   ;;  %vm209_vm8 = vcmask 522688   ;;  %s674_s6 = smul.u32 28, %s969_s13 }
   0xe   : > { %v624_v0 = vld [vmem:[%s811_s17 + $0x24] sm:$0xff]   ;;  %v627_v1 = vld [vmem:[%s811_s17 + $0x2c] sm:$0xff]   ;;  %v623_v2 = vld [vmem:[%s811_s17 + $0x20] sm:$0xf]  ;;  %v472_v48 = vpack.c.b16 %v467_v47, %v467_v47  ;;  %vm214_vm9 = vcmask 589313   ;;  %vm477_vm10 = vcmask 588800  }
   0xf   : > { %v332_v3 = vunpack.c.l.bf16 %v624_v0  ;;  %v367_v4 = vunpack.c.l.bf16 %v627_v1  ;;  %v816_v5 = vunpack.c.l.bf16 %v623_v2  ;;  %v818_v6 = vunpack.c.h.bf16 %v624_v0  ;;  %v172_v7 = vld [vmem:[%s811_s17] sm:$0xf]  ;;  %v612_v8 = vld [vmem:[%s811_s17 + $0x4] sm:$0xff]   ;;  %v630_v9 = vld [vmem:[%s811_s17 + $0x34] sm:$0xff]   ;;  %s945_s11 = scalar_lea.vmem %s967_s3, %s674_s6 }
  0x10   : > { %v620_v10 = vld [vmem:[%s811_s17 + $0x18] sm:$0xff]   ;;  %v828_v13 = vunpack.c.l.bf16 %v172_v7  ;;  %v832_v14 = vunpack.c.h.bf16 %v627_v1  ;;  %v186_v15 = vunpack.c.l.bf16 %v612_v8  ;;  %v402_v16 = vunpack.c.l.bf16 %v630_v9  ;;  %v614_v18 = vld [vmem:[%s811_s17 + $0x8] sm:$0xf]  ;;  %v615_v19 = vld [vmem:[%s811_s17 + $0xc] sm:$0xff]  }
  0x11   : > { %v698_v11 = vpack.i.bf16 %v367_v4, %v332_v3  ;;  %358 = vst.msk [vmem:[#allocation2 + $0x23] sm:$0x7f] %vm174_vm0, %v818_v6  ;;  %v688_v12 = vpack.i.bf16 %v818_v6, %v816_v5  ;;  %v287_v17 = vunpack.c.l.bf16 %v620_v10  ;;  %v217_v20 = vunpack.c.l.bf16 %v614_v18  ;;  %v625_v24 = vld [vmem:[%s811_s17 + $0x28] sm:$0xf]  ;;  %v628_v25 = vld [vmem:[%s811_s17 + $0x30] sm:$0xf] }
  0x12   : > { %323 = vst.msk [vmem:[#allocation2 + $0x1c] sm:$0x7f] %vm174_vm0, %v816_v5  ;;  %v252_v21 = vunpack.c.h.bf16 %v615_v19  ;;  %v703_v22 = vpack.i.bf16 %v186_v15, %v402_v16  ;;  %v693_v23 = vpack.i.bf16 %v828_v13, %v832_v14  ;;  %v202_v26 = vunpack.c.h.bf16 %v612_v8  ;;  %v618_v33 = vld [vmem:[%s811_s17 + $0x14] sm:$0xff]   ;;  %v616_v38 = vld [vmem:[%s811_s17 + $0x10] sm:$0xf]  ;;  %v655_v0 = vld [vmem:[%s965_s1] sm:$0xff] }
  0x13   : > { %699 = vrot.lane.b32.xlu1 %v698_v11, %s772_s18  ;;  %689 = vrot.lane.b32.xlu0 %v688_v12, %s773_s19  ;;  %175 = vst.msk [vmem:[#allocation2] sm:$0x7f] %vm174_vm0, %v828_v13  ;;  %v415_v27 = vunpack.c.h.bf16 %v630_v9  ;;  %v345_v28 = vunpack.c.l.bf16 %v625_v24  ;;  %v380_v29 = vunpack.c.l.bf16 %v628_v25  ;;  %v227_v34 = vunpack.c.l.bf16 %v615_v19  ;;  %v622_v42 = vld [vmem:[%s811_s17 + $0x20] sm:$0xf] }
  0x14   : > { %393 = vst.msk [vmem:[#allocation2 + $0x2a] sm:$0x7f] %vm174_vm0, %v832_v14  ;;  %709 = vrot.lane.b32.xlu2 %v698_v11, %s774_s20  ;;  %v728_v32 = vpack.i.bf16 %v252_v21, %v217_v20  ;;  %v262_v35 = vunpack.c.l.bf16 %v618_v33  ;;  %v297_v36 = vunpack.c.h.bf16 %v620_v10  ;;  %v240_v39 = vunpack.c.l.bf16 %v616_v38 }
  0x15   : > { %288 = vst.msk [vmem:[#allocation2 + $0x15] sm:$0x7f] %vm174_vm0, %v287_v17  ;;  %v723_v30 = vpack.i.bf16 %v202_v26, %v415_v27  ;;  %v718_v31 = vpack.i.bf16 %v380_v29, %v345_v28  ;;  %v275_v40 = vunpack.c.h.bf16 %v618_v33  ;;  %v310_v43 = vunpack.c.l.bf16 %v622_v42 }
  0x16   : > { %218 = vst.msk [vmem:[#allocation2 + $0x7] sm:$0x7f] %vm174_vm0, %v217_v20  ;;  %v743_v37 = vpack.i.bf16 %v262_v35, %v227_v34  ;;  %v492_v49 = vsel %vm490_vm2, %v472_v48, 0  ;;  %vm543_vm11 = vcmask 122880   ;;  %vm544_vm12 = vsmask.f32 256 }
  0x17   : > { %253 = vst.msk [vmem:[#allocation2 + $0xe] sm:$0x7f] %vm174_vm0, %v252_v21  ;;  %v753_v41 = vpack.i.bf16 %v275_v40, %v240_v39  ;;  %660 = vmatpush.bf16.msra.mxu2 %v492_v49  ;;  %661 = vmatpush.bf16.msra.mxu3 %v492_v49  ;;  %vm545_vm13 = vmand %vm543_vm11, %vm544_vm12  ;;  %vm536_vm14 = vcmask 125952  }
  0x18   : > { %359 = vst.msk [vmem:[#allocation2 + $0x23] sm:$0x7f] %vm176_vm1, %v818_v6  ;;  %497 = vmatpush.bf16.msra.mxu0 %v492_v49  ;;  %659 = vmatpush.bf16.msra.mxu1 %v492_v49  ;;  %v763_v49 = vld [vmem:[%s966_s2] ss:$0 sm:$0xff] }
  0x19   : > { %324 = vst.msk [vmem:[#allocation2 + $0x1c] sm:$0x7f] %vm176_vm1, %v816_v5 }
  0x1a   : > { %177 = vst.msk [vmem:[#allocation2] sm:$0x7f] %vm176_vm1, %v828_v13 }
  0x1b   : > { %704 = vrot.lane.b32.xlu1 %v703_v22, %s772_s18  ;;  %694 = vrot.lane.b32.xlu0 %v693_v23, %s773_s19  ;;  %219 = vst.msk [vmem:[#allocation2 + $0x7] sm:$0x7f] %vm176_vm1, %v217_v20 }
  0x1c   : > { %714 = vrot.lane.b32.xlu2 %v703_v22, %s774_s20  ;;  %254 = vst.msk [vmem:[#allocation2 + $0xe] sm:$0x7f] %vm176_vm1, %v252_v21  ;;  %663 = vmatpush.bf16.msra.mxu2 %v658_v51 }
  0x1d   : > { %289 = vst.msk [vmem:[#allocation2 + $0x15] sm:$0x7f] %vm176_vm1, %v287_v17  ;;  %664 = vmatpush.bf16.msra.mxu3 %v658_v51  ;;  %498 = vmatpush.bf16.msra.mxu0 %v658_v51 }
  0x1e   : > { %394 = vst.msk [vmem:[#allocation2 + $0x2a] sm:$0x7f] %vm176_vm1, %v832_v14  ;;  %662 = vmatpush.bf16.msra.mxu1 %v658_v51 }
  0x20   : > { %666 = vmatpush.bf16.msra.mxu2 %v657_v54 }
  0x21   : > { %667 = vmatpush.bf16.msra.mxu3 %v657_v54  ;;  %499 = vmatpush.bf16.msra.mxu0 %v657_v54 }
  0x22   : > { %665 = vmatpush.bf16.msra.mxu1 %v657_v54 }
  0x23   : > { %724 = vrot.lane.b32.xlu1 %v723_v30, %s775_s21  ;;  %719 = vrot.lane.b32.xlu0 %v718_v31, %s775_s21 }
  0x24   : > { %729 = vrot.lane.b32.xlu2 %v728_v32, %s773_s19  ;;  %669 = vmatpush.bf16.msra.mxu2 %v656_v57 }
  0x25   : > { %670 = vmatpush.bf16.msra.mxu3 %v656_v57  ;;  %500 = vmatpush.bf16.msra.mxu0 %v656_v57 }
  0x26   : > { %668 = vmatpush.bf16.msra.mxu1 %v656_v57 }
  0x28   : > { %672 = vmatpush.bf16.msra.mxu2 %v655_v0 }
  0x29   : > { %673 = vmatpush.bf16.msra.mxu3 %v655_v0  ;;  %501 = vmatpush.bf16.msra.mxu0 %v655_v0 }
  0x2a   : > { %671 = vmatpush.bf16.msra.mxu1 %v655_v0 }
  0x2b   : > { %734 = vrot.lane.b32.xlu1 %v718_v31, %s776_s22  ;;  %291 = vrot.lane.b32.xlu0 %v287_v17, %s773_s19 }
  0x2c   : > { %739 = vrot.lane.b32.xlu2 %v723_v30, %s776_s22 }
  0x33   : > { %299 = vrot.lane.b32.xlu1 %v297_v36, %s772_s18  ;;  %744 = vrot.lane.b32.xlu0 %v743_v37, %s772_s18 }
  0x34   : > { %749 = vrot.lane.b32.xlu2 %v743_v37, %s774_s20 }
  0x3b   : > { %754 = vrot.lane.b32.xlu1 %v753_v41, %s775_s21  ;;  %304 = vrot.lane.b32.xlu0 %v297_v36, %s774_s20 }
  0x3c   : > { %312 = vrot.lane.b32.xlu2 %v310_v43, %s775_s21 }
  0x43   : > { %317 = vrot.lane.b32.xlu1 %v310_v43, %s776_s22  ;;  %759 = vrot.lane.b32.xlu0 %v753_v41, %s776_s22 }
  0x6e   : > { %v710_v44 = vpop.permute.xlu2 %709 }
  0x6f   : > { %v711_v62 = vunpack.i.l.bf16 %v710_v44  ;;  %v712_v63 = vunpack.i.h.bf16 %v710_v44 }
  0x76   : > { %v866_v45 = vpop.permute.xlu2 %714 }
  0x77   : > { %v717_v7 = vunpack.i.h.bf16 %v866_v45  ;;  %v716_v8 = vunpack.i.l.bf16 %v866_v45 }
  0x7e   : > { %v730_v50 = vpop.permute.xlu2 %729 }
  0x7f   : > { %v732_v52 = vunpack.i.h.bf16 %v730_v50  ;;  %v731_v53 = vunpack.i.l.bf16 %v730_v50 }
  0x81   : > { %259 = vst.msk [vmem:[#allocation2 + $0xd] sm:$0xfe] %vm182_vm3, %v732_v52 }
  0x82   : > { %224 = vst.msk [vmem:[#allocation2 + $0x6] sm:$0xfe] %vm182_vm3, %v731_v53 }
  0x85   : > { %v700_v55 = vpop.permute.xlu1 %699  ;;  %v690_v56 = vpop.permute.xlu0 %689 }
  0x86   : > { %v702_v58 = vunpack.i.h.bf16 %v700_v55  ;;  %v692_v59 = vunpack.i.h.bf16 %v690_v56  ;;  %v691_v60 = vunpack.i.l.bf16 %v690_v56  ;;  %v701_v61 = vunpack.i.l.bf16 %v700_v55  ;;  %v740_v15 = vpop.permute.xlu2 %739  ;;  %v546_v55 = vld [vmem:[%s945_s11 + $0x18] sm:$0x1] }
  0x87   : > { %v742_v16 = vunpack.i.h.bf16 %v740_v15  ;;  %v741_v17 = vunpack.i.l.bf16 %v740_v15 }
  0x88   : > { %364 = vst.msk [vmem:[#allocation2 + $0x22] sm:$0xfe] %vm182_vm3, %v692_v59 }
  0x89   : > { %372 = vst.msk [vmem:[#allocation2 + $0x23] sm:$0x7f] %vm191_vm4, %v702_v58 }
  0x8a   : > { %329 = vst.msk [vmem:[#allocation2 + $0x1b] sm:$0xfe] %vm182_vm3, %v691_v60 }
  0x8b   : > { %337 = vst.msk [vmem:[#allocation2 + $0x1c] sm:$0x7f] %vm191_vm4, %v701_v61 }
  0x8c   : > { %338 = vst.msk [vmem:[#allocation2 + $0x1c] sm:$0x7f] %vm193_vm5, %v701_v61 }
  0x8d   : > { %v705_v1 = vpop.permute.xlu1 %704  ;;  %v695_v2 = vpop.permute.xlu0 %694  ;;  %373 = vst.msk [vmem:[#allocation2 + $0x23] sm:$0x7f] %vm193_vm5, %v702_v58 }
  0x8e   : > { %v707_v3 = vunpack.i.h.bf16 %v705_v1  ;;  %v697_v4 = vunpack.i.h.bf16 %v695_v2  ;;  %v696_v5 = vunpack.i.l.bf16 %v695_v2  ;;  %342 = vst.msk [vmem:[#allocation2 + $0x1b] sm:$0xfe] %vm198_vm6, %v711_v62  ;;  %v706_v6 = vunpack.i.l.bf16 %v705_v1  ;;  %v750_v22 = vpop.permute.xlu2 %749 }
  0x8f   : > { %377 = vst.msk [vmem:[#allocation2 + $0x22] sm:$0xfe] %vm198_vm6, %v712_v63  ;;  %v751_v28 = vunpack.i.l.bf16 %v750_v22  ;;  %v752_v30 = vunpack.i.h.bf16 %v750_v22 }
  0x90   : > { %183 = vst.msk [vmem:[#allocation2 - $0x1] sm:$0xfe] %vm182_vm3, %v697_v4 }
  0x91   : > { %192 = vst.msk [vmem:[#allocation2] sm:$0x7f] %vm191_vm4, %v707_v3 }
  0x92   : > { %399 = vst.msk [vmem:[#allocation2 + $0x29] sm:$0xfe] %vm182_vm3, %v696_v5 }
  0x93   : > { %407 = vst.msk [vmem:[#allocation2 + $0x2a] sm:$0x7f] %vm191_vm4, %v706_v6 }
  0x94   : > { %194 = vst.msk [vmem:[#allocation2] sm:$0x7f] %vm193_vm5, %v707_v3 }
  0x95   : > { %v725_v9 = vpop.permute.xlu1 %724  ;;  %199 = vst.msk [vmem:[#allocation2 - $0x1] sm:$0xfe] %vm198_vm6, %v717_v7  ;;  %v720_v10 = vpop.permute.xlu0 %719 }
  0x96   : > { %v727_v11 = vunpack.i.h.bf16 %v725_v9  ;;  %v726_v12 = vunpack.i.l.bf16 %v725_v9  ;;  %408 = vst.msk [vmem:[#allocation2 + $0x2a] sm:$0x7f] %vm193_vm5, %v706_v6  ;;  %v722_v13 = vunpack.i.h.bf16 %v720_v10  ;;  %v721_v14 = vunpack.i.l.bf16 %v720_v10  ;;  %v313_v34 = vpop.permute.xlu2 %312 }
  0x97   : > { %412 = vst.msk [vmem:[#allocation2 + $0x29] sm:$0xfe] %vm198_vm6, %v716_v8 }
  0x98   : > { %208 = vst.msk [vmem:[#allocation2] sm:$0x7f] %vm207_vm7, %v727_v11 }
  0x99   : > { %210 = vst.msk [vmem:[#allocation2] sm:$0x7f] %vm209_vm8, %v727_v11 }
  0x9a   : > { %420 = vst.msk [vmem:[#allocation2 + $0x2a] sm:$0x7f] %vm207_vm7, %v726_v12 }
  0x9b   : > { %421 = vst.msk [vmem:[#allocation2 + $0x2a] sm:$0x7f] %vm209_vm8, %v726_v12 }
  0x9c   : > { %385 = vst.msk [vmem:[#allocation2 + $0x23] sm:$0x7f] %vm207_vm7, %v722_v13 }
  0x9d   : > { %386 = vst.msk [vmem:[#allocation2 + $0x23] sm:$0x7f] %vm209_vm8, %v722_v13  ;;  %v735_v18 = vpop.permute.xlu1 %734  ;;  %v292_v19 = vpop.permute.xlu0 %291 }
  0x9e   : > { %350 = vst.msk [vmem:[#allocation2 + $0x1c] sm:$0x7f] %vm207_vm7, %v721_v14  ;;  %v736_v20 = vunpack.i.l.bf16 %v735_v18  ;;  %v737_v21 = vunpack.i.h.bf16 %v735_v18 }
  0x9f   : > { %351 = vst.msk [vmem:[#allocation2 + $0x1c] sm:$0x7f] %vm209_vm8, %v721_v14 }
  0xa0   : > { %215 = vst.msk [vmem:[#allocation2 - $0x1] sm:$0xfe] %vm214_vm9, %v742_v16 }
  0xa1   : > { %425 = vst.msk [vmem:[#allocation2 + $0x29] sm:$0xfe] %vm214_vm9, %v741_v17 }
  0xa2   : > { %355 = vst.msk [vmem:[#allocation2 + $0x1b] sm:$0xfe] %vm214_vm9, %v736_v20 }
  0xa3   : > { %390 = vst.msk [vmem:[#allocation2 + $0x22] sm:$0xfe] %vm214_vm9, %v737_v21 }
  0xa4   : > { %294 = vst.msk [vmem:[#allocation2 + $0x14] sm:$0xfe] %vm182_vm3, %v292_v19 }
  0xa5   : > { %v300_v23 = vpop.permute.xlu1 %299  ;;  %v745_v24 = vpop.permute.xlu0 %744 }
  0xa6   : > { %302 = vst.msk [vmem:[#allocation2 + $0x15] sm:$0x7f] %vm191_vm4, %v300_v23  ;;  %v747_v25 = vunpack.i.h.bf16 %v745_v24  ;;  %v746_v26 = vunpack.i.l.bf16 %v745_v24 }
  0xa7   : > { %303 = vst.msk [vmem:[#allocation2 + $0x15] sm:$0x7f] %vm193_vm5, %v300_v23 }
  0xa8   : > { %267 = vst.msk [vmem:[#allocation2 + $0xe] sm:$0x7f] %vm191_vm4, %v747_v25  ;;  %v432_v27 = vld [vmem:[#allocation2 + $0x30] sm:$0x1] }
  0xa9   : > { %268 = vst.msk [vmem:[#allocation2 + $0xe] sm:$0x7f] %vm193_vm5, %v747_v25  ;;  %v436_v29 = vpack.c.bf16 %v432_v27, %v432_v27 }
  0xaa   : > { %232 = vst.msk [vmem:[#allocation2 + $0x7] sm:$0x7f] %vm191_vm4, %v746_v26  ;;  %v430_v31 = vld [vmem:[#allocation2 + $0x20] sm:$0xff]  ;;  %v431_v32 = vld [vmem:[#allocation2 + $0x28] sm:$0xff] }
  0xab   : > { %233 = vst.msk [vmem:[#allocation2 + $0x7] sm:$0x7f] %vm193_vm5, %v746_v26  ;;  %v435_v33 = vpack.c.bf16 %v431_v32, %v430_v31  ;;  %651 = vmatmul.msk.bf16.vlgmr.msra.gmra.mxu3 %vm477_vm10, %v436_v29 }
  0xac   : > { %237 = vst.msk [vmem:[#allocation2 + $0x6] sm:$0xfe] %vm198_vm6, %v751_v28 }
  0xad   : > { %650 = vmatmul.msk.bf16.vlgmr.msra.gmra.mxu2 %vm477_vm10, %v435_v33  ;;  %272 = vst.msk [vmem:[#allocation2 + $0xd] sm:$0xfe] %vm198_vm6, %v752_v30  ;;  %v755_v35 = vpop.permute.xlu1 %754  ;;  %v305_v36 = vpop.permute.xlu0 %304 }
  0xae   : > { %v757_v37 = vunpack.i.h.bf16 %v755_v35  ;;  %v756_v38 = vunpack.i.l.bf16 %v755_v35  ;;  %307 = vst.msk [vmem:[#allocation2 + $0x14] sm:$0xfe] %vm198_vm6, %v305_v36 }
  0xaf   : > { %315 = vst.msk [vmem:[#allocation2 + $0x15] sm:$0x7f] %vm207_vm7, %v313_v34 }
  0xb0   : > { %245 = vst.msk [vmem:[#allocation2 + $0x7] sm:$0x7f] %vm207_vm7, %v756_v38 }
  0xb1   : > { %246 = vst.msk [vmem:[#allocation2 + $0x7] sm:$0x7f] %vm209_vm8, %v756_v38 }
  0xb2   : > { %280 = vst.msk [vmem:[#allocation2 + $0xe] sm:$0x7f] %vm207_vm7, %v757_v37 }
  0xb3   : > { %281 = vst.msk [vmem:[#allocation2 + $0xe] sm:$0x7f] %vm209_vm8, %v757_v37 }
  0xb4   : > { %316 = vst.msk [vmem:[#allocation2 + $0x15] sm:$0x7f] %vm209_vm8, %v313_v34 }
  0xb5   : > { %v318_v39 = vpop.permute.xlu1 %317  ;;  %v760_v40 = vpop.permute.xlu0 %759 }
  0xb6   : > { %320 = vst.msk [vmem:[#allocation2 + $0x14] sm:$0xfe] %vm214_vm9, %v318_v39  ;;  %v762_v41 = vunpack.i.h.bf16 %v760_v40  ;;  %v761_v42 = vunpack.i.l.bf16 %v760_v40 }
  0xb8   : > { %250 = vst.msk [vmem:[#allocation2 + $0x6] sm:$0xfe] %vm214_vm9, %v761_v42 }
  0xb9   : > { %285 = vst.msk [vmem:[#allocation2 + $0xd] sm:$0xfe] %vm214_vm9, %v762_v41 }
  0xbd   : > { %v429_v46 = vld [vmem:[#allocation2 + $0x18] sm:$0xff] }
  0xbf   : > { %v426_v43 = vld [vmem:[#allocation2] sm:$0xff] }
  0xc0   : > { %v427_v44 = vld [vmem:[#allocation2 + $0x8] sm:$0xff]  ;;  %v428_v45 = vld [vmem:[#allocation2 + $0x10] sm:$0xff] }
  0xc1   : > { %v433_v47 = vpack.c.bf16 %v427_v44, %v426_v43  ;;  %v434_v48 = vpack.c.bf16 %v429_v46, %v428_v45 }
  0xc3   : > { %648 = vmatmul.msk.bf16.vlgmr.msra.gmra.mxu0 %vm477_vm10, %v433_v47  ;;  %649 = vmatmul.msk.bf16.vlgmr.msra.gmra.mxu1 %vm477_vm10, %v434_v48 }
 0x12e   : > { %v518_v50 = vpop.f32.mrf.mxu3 }
 0x12f   : > { %v519_v51 = vadd.f32 %v763_v49, %v518_v50 }
 0x130   : > { %v513_v52 = vpop.f32.mrf.mxu2 }
 0x131   : > { %v514_v53 = vadd.f32 %v763_v49, %v513_v52  ;;  %v528_v54 = vmax.f32 %v519_v51, 0.0 }
 0x133   : > { %v526_v56 = vmax.f32 %v514_v53, 0.0  ;;  %v535_v57 = vpack.c.bf16 %v528_v54, %v528_v54 }
 0x135   : > { %v533_v58 = vpack.c.bf16 %v526_v56, %v526_v56  ;;  %v547_v59 = vsel %vm545_vm13, %v535_v57, %v546_v55 }
 0x136   : > { %548 = vst [vmem:[%s945_s11 + $0x18] sm:$0x1] %v547_v59  ;;  %v520_v60 = vpop.f32.mrf.mxu3 }
 0x137   : > { %541 = vst.msk [vmem:[%s945_s11 + $0x10] sm:$0xf] %vm536_vm14, %v533_v58 }
 0x138   : > { %v515_v61 = vpop.f32.mrf.mxu2 }
 0x139   : > { %v516_v62 = vadd.f32 %v763_v49, %v515_v61 }
 0x13b   : > { %v527_v63 = vmax.f32 %v516_v62, 0.0 }
 0x13d   : > { %v534_v0 = vpack.c.bf16 %v527_v63, %v527_v63 }
 0x13f   : > { %542 = vst.msk [vmem:[%s945_s11 + $0x14] sm:$0xf] %vm536_vm14, %v534_v0 }
 0x140   : > { %v503_v1 = vpop.f32.mrf.mxu0  ;;  %v508_v2 = vpop.f32.mrf.mxu1 }
 0x141   : > { %v504_v3 = vadd.f32 %v763_v49, %v503_v1  ;;  %v509_v4 = vadd.f32 %v763_v49, %v508_v2 }
 0x143   : > { %v522_v5 = vmax.f32 %v504_v3, 0.0  ;;  %v524_v6 = vmax.f32 %v509_v4, 0.0 }
 0x145   : > { %v529_v7 = vpack.c.bf16 %v522_v5, %v522_v5  ;;  %v531_v8 = vpack.c.bf16 %v524_v6, %v524_v6 }
 0x147   : > { %537 = vst.msk [vmem:[%s945_s11] sm:$0xf] %vm536_vm14, %v529_v7 }
 0x148   : > { %539 = vst.msk [vmem:[%s945_s11 + $0x8] sm:$0xf] %vm536_vm14, %v531_v8  ;;  %v505_v9 = vpop.f32.mrf.mxu0  ;;  %v510_v10 = vpop.f32.mrf.mxu1 }
 0x149   : > { %v506_v11 = vadd.f32 %v763_v49, %v505_v9  ;;  %v511_v12 = vadd.f32 %v763_v49, %v510_v10 }
 0x14b   : > { %v523_v13 = vmax.f32 %v506_v11, 0.0  ;;  %v525_v14 = vmax.f32 %v511_v12, 0.0 }
 0x14d   : > { %v530_v15 = vpack.c.bf16 %v523_v13, %v523_v13  ;;  %v532_v16 = vpack.c.bf16 %v525_v14, %v525_v14 }
 0x14f   : > { %538 = vst.msk [vmem:[%s945_s11 + $0x4] sm:$0xf] %vm536_vm14, %v530_v15 }
 0x150   : > { %540 = vst.msk [vmem:[%s945_s11 + $0xc] sm:$0xf] %vm536_vm14, %v532_v16 }
 0x151 PF: > { %s13_s12 = sadd.s32 1, %s770_s12  }
 0x152   : > { %p10_p4 = scmp.ge.s32.totalorder %s13_s12, 4  }
 0x154   :  { %12 = sbr.rel (!%p10_p4) target bundleno = 1 (0x1), region = 76 }

// kernel: reduction_a.8
= control target key start
LH: loop header
LB: loop body
LE: loop exit
PB: predicated region body
PF: predicated region fallthrough
CT: control target
= control target key end

     0   :  { %s3716_s12 = smov 0   ;;  %s5022_s0 = inlined_call_operand.vmem [shape: bf16[2,18,18,8], index: 0, kind: input, shape index: {}]   ;;  %s5023_s1 = inlined_call_operand.vmem [shape: bf16[72,8], index: 1, kind: input, shape index: {}]   ;;  %s5024_s2 = inlined_call_operand.vmem [shape: f32[1,8], index: 2, kind: input, shape index: {}]   ;;  %s5025_s3 = inlined_call_operand.vmem [shape: bf16[2,256,8], index: 3, kind: output, shape index: {}]  }
   0x1 LB: > { %s2464_s13 = sadd.s32 4294967295, %s3686_s12   ;;  %p2468_p0 = scmp.ge.s32.totalorder %s3686_s12, 1  ;;  %s3686_s12 = sphi %s3716_s12, %s13_s12  }
   0x2   : > { %p137_p1 = scmp.lt.s32.totalorder %s3686_s12, 3 }
   0x4   : > { %p138_p2 = pnand %p2468_p0, %p137_p1 }
   0x5   : > { %p161_p3 = scmp.lt.s32.totalorder (!%p138_p2), %s2464_s13, 1  ;;  %s3688_s18 = smov (!%p138_p2), 16  }
   0x6   : > { %141 = sbr.rel (%p138_p2) target bundleno = 762 (0x2fa), region = 32  ;;  %s3689_s19 = smov (!%p138_p2), 8  }
   0x7   : > { %s3690_s20 = smov (!%p138_p2), 24   ;;  %s3691_s21 = smov (!%p138_p2), 32  }
   0x8   : > { %s3692_s22 = smov (!%p138_p2), 40   ;;  %s3693_s23 = smov (!%p138_p2), 56  }
   0x9   : > { %s3694_s24 = smov (!%p138_p2), 48   ;;  %s3695_s25 = smov (!%p138_p2), 64  }
   0xb   : > { %s5203_s13 = smov (!%p161_p3, %s2464_s13), 1  ;;  %vm177_vm0 = vcmask 64512   ;;  %vm2219_vm1 = vcmask 1043456   ;;  %vm193_vm2 = vcmask 130113   ;;  %vm5026_vm3 = vcmask 195714  }
   0xc   : > { %s2786_s14 = smul.u32 216, %s5203_s13  ;;  %vm5027_vm4 = vcmask 130112   ;;  %vm210_vm5 = vcmask 195712   ;;  %vm228_vm6 = vcmask 261312   ;;  %vm5033_vm7 = vcmask 326913   ;;  %s2647_s11 = sshll.u32 %s5203_s13, 7 }
   0xd   : > { %vm5031_vm8 = vcmask 122944   ;;  %vm212_vm9 = vcmask 189568   ;;  %vm5032_vm10 = vcmask 326912   ;;  %vm257_vm11 = vcmask 392514   ;;  %s4348_s15 = scalar_lea.vmem %s5025_s3, %s2647_s11 }
   0xe   : > { %s3730_s17 = scalar_lea.vmem %s5022_s0, %s2786_s14  ;;  %vm5036_vm12 = vcmask 319744   ;;  %vm5035_vm13 = vcmask 386368   ;;  %vm5034_vm14 = vcmask 392512   ;;  %vm5028_vm15 = vcmask 458112  }
   0xf   : > { %v3733_v0 = vld [vmem:[%s3730_s17] sm:$0xff]   ;;  %v3738_v3 = vld [vmem:[%s3730_s17 + $0xc] sm:$0xff]   ;;  %v174_v5 = vld [vmem:[%s3730_s17 + $0x8] sm:$0x1] }
  0x10   : > { %v2654_v1 = vunpack.c.l.bf16 %v3733_v0  ;;  %v2655_v2 = vunpack.c.h.bf16 %v3733_v0  ;;  %v3741_v4 = vld [vmem:[%s3730_s17 + $0xc] sm:$0xff]   ;;  %v219_v7 = vunpack.c.h.bf16 %v3738_v3  ;;  %v180_v10 = vunpack.c.l.bf16 %v174_v5  ;;  %v2474_v13 = vld [vmem:[%s3730_s17 + $0x14] sm:$0x1]  ;;  %v2749_v14 = vld [vmem:[%s3730_s17 + $0x18] sm:$0xff]  }
  0x11   : > { %v218_v6 = vunpack.c.l.bf16 %v3741_v4  ;;  %v315_v11 = vunpack.c.l.bf16 %v3738_v3  ;;  %v231_v15 = vunpack.c.l.bf16 %v2474_v13  ;;  %v3760_v16 = vunpack.c.l.bf16 %v2749_v14  ;;  %v2477_v19 = vld [vmem:[%s3730_s17 + $0x20] sm:$0x1]  ;;  %v2484_v20 = vld [vmem:[%s3730_s17 + $0x24] sm:$0xff]   ;;  %v2480_v25 = vld [vmem:[%s3730_s17 + $0x14] sm:$0x1] }
  0x12   : > { %v2813_v8 = vpack.i.bf16 %v2655_v2, %v2654_v1  ;;  %v3766_v18 = vunpack.c.h.bf16 %v2749_v14  ;;  %v280_v21 = vunpack.c.l.bf16 %v2477_v19  ;;  %v392_v22 = vunpack.c.l.bf16 %v2484_v20  ;;  %v2483_v29 = vld [vmem:[%s3730_s17 + $0x20] sm:$0x1]  ;;  %v2486_v33 = vld [vmem:[%s3730_s17 + $0x2c] sm:$0x1]  ;;  %v2496_v38 = vld [vmem:[%s3730_s17 + $0x24] sm:$0xff]   ;;  %178 = vst.msk [vmem:[#allocation2] sm:$0xff] %vm177_vm0, %v2654_v1 }
  0x13   : > { %v2823_v9 = vpack.i.bf16 %v219_v7, %v218_v6  ;;  %v2818_v12 = vpack.i.bf16 %v315_v11, %v180_v10  ;;  %v2833_v17 = vpack.i.bf16 %v3760_v16, %v231_v15  ;;  %v316_v26 = vunpack.c.h.bf16 %v3741_v4  ;;  %v2489_v37 = vld [vmem:[%s3730_s17 + $0x20] sm:$0x1]  ;;  %v2490_v42 = vld [vmem:[%s3730_s17 + $0x24] sm:$0xff]   ;;  %v2492_v45 = vld [vmem:[%s3730_s17 + $0x2c] sm:$0x1]  ;;  %179 = vst.msk [vmem:[#allocation2 + $0x8] sm:$0xff] %vm177_vm0, %v2655_v2 }
  0x14   : > { %2814 = vrot.lane.b32.xlu1 %v2813_v8, %s3688_s18  ;;  %2804 = vrot.lane.b32.xlu0 %v2813_v8, %s3689_s19  ;;  %v2853_v23 = vpack.i.bf16 %v3766_v18, %v3760_v16  ;;  %v2858_v24 = vpack.i.bf16 %v392_v22, %v280_v21  ;;  %v319_v27 = vunpack.c.l.bf16 %v2480_v25  ;;  %v362_v30 = vunpack.c.l.bf16 %v2483_v29  ;;  %v2752_v46 = vld [vmem:[%s3730_s17 + $0x30] sm:$0xff]   ;;  %v2495_v53 = vld [vmem:[%s3730_s17 + $0x38] sm:$0x1]  ;;  %317 = vst.msk [vmem:[#allocation2 + $0x10] sm:$0xff] %vm177_vm0, %v315_v11 }
  0x15   : > { %2824 = vrot.lane.b32.xlu2 %v2823_v9, %s3690_s20  ;;  %v393_v32 = vunpack.c.h.bf16 %v2484_v20  ;;  %v404_v34 = vunpack.c.l.bf16 %v2486_v33  ;;  %v437_v39 = vunpack.c.l.bf16 %v2489_v37  ;;  %v551_v40 = vunpack.c.l.bf16 %v2496_v38  ;;  %v2502_v54 = vld [vmem:[%s3730_s17 + $0x3c] sm:$0xff]   ;;  %v2498_v58 = vld [vmem:[%s3730_s17 + $0x2c] sm:$0x1]  ;;  %318 = vst.msk [vmem:[#allocation2 + $0x18] sm:$0xff] %vm177_vm0, %v316_v26  ;;  %v2501_v1 = vld [vmem:[%s3730_s17 + $0x38] sm:$0x1] }
  0x16   : > { %v2873_v28 = vpack.i.bf16 %v319_v27, %v316_v26  ;;  %v2888_v31 = vpack.i.bf16 %v362_v30, %v3766_v18  ;;  %v468_v43 = vunpack.c.l.bf16 %v2490_v42  ;;  %v469_v44 = vunpack.c.h.bf16 %v2496_v38  ;;  %435 = vst.msk [vmem:[#allocation2 + $0x20] sm:$0xff] %vm177_vm0, %v3760_v16  ;;  %v3833_v61 = vld [vmem:[%s3730_s17 + $0x3c] sm:$0xff]   ;;  %v2504_v6 = vld [vmem:[%s3730_s17 + $0x44] sm:$0x1]  ;;  %v2755_v8 = vld [vmem:[%s3730_s17 + $0x48] sm:$0xff]  }
  0x17   : > { %v2898_v35 = vpack.i.bf16 %v393_v32, %v392_v22  ;;  %v2903_v36 = vpack.i.bf16 %v404_v34, %v393_v32  ;;  %v2918_v41 = vpack.i.bf16 %v551_v40, %v437_v39  ;;  %v480_v48 = vunpack.c.l.bf16 %v2492_v45  ;;  %436 = vst.msk [vmem:[#allocation2 + $0x28] sm:$0xff] %vm177_vm0, %v3766_v18  ;;  %v2138_v11 = vld [vmem:[%s5023_s1 + $0x20] sm:$0xf]  ;;  %v2507_v16 = vld [vmem:[%s3730_s17 + $0x38] sm:$0x1]  ;;  %v2649_v33 = vld [vmem:[%s5023_s1 + $0x8] sm:$0xff] }
  0x18   : > { %v2933_v47 = vpack.i.bf16 %v469_v44, %v468_v43  ;;  %v2674_v49 = vunpack.c.l.bf16 %v2752_v46  ;;  %v2671_v51 = vunpack.c.h.bf16 %v2752_v46  ;;  %v522_v55 = vunpack.c.l.bf16 %v2495_v53  ;;  %553 = vst.msk [vmem:[#allocation2 + $0x30] sm:$0xff] %vm177_vm0, %v551_v40  ;;  %v2651_v20 = vld [vmem:[%s5023_s1 + $0x18] sm:$0xff] }
  0x19   : > { %v628_v56 = vunpack.c.l.bf16 %v2502_v54  ;;  %v552_v59 = vunpack.c.h.bf16 %v2490_v42  ;;  %v555_v60 = vunpack.c.l.bf16 %v2498_v58  ;;  %v787_v0 = vunpack.c.l.bf16 %v3833_v61  ;;  %v3881_v30 = vld [vmem:[%s3730_s17 + $0x3c] sm:$0xff]  }
  0x1a   : > { %v2943_v50 = vpack.i.bf16 %v2674_v49, %v480_v48  ;;  %v3804_v52 = vpack.i.bf16 %v2671_v51, %v2674_v49  ;;  %671 = vst.msk [vmem:[#allocation2 + $0x40] sm:$0xff] %vm177_vm0, %v2674_v49  ;;  %v598_v2 = vunpack.c.l.bf16 %v2501_v1  ;;  %v629_v3 = vunpack.c.h.bf16 %v2502_v54  ;;  %v2648_v48 = vld [vmem:[%s5023_s1] sm:$0xff] }
  0x1b   : > { %v2968_v57 = vpack.i.bf16 %v628_v56, %v522_v55  ;;  %554 = vst.msk [vmem:[#allocation2 + $0x38] sm:$0xff] %vm177_vm0, %v552_v59  ;;  %v2988_v63 = vpack.i.bf16 %v555_v60, %v552_v59  ;;  %v640_v10 = vunpack.c.l.bf16 %v2504_v6  ;;  %v3865_v18 = vunpack.c.h.bf16 %v2755_v8  ;;  %v2513_v60 = vld [vmem:[%s3730_s17 + $0x50] sm:$0x1] }
  0x1c   : > { %2819 = vrot.lane.b32.xlu1 %v2818_v12, %s3688_s18  ;;  %2809 = vrot.lane.b32.xlu0 %v2818_v12, %s3689_s19  ;;  %672 = vst.msk [vmem:[#allocation2 + $0x48] sm:$0xff] %vm177_vm0, %v2671_v51  ;;  %v3003_v5 = vpack.i.bf16 %v598_v2, %v2671_v51  ;;  %v3008_v7 = vpack.i.bf16 %v629_v3, %v628_v56  ;;  %v2160_v12 = vunpack.c.l.b16 %v2138_v11  ;;  %v673_v19 = vunpack.c.l.bf16 %v2507_v16  ;;  %v3956_v11 = vld [vmem:[%s3730_s17 + $0x54] sm:$0xff]  }
  0x1d   : > { %2829 = vrot.lane.b32.xlu2 %v2823_v9, %s3691_s21  ;;  %789 = vst.msk [vmem:[#allocation2 + $0x50] sm:$0xff] %vm177_vm0, %v787_v0  ;;  %v3018_v15 = vpack.i.bf16 %v640_v10, %v629_v3  ;;  %v704_v34 = vunpack.c.l.bf16 %v3881_v30  ;;  %v788_v37 = vunpack.c.h.bf16 %v3881_v30  ;;  %v2516_v10 = vld [vmem:[%s3730_s17 + $0x44] sm:$0x1] }
  0x1e   : > { %v2165_v14 = vpack.c.b16 %v2160_v12, %v2160_v12  ;;  %908 = vst.msk [vmem:[#allocation2 + $0x68] sm:$0xff] %vm177_vm0, %v3865_v18  ;;  %v791_v12 = vunpack.c.l.bf16 %v2516_v10 }
  0x1f   : > { %790 = vst.msk [vmem:[#allocation2 + $0x58] sm:$0xff] %vm177_vm0, %v788_v37 }
  0x24   : > { %2839 = vrot.lane.b32.xlu1 %v2823_v9, %s3692_s22  ;;  %2834 = vrot.lane.b32.xlu0 %v2833_v17, %s3691_s21  ;;  %v3852_v9 = vunpack.c.l.bf16 %v2755_v8 }
  0x25   : > { %2844 = vrot.lane.b32.xlu2 %v2833_v17, %s3692_s22  ;;  %v2221_v17 = vsel %vm2219_vm1, %v2165_v14, 0  ;;  %vm5030_vm1 = vcmask 523712   ;;  %v1023_v14 = vunpack.c.l.bf16 %v3956_v11 }
  0x26   : > { %907 = vst.msk [vmem:[#allocation2 + $0x60] sm:$0xff] %vm177_vm0, %v3852_v9  ;;  %2226 = vmatpush.bf16.msra.mxu0 %v2221_v17  ;;  %2771 = vmatpush.bf16.msra.mxu1 %v2221_v17 }
  0x27   : > { %2772 = vmatpush.bf16.msra.mxu2 %v2221_v17  ;;  %2773 = vmatpush.bf16.msra.mxu3 %v2221_v17  ;;  %1025 = vst.msk [vmem:[#allocation2 + $0x70] sm:$0xff] %vm177_vm0, %v1023_v14 }
  0x2a   : > { %2227 = vmatpush.bf16.msra.mxu0 %v2651_v20  ;;  %2774 = vmatpush.bf16.msra.mxu1 %v2651_v20 }
  0x2b   : > { %2775 = vmatpush.bf16.msra.mxu2 %v2651_v20  ;;  %2776 = vmatpush.bf16.msra.mxu3 %v2651_v20 }
  0x2c   : > { %2854 = vrot.lane.b32.xlu1 %v2853_v23, %s3693_s23  ;;  %2849 = vrot.lane.b32.xlu0 %v2853_v23, %s3694_s24 }
  0x2d   : > { %2859 = vrot.lane.b32.xlu2 %v2858_v24, %s3693_s23 }
  0x34   : > { %2869 = vrot.lane.b32.xlu1 %v2858_v24, %s3695_s25  ;;  %2864 = vrot.lane.b32.xlu0 %v2853_v23, %s3695_s25 }
  0x35   : > { %2874 = vrot.lane.b32.xlu2 %v2873_v28, %s3689_s19 }
  0x3c   : > { %2884 = vrot.lane.b32.xlu1 %v2853_v23, %s3690_s20  ;;  %2879 = vrot.lane.b32.xlu0 %v2873_v28, %s3688_s18  ;;  %v3028_v28 = vpack.i.bf16 %v787_v0, %v673_v19 }
  0x3d   : > { %2889 = vrot.lane.b32.xlu2 %v2888_v31, %s3691_s21 }
  0x44   : > { %2899 = vrot.lane.b32.xlu1 %v2898_v35, %s3694_s24  ;;  %2894 = vrot.lane.b32.xlu0 %v2888_v31, %s3692_s22  ;;  %v2650_v31 = vld [vmem:[%s5023_s1 + $0x10] sm:$0xff]  ;;  %v705_v35 = vunpack.c.h.bf16 %v3833_v61 }
  0x45   : > { %2904 = vrot.lane.b32.xlu2 %v2903_v36, %s3693_s23  ;;  %2228 = vmatpush.bf16.msra.mxu0 %v2650_v31  ;;  %v3932_v61 = vld [vmem:[%s3730_s17 + $0x54] sm:$0xff]  }
  0x46   : > { %2777 = vmatpush.bf16.msra.mxu1 %v2650_v31  ;;  %2778 = vmatpush.bf16.msra.mxu2 %v2650_v31  ;;  %v3048_v46 = vpack.i.bf16 %v705_v35, %v704_v34  ;;  %v864_v0 = vunpack.c.l.bf16 %v3932_v61 }
  0x47   : > { %2779 = vmatpush.bf16.msra.mxu3 %v2650_v31 }
  0x49   : > { %2229 = vmatpush.bf16.msra.mxu0 %v2649_v33 }
  0x4a   : > { %2780 = vmatpush.bf16.msra.mxu1 %v2649_v33  ;;  %2781 = vmatpush.bf16.msra.mxu2 %v2649_v33 }
  0x4b   : > { %2782 = vmatpush.bf16.msra.mxu3 %v2649_v33 }
  0x4c   : > { %2914 = vrot.lane.b32.xlu1 %v2853_v23, %s3689_s19  ;;  %2909 = vrot.lane.b32.xlu0 %v2903_v36, %s3695_s25  ;;  %v2510_v36 = vld [vmem:[%s3730_s17 + $0x44] sm:$0x1] }
  0x4d   : > { %2919 = vrot.lane.b32.xlu2 %v2918_v41, %s3689_s19  ;;  %v716_v43 = vunpack.c.l.bf16 %v2510_v36  ;;  %2230 = vmatpush.bf16.msra.mxu0 %v2648_v48 }
  0x4e   : > { %2783 = vmatpush.bf16.msra.mxu1 %v2648_v48  ;;  %2784 = vmatpush.bf16.msra.mxu2 %v2648_v48 }
  0x4f   : > { %2785 = vmatpush.bf16.msra.mxu3 %v2648_v48 }
  0x54   : > { %2929 = vrot.lane.b32.xlu1 %v2918_v41, %s3688_s18  ;;  %2924 = vrot.lane.b32.xlu0 %v2853_v23, %s3688_s18 }
  0x55   : > { %2934 = vrot.lane.b32.xlu2 %v2933_v47, %s3690_s20 }
  0x5c   : > { %2944 = vrot.lane.b32.xlu1 %v2943_v50, %s3691_s21  ;;  %2939 = vrot.lane.b32.xlu0 %v2933_v47, %s3691_s21 }
  0x5d   : > { %2949 = vrot.lane.b32.xlu2 %v2933_v47, %s3692_s22 }
  0x64   : > { %2959 = vrot.lane.b32.xlu1 %v3804_v52, %s3694_s24  ;;  %2954 = vrot.lane.b32.xlu0 %v2943_v50, %s3692_s22  ;;  %v3063_v50 = vpack.i.bf16 %v3852_v9, %v716_v43 }
  0x65   : > { %2964 = vrot.lane.b32.xlu2 %v3804_v52, %s3693_s23 }
  0x6c   : > { %2974 = vrot.lane.b32.xlu1 %v3804_v52, %s3695_s25  ;;  %2969 = vrot.lane.b32.xlu0 %v2968_v57, %s3693_s23 }
  0x6d   : > { %2979 = vrot.lane.b32.xlu2 %v2968_v57, %s3695_s25 }
  0x6f   : > { %v3837_v62 = vpop.permute.xlu2 %2824 }
  0x70   : > { %v2826_v29 = vunpack.i.l.bf16 %v3837_v62  ;;  %v2827_v49 = vunpack.i.h.bf16 %v3837_v62  ;;  %v3938_v62 = vpack.i.bf16 %v3865_v18, %v3852_v9 }
  0x74   : > { %2989 = vrot.lane.b32.xlu1 %v2988_v63, %s3688_s18  ;;  %2984 = vrot.lane.b32.xlu0 %v2988_v63, %s3689_s19  ;;  %v758_v63 = vunpack.c.l.bf16 %v2513_v60 }
  0x75   : > { %2994 = vrot.lane.b32.xlu2 %v3804_v52, %s3690_s20 }
  0x76   : > { %v3078_v8 = vpack.i.bf16 %v864_v0, %v758_v63 }
  0x77   : > { %v3848_v4 = vpop.permute.xlu2 %2829 }
  0x78   : > { %v2831_v32 = vunpack.i.l.bf16 %v3848_v4  ;;  %v2832_v47 = vunpack.i.h.bf16 %v3848_v4 }
  0x7c   : > { %3004 = vrot.lane.b32.xlu1 %v3003_v5, %s3692_s22  ;;  %2999 = vrot.lane.b32.xlu0 %v3003_v5, %s3691_s21 }
  0x7d   : > { %3009 = vrot.lane.b32.xlu2 %v3008_v7, %s3694_s24 }
  0x7f   : > { %v3862_v13 = vpop.permute.xlu2 %2844 }
  0x80   : > { %v2846_v57 = vunpack.i.l.bf16 %v3862_v13 }
  0x84   : > { %3019 = vrot.lane.b32.xlu1 %v3018_v15, %s3695_s25  ;;  %3014 = vrot.lane.b32.xlu0 %v3018_v15, %s3693_s23 }
  0x85   : > { %3024 = vrot.lane.b32.xlu2 %v3804_v52, %s3689_s19 }
  0x86   : > { %v2815_v21 = vpop.permute.xlu1 %2814  ;;  %v2805_v22 = vpop.permute.xlu0 %2804 }
  0x87   : > { %v2816_v23 = vunpack.i.l.bf16 %v2815_v21  ;;  %v2807_v24 = vunpack.i.h.bf16 %v2805_v22  ;;  %v2806_v25 = vunpack.i.l.bf16 %v2805_v22  ;;  %v3876_v26 = vpop.permute.xlu2 %2859  ;;  %v2817_v27 = vunpack.i.h.bf16 %v2815_v21 }
  0x88   : > { %v2861_v7 = vunpack.i.l.bf16 %v3876_v26  ;;  %v3093_v22 = vpack.i.bf16 %v791_v12, %v788_v37  ;;  %v2522_v37 = vld [vmem:[%s3730_s17 + $0x5c] sm:$0x1] }
  0x89   : > { %194 = vst.msk [vmem:[#allocation2 - $0x1] sm:$0xfe] %vm193_vm2, %v2806_v25 }
  0x8a   : > { %209 = vst.msk [vmem:[#allocation2 - $0x2] sm:$0xfc] %vm5026_vm3, %v2816_v23 }
  0x8b   : > { %196 = vst.msk [vmem:[#allocation2 + $0x7] sm:$0xff] %vm5027_vm4, %v2807_v24  ;;  %v2519_v24 = vld [vmem:[%s3730_s17 + $0x50] sm:$0x1] }
  0x8c   : > { %3034 = vrot.lane.b32.xlu1 %v3804_v52, %s3688_s18  ;;  %3029 = vrot.lane.b32.xlu0 %v3028_v28, %s3689_s19  ;;  %211 = vst.msk [vmem:[#allocation2 + $0x6] sm:$0xff] %vm210_vm5, %v2817_v27  ;;  %v834_v27 = vunpack.c.l.bf16 %v2519_v24 }
  0x8d   : > { %229 = vst.msk [vmem:[#allocation2] sm:$0xff] %vm228_vm6, %v2826_v29  ;;  %3039 = vrot.lane.b32.xlu2 %v3028_v28, %s3688_s18 }
  0x8e   : > { %v2820_v38 = vpop.permute.xlu1 %2819  ;;  %v2810_v39 = vpop.permute.xlu0 %2809  ;;  %243 = vst.msk [vmem:[#allocation2 - $0x1] sm:$0xfe] %vm5033_vm7, %v2831_v32  ;;  %v3108_v35 = vpack.i.bf16 %v834_v27, %v3865_v18  ;;  %v865_v18 = vunpack.c.h.bf16 %v3932_v61 }
  0x8f   : > { %v2822_v40 = vunpack.i.h.bf16 %v2820_v38  ;;  %v2812_v41 = vunpack.i.h.bf16 %v2810_v39  ;;  %v2811_v42 = vunpack.i.l.bf16 %v2810_v39  ;;  %v2875_v44 = vpop.permute.xlu2 %2874  ;;  %v2821_v45 = vunpack.i.l.bf16 %v2820_v38 }
  0x90   : > { %v2877_v51 = vunpack.i.h.bf16 %v2875_v44  ;;  %v2876_v52 = vunpack.i.l.bf16 %v2875_v44  ;;  %v2847_v44 = vunpack.i.h.bf16 %v3862_v13 }
  0x91   : > { %332 = vst.msk [vmem:[#allocation2 + $0xf] sm:$0xfe] %vm193_vm2, %v2812_v41 }
  0x92   : > { %344 = vst.msk [vmem:[#allocation2 + $0xe] sm:$0xfc] %vm5026_vm3, %v2822_v40  ;;  %vm5029_vm3 = vcmask 516544  }
  0x93   : > { %198 = vst.msk [vmem:[#allocation2 + $0xf] sm:$0x1] %vm5031_vm8, %v2811_v42  ;;  %v876_v42 = vunpack.c.l.bf16 %v2522_v37  ;;  %v4085_v37 = vld [vmem:[%s3730_s17 + $0x6c] sm:$0xff]  }
  0x94   : > { %213 = vst.msk [vmem:[#allocation2 + $0xe] sm:$0x3] %vm212_vm9, %v2821_v45  ;;  %3049 = vrot.lane.b32.xlu1 %v3048_v46, %s3691_s21  ;;  %3044 = vrot.lane.b32.xlu0 %v3048_v46, %s3690_s20 }
  0x95   : > { %230 = vst.msk [vmem:[#allocation2 + $0x8] sm:$0xff] %vm228_vm6, %v2827_v49  ;;  %3054 = vrot.lane.b32.xlu2 %v3063_v50, %s3691_s21 }
  0x96   : > { %v2840_v53 = vpop.permute.xlu1 %2839  ;;  %v3920_v54 = vpop.permute.xlu0 %2834  ;;  %245 = vst.msk [vmem:[#allocation2 + $0x7] sm:$0xff] %vm5032_vm10, %v2832_v47 }
  0x97   : > { %v2841_v55 = vunpack.i.l.bf16 %v2840_v53  ;;  %v2836_v56 = vunpack.i.l.bf16 %v3920_v54  ;;  %334 = vst.msk [vmem:[#allocation2 + $0x1f] sm:$0x1] %vm5031_vm8, %v2877_v51  ;;  %v3926_v58 = vpop.permute.xlu2 %2889  ;;  %v2842_v59 = vunpack.i.h.bf16 %v2840_v53  ;;  %v2837_v43 = vunpack.i.h.bf16 %v3920_v54  ;;  %v2525_v54 = vld [vmem:[%s3730_s17 + $0x50] sm:$0x1] }
  0x98   : > { %333 = vst.msk [vmem:[#allocation2 + $0x17] sm:$0xff] %vm5027_vm4, %v2876_v52  ;;  %vm291_vm4 = vcmask 523713   ;;  %v2891_v36 = vunpack.i.l.bf16 %v3926_v58  ;;  %v2892_v38 = vunpack.i.h.bf16 %v3926_v58  ;;  %v3123_v52 = vpack.i.bf16 %v876_v42, %v865_v18 }
  0x99   : > { %258 = vst.msk [vmem:[#allocation2 - $0x2] sm:$0xfc] %vm257_vm11, %v2841_v55  ;;  %v3118_v53 = vpack.i.bf16 %v865_v18, %v864_v0 }
  0x9a   : > { %247 = vst.msk [vmem:[#allocation2 + $0xf] sm:$0x1] %vm5036_vm12, %v2836_v56  ;;  %v909_v56 = vunpack.c.l.bf16 %v2525_v54 }
  0x9b   : > { %262 = vst.msk [vmem:[#allocation2 + $0xe] sm:$0x3] %vm5035_vm13, %v2846_v57  ;;  %v2862_v57 = vunpack.i.h.bf16 %v3876_v26 }
  0x9c   : > { %3064 = vrot.lane.b32.xlu1 %v3063_v50, %s3692_s22  ;;  %3059 = vrot.lane.b32.xlu0 %v3048_v46, %s3692_s22  ;;  %260 = vst.msk [vmem:[#allocation2 + $0x6] sm:$0xff] %vm5034_vm14, %v2842_v59 }
  0x9d   : > { %3069 = vrot.lane.b32.xlu2 %v3938_v62, %s3694_s24 }
  0x9e   : > { %v2855_v1 = vpop.permute.xlu1 %2854  ;;  %v2850_v2 = vpop.permute.xlu0 %2849 }
  0x9f   : > { %v2857_v3 = vunpack.i.h.bf16 %v2855_v1  ;;  %v2852_v4 = vunpack.i.h.bf16 %v2850_v2  ;;  %v2851_v5 = vunpack.i.l.bf16 %v2850_v2  ;;  %v3946_v6 = vpop.permute.xlu2 %2904  ;;  %v2856_v9 = vunpack.i.l.bf16 %v2855_v1 }
  0xa0   : > { %v2906_v13 = vunpack.i.l.bf16 %v3946_v6  ;;  %v2907_v55 = vunpack.i.h.bf16 %v3946_v6  ;;  %v3138_v2 = vpack.i.bf16 %v1023_v14, %v909_v56 }
  0xa1   : > { %278 = vst.msk [vmem:[#allocation2] sm:$0xff] %vm5028_vm15, %v2851_v5 }
  0xa2   : > { %279 = vst.msk [vmem:[#allocation2 + $0x8] sm:$0xff] %vm5028_vm15, %v2852_v4  ;;  %vm310_vm15 = vcmask 583168   ;;  %v4032_v4 = vld [vmem:[%s3730_s17 + $0x54] sm:$0xff]  }
  0xa3   : > { %294 = vst.msk [vmem:[#allocation2 + $0x7] sm:$0xff] %vm5030_vm1, %v2857_v3  ;;  %vm308_vm1 = vcmask 589312   ;;  %v2758_v3 = vld [vmem:[%s3730_s17 + $0x60] sm:$0xff]   ;;  %v940_v6 = vunpack.c.l.bf16 %v4032_v4 }
  0xa4   : > { %296 = vst.msk [vmem:[#allocation2 + $0xf] sm:$0x1] %vm5029_vm3, %v2861_v7  ;;  %3079 = vrot.lane.b32.xlu1 %v3078_v8, %s3693_s23  ;;  %3074 = vrot.lane.b32.xlu0 %v3938_v62, %s3693_s23  ;;  %vm306_vm3 = vcmask 589314   ;;  %v4036_v5 = vunpack.c.l.bf16 %v2758_v3  ;;  %v941_v7 = vunpack.c.h.bf16 %v3956_v11 }
  0xa5   : > { %292 = vst.msk [vmem:[#allocation2 - $0x1] sm:$0xfe] %vm291_vm4, %v2856_v9  ;;  %3084 = vrot.lane.b32.xlu2 %v3938_v62, %s3695_s25 }
  0xa6   : > { %v3966_v15 = vpop.permute.xlu1 %2869  ;;  %v2865_v16 = vpop.permute.xlu0 %2864  ;;  %1143 = vst.msk [vmem:[#allocation2 + $0x80] sm:$0xff] %vm177_vm0, %v4036_v5  ;;  %v3153_v11 = vpack.i.bf16 %v941_v7, %v940_v6 }
  0xa7   : > { %v2871_v17 = vunpack.i.l.bf16 %v3966_v15  ;;  %v2867_v19 = vunpack.i.h.bf16 %v2865_v16  ;;  %v2866_v20 = vunpack.i.l.bf16 %v2865_v16  ;;  %v2920_v21 = vpop.permute.xlu2 %2919  ;;  %v2872_v58 = vunpack.i.h.bf16 %v3966_v15 }
  0xa8   : > { %v2922_v23 = vunpack.i.h.bf16 %v2920_v21  ;;  %v2921_v25 = vunpack.i.l.bf16 %v2920_v21 }
  0xa9   : > { %311 = vst.msk [vmem:[#allocation2 + $0xe] sm:$0x3] %vm310_vm15, %v2871_v17 }
  0xaa   : > { %307 = vst.msk [vmem:[#allocation2 - $0x2] sm:$0xfc] %vm306_vm3, %v2866_v20 }
  0xab   : > { %309 = vst.msk [vmem:[#allocation2 + $0x6] sm:$0xff] %vm308_vm1, %v2867_v19 }
  0xac   : > { %3094 = vrot.lane.b32.xlu1 %v3093_v22, %s3689_s19  ;;  %3089 = vrot.lane.b32.xlu0 %v3078_v8, %s3695_s25  ;;  %568 = vst.msk [vmem:[#allocation2 + $0x2f] sm:$0xfe] %vm193_vm2, %v2922_v23  ;;  %v4044_v8 = vunpack.c.h.bf16 %v2758_v3 }
  0xad   : > { %452 = vst.msk [vmem:[#allocation2 + $0x2f] sm:$0x1] %vm5031_vm8, %v2921_v25  ;;  %3099 = vrot.lane.b32.xlu2 %v3093_v22, %s3688_s18  ;;  %vm2170_vm8 = vcmask 588800   ;;  %v1024_v25 = vunpack.c.h.bf16 %v4032_v4 }
  0xae   : > { %v2885_v28 = vpop.permute.xlu1 %2884  ;;  %v2880_v29 = vpop.permute.xlu0 %2879  ;;  %1144 = vst.msk [vmem:[#allocation2 + $0x88] sm:$0xff] %vm177_vm0, %v4044_v8 }
  0xaf   : > { %v2886_v30 = vunpack.i.l.bf16 %v2885_v28  ;;  %v2882_v31 = vunpack.i.h.bf16 %v2880_v29  ;;  %v2881_v32 = vunpack.i.l.bf16 %v2880_v29  ;;  %v3983_v33 = vpop.permute.xlu2 %2934  ;;  %v2887_v34 = vunpack.i.h.bf16 %v2885_v28  ;;  %1026 = vst.msk [vmem:[#allocation2 + $0x78] sm:$0xff] %vm177_vm0, %v1024_v25 }
  0xb0   : > { %v2936_v19 = vunpack.i.l.bf16 %v3983_v33  ;;  %v2937_v20 = vunpack.i.h.bf16 %v3983_v33 }
  0xb1   : > { %346 = vst.msk [vmem:[#allocation2 + $0x1e] sm:$0x3] %vm212_vm9, %v2882_v31 }
  0xb2   : > { %345 = vst.msk [vmem:[#allocation2 + $0x16] sm:$0xff] %vm210_vm5, %v2881_v32  ;;  %v2082_v39 = vld [vmem:[#allocation2] sm:$0xff]  ;;  %v2083_v40 = vld [vmem:[#allocation2 + $0x8] sm:$0xff] }
  0xb3   : > { %360 = vst.msk [vmem:[#allocation2 + $0x10] sm:$0xff] %vm228_vm6, %v2886_v30  ;;  %v2114_v41 = vpack.c.bf16 %v2083_v40, %v2082_v39 }
  0xb4   : > { %361 = vst.msk [vmem:[#allocation2 + $0x18] sm:$0xff] %vm228_vm6, %v2887_v34  ;;  %3109 = vrot.lane.b32.xlu1 %v3108_v35, %s3691_s21  ;;  %3104 = vrot.lane.b32.xlu0 %v3938_v62, %s3690_s20 }
  0xb5   : > { %374 = vst.msk [vmem:[#allocation2 + $0x17] sm:$0xff] %vm5032_vm10, %v2891_v36  ;;  %2629 = vmatmul.msk.bf16.vlgmr.msra.gmra.mxu0 %vm2170_vm8, %v2114_v41  ;;  %3114 = vrot.lane.b32.xlu2 %v3108_v35, %s3692_s22  ;;  %vm5037_vm10 = vcmask 458112   ;;  %v2531_v36 = vld [vmem:[%s3730_s17 + $0x68] sm:$0x1] }
  0xb6   : > { %375 = vst.msk [vmem:[#allocation2 + $0x1f] sm:$0x1] %vm5036_vm12, %v2892_v38  ;;  %v2900_v45 = vpop.permute.xlu1 %2899  ;;  %v2895_v46 = vpop.permute.xlu0 %2894  ;;  %v994_v40 = vunpack.c.l.bf16 %v2531_v36 }
  0xb7   : > { %373 = vst.msk [vmem:[#allocation2 + $0xf] sm:$0xfe] %vm5033_vm7, %v2837_v43  ;;  %v2901_v47 = vunpack.i.l.bf16 %v2900_v45  ;;  %v2897_v48 = vunpack.i.h.bf16 %v2895_v46  ;;  %v2896_v49 = vunpack.i.l.bf16 %v2895_v46  ;;  %v4004_v50 = vpop.permute.xlu2 %2949  ;;  %v2902_v51 = vunpack.i.h.bf16 %v2900_v45  ;;  %vm5038_vm7 = vmmov %vm5037_vm10 }
  0xb8   : > { %385 = vst.msk [vmem:[#allocation2 + $0xe] sm:$0xfc] %vm257_vm11, %v2847_v44  ;;  %v2951_v33 = vunpack.i.l.bf16 %v4004_v50  ;;  %v2952_v35 = vunpack.i.h.bf16 %v4004_v50  ;;  %v1100_v43 = vunpack.c.l.bf16 %v4085_v37  ;;  %v4098_v46 = vpack.i.bf16 %v4044_v8, %v4036_v5 }
  0xb9   : > { %386 = vst.msk [vmem:[#allocation2 + $0x16] sm:$0xff] %vm5034_vm14, %v2896_v49  ;;  %vm5039_vm14 = vcmask 523712   ;;  %v2534_v49 = vld [vmem:[%s3730_s17 + $0x5c] sm:$0x1] }
  0xba   : > { %387 = vst.msk [vmem:[#allocation2 + $0x1e] sm:$0x3] %vm5035_vm13, %v2897_v48  ;;  %vm5040_vm13 = vcmask 516544   ;;  %v3188_v48 = vpack.i.bf16 %v1100_v43, %v994_v40  ;;  %v1027_v54 = vunpack.c.l.bf16 %v2534_v49 }
  0xbb   : > { %402 = vst.msk [vmem:[#allocation2 + $0x10] sm:$0xff] %vm5037_vm10, %v2901_v47  ;;  %vm5042_vm10 = vcmask 195714  }
  0xbc   : > { %403 = vst.msk [vmem:[#allocation2 + $0x18] sm:$0xff] %vm5038_vm7, %v2902_v51  ;;  %3124 = vrot.lane.b32.xlu1 %v3123_v52, %s3693_s23  ;;  %3119 = vrot.lane.b32.xlu0 %v3118_v53, %s3694_s24  ;;  %vm5041_vm7 = vcmask 130112  }
  0xbd   : > { %416 = vst.msk [vmem:[#allocation2 + $0x17] sm:$0xff] %vm5039_vm14, %v2906_v13  ;;  %3129 = vrot.lane.b32.xlu2 %v3123_v52, %s3695_s25  ;;  %vm5044_vm14 = vcmask 326913  }
  0xbe   : > { %417 = vst.msk [vmem:[#allocation2 + $0x1f] sm:$0x1] %vm5040_vm13, %v2907_v55  ;;  %v2915_v59 = vpop.permute.xlu1 %2914  ;;  %v2910_v60 = vpop.permute.xlu0 %2909  ;;  %vm5043_vm13 = vmmov %vm5042_vm10 }
  0xbf   : > { %415 = vst.msk [vmem:[#allocation2 + $0xf] sm:$0xfe] %vm291_vm4, %v2862_v57  ;;  %v2917_v61 = vunpack.i.h.bf16 %v2915_v59  ;;  %v2916_v63 = vunpack.i.l.bf16 %v2915_v59  ;;  %v2911_v0 = vunpack.i.l.bf16 %v2910_v60  ;;  %v4024_v1 = vpop.permute.xlu2 %2964  ;;  %v2912_v26 = vunpack.i.h.bf16 %v2910_v60  ;;  %v4122_v60 = vld [vmem:[%s3730_s17 + $0x6c] sm:$0xff]  }
  0xc0   : > { %427 = vst.msk [vmem:[#allocation2 + $0xe] sm:$0xfc] %vm306_vm3, %v2872_v58  ;;  %v2966_v45 = vunpack.i.l.bf16 %v4024_v1  ;;  %v2967_v47 = vunpack.i.h.bf16 %v4024_v1  ;;  %v3203_v58 = vpack.i.bf16 %v1027_v54, %v1024_v25  ;;  %v1177_v49 = vunpack.c.h.bf16 %v4122_v60 }
  0xc1   : > { %450 = vst.msk [vmem:[#allocation2 + $0x1f] sm:$0xfe] %vm193_vm2, %v2916_v63  ;;  %v1259_v63 = vunpack.c.l.bf16 %v4122_v60 }
  0xc2   : > { %451 = vst.msk [vmem:[#allocation2 + $0x27] sm:$0xff] %vm5041_vm7, %v2917_v61  ;;  %vm5045_vm7 = vcmask 326912   ;;  %v2537_v61 = vld [vmem:[%s3730_s17 + $0x68] sm:$0x1] }
  0xc3   : > { %428 = vst.msk [vmem:[#allocation2 + $0x16] sm:$0xff] %vm308_vm1, %v2911_v0  ;;  %v1070_v4 = vunpack.c.l.bf16 %v2537_v61 }
  0xc4   : > { %429 = vst.msk [vmem:[#allocation2 + $0x1e] sm:$0x3] %vm310_vm15, %v2912_v26  ;;  %3139 = vrot.lane.b32.xlu1 %v3138_v2, %s3689_s19  ;;  %3134 = vrot.lane.b32.xlu0 %v3938_v62, %s3689_s19 }
  0xc5   : > { %3144 = vrot.lane.b32.xlu2 %v3938_v62, %s3688_s18  ;;  %v2528_v62 = vld [vmem:[%s3730_s17 + $0x5c] sm:$0x1]  ;;  %1261 = vst.msk [vmem:[#allocation2 + $0x90] sm:$0xff] %vm177_vm0, %v1259_v63 }
  0xc6   : > { %v2930_v9 = vpop.permute.xlu1 %2929  ;;  %v2925_v10 = vpop.permute.xlu0 %2924  ;;  %v952_v24 = vunpack.c.l.bf16 %v2528_v62 }
  0xc7   : > { %v2932_v12 = vunpack.i.h.bf16 %v2930_v9  ;;  %v2931_v14 = vunpack.i.l.bf16 %v2930_v9  ;;  %v2927_v15 = vunpack.i.h.bf16 %v2925_v10  ;;  %v4052_v16 = vpop.permute.xlu2 %2979  ;;  %v2926_v17 = vunpack.i.l.bf16 %v2925_v10 }
  0xc8   : > { %v3163_v34 = vpack.i.bf16 %v4036_v5, %v952_v24  ;;  %v2981_v56 = vunpack.i.l.bf16 %v4052_v16  ;;  %v3218_v10 = vpack.i.bf16 %v1070_v4, %v4044_v8  ;;  %v2540_v8 = vld [vmem:[%s3730_s17 + $0x74] sm:$0x1] }
  0xc9   : > { %580 = vst.msk [vmem:[#allocation2 + $0x2e] sm:$0xfc] %vm5042_vm10, %v2932_v12  ;;  %vm5046_vm10 = vcmask 392512   ;;  %v1112_v24 = vunpack.c.l.bf16 %v2540_v8 }
  0xca   : > { %464 = vst.msk [vmem:[#allocation2 + $0x2e] sm:$0x3] %vm212_vm9, %v2931_v14  ;;  %v2084_v21 = vld [vmem:[#allocation2 + $0x10] sm:$0xff] }
  0xcb   : > { %463 = vst.msk [vmem:[#allocation2 + $0x26] sm:$0xff] %vm210_vm5, %v2927_v15  ;;  %v2085_v22 = vld [vmem:[#allocation2 + $0x18] sm:$0xff] }
  0xcc   : > { %462 = vst.msk [vmem:[#allocation2 + $0x1e] sm:$0xfc] %vm5043_vm13, %v2926_v17  ;;  %v2115_v23 = vpack.c.bf16 %v2085_v22, %v2084_v21  ;;  %3154 = vrot.lane.b32.xlu1 %v3153_v11, %s3690_s20  ;;  %3149 = vrot.lane.b32.xlu0 %v3138_v2, %s3688_s18  ;;  %vm5047_vm13 = vcmask 458112  }
  0xcd   : > { %478 = vst.msk [vmem:[#allocation2 + $0x20] sm:$0xff] %vm228_vm6, %v2936_v19  ;;  %3159 = vrot.lane.b32.xlu2 %v3153_v11, %s3691_s21 }
  0xce   : > { %479 = vst.msk [vmem:[#allocation2 + $0x28] sm:$0xff] %vm228_vm6, %v2937_v20  ;;  %2630 = vmatmul.msk.bf16.gmra.mxu0 %vm2170_vm8, %v2115_v23  ;;  %v4068_v27 = vpop.permute.xlu1 %2944  ;;  %v2940_v28 = vpop.permute.xlu0 %2939 }
  0xcf   : > { %v2946_v29 = vunpack.i.l.bf16 %v4068_v27  ;;  %v2942_v30 = vunpack.i.h.bf16 %v2940_v28  ;;  %v2941_v31 = vunpack.i.l.bf16 %v2940_v28  ;;  %v4071_v32 = vpop.permute.xlu2 %2994  ;;  %v2947_v15 = vunpack.i.h.bf16 %v4068_v27 }
  0xd0   : > { %v2996_v7 = vunpack.i.l.bf16 %v4071_v32  ;;  %v2997_v12 = vunpack.i.h.bf16 %v4071_v32 }
  0xd1   : > { %493 = vst.msk [vmem:[#allocation2 + $0x2f] sm:$0x1] %vm5036_vm12, %v2946_v29 }
  0xd2   : > { %491 = vst.msk [vmem:[#allocation2 + $0x1f] sm:$0xfe] %vm5044_vm14, %v2941_v31  ;;  %vm5048_vm14 = vcmask 386368  }
  0xd3   : > { %492 = vst.msk [vmem:[#allocation2 + $0x27] sm:$0xff] %vm5045_vm7, %v2942_v30  ;;  %vm5049_vm7 = vmmov %vm5047_vm13 }
  0xd4   : > { %503 = vst.msk [vmem:[#allocation2 + $0x1e] sm:$0xfc] %vm257_vm11, %v2951_v33  ;;  %3169 = vrot.lane.b32.xlu1 %v3153_v11, %s3692_s22  ;;  %3164 = vrot.lane.b32.xlu0 %v3163_v34, %s3691_s21  ;;  %v1101_v11 = vunpack.c.h.bf16 %v4085_v37  ;;  %v2543_v33 = vld [vmem:[%s3730_s17 + $0x68] sm:$0x1] }
  0xd5   : > { %504 = vst.msk [vmem:[#allocation2 + $0x26] sm:$0xff] %vm5046_vm10, %v2952_v35  ;;  %3174 = vrot.lane.b32.xlu2 %v3163_v34, %s3692_s22  ;;  %vm5050_vm10 = vcmask 523712   ;;  %v2982_v34 = vunpack.i.h.bf16 %v4052_v16  ;;  %v1145_v40 = vunpack.c.l.bf16 %v2543_v33 }
  0xd6   : > { %v2960_v38 = vpop.permute.xlu1 %2959  ;;  %v4089_v39 = vpop.permute.xlu0 %2954  ;;  %v3228_v28 = vpack.i.bf16 %v1101_v11, %v1100_v43  ;;  %v3233_v30 = vpack.i.bf16 %v1112_v24, %v1101_v11 }
  0xd7   : > { %v2962_v41 = vunpack.i.h.bf16 %v2960_v38  ;;  %v2961_v18 = vunpack.i.l.bf16 %v2960_v38  ;;  %v2956_v42 = vunpack.i.l.bf16 %v4089_v39  ;;  %v4093_v44 = vpop.permute.xlu2 %3009  ;;  %v2957_v19 = vunpack.i.h.bf16 %v4089_v39 }
  0xd8   : > { %v3011_v29 = vunpack.i.l.bf16 %v4093_v44  ;;  %v3012_v32 = vunpack.i.h.bf16 %v4093_v44  ;;  %v4191_v44 = vld [vmem:[%s3730_s17 + $0x6c] sm:$0xff]  }
  0xd9   : > { %520 = vst.msk [vmem:[#allocation2 + $0x20] sm:$0xff] %vm5047_vm13, %v2961_v18  ;;  %vm5051_vm13 = vcmask 516544   ;;  %v2761_v18 = vld [vmem:[%s3730_s17 + $0x78] sm:$0xff]  }
  0xda   : > { %505 = vst.msk [vmem:[#allocation2 + $0x2e] sm:$0x3] %vm5048_vm14, %v2956_v42  ;;  %vm5052_vm14 = vcmask 130112   ;;  %v3248_v42 = vpack.i.bf16 %v1259_v63, %v1145_v40  ;;  %v2710_v43 = vunpack.c.l.bf16 %v2761_v18 }
  0xdb   : > { %521 = vst.msk [vmem:[#allocation2 + $0x28] sm:$0xff] %vm5049_vm7, %v2962_v41  ;;  %vm5053_vm7 = vcmask 122944  }
  0xdc   : > { %533 = vst.msk [vmem:[#allocation2 + $0x1f] sm:$0xfe] %vm291_vm4, %v2966_v45  ;;  %3184 = vrot.lane.b32.xlu1 %v4098_v46, %s3693_s23  ;;  %3179 = vrot.lane.b32.xlu0 %v4098_v46, %s3694_s24  ;;  %v4193_v45 = vunpack.c.h.bf16 %v2761_v18 }
  0xdd   : > { %534 = vst.msk [vmem:[#allocation2 + $0x27] sm:$0xff] %vm5050_vm10, %v2967_v47  ;;  %3189 = vrot.lane.b32.xlu2 %v3188_v48, %s3693_s23  ;;  %vm5054_vm10 = vmmov %vm5052_vm14 }
  0xde   : > { %v2975_v50 = vpop.permute.xlu1 %2974  ;;  %v4114_v51 = vpop.permute.xlu0 %2969  ;;  %1379 = vst.msk [vmem:[#allocation2 + $0xa0] sm:$0xff] %vm177_vm0, %v2710_v43  ;;  %v4239_v8 = vpack.i.bf16 %v4193_v45, %v2710_v43 }
  0xdf   : > { %v2977_v52 = vunpack.i.h.bf16 %v2975_v50  ;;  %v2976_v53 = vunpack.i.l.bf16 %v2975_v50  ;;  %v2971_v13 = vunpack.i.l.bf16 %v4114_v51  ;;  %v3025_v55 = vpop.permute.xlu2 %3024  ;;  %v2972_v31 = vunpack.i.h.bf16 %v4114_v51  ;;  %1380 = vst.msk [vmem:[#allocation2 + $0xa8] sm:$0xff] %vm177_vm0, %v4193_v45 }
  0xe0   : > { %v3026_v57 = vunpack.i.l.bf16 %v3025_v55  ;;  %v3027_v59 = vunpack.i.h.bf16 %v3025_v55 }
  0xe1   : > { %545 = vst.msk [vmem:[#allocation2 + $0x1e] sm:$0xfc] %vm306_vm3, %v2976_v53  ;;  %v1176_v53 = vunpack.c.l.bf16 %v4191_v44 }
  0xe2   : > { %546 = vst.msk [vmem:[#allocation2 + $0x26] sm:$0xff] %vm308_vm1, %v2977_v52 }
  0xe3   : > { %535 = vst.msk [vmem:[#allocation2 + $0x2f] sm:$0x1] %vm5051_vm13, %v2971_v13  ;;  %vm5055_vm13 = vcmask 326913  }
  0xe4   : > { %547 = vst.msk [vmem:[#allocation2 + $0x2e] sm:$0x3] %vm310_vm15, %v2981_v56  ;;  %3199 = vrot.lane.b32.xlu1 %v3188_v48, %s3695_s25  ;;  %3194 = vrot.lane.b32.xlu0 %v4098_v46, %s3695_s25  ;;  %v2546_v56 = vld [vmem:[%s3730_s17 + $0x74] sm:$0x1] }
  0xe5   : > { %686 = vst.msk [vmem:[#allocation2 + $0x3f] sm:$0xfe] %vm193_vm2, %v3026_v57  ;;  %3204 = vrot.lane.b32.xlu2 %v3203_v58, %s3689_s19  ;;  %v3263_v57 = vpack.i.bf16 %v1177_v49, %v1176_v53  ;;  %v1188_v63 = vunpack.c.l.bf16 %v2546_v56 }
  0xe6   : > { %v2990_v0 = vpop.permute.xlu1 %2989  ;;  %v2985_v1 = vpop.permute.xlu0 %2984  ;;  %687 = vst.msk [vmem:[#allocation2 + $0x47] sm:$0xff] %vm5052_vm14, %v3027_v59  ;;  %vm5056_vm14 = vcmask 326912  }
  0xe7   : > { %v2992_v26 = vunpack.i.h.bf16 %v2990_v0  ;;  %v2987_v2 = vunpack.i.h.bf16 %v2985_v1  ;;  %v2986_v3 = vunpack.i.l.bf16 %v2985_v1  ;;  %v4133_v5 = vpop.permute.xlu2 %3039  ;;  %v2991_v6 = vunpack.i.l.bf16 %v2990_v0 }
  0xe8   : > { %v3041_v55 = vunpack.i.l.bf16 %v4133_v5  ;;  %v1260_v0 = vunpack.c.h.bf16 %v4191_v44 }
  0xe9   : > { %570 = vst.msk [vmem:[#allocation2 + $0x3f] sm:$0x1] %vm5053_vm7, %v2987_v2  ;;  %v2086_v9 = vld [vmem:[#allocation2 + $0x20] sm:$0xff]  ;;  %vm5057_vm7 = vcmask 386368  }
  0xea   : > { %569 = vst.msk [vmem:[#allocation2 + $0x37] sm:$0xff] %vm5054_vm10, %v2986_v3  ;;  %vm5058_vm10 = vcmask 392512  }
  0xeb   : > { %582 = vst.msk [vmem:[#allocation2 + $0x3e] sm:$0x3] %vm212_vm9, %v2992_v26  ;;  %v2087_v14 = vld [vmem:[#allocation2 + $0x28] sm:$0xff] }
  0xec   : > { %581 = vst.msk [vmem:[#allocation2 + $0x36] sm:$0xff] %vm210_vm5, %v2991_v6  ;;  %3214 = vrot.lane.b32.xlu1 %v4098_v46, %s3690_s20  ;;  %3209 = vrot.lane.b32.xlu0 %v3203_v58, %s3688_s18  ;;  %v2116_v17 = vpack.c.bf16 %v2087_v14, %v2086_v9  ;;  %v3042_v58 = vunpack.i.h.bf16 %v4133_v5  ;;  %v3273_v6 = vpack.i.bf16 %v2710_v43, %v1188_v63 }
  0xed   : > { %596 = vst.msk [vmem:[#allocation2 + $0x30] sm:$0xff] %vm228_vm6, %v2996_v7  ;;  %3219 = vrot.lane.b32.xlu2 %v3218_v10, %s3691_s21 }
  0xee   : > { %609 = vst.msk [vmem:[#allocation2 + $0x2f] sm:$0xfe] %vm5055_vm13, %v2947_v15  ;;  %2631 = vmatmul.msk.bf16.gmra.mxu0 %vm2170_vm8, %v2116_v17  ;;  %v3005_v62 = vpop.permute.xlu1 %3004  ;;  %v3000_v20 = vpop.permute.xlu0 %2999  ;;  %vm5059_vm13 = vcmask 458112  }
  0xef   : > { %597 = vst.msk [vmem:[#allocation2 + $0x38] sm:$0xff] %vm228_vm6, %v2997_v12  ;;  %v3007_v21 = vunpack.i.h.bf16 %v3005_v62  ;;  %v3002_v22 = vunpack.i.h.bf16 %v3000_v20  ;;  %v3001_v23 = vunpack.i.l.bf16 %v3000_v20  ;;  %v4157_v25 = vpop.permute.xlu2 %3054  ;;  %v3006_v27 = vunpack.i.l.bf16 %v3005_v62  ;;  %v2549_v62 = vld [vmem:[%s3730_s17 + $0x80] sm:$0x1]  ;;  %v4245_v20 = vld [vmem:[%s3730_s17 + $0x84] sm:$0xff]  }
  0xf0   : > { %621 = vst.msk [vmem:[#allocation2 + $0x2e] sm:$0xfc] %vm257_vm11, %v2957_v19  ;;  %v3056_v7 = vunpack.i.l.bf16 %v4157_v25  ;;  %v1337_v53 = vunpack.c.h.bf16 %v4245_v20  ;;  %v3057_v56 = vunpack.i.h.bf16 %v4157_v25 }
  0xf1   : > { %610 = vst.msk [vmem:[#allocation2 + $0x37] sm:$0xff] %vm5056_vm14, %v3001_v23  ;;  %vm5060_vm14 = vmmov %vm5059_vm13 }
  0xf2   : > { %611 = vst.msk [vmem:[#allocation2 + $0x3f] sm:$0x1] %vm5036_vm12, %v3002_v22  ;;  %v1336_v22 = vunpack.c.l.bf16 %v4245_v20 }
  0xf3   : > { %623 = vst.msk [vmem:[#allocation2 + $0x3e] sm:$0x3] %vm5057_vm7, %v3007_v21  ;;  %vm5061_vm7 = vcmask 523712   ;;  %v1230_v21 = vunpack.c.l.bf16 %v2549_v62 }
  0xf4   : > { %622 = vst.msk [vmem:[#allocation2 + $0x36] sm:$0xff] %vm5058_vm10, %v3006_v27  ;;  %3229 = vrot.lane.b32.xlu1 %v3228_v28, %s3694_s24  ;;  %3224 = vrot.lane.b32.xlu0 %v3218_v10, %s3692_s22  ;;  %vm5062_vm10 = vcmask 516544  }
  0xf5   : > { %638 = vst.msk [vmem:[#allocation2 + $0x30] sm:$0xff] %vm5059_vm13, %v3011_v29  ;;  %3234 = vrot.lane.b32.xlu2 %v3233_v30, %s3693_s23  ;;  %vm5063_vm13 = vcmask 195714  }
  0xf6   : > { %651 = vst.msk [vmem:[#allocation2 + $0x2f] sm:$0xfe] %vm291_vm4, %v2972_v31  ;;  %v3020_v35 = vpop.permute.xlu1 %3019  ;;  %v3015_v36 = vpop.permute.xlu0 %3014 }
  0xf7   : > { %663 = vst.msk [vmem:[#allocation2 + $0x2e] sm:$0xfc] %vm306_vm3, %v2982_v34  ;;  %v3021_v37 = vunpack.i.l.bf16 %v3020_v35  ;;  %v3017_v38 = vunpack.i.h.bf16 %v3015_v36  ;;  %v3016_v39 = vunpack.i.l.bf16 %v3015_v36  ;;  %v4177_v41 = vpop.permute.xlu2 %3069  ;;  %v3022_v16 = vunpack.i.h.bf16 %v3020_v35  ;;  %v2552_v34 = vld [vmem:[%s3730_s17 + $0x74] sm:$0x1]  ;;  %v4273_v36 = vld [vmem:[%s3730_s17 + $0x84] sm:$0xff]  }
  0xf8   : > { %639 = vst.msk [vmem:[#allocation2 + $0x38] sm:$0xff] %vm5060_vm14, %v3012_v32  ;;  %vm5064_vm14 = vcmask 122944   ;;  %v3071_v11 = vunpack.i.l.bf16 %v4177_v41  ;;  %v3072_v19 = vunpack.i.h.bf16 %v4177_v41  ;;  %v3298_v32 = vpack.i.bf16 %v1336_v22, %v1230_v21 }
  0xf9   : > { %652 = vst.msk [vmem:[#allocation2 + $0x37] sm:$0xff] %vm5061_vm7, %v3016_v39  ;;  %vm5065_vm7 = vmmov %vm5063_vm13  ;;  %v1263_v35 = vunpack.c.l.bf16 %v2552_v34 }
  0xfa   : > { %653 = vst.msk [vmem:[#allocation2 + $0x3f] sm:$0x1] %vm5062_vm10, %v3017_v38  ;;  %vm5066_vm10 = vcmask 326913  }
  0xfb   : > { %664 = vst.msk [vmem:[#allocation2 + $0x36] sm:$0xff] %vm308_vm1, %v3021_v37  ;;  %v1495_v37 = vunpack.c.l.bf16 %v4273_v36  ;;  %v3318_v43 = vpack.i.bf16 %v1263_v35, %v1260_v0 }
  0xfc   : > { %665 = vst.msk [vmem:[#allocation2 + $0x3e] sm:$0x3] %vm310_vm15, %v3022_v16  ;;  %3244 = vrot.lane.b32.xlu1 %v4098_v46, %s3689_s19  ;;  %3239 = vrot.lane.b32.xlu0 %v3233_v30, %s3695_s25 }
  0xfd   : > { %3249 = vrot.lane.b32.xlu2 %v3248_v42, %s3689_s19  ;;  %1262 = vst.msk [vmem:[#allocation2 + $0x98] sm:$0xff] %vm177_vm0, %v1260_v0 }
  0xfe   : > { %v3035_v47 = vpop.permute.xlu1 %3034  ;;  %v3030_v48 = vpop.permute.xlu0 %3029  ;;  %1497 = vst.msk [vmem:[#allocation2 + $0xb0] sm:$0xff] %vm177_vm0, %v1495_v37 }
  0xff   : > { %v3037_v50 = vunpack.i.h.bf16 %v3035_v47  ;;  %v3036_v51 = vunpack.i.l.bf16 %v3035_v47  ;;  %v3032_v52 = vunpack.i.h.bf16 %v3030_v48  ;;  %v4201_v13 = vpop.permute.xlu2 %3084  ;;  %v3031_v54 = vunpack.i.l.bf16 %v3030_v48  ;;  %v2555_v48 = vld [vmem:[%s3730_s17 + $0x80] sm:$0x1] }
 0x100   : > { %v3086_v31 = vunpack.i.l.bf16 %v4201_v13  ;;  %v3087_v33 = vunpack.i.h.bf16 %v4201_v13  ;;  %v1306_v49 = vunpack.c.l.bf16 %v2555_v48 }
 0x101   : > { %698 = vst.msk [vmem:[#allocation2 + $0x3e] sm:$0xfc] %vm5063_vm13, %v3036_v51  ;;  %vm5067_vm13 = vcmask 326912  }
 0x102   : > { %699 = vst.msk [vmem:[#allocation2 + $0x46] sm:$0xff] %vm210_vm5, %v3037_v50  ;;  %v2088_v59 = vld [vmem:[#allocation2 + $0x30] sm:$0xff] }
 0x103   : > { %804 = vst.msk [vmem:[#allocation2 + $0x4f] sm:$0xfe] %vm193_vm2, %v3032_v52  ;;  %v2089_v60 = vld [vmem:[#allocation2 + $0x38] sm:$0xff] }
 0x104   : > { %688 = vst.msk [vmem:[#allocation2 + $0x4f] sm:$0x1] %vm5064_vm14, %v3031_v54  ;;  %3259 = vrot.lane.b32.xlu1 %v3248_v42, %s3688_s18  ;;  %3254 = vrot.lane.b32.xlu0 %v4098_v46, %s3688_s18  ;;  %v2117_v61 = vpack.c.bf16 %v2089_v60, %v2088_v59  ;;  %vm5068_vm14 = vcmask 386368   ;;  %v3338_v59 = vpack.i.bf16 %v1337_v53, %v1336_v22 }
 0x105   : > { %700 = vst.msk [vmem:[#allocation2 + $0x4e] sm:$0x3] %vm212_vm9, %v3041_v55  ;;  %3264 = vrot.lane.b32.xlu2 %v3263_v57, %s3690_s20  ;;  %v3333_v55 = vpack.i.bf16 %v1306_v49, %v4193_v45 }
 0x106   : > { %816 = vst.msk [vmem:[#allocation2 + $0x4e] sm:$0xfc] %vm5065_vm7, %v3042_v58  ;;  %2632 = vmatmul.msk.bf16.gmra.mxu0 %vm2170_vm8, %v2117_v61  ;;  %v3050_v1 = vpop.permute.xlu1 %3049  ;;  %v3045_v26 = vpop.permute.xlu0 %3044  ;;  %vm5069_vm7 = vcmask 392512   ;;  %v2558_v58 = vld [vmem:[%s3730_s17 + $0x8c] sm:$0x1] }
 0x107   : > { %v3051_v2 = vunpack.i.l.bf16 %v3050_v1  ;;  %v3047_v3 = vunpack.i.h.bf16 %v3045_v26  ;;  %v3046_v4 = vunpack.i.l.bf16 %v3045_v26  ;;  %v4218_v5 = vpop.permute.xlu2 %3099  ;;  %v3052_v46 = vunpack.i.h.bf16 %v3050_v1 }
 0x108   : > { %v3101_v42 = vunpack.i.l.bf16 %v4218_v5  ;;  %v3102_v47 = vunpack.i.h.bf16 %v4218_v5  ;;  %v1348_v45 = vunpack.c.l.bf16 %v2558_v58  ;;  %v4323_v5 = vld [vmem:[%s5024_s2] ss:$0 sm:$0xff] }
 0x109   : > { %714 = vst.msk [vmem:[#allocation2 + $0x40] sm:$0xff] %vm228_vm6, %v3046_v4 }
 0x10a   : > { %715 = vst.msk [vmem:[#allocation2 + $0x48] sm:$0xff] %vm228_vm6, %v3047_v3 }
 0x10b   : > { %727 = vst.msk [vmem:[#allocation2 + $0x3f] sm:$0xfe] %vm5066_vm10, %v3051_v2  ;;  %vm5070_vm10 = vcmask 458112  }
 0x10c   : > { %728 = vst.msk [vmem:[#allocation2 + $0x47] sm:$0xff] %vm5067_vm13, %v3052_v46  ;;  %3274 = vrot.lane.b32.xlu1 %v3273_v6, %s3691_s21  ;;  %3269 = vrot.lane.b32.xlu0 %v3263_v57, %s3691_s21  ;;  %vm5071_vm13 = vmmov %vm5070_vm10 }
 0x10d   : > { %729 = vst.msk [vmem:[#allocation2 + $0x4f] sm:$0x1] %vm5036_vm12, %v3056_v7  ;;  %3279 = vrot.lane.b32.xlu2 %v3263_v57, %s3692_s22  ;;  %v3348_v7 = vpack.i.bf16 %v1348_v45, %v1337_v53 }
 0x10e   : > { %v4232_v9 = vpop.permute.xlu1 %3064  ;;  %v3060_v10 = vpop.permute.xlu0 %3059 }
 0x10f   : > { %v3066_v12 = vunpack.i.l.bf16 %v4232_v9  ;;  %v3062_v14 = vunpack.i.h.bf16 %v3060_v10  ;;  %v3061_v15 = vunpack.i.l.bf16 %v3060_v10  ;;  %v4235_v17 = vpop.permute.xlu2 %3114  ;;  %v3067_v1 = vunpack.i.h.bf16 %v4232_v9  ;;  %v2561_v10 = vld [vmem:[%s3730_s17 + $0x80] sm:$0x1] }
 0x110   : > { %v3116_v63 = vunpack.i.l.bf16 %v4235_v17  ;;  %v3117_v25 = vunpack.i.h.bf16 %v4235_v17  ;;  %v1381_v62 = vunpack.c.l.bf16 %v2561_v10 }
 0x111   : > { %741 = vst.msk [vmem:[#allocation2 + $0x4e] sm:$0x3] %vm5068_vm14, %v3066_v12  ;;  %vm5072_vm14 = vcmask 516544  }
 0x112   : > { %739 = vst.msk [vmem:[#allocation2 + $0x3e] sm:$0xfc] %vm257_vm11, %v3061_v15 }
 0x113   : > { %740 = vst.msk [vmem:[#allocation2 + $0x46] sm:$0xff] %vm5069_vm7, %v3062_v14  ;;  %vm5073_vm7 = vcmask 523712  }
 0x114   : > { %756 = vst.msk [vmem:[#allocation2 + $0x40] sm:$0xff] %vm5070_vm10, %v3071_v11  ;;  %3289 = vrot.lane.b32.xlu1 %v4239_v8, %s3694_s24  ;;  %3284 = vrot.lane.b32.xlu0 %v3273_v6, %s3692_s22  ;;  %vm5074_vm10 = vcmask 122944  }
 0x115   : > { %757 = vst.msk [vmem:[#allocation2 + $0x48] sm:$0xff] %vm5071_vm13, %v3072_v19  ;;  %3294 = vrot.lane.b32.xlu2 %v4239_v8, %s3693_s23  ;;  %vm5075_vm13 = vcmask 130112  }
 0x116   : > { %v4257_v23 = vpop.permute.xlu1 %3079  ;;  %v3075_v24 = vpop.permute.xlu0 %3074 }
 0x117   : > { %v3081_v27 = vunpack.i.l.bf16 %v4257_v23  ;;  %v3077_v28 = vunpack.i.h.bf16 %v3075_v24  ;;  %v3076_v29 = vunpack.i.l.bf16 %v3075_v24  ;;  %v4260_v30 = vpop.permute.xlu2 %3129  ;;  %v3082_v9 = vunpack.i.h.bf16 %v4257_v23 }
 0x118   : > { %v3131_v17 = vunpack.i.l.bf16 %v4260_v30  ;;  %v3132_v19 = vunpack.i.h.bf16 %v4260_v30  ;;  %v3358_v30 = vpack.i.bf16 %v1495_v37, %v1381_v62 }
 0x119   : > { %771 = vst.msk [vmem:[#allocation2 + $0x4f] sm:$0x1] %vm5072_vm14, %v3081_v27  ;;  %vm5076_vm14 = vcmask 326913  }
 0x11a   : > { %769 = vst.msk [vmem:[#allocation2 + $0x3f] sm:$0xfe] %vm291_vm4, %v3076_v29 }
 0x11b   : > { %770 = vst.msk [vmem:[#allocation2 + $0x47] sm:$0xff] %vm5073_vm7, %v3077_v28  ;;  %vm5077_vm7 = vcmask 326912  }
 0x11c   : > { %781 = vst.msk [vmem:[#allocation2 + $0x3e] sm:$0xfc] %vm306_vm3, %v3086_v31  ;;  %3304 = vrot.lane.b32.xlu1 %v4239_v8, %s3695_s25  ;;  %3299 = vrot.lane.b32.xlu0 %v3298_v32, %s3693_s23 }
 0x11d   : > { %782 = vst.msk [vmem:[#allocation2 + $0x46] sm:$0xff] %vm308_vm1, %v3087_v33  ;;  %3309 = vrot.lane.b32.xlu2 %v3298_v32, %s3695_s25  ;;  %v4359_v32 = vld [vmem:[%s3730_s17 + $0x84] sm:$0xff]  }
 0x11e   : > { %v3095_v38 = vpop.permute.xlu1 %3094  ;;  %v4278_v39 = vpop.permute.xlu0 %3089  ;;  %v1412_v37 = vunpack.c.l.bf16 %v4359_v32 }
 0x11f   : > { %v3097_v40 = vunpack.i.h.bf16 %v3095_v38  ;;  %v3096_v41 = vunpack.i.l.bf16 %v3095_v38  ;;  %v3091_v16 = vunpack.i.l.bf16 %v4278_v39  ;;  %v4281_v18 = vpop.permute.xlu2 %3144  ;;  %v3092_v15 = vunpack.i.h.bf16 %v4278_v39  ;;  %v2564_v39 = vld [vmem:[%s3730_s17 + $0x8c] sm:$0x1] }
 0x120   : > { %v3146_v33 = vunpack.i.l.bf16 %v4281_v18  ;;  %v3147_v35 = vunpack.i.h.bf16 %v4281_v18 }
 0x121   : > { %806 = vst.msk [vmem:[#allocation2 + $0x5f] sm:$0x1] %vm5074_vm10, %v3097_v40  ;;  %vm5078_vm10 = vcmask 392512   ;;  %v1413_v40 = vunpack.c.h.bf16 %v4273_v36 }
 0x122   : > { %805 = vst.msk [vmem:[#allocation2 + $0x57] sm:$0xff] %vm5075_vm13, %v3096_v41  ;;  %vm5079_vm13 = vcmask 386368   ;;  %v2764_v41 = vld [vmem:[%s3730_s17 + $0x90] sm:$0xff]  }
 0x123   : > { %783 = vst.msk [vmem:[#allocation2 + $0x4e] sm:$0x3] %vm310_vm15, %v3091_v16 }
 0x124   : > { %817 = vst.msk [vmem:[#allocation2 + $0x56] sm:$0xff] %vm210_vm5, %v3101_v42  ;;  %3319 = vrot.lane.b32.xlu1 %v3318_v43, %s3688_s18  ;;  %3314 = vrot.lane.b32.xlu0 %v3318_v43, %s3689_s19  ;;  %v2090_v60 = vld [vmem:[#allocation2 + $0x40] sm:$0xff] }
 0x125   : > { %818 = vst.msk [vmem:[#allocation2 + $0x5e] sm:$0x3] %vm212_vm9, %v3102_v47  ;;  %3324 = vrot.lane.b32.xlu2 %v4239_v8, %s3690_s20  ;;  %v1424_v47 = vunpack.c.l.bf16 %v2564_v39 }
 0x126   : > { %v3110_v44 = vpop.permute.xlu1 %3109  ;;  %v3105_v50 = vpop.permute.xlu0 %3104 }
 0x127   : > { %v3107_v51 = vunpack.i.h.bf16 %v3105_v50  ;;  %v3106_v52 = vunpack.i.l.bf16 %v3105_v50  ;;  %v4301_v13 = vpop.permute.xlu2 %3159  ;;  %v3112_v54 = vunpack.i.h.bf16 %v3110_v44  ;;  %v3111_v57 = vunpack.i.l.bf16 %v3110_v44 }
 0x128   : > { %v2722_v50 = vunpack.c.l.bf16 %v2764_v41 }
 0x129   : > { %832 = vst.msk [vmem:[#allocation2 + $0x50] sm:$0xff] %vm228_vm6, %v3106_v52 }
 0x12a   : > { %833 = vst.msk [vmem:[#allocation2 + $0x58] sm:$0xff] %vm228_vm6, %v3107_v51  ;;  %v2091_v61 = vld [vmem:[#allocation2 + $0x48] sm:$0xff]  ;;  %v3393_v58 = vpack.i.bf16 %v2722_v50, %v1424_v47 }
 0x12b   : > { %845 = vst.msk [vmem:[#allocation2 + $0x4f] sm:$0xfe] %vm5076_vm14, %v3057_v56  ;;  %v2118_v0 = vpack.c.bf16 %v2091_v61, %v2090_v60  ;;  %vm5080_vm14 = vcmask 458112   ;;  %v3161_v56 = vunpack.i.l.bf16 %v4301_v13 }
 0x12c   : > { %847 = vst.msk [vmem:[#allocation2 + $0x5f] sm:$0x1] %vm5036_vm12, %v3112_v54  ;;  %3334 = vrot.lane.b32.xlu1 %v3333_v55, %s3692_s22  ;;  %3329 = vrot.lane.b32.xlu0 %v3333_v55, %s3691_s21  ;;  %v3378_v54 = vpack.i.bf16 %v1413_v40, %v1412_v37 }
 0x12d   : > { %846 = vst.msk [vmem:[#allocation2 + $0x57] sm:$0xff] %vm5077_vm7, %v3111_v57  ;;  %2633 = vmatmul.msk.bf16.vlgmr.msra.gmra.mxu1 %vm2170_vm8, %v2118_v0  ;;  %3339 = vrot.lane.b32.xlu2 %v3338_v59, %s3694_s24  ;;  %vm5081_vm7 = vmmov %vm5080_vm14  ;;  %v3162_v57 = vunpack.i.h.bf16 %v4301_v13 }
 0x12e   : > { %857 = vst.msk [vmem:[#allocation2 + $0x4e] sm:$0xfc] %vm257_vm11, %v3067_v1  ;;  %v3125_v26 = vpop.permute.xlu1 %3124  ;;  %v3120_v2 = vpop.permute.xlu0 %3119  ;;  %v4399_v1 = vunpack.c.h.bf16 %v2764_v41 }
 0x12f   : > { %858 = vst.msk [vmem:[#allocation2 + $0x56] sm:$0xff] %vm5078_vm10, %v3116_v63  ;;  %v3122_v3 = vunpack.i.h.bf16 %v3120_v2  ;;  %v3121_v4 = vunpack.i.l.bf16 %v3120_v2  ;;  %v4325_v46 = vpop.permute.xlu2 %3174  ;;  %v3127_v6 = vunpack.i.h.bf16 %v3125_v26  ;;  %v3126_v12 = vunpack.i.l.bf16 %v3125_v26  ;;  %v2567_v26 = vld [vmem:[%s3730_s17 + $0x98] sm:$0x1]  ;;  %v4408_v2 = vld [vmem:[%s3730_s17 + $0x9c] sm:$0xff]  }
 0x130   : > { %859 = vst.msk [vmem:[#allocation2 + $0x5e] sm:$0x3] %vm5079_vm13, %v3117_v25  ;;  %vm5082_vm10 = vcmask 516544   ;;  %vm5083_vm13 = vcmask 523712   ;;  %v3176_v45 = vunpack.i.l.bf16 %v4325_v46  ;;  %v1572_v10 = vunpack.c.l.bf16 %v4408_v2 }
 0x131   : > { %874 = vst.msk [vmem:[#allocation2 + $0x50] sm:$0xff] %vm5080_vm14, %v3121_v4  ;;  %vm2376_vm14 = vcmask 60416  }
 0x132   : > { %875 = vst.msk [vmem:[#allocation2 + $0x58] sm:$0xff] %vm5081_vm7, %v3122_v3  ;;  %v2232_v14 = vpop.f32.mrf.mxu0  ;;  %vm5084_vm7 = vcmask 122944  }
 0x133   : > { %887 = vst.msk [vmem:[#allocation2 + $0x4f] sm:$0xfe] %vm291_vm4, %v3082_v9  ;;  %v2233_v11 = vadd.f32 %v4323_v5, %v2232_v14  ;;  %v1466_v9 = vunpack.c.l.bf16 %v2567_v26 }
 0x134   : > { %889 = vst.msk [vmem:[#allocation2 + $0x5f] sm:$0x1] %vm5082_vm10, %v3127_v6  ;;  %3349 = vrot.lane.b32.xlu1 %v3348_v7, %s3695_s25  ;;  %3344 = vrot.lane.b32.xlu0 %v3348_v7, %s3693_s23  ;;  %vm5085_vm10 = vcmask 130112   ;;  %v4413_v6 = vpack.i.bf16 %v4399_v1, %v2722_v50 }
 0x135   : > { %899 = vst.msk [vmem:[#allocation2 + $0x4e] sm:$0xfc] %vm306_vm3, %v3092_v15  ;;  %v2312_v20 = vmax.f32 %v2233_v11, 0.0  ;;  %3354 = vrot.lane.b32.xlu2 %v4239_v8, %s3689_s19 }
 0x136   : > { %888 = vst.msk [vmem:[#allocation2 + $0x57] sm:$0xff] %vm5083_vm13, %v3126_v12  ;;  %v3140_v21 = vpop.permute.xlu1 %3139  ;;  %v3135_v22 = vpop.permute.xlu0 %3134  ;;  %vm5086_vm13 = vcmask 195714  }
 0x137   : > { %900 = vst.msk [vmem:[#allocation2 + $0x56] sm:$0xff] %vm308_vm1, %v3131_v17  ;;  %v2344_v23 = vpack.c.bf16 %v2312_v20, %v2312_v20  ;;  %v3142_v24 = vunpack.i.h.bf16 %v3140_v21  ;;  %v3141_v27 = vunpack.i.l.bf16 %v3140_v21  ;;  %v4351_v28 = vpop.permute.xlu2 %3189  ;;  %v3137_v29 = vunpack.i.h.bf16 %v3135_v22 }
 0x138   : > { %901 = vst.msk [vmem:[#allocation2 + $0x5e] sm:$0x3] %vm310_vm15, %v3132_v19  ;;  %v3136_v31 = vunpack.i.l.bf16 %v3135_v22  ;;  %v3408_v21 = vpack.i.bf16 %v1572_v10, %v1466_v9  ;;  %v2579_v9 = vld [vmem:[%s3730_s17 + $0x98] sm:$0x1] }
 0x139   : > { %2377 = vst.msk [vmem:[%s4348_s15] sm:$0xf] %vm2376_vm14, %v2344_v23  ;;  %v2570_v23 = vld [vmem:[%s3730_s17 + $0x8c] sm:$0x1] }
 0x13a   : > { %1040 = vst.msk [vmem:[#allocation2 + $0x6f] sm:$0xfe] %vm193_vm2, %v3142_v24  ;;  %v2234_v34 = vpop.f32.mrf.mxu0  ;;  %v3191_v24 = vunpack.i.l.bf16 %v4351_v28 }
 0x13b   : > { %924 = vst.msk [vmem:[#allocation2 + $0x6f] sm:$0x1] %vm5084_vm7, %v3141_v27  ;;  %v2235_v38 = vadd.f32 %v4323_v5, %v2234_v34  ;;  %vm5087_vm7 = vmmov %vm5086_vm13 }
 0x13c   : > { %923 = vst.msk [vmem:[#allocation2 + $0x67] sm:$0xff] %vm5085_vm10, %v3137_v29  ;;  %3364 = vrot.lane.b32.xlu1 %v4239_v8, %s3688_s18  ;;  %3359 = vrot.lane.b32.xlu0 %v3358_v30, %s3689_s19  ;;  %v1496_v8 = vunpack.c.h.bf16 %v4359_v32  ;;  %vm5088_vm10 = vcmask 326913  }
 0x13d   : > { %922 = vst.msk [vmem:[#allocation2 + $0x5f] sm:$0xfe] %vm193_vm2, %v3136_v31  ;;  %v2313_v16 = vmax.f32 %v2235_v38, 0.0  ;;  %3369 = vrot.lane.b32.xlu2 %v3358_v30, %s3688_s18  ;;  %v1499_v30 = vunpack.c.l.bf16 %v2570_v23  ;;  %v4442_v31 = vld [vmem:[%s3730_s17 + $0x9c] sm:$0xff]  }
 0x13e   : > { %934 = vst.msk [vmem:[#allocation2 + $0x5e] sm:$0xfc] %vm5086_vm13, %v3146_v33  ;;  %v2092_v18 = vld [vmem:[#allocation2 + $0x50] sm:$0xff]  ;;  %v3155_v42 = vpop.permute.xlu1 %3154  ;;  %v3150_v43 = vpop.permute.xlu0 %3149  ;;  %vm5089_vm13 = vcmask 326912   ;;  %v1731_v33 = vunpack.c.l.bf16 %v4442_v31 }
 0x13f   : > { %935 = vst.msk [vmem:[#allocation2 + $0x66] sm:$0xff] %vm210_vm5, %v3147_v35  ;;  %v2345_v48 = vpack.c.bf16 %v2313_v16, %v2313_v16  ;;  %v2093_v49 = vld [vmem:[#allocation2 + $0x58] sm:$0xff]  ;;  %v3156_v36 = vunpack.i.l.bf16 %v3155_v42  ;;  %v3152_v44 = vunpack.i.h.bf16 %v3150_v43  ;;  %v3205_v51 = vpop.permute.xlu2 %3204  ;;  %v3151_v53 = vunpack.i.l.bf16 %v3150_v43 }
 0x140   : > { %v2119_v52 = vpack.c.bf16 %v2093_v49, %v2092_v18  ;;  %1498 = vst.msk [vmem:[#allocation2 + $0xb8] sm:$0xff] %vm177_vm0, %v1496_v8  ;;  %v3157_v55 = vunpack.i.h.bf16 %v3155_v42  ;;  %v3207_v59 = vunpack.i.h.bf16 %v3205_v51  ;;  %v3206_v3 = vunpack.i.l.bf16 %v3205_v51  ;;  %v2573_v42 = vld [vmem:[%s3730_s17 + $0x98] sm:$0x1] }
 0x141   : > { %2378 = vst.msk [vmem:[%s4348_s15 + $0x4] sm:$0xf] %vm2376_vm14, %v2345_v48  ;;  %v3423_v18 = vpack.i.bf16 %v1499_v30, %v1496_v8  ;;  %v1542_v48 = vunpack.c.l.bf16 %v2573_v42  ;;  %v2767_v30 = vld [vmem:[%s3730_s17 + $0xa8] sm:$0xff]  }
 0x142   : > { %2634 = vmatmul.msk.bf16.gmra.mxu1 %vm2170_vm8, %v2119_v52  ;;  %950 = vst.msk [vmem:[#allocation2 + $0x60] sm:$0xff] %vm228_vm6, %v3156_v36 }
 0x143   : > { %1052 = vst.msk [vmem:[#allocation2 + $0x6e] sm:$0xfc] %vm5087_vm7, %v3152_v44  ;;  %vm5090_vm7 = vcmask 122944   ;;  %v3438_v52 = vpack.i.bf16 %v1542_v48, %v4399_v1 }
 0x144   : > { %936 = vst.msk [vmem:[#allocation2 + $0x6e] sm:$0x3] %vm212_vm9, %v3151_v53  ;;  %3379 = vrot.lane.b32.xlu1 %v3378_v54, %s3691_s21  ;;  %3374 = vrot.lane.b32.xlu0 %v3378_v54, %s3690_s20 }
 0x145   : > { %951 = vst.msk [vmem:[#allocation2 + $0x68] sm:$0xff] %vm228_vm6, %v3157_v55  ;;  %3384 = vrot.lane.b32.xlu2 %v3393_v58, %s3691_s21 }
 0x146   : > { %963 = vst.msk [vmem:[#allocation2 + $0x5f] sm:$0xfe] %vm5088_vm10, %v3161_v56  ;;  %v3170_v60 = vpop.permute.xlu1 %3169  ;;  %v4395_v61 = vpop.permute.xlu0 %3164  ;;  %vm5091_vm10 = vcmask 392512  }
 0x147   : > { %964 = vst.msk [vmem:[#allocation2 + $0x67] sm:$0xff] %vm5089_vm13, %v3162_v57  ;;  %v3172_v13 = vunpack.i.h.bf16 %v3170_v60  ;;  %v3171_v63 = vunpack.i.l.bf16 %v3170_v60  ;;  %v3166_v0 = vunpack.i.l.bf16 %v4395_v61  ;;  %v4401_v25 = vpop.permute.xlu2 %3219  ;;  %vm5092_vm13 = vcmask 386368  }
 0x148   : > { %1042 = vst.msk [vmem:[#allocation2 + $0x7f] sm:$0x1] %vm5090_vm7, %v3207_v59  ;;  %vm5093_vm7 = vcmask 130112   ;;  %v3221_v53 = vunpack.i.l.bf16 %v4401_v25  ;;  %v3222_v55 = vunpack.i.h.bf16 %v4401_v25  ;;  %v1573_v59 = vunpack.c.h.bf16 %v4408_v2 }
 0x149   : > { %975 = vst.msk [vmem:[#allocation2 + $0x5e] sm:$0xfc] %vm257_vm11, %v3171_v63  ;;  %v3177_v63 = vunpack.i.h.bf16 %v4325_v46  ;;  %v1617_v2 = vunpack.c.l.bf16 %v2579_v9 }
 0x14a   : > { %976 = vst.msk [vmem:[#allocation2 + $0x66] sm:$0xff] %vm5091_vm10, %v3172_v13  ;;  %vm5094_vm10 = vcmask 458112   ;;  %v3167_v13 = vunpack.i.h.bf16 %v4395_v61  ;;  %v3448_v46 = vpack.i.bf16 %v1573_v59, %v1572_v10  ;;  %v3192_v10 = vunpack.i.h.bf16 %v4351_v28 }
 0x14b   : > { %965 = vst.msk [vmem:[#allocation2 + $0x6f] sm:$0x1] %vm5036_vm12, %v3166_v0  ;;  %v2237_v4 = vpop.f32.mrf.mxu0 }
 0x14c   : > { %977 = vst.msk [vmem:[#allocation2 + $0x6e] sm:$0x3] %vm5092_vm13, %v3176_v45  ;;  %v2238_v7 = vadd.f32 %v4323_v5, %v2237_v4  ;;  %3394 = vrot.lane.b32.xlu1 %v3393_v58, %s3692_s22  ;;  %3389 = vrot.lane.b32.xlu0 %v3378_v54, %s3692_s22  ;;  %vm5095_vm13 = vmmov %vm5094_vm10  ;;  %v2576_v54 = vld [vmem:[%s3730_s17 + $0xa4] sm:$0x1] }
 0x14d   : > { %1041 = vst.msk [vmem:[#allocation2 + $0x77] sm:$0xff] %vm5093_vm7, %v3206_v3  ;;  %3399 = vrot.lane.b32.xlu2 %v4413_v6, %s3694_s24  ;;  %vm5096_vm7 = vcmask 523712   ;;  %v1584_v60 = vunpack.c.l.bf16 %v2576_v54 }
 0x14e   : > { %v2314_v12 = vmax.f32 %v2238_v7, 0.0  ;;  %v3185_v14 = vpop.permute.xlu1 %3184  ;;  %v3180_v15 = vpop.permute.xlu0 %3179  ;;  %1615 = vst.msk [vmem:[#allocation2 + $0xc0] sm:$0xff] %vm177_vm0, %v2722_v50 }
 0x14f   : > { %v3182_v17 = vunpack.i.h.bf16 %v3180_v15  ;;  %v3181_v11 = vunpack.i.l.bf16 %v3180_v15  ;;  %v4424_v19 = vpop.permute.xlu2 %3234  ;;  %1616 = vst.msk [vmem:[#allocation2 + $0xc8] sm:$0xff] %vm177_vm0, %v4399_v1  ;;  %v3186_v20 = vunpack.i.l.bf16 %v3185_v14  ;;  %v3187_v22 = vunpack.i.h.bf16 %v3185_v14 }
 0x150   : > { %v2346_v62 = vpack.c.bf16 %v2314_v12, %v2314_v12  ;;  %1733 = vst.msk [vmem:[#allocation2 + $0xd0] sm:$0xff] %vm177_vm0, %v1731_v33  ;;  %v3453_v4 = vpack.i.bf16 %v1584_v60, %v1573_v59  ;;  %v3236_v7 = vunpack.i.l.bf16 %v4424_v19  ;;  %v3237_v12 = vunpack.i.h.bf16 %v4424_v19 }
 0x151   : > { %992 = vst.msk [vmem:[#allocation2 + $0x60] sm:$0xff] %vm5094_vm10, %v3181_v11  ;;  %vm5097_vm10 = vcmask 516544  }
 0x152   : > { %2379 = vst.msk [vmem:[%s4348_s15 + $0x8] sm:$0xf] %vm2376_vm14, %v2346_v62 }
 0x153   : > { %993 = vst.msk [vmem:[#allocation2 + $0x68] sm:$0xff] %vm5095_vm13, %v3182_v17  ;;  %v2239_v27 = vpop.f32.mrf.mxu0  ;;  %vm5098_vm13 = vcmask 122944  }
 0x154   : > { %1005 = vst.msk [vmem:[#allocation2 + $0x5f] sm:$0xfe] %vm291_vm4, %v3186_v20  ;;  %v2240_v29 = vadd.f32 %v4323_v5, %v2239_v27  ;;  %3409 = vrot.lane.b32.xlu1 %v3408_v21, %s3693_s23  ;;  %3404 = vrot.lane.b32.xlu0 %v4413_v6, %s3693_s23 }
 0x155   : > { %1006 = vst.msk [vmem:[#allocation2 + $0x67] sm:$0xff] %vm5096_vm7, %v3187_v22  ;;  %3414 = vrot.lane.b32.xlu2 %v4413_v6, %s3695_s25  ;;  %vm5099_vm7 = vcmask 326912  }
 0x156   : > { %1007 = vst.msk [vmem:[#allocation2 + $0x6f] sm:$0x1] %vm5097_vm10, %v3191_v24  ;;  %v2315_v34 = vmax.f32 %v2240_v29, 0.0  ;;  %v4449_v35 = vpop.permute.xlu1 %3199  ;;  %v3195_v38 = vpop.permute.xlu0 %3194  ;;  %vm5100_vm10 = vcmask 326913   ;;  %v3468_v24 = vpack.i.bf16 %v1731_v33, %v1617_v2  ;;  %v4517_v29 = vld [vmem:[%s3730_s17 + $0x9c] sm:$0xff]  }
 0x157   : > { %v3201_v39 = vunpack.i.l.bf16 %v4449_v35  ;;  %v3196_v37 = vunpack.i.l.bf16 %v3195_v38  ;;  %v3250_v40 = vpop.permute.xlu2 %3249  ;;  %v3197_v16 = vunpack.i.h.bf16 %v3195_v38  ;;  %v3202_v17 = vunpack.i.h.bf16 %v4449_v35 }
 0x158   : > { %v2347_v41 = vpack.c.bf16 %v2315_v34, %v2315_v34  ;;  %v3252_v43 = vunpack.i.h.bf16 %v3250_v40  ;;  %v3251_v47 = vunpack.i.l.bf16 %v3250_v40  ;;  %v1648_v33 = vunpack.c.l.bf16 %v4517_v29 }
 0x159   : > { %1019 = vst.msk [vmem:[#allocation2 + $0x6e] sm:$0x3] %vm310_vm15, %v3201_v39  ;;  %v1649_v38 = vunpack.c.h.bf16 %v4442_v31  ;;  %v4530_v39 = vunpack.c.l.bf16 %v2767_v30 }
 0x15a   : > { %2380 = vst.msk [vmem:[%s4348_s15 + $0xc] sm:$0xf] %vm2376_vm14, %v2347_v41 }
 0x15b   : > { %1017 = vst.msk [vmem:[#allocation2 + $0x5e] sm:$0xfc] %vm306_vm3, %v3196_v37  ;;  %v4533_v37 = vunpack.c.h.bf16 %v2767_v30  ;;  %v3483_v48 = vpack.i.bf16 %v1649_v38, %v1648_v33 }
 0x15c   : > { %1018 = vst.msk [vmem:[#allocation2 + $0x66] sm:$0xff] %vm308_vm1, %v3197_v16  ;;  %3424 = vrot.lane.b32.xlu1 %v3423_v18, %s3689_s19  ;;  %3419 = vrot.lane.b32.xlu0 %v3408_v21, %s3695_s25 }
 0x15d   : > { %1276 = vst.msk [vmem:[#allocation2 + $0x8f] sm:$0xfe] %vm193_vm2, %v3252_v43  ;;  %3429 = vrot.lane.b32.xlu2 %v3423_v18, %s3688_s18 }
 0x15e   : > { %v3215_v32 = vpop.permute.xlu1 %3214  ;;  %v3210_v8 = vpop.permute.xlu0 %3209  ;;  %1160 = vst.msk [vmem:[#allocation2 + $0x8f] sm:$0x1] %vm5098_vm13, %v3251_v47  ;;  %vm5101_vm13 = vcmask 392512  }
 0x15f   : > { %v3216_v49 = vunpack.i.l.bf16 %v3215_v32  ;;  %v3212_v36 = vunpack.i.h.bf16 %v3210_v8  ;;  %v3211_v44 = vunpack.i.l.bf16 %v3210_v8  ;;  %v4468_v50 = vpop.permute.xlu2 %3264  ;;  %v3217_v51 = vunpack.i.h.bf16 %v3215_v32  ;;  %1851 = vst.msk [vmem:[#allocation2 + $0xe0] sm:$0xff] %vm177_vm0, %v4530_v39 }
 0x160   : > { %1852 = vst.msk [vmem:[#allocation2 + $0xe8] sm:$0xff] %vm177_vm0, %v4533_v37  ;;  %v3266_v8 = vunpack.i.l.bf16 %v4468_v50 }
 0x161   : > { %1054 = vst.msk [vmem:[#allocation2 + $0x7e] sm:$0x3] %vm212_vm9, %v3212_v36 }
 0x162   : > { %1053 = vst.msk [vmem:[#allocation2 + $0x76] sm:$0xff] %vm210_vm5, %v3211_v44 }
 0x163   : > { %1068 = vst.msk [vmem:[#allocation2 + $0x70] sm:$0xff] %vm228_vm6, %v3216_v49  ;;  %v2094_v56 = vld [vmem:[#allocation2 + $0x60] sm:$0xff]  ;;  %v2095_v57 = vld [vmem:[#allocation2 + $0x68] sm:$0xff]  ;;  %v3267_v49 = vunpack.i.h.bf16 %v4468_v50  ;;  %v1732_v50 = vunpack.c.h.bf16 %v4517_v29 }
 0x164   : > { %1069 = vst.msk [vmem:[#allocation2 + $0x78] sm:$0xff] %vm228_vm6, %v3217_v51  ;;  %v2120_v58 = vpack.c.bf16 %v2095_v57, %v2094_v56  ;;  %3439 = vrot.lane.b32.xlu1 %v3438_v52, %s3691_s21  ;;  %3434 = vrot.lane.b32.xlu0 %v4413_v6, %s3690_s20 }
 0x165   : > { %1082 = vst.msk [vmem:[#allocation2 + $0x77] sm:$0xff] %vm5099_vm7, %v3221_v53  ;;  %3444 = vrot.lane.b32.xlu2 %v3438_v52, %s3692_s22  ;;  %vm5102_vm7 = vcmask 386368  }
 0x166   : > { %1083 = vst.msk [vmem:[#allocation2 + $0x7f] sm:$0x1] %vm5036_vm12, %v3222_v55  ;;  %2635 = vmatmul.msk.bf16.gmra.mxu1 %vm2170_vm8, %v2120_v58  ;;  %v3230_v0 = vpop.permute.xlu1 %3229  ;;  %v3225_v1 = vpop.permute.xlu0 %3224 }
 0x167   : > { %1081 = vst.msk [vmem:[#allocation2 + $0x6f] sm:$0xfe] %vm5100_vm10, %v3167_v13  ;;  %v3231_v25 = vunpack.i.l.bf16 %v3230_v0  ;;  %v3227_v45 = vunpack.i.h.bf16 %v3225_v1  ;;  %v3226_v26 = vunpack.i.l.bf16 %v3225_v1  ;;  %v4489_v3 = vpop.permute.xlu2 %3279  ;;  %v3232_v61 = vunpack.i.h.bf16 %v3230_v0  ;;  %v2585_v1 = vld [vmem:[%s3730_s17 + $0xb0] sm:$0x1] }
 0x168   : > { %1093 = vst.msk [vmem:[#allocation2 + $0x6e] sm:$0xfc] %vm257_vm11, %v3177_v63  ;;  %vm5103_vm10 = vcmask 458112   ;;  %v3281_v59 = vunpack.i.l.bf16 %v4489_v3  ;;  %v3282_v13 = vunpack.i.h.bf16 %v4489_v3 }
 0x169   : > { %1094 = vst.msk [vmem:[#allocation2 + $0x76] sm:$0xff] %vm5101_vm13, %v3226_v26  ;;  %vm5104_vm12 = vmmov %vm5103_vm10  ;;  %vm5105_vm13 = vcmask 523712  }
 0x16a   : > { %1095 = vst.msk [vmem:[#allocation2 + $0x7e] sm:$0x3] %vm5102_vm7, %v3227_v45  ;;  %vm5106_vm7 = vcmask 516544  }
 0x16b   : > { %1110 = vst.msk [vmem:[#allocation2 + $0x70] sm:$0xff] %vm5103_vm10, %v3231_v25  ;;  %v2242_v14 = vpop.f32.mrf.mxu0  ;;  %vm5108_vm10 = vcmask 195714   ;;  %v4577_v25 = vld [vmem:[%s3730_s17 + $0xb4] sm:$0xff]  }
 0x16c   : > { %1111 = vst.msk [vmem:[#allocation2 + $0x78] sm:$0xff] %vm5104_vm12, %v3232_v61  ;;  %v2243_v15 = vadd.f32 %v4323_v5, %v2242_v14  ;;  %3454 = vrot.lane.b32.xlu1 %v3453_v4, %s3693_s23  ;;  %3449 = vrot.lane.b32.xlu0 %v3448_v46, %s3694_s24  ;;  %vm5107_vm12 = vcmask 130112   ;;  %v1702_v46 = vunpack.c.l.bf16 %v2585_v1 }
 0x16d   : > { %1124 = vst.msk [vmem:[#allocation2 + $0x77] sm:$0xff] %vm5105_vm13, %v3236_v7  ;;  %3459 = vrot.lane.b32.xlu2 %v3453_v4, %s3695_s25  ;;  %vm5109_vm13 = vmmov %vm5108_vm10  ;;  %v1808_v7 = vunpack.c.l.bf16 %v4577_v25 }
 0x16e   : > { %1125 = vst.msk [vmem:[#allocation2 + $0x7f] sm:$0x1] %vm5106_vm7, %v3237_v12  ;;  %v2316_v11 = vmax.f32 %v2243_v15, 0.0  ;;  %v3245_v19 = vpop.permute.xlu1 %3244  ;;  %v3240_v62 = vpop.permute.xlu0 %3239  ;;  %vm5110_vm7 = vcmask 319744   ;;  %v4589_v15 = vpack.i.bf16 %v4533_v37, %v4530_v39 }
 0x16f   : > { %1123 = vst.msk [vmem:[#allocation2 + $0x6f] sm:$0xfe] %vm291_vm4, %v3192_v10  ;;  %v3247_v20 = vunpack.i.h.bf16 %v3245_v19  ;;  %v3246_v21 = vunpack.i.l.bf16 %v3245_v19  ;;  %v4510_v22 = vpop.permute.xlu2 %3294  ;;  %v3241_v23 = vunpack.i.l.bf16 %v3240_v62  ;;  %v3242_v27 = vunpack.i.h.bf16 %v3240_v62  ;;  %v2588_v62 = vld [vmem:[%s3730_s17 + $0xa4] sm:$0x1] }
 0x170   : > { %v2348_v28 = vpack.c.bf16 %v2316_v11, %v2316_v11  ;;  %1135 = vst.msk [vmem:[#allocation2 + $0x6e] sm:$0xfc] %vm306_vm3, %v3202_v17  ;;  %v3296_v2 = vunpack.i.l.bf16 %v4510_v22  ;;  %v3518_v10 = vpack.i.bf16 %v1808_v7, %v1702_v46  ;;  %v3297_v17 = vunpack.i.h.bf16 %v4510_v22 }
 0x171   : > { %1158 = vst.msk [vmem:[#allocation2 + $0x7f] sm:$0xfe] %vm193_vm2, %v3246_v21 }
 0x172   : > { %2381 = vst.msk [vmem:[%s4348_s15 + $0x10] sm:$0xf] %vm2376_vm14, %v2348_v28 }
 0x173   : > { %1159 = vst.msk [vmem:[#allocation2 + $0x87] sm:$0xff] %vm5107_vm12, %v3247_v20  ;;  %v2244_v34 = vpop.f32.mrf.mxu0  ;;  %vm5111_vm12 = vcmask 326913  }
 0x174   : > { %1136 = vst.msk [vmem:[#allocation2 + $0x76] sm:$0xff] %vm308_vm1, %v3241_v23  ;;  %v2245_v35 = vadd.f32 %v4323_v5, %v2244_v34  ;;  %3469 = vrot.lane.b32.xlu1 %v3468_v24, %s3689_s19  ;;  %3464 = vrot.lane.b32.xlu0 %v4413_v6, %s3689_s19 }
 0x175   : > { %1137 = vst.msk [vmem:[#allocation2 + $0x7e] sm:$0x3] %vm310_vm15, %v3242_v27  ;;  %3474 = vrot.lane.b32.xlu2 %v4413_v6, %s3688_s18  ;;  %v2582_v6 = vld [vmem:[%s3730_s17 + $0xa4] sm:$0x1] }
 0x176   : > { %v2317_v40 = vmax.f32 %v2245_v35, 0.0  ;;  %v3260_v41 = vpop.permute.xlu1 %3259  ;;  %v3255_v16 = vpop.permute.xlu0 %3254  ;;  %v1660_v51 = vunpack.c.l.bf16 %v2582_v6  ;;  %1734 = vst.msk [vmem:[#allocation2 + $0xd8] sm:$0xff] %vm177_vm0, %v1732_v50 }
 0x177   : > { %v3262_v18 = vunpack.i.h.bf16 %v3260_v41  ;;  %v3261_v42 = vunpack.i.l.bf16 %v3260_v41  ;;  %v4539_v31 = vpop.permute.xlu2 %3309  ;;  %v3257_v47 = vunpack.i.h.bf16 %v3255_v16  ;;  %v3256_v32 = vunpack.i.l.bf16 %v3255_v16 }
 0x178   : > { %v2349_v43 = vpack.c.bf16 %v2317_v40, %v2317_v40  ;;  %v3493_v60 = vpack.i.bf16 %v4530_v39, %v1660_v51  ;;  %v3311_v34 = vunpack.i.l.bf16 %v4539_v31  ;;  %v2591_v39 = vld [vmem:[%s3730_s17 + $0xb0] sm:$0x1]  ;;  %v4625_v40 = vld [vmem:[%s3730_s17 + $0xb4] sm:$0xff]  }
 0x179   : > { %1288 = vst.msk [vmem:[#allocation2 + $0x8e] sm:$0xfc] %vm5108_vm10, %v3262_v18  ;;  %vm5112_vm10 = vcmask 326912   ;;  %v1967_v18 = vunpack.c.l.bf16 %v4625_v40 }
 0x17a   : > { %2382 = vst.msk [vmem:[%s4348_s15 + $0x14] sm:$0xf] %vm2376_vm14, %v2349_v43 }
 0x17b   : > { %1172 = vst.msk [vmem:[#allocation2 + $0x8e] sm:$0x3] %vm212_vm9, %v3261_v42  ;;  %v2096_v36 = vld [vmem:[#allocation2 + $0x70] sm:$0xff] }
 0x17c   : > { %1171 = vst.msk [vmem:[#allocation2 + $0x86] sm:$0xff] %vm210_vm5, %v3257_v47  ;;  %v2097_v44 = vld [vmem:[#allocation2 + $0x78] sm:$0xff]  ;;  %3484 = vrot.lane.b32.xlu1 %v3483_v48, %s3690_s20  ;;  %3479 = vrot.lane.b32.xlu0 %v3468_v24, %s3688_s18  ;;  %v1735_v24 = vunpack.c.l.bf16 %v2588_v62 }
 0x17d   : > { %1170 = vst.msk [vmem:[#allocation2 + $0x7e] sm:$0xfc] %vm5109_vm13, %v3256_v32  ;;  %v2121_v52 = vpack.c.bf16 %v2097_v44, %v2096_v36  ;;  %3489 = vrot.lane.b32.xlu2 %v3483_v48, %s3691_s21  ;;  %vm5113_vm13 = vcmask 392512  }
 0x17e   : > { %1186 = vst.msk [vmem:[#allocation2 + $0x80] sm:$0xff] %vm228_vm6, %v3266_v8  ;;  %v4556_v53 = vpop.permute.xlu1 %3274  ;;  %v3270_v54 = vpop.permute.xlu0 %3269  ;;  %v3533_v35 = vpack.i.bf16 %v1735_v24, %v1732_v50  ;;  %v2594_v50 = vld [vmem:[%s3730_s17 + $0xbc] sm:$0x1] }
 0x17f   : > { %1187 = vst.msk [vmem:[#allocation2 + $0x88] sm:$0xff] %vm228_vm6, %v3267_v49  ;;  %2636 = vmatmul.msk.bf16.gmra.mxu1 %vm2170_vm8, %v2121_v52  ;;  %v3276_v55 = vunpack.i.l.bf16 %v4556_v53  ;;  %v3272_v56 = vunpack.i.h.bf16 %v3270_v54  ;;  %v3271_v57 = vunpack.i.l.bf16 %v3270_v54  ;;  %v4562_v58 = vpop.permute.xlu2 %3324  ;;  %v3277_v51 = vunpack.i.h.bf16 %v4556_v53 }
 0x180   : > { %1969 = vst.msk [vmem:[#allocation2 + $0xf0] sm:$0xff] %vm177_vm0, %v1967_v18  ;;  %v3326_v8 = vunpack.i.l.bf16 %v4562_v58  ;;  %v3327_v36 = vunpack.i.h.bf16 %v4562_v58  ;;  %v1809_v54 = vunpack.c.h.bf16 %v4577_v25  ;;  %v2597_v25 = vld [vmem:[%s3730_s17 + $0xb0] sm:$0x1] }
 0x181   : > { %1201 = vst.msk [vmem:[#allocation2 + $0x8f] sm:$0x1] %vm5110_vm7, %v3276_v55  ;;  %vm5114_vm7 = vcmask 458112  }
 0x182   : > { %1199 = vst.msk [vmem:[#allocation2 + $0x7f] sm:$0xfe] %vm5111_vm12, %v3271_v57  ;;  %vm5115_vm12 = vcmask 386368  }
 0x183   : > { %1200 = vst.msk [vmem:[#allocation2 + $0x87] sm:$0xff] %vm5112_vm10, %v3272_v56  ;;  %v2247_v63 = vpop.f32.mrf.mxu0  ;;  %vm5116_vm10 = vmmov %vm5114_vm7 }
 0x184   : > { %1211 = vst.msk [vmem:[#allocation2 + $0x7e] sm:$0xfc] %vm257_vm11, %v3281_v59  ;;  %v2248_v0 = vadd.f32 %v4323_v5, %v2247_v63  ;;  %3499 = vrot.lane.b32.xlu1 %v3483_v48, %s3692_s22  ;;  %3494 = vrot.lane.b32.xlu0 %v3493_v60, %s3691_s21  ;;  %v1778_v48 = vunpack.c.l.bf16 %v2591_v39 }
 0x185   : > { %1212 = vst.msk [vmem:[#allocation2 + $0x86] sm:$0xff] %vm5113_vm13, %v3282_v13  ;;  %3504 = vrot.lane.b32.xlu2 %v3493_v60, %s3692_s22  ;;  %vm5117_vm13 = vcmask 523712   ;;  %v1820_v60 = vunpack.c.l.bf16 %v2594_v50 }
 0x186   : > { %v2318_v45 = vmax.f32 %v2248_v0, 0.0  ;;  %v3290_v26 = vpop.permute.xlu1 %3289  ;;  %v4581_v3 = vpop.permute.xlu0 %3284  ;;  %v3553_v44 = vpack.i.bf16 %v1778_v48, %v4533_v37  ;;  %v3558_v0 = vpack.i.bf16 %v1809_v54, %v1808_v7 }
 0x187   : > { %v3291_v61 = vunpack.i.l.bf16 %v3290_v26  ;;  %v3286_v4 = vunpack.i.l.bf16 %v4581_v3  ;;  %v4585_v9 = vpop.permute.xlu2 %3339  ;;  %v3292_v14 = vunpack.i.h.bf16 %v3290_v26  ;;  %v3287_v37 = vunpack.i.h.bf16 %v4581_v3 }
 0x188   : > { %v2350_v12 = vpack.c.bf16 %v2318_v45, %v2318_v45  ;;  %v3341_v1 = vunpack.i.l.bf16 %v4585_v9  ;;  %v3563_v45 = vpack.i.bf16 %v1820_v60, %v1809_v54  ;;  %v3342_v3 = vunpack.i.h.bf16 %v4585_v9 }
 0x189   : > { %1228 = vst.msk [vmem:[#allocation2 + $0x80] sm:$0xff] %vm5114_vm7, %v3291_v61  ;;  %vm5118_vm7 = vcmask 516544   ;;  %v3312_v61 = vunpack.i.h.bf16 %v4539_v31 }
 0x18a   : > { %2383 = vst.msk [vmem:[%s4348_s15 + $0x18] sm:$0xf] %vm2376_vm14, %v2350_v12 }
 0x18b   : > { %1213 = vst.msk [vmem:[#allocation2 + $0x8e] sm:$0x3] %vm5115_vm12, %v3286_v4  ;;  %v2249_v11 = vpop.f32.mrf.mxu0  ;;  %vm5119_vm12 = vcmask 130112  }
 0x18c   : > { %1229 = vst.msk [vmem:[#allocation2 + $0x88] sm:$0xff] %vm5116_vm10, %v3292_v14  ;;  %v2250_v19 = vadd.f32 %v4323_v5, %v2249_v11  ;;  %3514 = vrot.lane.b32.xlu1 %v4589_v15, %s3693_s23  ;;  %3509 = vrot.lane.b32.xlu0 %v4589_v15, %s3694_s24  ;;  %vm5120_vm10 = vcmask 122944   ;;  %v1853_v14 = vunpack.c.l.bf16 %v2597_v25  ;;  %v4752_v25 = vld [vmem:[%s3730_s17 + $0xcc] sm:$0xff]  }
 0x18d   : > { %1241 = vst.msk [vmem:[#allocation2 + $0x7f] sm:$0xfe] %vm291_vm4, %v3296_v2  ;;  %3519 = vrot.lane.b32.xlu2 %v3518_v10, %s3693_s23 }
 0x18e   : > { %1242 = vst.msk [vmem:[#allocation2 + $0x87] sm:$0xff] %vm5117_vm13, %v3297_v17  ;;  %v2319_v20 = vmax.f32 %v2250_v19, 0.0  ;;  %v3305_v21 = vpop.permute.xlu1 %3304  ;;  %v4609_v22 = vpop.permute.xlu0 %3299  ;;  %vm5121_vm13 = vmmov %vm5119_vm12  ;;  %v4684_v19 = vld [vmem:[%s3730_s17 + $0xb4] sm:$0xff]  }
 0x18f   : > { %v3307_v28 = vunpack.i.h.bf16 %v3305_v21  ;;  %v3306_v23 = vunpack.i.l.bf16 %v3305_v21  ;;  %v3355_v27 = vpop.permute.xlu2 %3354  ;;  %v3301_v30 = vunpack.i.l.bf16 %v4609_v22  ;;  %v3302_v26 = vunpack.i.h.bf16 %v4609_v22 }
 0x190   : > { %v2351_v29 = vpack.c.bf16 %v2319_v20, %v2319_v20  ;;  %v3356_v33 = vunpack.i.l.bf16 %v3355_v27  ;;  %v3357_v38 = vunpack.i.h.bf16 %v3355_v27  ;;  %v1884_v22 = vunpack.c.l.bf16 %v4684_v19 }
 0x191   : > { %1253 = vst.msk [vmem:[#allocation2 + $0x7e] sm:$0xfc] %vm306_vm3, %v3306_v23  ;;  %v1885_v27 = vunpack.c.h.bf16 %v4625_v40 }
 0x192   : > { %2384 = vst.msk [vmem:[%s4348_s15 + $0x1c] sm:$0xf] %vm2376_vm14, %v2351_v29 }
 0x193   : > { %1254 = vst.msk [vmem:[#allocation2 + $0x86] sm:$0xff] %vm308_vm1, %v3307_v28 }
 0x194   : > { %1243 = vst.msk [vmem:[#allocation2 + $0x8f] sm:$0x1] %vm5118_vm7, %v3301_v30  ;;  %3529 = vrot.lane.b32.xlu1 %v3518_v10, %s3695_s25  ;;  %3524 = vrot.lane.b32.xlu0 %v4589_v15, %s3695_s25  ;;  %vm5122_vm7 = vcmask 326913   ;;  %v3578_v10 = vpack.i.bf16 %v1967_v18, %v1853_v14 }
 0x195   : > { %1255 = vst.msk [vmem:[#allocation2 + $0x8e] sm:$0x3] %vm310_vm15, %v3311_v34  ;;  %3534 = vrot.lane.b32.xlu2 %v3533_v35, %s3689_s19 }
 0x196   : > { %v3320_v41 = vpop.permute.xlu1 %3319  ;;  %v3315_v16 = vpop.permute.xlu0 %3314  ;;  %1394 = vst.msk [vmem:[#allocation2 + $0x9f] sm:$0xfe] %vm193_vm2, %v3356_v33  ;;  %v4699_v33 = vld [vmem:[%s3730_s17 + $0xc0] sm:$0xff]  }
 0x197   : > { %v3322_v42 = vunpack.i.h.bf16 %v3320_v41  ;;  %v3317_v43 = vunpack.i.h.bf16 %v3315_v16  ;;  %v3316_v47 = vunpack.i.l.bf16 %v3315_v16  ;;  %1395 = vst.msk [vmem:[#allocation2 + $0xa7] sm:$0xff] %vm5119_vm12, %v3357_v38  ;;  %v4630_v32 = vpop.permute.xlu2 %3369  ;;  %v3321_v6 = vunpack.i.l.bf16 %v3320_v41 }
 0x198   : > { %vm5123_vm12 = vcmask 326912   ;;  %v3593_v38 = vpack.i.bf16 %v1885_v27, %v1884_v22  ;;  %v3371_v39 = vunpack.i.l.bf16 %v4630_v32  ;;  %v3372_v40 = vunpack.i.h.bf16 %v4630_v32  ;;  %v2606_v22 = vld [vmem:[%s3730_s17 + $0xbc] sm:$0x1] }
 0x199   : > { %1278 = vst.msk [vmem:[#allocation2 + $0x9f] sm:$0x1] %vm5120_vm10, %v3317_v43  ;;  %vm5124_vm10 = vcmask 319744   ;;  %v2746_v48 = vunpack.c.l.bf16 %v4699_v33 }
 0x19a   : > { %1277 = vst.msk [vmem:[#allocation2 + $0x97] sm:$0xff] %vm5121_vm13, %v3316_v47  ;;  %v2098_v49 = vld [vmem:[#allocation2 + $0x80] sm:$0xff]  ;;  %vm5125_vm13 = vcmask 386368  }
 0x19b   : > { %1290 = vst.msk [vmem:[#allocation2 + $0x9e] sm:$0x3] %vm212_vm9, %v3322_v42 }
 0x19c   : > { %1289 = vst.msk [vmem:[#allocation2 + $0x96] sm:$0xff] %vm210_vm5, %v3321_v6  ;;  %3539 = vrot.lane.b32.xlu0 %v3533_v35, %s3688_s18  ;;  %v2099_v52 = vld [vmem:[#allocation2 + $0x88] sm:$0xff]  ;;  %3544 = vrot.lane.b32.xlu1 %v4589_v15, %s3690_s20  ;;  %v2600_v35 = vld [vmem:[%s3730_s17 + $0xbc] sm:$0x1] }
 0x19d   : > { %1304 = vst.msk [vmem:[#allocation2 + $0x90] sm:$0xff] %vm228_vm6, %v3326_v8  ;;  %v2122_v55 = vpack.c.bf16 %v2099_v52, %v2098_v49  ;;  %3549 = vrot.lane.b32.xlu2 %v3553_v44, %s3691_s21  ;;  %v1896_v47 = vunpack.c.l.bf16 %v2600_v35 }
 0x19e   : > { %1317 = vst.msk [vmem:[#allocation2 + $0x8f] sm:$0xfe] %vm5122_vm7, %v3277_v51  ;;  %v3335_v53 = vpop.permute.xlu1 %3334  ;;  %v3330_v56 = vpop.permute.xlu0 %3329  ;;  %vm5126_vm7 = vcmask 392512  }
 0x19f   : > { %1305 = vst.msk [vmem:[#allocation2 + $0x98] sm:$0xff] %vm228_vm6, %v3327_v36  ;;  %2637 = vmatmul.msk.bf16.vlgmr.msra.gmra.mxu2 %vm2170_vm8, %v2122_v55  ;;  %v3337_v57 = vunpack.i.h.bf16 %v3335_v53  ;;  %v3332_v58 = vunpack.i.h.bf16 %v3330_v56  ;;  %v3331_v59 = vunpack.i.l.bf16 %v3330_v56  ;;  %v4654_v13 = vpop.permute.xlu2 %3384  ;;  %v3336_v63 = vunpack.i.l.bf16 %v3335_v53 }
 0x1a0   : > { %1329 = vst.msk [vmem:[#allocation2 + $0x8e] sm:$0xfc] %vm257_vm11, %v3287_v37  ;;  %v3603_v52 = vpack.i.bf16 %v2746_v48, %v1896_v47  ;;  %v3386_v50 = vunpack.i.l.bf16 %v4654_v13  ;;  %v2743_v55 = vunpack.c.h.bf16 %v4699_v33 }
 0x1a1   : > { %1318 = vst.msk [vmem:[#allocation2 + $0x97] sm:$0xff] %vm5123_vm12, %v3331_v59  ;;  %vm5127_vm12 = vcmask 458112  }
 0x1a2   : > { %1319 = vst.msk [vmem:[#allocation2 + $0x9f] sm:$0x1] %vm5124_vm10, %v3332_v58  ;;  %vm5128_vm10 = vmmov %vm5127_vm12 }
 0x1a3   : > { %1331 = vst.msk [vmem:[#allocation2 + $0x9e] sm:$0x3] %vm5125_vm13, %v3337_v57  ;;  %vm5129_vm13 = vcmask 523712  }
 0x1a4   : > { %1330 = vst.msk [vmem:[#allocation2 + $0x96] sm:$0xff] %vm5126_vm7, %v3336_v63  ;;  %3554 = vrot.lane.b32.xlu0 %v3553_v44, %s3692_s22  ;;  %3559 = vrot.lane.b32.xlu1 %v3558_v0, %s3694_s24  ;;  %vm5130_vm7 = vcmask 516544   ;;  %v4742_v63 = vld [vmem:[%s5024_s2] ss:$0 sm:$0xff] }
 0x1a5   : > { %1346 = vst.msk [vmem:[#allocation2 + $0x90] sm:$0xff] %vm5127_vm12, %v3341_v1  ;;  %3564 = vrot.lane.b32.xlu2 %v3563_v45, %s3693_s23  ;;  %vm5131_vm12 = vcmask 195714  }
 0x1a6   : > { %1359 = vst.msk [vmem:[#allocation2 + $0x8f] sm:$0xfe] %vm291_vm4, %v3302_v26  ;;  %v3350_v4 = vpop.permute.xlu1 %3349  ;;  %v3345_v46 = vpop.permute.xlu0 %3344 }
 0x1a7   : > { %1371 = vst.msk [vmem:[#allocation2 + $0x8e] sm:$0xfc] %vm306_vm3, %v3312_v61  ;;  %v3351_v7 = vunpack.i.l.bf16 %v3350_v4  ;;  %v3347_v9 = vunpack.i.h.bf16 %v3345_v46  ;;  %v3346_v12 = vunpack.i.l.bf16 %v3345_v46  ;;  %v4674_v2 = vpop.permute.xlu2 %3399  ;;  %v3352_v31 = vunpack.i.h.bf16 %v3350_v4 }
 0x1a8   : > { %1347 = vst.msk [vmem:[#allocation2 + $0x98] sm:$0xff] %vm5128_vm10, %v3342_v3  ;;  %vm5132_vm10 = vcmask 122944   ;;  %v3401_v1 = vunpack.i.l.bf16 %v4674_v2  ;;  %v3402_v26 = vunpack.i.h.bf16 %v4674_v2  ;;  %v2603_v3 = vld [vmem:[%s3730_s17 + $0xc8] sm:$0x1] }
 0x1a9   : > { %1360 = vst.msk [vmem:[#allocation2 + $0x97] sm:$0xff] %vm5129_vm13, %v3346_v12  ;;  %vm5133_vm13 = vmmov %vm5131_vm12  ;;  %v1938_v46 = vunpack.c.l.bf16 %v2603_v3 }
 0x1aa   : > { %1361 = vst.msk [vmem:[#allocation2 + $0x9f] sm:$0x1] %vm5130_vm7, %v3347_v9  ;;  %v2252_v17 = vpop.f32.mrf.mxu1  ;;  %vm5134_vm7 = vcmask 326913  }
 0x1ab   : > { %1372 = vst.msk [vmem:[#allocation2 + $0x96] sm:$0xff] %vm308_vm1, %v3351_v7  ;;  %v2253_v11 = vadd.f32 %v4323_v5, %v2252_v17  ;;  %v2044_v7 = vunpack.c.l.bf16 %v4752_v25 }
 0x1ac   : > { %1373 = vst.msk [vmem:[#allocation2 + $0x9e] sm:$0x3] %vm310_vm15, %v3352_v31  ;;  %3569 = vrot.lane.b32.xlu0 %v3563_v45, %s3695_s25  ;;  %3574 = vrot.lane.b32.xlu1 %v4589_v15, %s3689_s19  ;;  %v3618_v45 = vpack.i.bf16 %v2743_v55, %v2746_v48  ;;  %v2045_v48 = vunpack.c.h.bf16 %v4752_v25 }
 0x1ad   : > { %v2320_v62 = vmax.f32 %v2253_v11, 0.0  ;;  %3579 = vrot.lane.b32.xlu2 %v3578_v10, %s3689_s19 }
 0x1ae   : > { %v3365_v20 = vpop.permute.xlu1 %3364  ;;  %v3360_v21 = vpop.permute.xlu0 %3359 }
 0x1af   : > { %v2352_v28 = vpack.c.bf16 %v2320_v62, %v2320_v62  ;;  %v3367_v23 = vunpack.i.h.bf16 %v3365_v20  ;;  %v3366_v24 = vunpack.i.l.bf16 %v3365_v20  ;;  %v4693_v29 = vpop.permute.xlu2 %3414  ;;  %v3362_v30 = vunpack.i.h.bf16 %v3360_v21 }
 0x1b0   : > { %v3361_v34 = vunpack.i.l.bf16 %v3360_v21  ;;  %v3416_v62 = vunpack.i.l.bf16 %v4693_v29  ;;  %v3628_v20 = vpack.i.bf16 %v2044_v7, %v1938_v46  ;;  %v3417_v21 = vunpack.i.h.bf16 %v4693_v29 }
 0x1b1   : > { %2385 = vst.msk [vmem:[%s4348_s15 + $0x20] sm:$0xf] %vm2376_vm14, %v2352_v28 }
 0x1b2   : > { %1406 = vst.msk [vmem:[#allocation2 + $0x9e] sm:$0xfc] %vm5131_vm12, %v3366_v24  ;;  %v2254_v41 = vpop.f32.mrf.mxu1  ;;  %v2100_v16 = vld [vmem:[#allocation2 + $0x90] sm:$0xff]  ;;  %vm5135_vm12 = vcmask 326912   ;;  %v1971_v24 = vunpack.c.l.bf16 %v2606_v22 }
 0x1b3   : > { %1407 = vst.msk [vmem:[#allocation2 + $0xa6] sm:$0xff] %vm210_vm5, %v3367_v23  ;;  %v2255_v18 = vadd.f32 %v4323_v5, %v2254_v41  ;;  %v2101_v42 = vld [vmem:[#allocation2 + $0x98] sm:$0xff] }
 0x1b4   : > { %1512 = vst.msk [vmem:[#allocation2 + $0xaf] sm:$0xfe] %vm193_vm2, %v3362_v30  ;;  %3584 = vrot.lane.b32.xlu0 %v4589_v15, %s3688_s18  ;;  %v2123_v43 = vpack.c.bf16 %v2101_v42, %v2100_v16  ;;  %3589 = vrot.lane.b32.xlu1 %v3578_v10, %s3688_s18  ;;  %v1968_v15 = vunpack.c.h.bf16 %v4684_v19 }
 0x1b5   : > { %1396 = vst.msk [vmem:[#allocation2 + $0xaf] sm:$0x1] %vm5132_vm10, %v3361_v34  ;;  %v2321_v6 = vmax.f32 %v2255_v18, 0.0  ;;  %3594 = vrot.lane.b32.xlu2 %v3593_v38, %s3690_s20  ;;  %vm5137_vm10 = vcmask 386368  }
 0x1b6   : > { %1408 = vst.msk [vmem:[#allocation2 + $0xae] sm:$0x3] %vm212_vm9, %v3371_v39  ;;  %2638 = vmatmul.msk.bf16.gmra.mxu2 %vm2170_vm8, %v2123_v43  ;;  %v3380_v5 = vpop.permute.xlu1 %3379  ;;  %v3375_v32 = vpop.permute.xlu0 %3374  ;;  %v3638_v41 = vpack.i.bf16 %v1971_v24, %v1968_v15 }
 0x1b7   : > { %1524 = vst.msk [vmem:[#allocation2 + $0xae] sm:$0xfc] %vm5133_vm13, %v3372_v40  ;;  %v2353_v8 = vpack.c.bf16 %v2321_v6, %v2321_v6  ;;  %v3377_v49 = vunpack.i.h.bf16 %v3375_v32  ;;  %v4717_v36 = vpop.permute.xlu2 %3429  ;;  %v3381_v44 = vunpack.i.l.bf16 %v3380_v5  ;;  %v3376_v51 = vunpack.i.l.bf16 %v3375_v32  ;;  %v2609_v40 = vld [vmem:[%s3730_s17 + $0xc8] sm:$0x1] }
 0x1b8   : > { %1970 = vst.msk [vmem:[#allocation2 + $0xf8] sm:$0xff] %vm177_vm0, %v1968_v15  ;;  %v3382_v54 = vunpack.i.h.bf16 %v3380_v5  ;;  %vm5136_vm0 = vcmask 319744   ;;  %vm5138_vm13 = vcmask 392512   ;;  %v3431_v39 = vunpack.i.l.bf16 %v4717_v36 }
 0x1b9   : > { %2386 = vst.msk [vmem:[%s4348_s15 + $0x24] sm:$0xf] %vm2376_vm14, %v2353_v8  ;;  %v3432_v16 = vunpack.i.h.bf16 %v4717_v36  ;;  %v2014_v18 = vunpack.c.l.bf16 %v2609_v40  ;;  %v3387_v15 = vunpack.i.h.bf16 %v4654_v13  ;;  %v3663_v36 = vpack.i.bf16 %v2045_v48, %v2044_v7 }
 0x1ba   : > { %1422 = vst.msk [vmem:[#allocation2 + $0xa0] sm:$0xff] %vm228_vm6, %v3376_v51 }
 0x1bb   : > { %1423 = vst.msk [vmem:[#allocation2 + $0xa8] sm:$0xff] %vm228_vm6, %v3377_v49  ;;  %v3653_v32 = vpack.i.bf16 %v2014_v18, %v2743_v55  ;;  %v2612_v49 = vld [vmem:[%s3730_s17 + $0xd4] sm:$0x1] }
 0x1bc   : > { %1435 = vst.msk [vmem:[#allocation2 + $0x9f] sm:$0xfe] %vm5134_vm7, %v3381_v44  ;;  %3599 = vrot.lane.b32.xlu0 %v3593_v38, %s3691_s21  ;;  %3604 = vrot.lane.b32.xlu1 %v3603_v52, %s3691_s21  ;;  %vm5139_vm7 = vcmask 458112   ;;  %v2056_v33 = vunpack.c.l.bf16 %v2612_v49 }
 0x1bd   : > { %1436 = vst.msk [vmem:[#allocation2 + $0xa7] sm:$0xff] %vm5135_vm12, %v3382_v54  ;;  %3609 = vrot.lane.b32.xlu2 %v3593_v38, %s3692_s22  ;;  %vm5140_vm12 = vmmov %vm5139_vm7 }
 0x1be   : > { %1437 = vst.msk [vmem:[#allocation2 + $0xaf] sm:$0x1] %vm5136_vm0, %v3386_v50  ;;  %v4734_v37 = vpop.permute.xlu1 %3394  ;;  %v3390_v53 = vpop.permute.xlu0 %3389  ;;  %vm5141_vm0 = vcmask 516544  }
 0x1bf   : > { %v2257_v56 = vpop.f32.mrf.mxu1  ;;  %v3396_v57 = vunpack.i.l.bf16 %v4734_v37  ;;  %v3392_v58 = vunpack.i.h.bf16 %v3390_v53  ;;  %v3391_v59 = vunpack.i.l.bf16 %v3390_v53  ;;  %v4737_v60 = vpop.permute.xlu2 %3444  ;;  %v3397_v50 = vunpack.i.h.bf16 %v4734_v37 }
 0x1c0   : > { %v2258_v0 = vadd.f32 %v4742_v63, %v2257_v56  ;;  %v3447_v13 = vunpack.i.h.bf16 %v4737_v60 }
 0x1c1   : > { %1449 = vst.msk [vmem:[#allocation2 + $0xae] sm:$0x3] %vm5137_vm10, %v3396_v57  ;;  %vm5142_vm10 = vcmask 523712  }
 0x1c2   : > { %v2322_v61 = vmax.f32 %v2258_v0, 0.0  ;;  %1447 = vst.msk [vmem:[#allocation2 + $0x9e] sm:$0xfc] %vm257_vm11, %v3391_v59  ;;  %v3668_v59 = vpack.i.bf16 %v2056_v33, %v2045_v48 }
 0x1c3   : > { %1448 = vst.msk [vmem:[#allocation2 + $0xa6] sm:$0xff] %vm5138_vm13, %v3392_v58  ;;  %vm5143_vm13 = vcmask 122944  }
 0x1c4   : > { %v2354_v4 = vpack.c.bf16 %v2322_v61, %v2322_v61  ;;  %1464 = vst.msk [vmem:[#allocation2 + $0xa0] sm:$0xff] %vm5139_vm7, %v3401_v1  ;;  %3614 = vrot.lane.b32.xlu0 %v3603_v52, %s3692_s22  ;;  %3619 = vrot.lane.b32.xlu1 %v3618_v45, %s3694_s24  ;;  %vm5144_vm7 = vcmask 130112   ;;  %v3446_v52 = vunpack.i.l.bf16 %v4737_v60 }
 0x1c5   : > { %1465 = vst.msk [vmem:[#allocation2 + $0xa8] sm:$0xff] %vm5140_vm12, %v3402_v26  ;;  %3624 = vrot.lane.b32.xlu2 %v3618_v45, %s3693_s23  ;;  %vm5145_vm12 = vcmask 326913  }
 0x1c6   : > { %2387 = vst.msk [vmem:[%s4348_s15 + $0x28] sm:$0xf] %vm2376_vm14, %v2354_v4  ;;  %v4764_v9 = vpop.permute.xlu1 %3409  ;;  %v3405_v12 = vpop.permute.xlu0 %3404 }
 0x1c7   : > { %v2259_v14 = vpop.f32.mrf.mxu1  ;;  %v3411_v2 = vunpack.i.l.bf16 %v4764_v9  ;;  %v3407_v31 = vunpack.i.h.bf16 %v3405_v12  ;;  %v3406_v10 = vunpack.i.l.bf16 %v3405_v12  ;;  %v4767_v17 = vpop.permute.xlu2 %3459  ;;  %v3412_v60 = vunpack.i.h.bf16 %v4764_v9 }
 0x1c8   : > { %v2260_v11 = vadd.f32 %v4742_v63, %v2259_v14  ;;  %v3462_v3 = vunpack.i.h.bf16 %v4767_v17 }
 0x1c9   : > { %1479 = vst.msk [vmem:[#allocation2 + $0xaf] sm:$0x1] %vm5141_vm0, %v3411_v2  ;;  %vm5146_vm0 = vcmask 319744  }
 0x1ca   : > { %v2323_v28 = vmax.f32 %v2260_v11, 0.0  ;;  %1477 = vst.msk [vmem:[#allocation2 + $0x9f] sm:$0xfe] %vm291_vm4, %v3406_v10 }
 0x1cb   : > { %1478 = vst.msk [vmem:[#allocation2 + $0xa7] sm:$0xff] %vm5142_vm10, %v3407_v31  ;;  %vm5147_vm10 = vcmask 326912  }
 0x1cc   : > { %v2355_v23 = vpack.c.bf16 %v2323_v28, %v2323_v28  ;;  %1489 = vst.msk [vmem:[#allocation2 + $0x9e] sm:$0xfc] %vm306_vm3, %v3416_v62  ;;  %3629 = vrot.lane.b32.xlu0 %v3628_v20, %s3693_s23  ;;  %3634 = vrot.lane.b32.xlu1 %v3618_v45, %s3695_s25 }
 0x1cd   : > { %1490 = vst.msk [vmem:[#allocation2 + $0xa6] sm:$0xff] %vm308_vm1, %v3417_v21  ;;  %1956 = vrot.lane.b32.xlu2 %v1938_v46, %s3695_s25 }
 0x1ce   : > { %2388 = vst.msk [vmem:[%s4348_s15 + $0x2c] sm:$0xf] %vm2376_vm14, %v2355_v23  ;;  %v3425_v27 = vpop.permute.xlu1 %3424  ;;  %v4783_v29 = vpop.permute.xlu0 %3419 }
 0x1cf   : > { %v3427_v30 = vunpack.i.h.bf16 %v3425_v27  ;;  %v3426_v34 = vunpack.i.l.bf16 %v3425_v27  ;;  %v3421_v35 = vunpack.i.l.bf16 %v4783_v29  ;;  %v4786_v38 = vpop.permute.xlu2 %3474  ;;  %v3422_v1 = vunpack.i.h.bf16 %v4783_v29 }
 0x1d0   : > { %v3476_v10 = vunpack.i.l.bf16 %v4786_v38 }
 0x1d1   : > { %1514 = vst.msk [vmem:[#allocation2 + $0xbf] sm:$0x1] %vm5143_vm13, %v3427_v30  ;;  %vm5148_vm13 = vcmask 392512  }
 0x1d2   : > { %1513 = vst.msk [vmem:[#allocation2 + $0xb7] sm:$0xff] %vm5144_vm7, %v3426_v34  ;;  %vm5149_vm7 = vcmask 386368  }
 0x1d3   : > { %1491 = vst.msk [vmem:[#allocation2 + $0xae] sm:$0x3] %vm310_vm15, %v3421_v35 }
 0x1d4   : > { %1525 = vst.msk [vmem:[#allocation2 + $0xb6] sm:$0xff] %vm210_vm5, %v3431_v39  ;;  %3639 = vrot.lane.b32.xlu0 %v3638_v41, %s3689_s19  ;;  %3644 = vrot.lane.b32.xlu1 %v3638_v41, %s3688_s18  ;;  %v2102_v44 = vld [vmem:[#allocation2 + $0xa0] sm:$0xff] }
 0x1d5   : > { %1526 = vst.msk [vmem:[#allocation2 + $0xbe] sm:$0x3] %vm212_vm9, %v3432_v16  ;;  %3649 = vrot.lane.b32.xlu2 %v3618_v45, %s3690_s20  ;;  %v3461_v45 = vunpack.i.l.bf16 %v4767_v17  ;;  %v3477_v17 = vunpack.i.h.bf16 %v4786_v38 }
 0x1d6   : > { %v3440_v19 = vpop.permute.xlu1 %3439  ;;  %v3435_v42 = vpop.permute.xlu0 %3434 }
 0x1d7   : > { %v3437_v43 = vunpack.i.h.bf16 %v3435_v42  ;;  %v3436_v47 = vunpack.i.l.bf16 %v3435_v42  ;;  %v4802_v6 = vpop.permute.xlu2 %3489  ;;  %v3442_v5 = vunpack.i.h.bf16 %v3440_v19  ;;  %v3441_v8 = vunpack.i.l.bf16 %v3440_v19 }
 0x1d8   : > { %v3491_v39 = vunpack.i.l.bf16 %v4802_v6  ;;  %v3492_v41 = vunpack.i.h.bf16 %v4802_v6 }
 0x1d9   : > { %1540 = vst.msk [vmem:[#allocation2 + $0xb0] sm:$0xff] %vm228_vm6, %v3436_v47 }
 0x1da   : > { %1541 = vst.msk [vmem:[#allocation2 + $0xb8] sm:$0xff] %vm228_vm6, %v3437_v43  ;;  %v2103_v51 = vld [vmem:[#allocation2 + $0xa8] sm:$0xff] }
 0x1db   : > { %1553 = vst.msk [vmem:[#allocation2 + $0xaf] sm:$0xfe] %vm5145_vm12, %v3387_v15  ;;  %v2124_v54 = vpack.c.bf16 %v2103_v51, %v2102_v44  ;;  %vm5150_vm12 = vcmask 458112  }
 0x1dc   : > { %1555 = vst.msk [vmem:[#allocation2 + $0xbf] sm:$0x1] %vm5146_vm0, %v3442_v5  ;;  %3654 = vrot.lane.b32.xlu0 %v3653_v32, %s3691_s21  ;;  %3659 = vrot.lane.b32.xlu1 %v3653_v32, %s3692_s22  ;;  %vm5151_vm0 = vmmov %vm5150_vm12 }
 0x1dd   : > { %1554 = vst.msk [vmem:[#allocation2 + $0xb7] sm:$0xff] %vm5147_vm10, %v3441_v8  ;;  %2639 = vmatmul.msk.bf16.gmra.mxu2 %vm2170_vm8, %v2124_v54  ;;  %3664 = vrot.lane.b32.xlu2 %v3663_v36, %s3694_s24  ;;  %vm5152_vm10 = vcmask 516544  }
 0x1de   : > { %1565 = vst.msk [vmem:[#allocation2 + $0xae] sm:$0xfc] %vm257_vm11, %v3397_v50  ;;  %v3455_v55 = vpop.permute.xlu1 %3454  ;;  %v3450_v53 = vpop.permute.xlu0 %3449 }
 0x1df   : > { %1566 = vst.msk [vmem:[#allocation2 + $0xb6] sm:$0xff] %vm5148_vm13, %v3446_v52  ;;  %v3452_v37 = vunpack.i.h.bf16 %v3450_v53  ;;  %v3451_v56 = vunpack.i.l.bf16 %v3450_v53  ;;  %v4822_v57 = vpop.permute.xlu2 %3504  ;;  %v3457_v58 = vunpack.i.h.bf16 %v3455_v55  ;;  %v3456_v0 = vunpack.i.l.bf16 %v3455_v55 }
 0x1e0   : > { %1567 = vst.msk [vmem:[#allocation2 + $0xbe] sm:$0x3] %vm5149_vm7, %v3447_v13  ;;  %vm5153_vm13 = vcmask 523712   ;;  %vm5154_vm7 = vcmask 122944   ;;  %v3506_v48 = vunpack.i.l.bf16 %v4822_v57 }
 0x1e1   : > { %1582 = vst.msk [vmem:[#allocation2 + $0xb0] sm:$0xff] %vm5150_vm12, %v3451_v56  ;;  %vm5155_vm12 = vcmask 130112  }
 0x1e2   : > { %1583 = vst.msk [vmem:[#allocation2 + $0xb8] sm:$0xff] %vm5151_vm0, %v3452_v37  ;;  %vm5156_vm0 = vcmask 195714  }
 0x1e3   : > { %1595 = vst.msk [vmem:[#allocation2 + $0xaf] sm:$0xfe] %vm291_vm4, %v3412_v60  ;;  %v2262_v26 = vpop.f32.mrf.mxu1 }
 0x1e4   : > { %1597 = vst.msk [vmem:[#allocation2 + $0xbf] sm:$0x1] %vm5152_vm10, %v3457_v58  ;;  %v2263_v25 = vadd.f32 %v4742_v63, %v2262_v26  ;;  %3669 = vrot.lane.b32.xlu0 %v3668_v59, %s3693_s23  ;;  %3674 = vrot.lane.b32.xlu1 %v3663_v36, %s3695_s25  ;;  %vm5157_vm10 = vmmov %vm5156_vm0 }
 0x1e5   : > { %1607 = vst.msk [vmem:[#allocation2 + $0xae] sm:$0xfc] %vm306_vm3, %v3422_v1  ;;  %2074 = vrot.lane.b32.xlu2 %v2056_v33, %s3695_s25 }
 0x1e6   : > { %1596 = vst.msk [vmem:[#allocation2 + $0xb7] sm:$0xff] %vm5153_vm13, %v3456_v0  ;;  %v2324_v61 = vmax.f32 %v2263_v25, 0.0  ;;  %v3470_v4 = vpop.permute.xlu1 %3469  ;;  %v3465_v46 = vpop.permute.xlu0 %3464  ;;  %vm5158_vm13 = vcmask 326913  }
 0x1e7   : > { %1608 = vst.msk [vmem:[#allocation2 + $0xb6] sm:$0xff] %vm308_vm1, %v3461_v45  ;;  %v3472_v7 = vunpack.i.h.bf16 %v3470_v4  ;;  %v3471_v9 = vunpack.i.l.bf16 %v3470_v4  ;;  %v4840_v12 = vpop.permute.xlu2 %3519  ;;  %v3467_v2 = vunpack.i.h.bf16 %v3465_v46  ;;  %v3466_v31 = vunpack.i.l.bf16 %v3465_v46 }
 0x1e8   : > { %1609 = vst.msk [vmem:[#allocation2 + $0xbe] sm:$0x3] %vm310_vm15, %v3462_v3  ;;  %v2356_v14 = vpack.c.bf16 %v2324_v61, %v2324_v61  ;;  %v3521_v13 = vunpack.i.l.bf16 %v4840_v12 }
 0x1e9   : > { %1748 = vst.msk [vmem:[#allocation2 + $0xcf] sm:$0xfe] %vm193_vm2, %v3472_v7 }
 0x1ea   : > { %2389 = vst.msk [vmem:[%s4348_s15 + $0x30] sm:$0xf] %vm2376_vm14, %v2356_v14 }
 0x1eb   : > { %1632 = vst.msk [vmem:[#allocation2 + $0xcf] sm:$0x1] %vm5154_vm7, %v3471_v9  ;;  %v2264_v11 = vpop.f32.mrf.mxu1  ;;  %vm5159_vm7 = vcmask 326912  }
 0x1ec   : > { %1631 = vst.msk [vmem:[#allocation2 + $0xc7] sm:$0xff] %vm5155_vm12, %v3467_v2  ;;  %v2265_v62 = vadd.f32 %v4742_v63, %v2264_v11  ;;  %vm5160_vm12 = vcmask 122944  }
 0x1ed   : > { %1630 = vst.msk [vmem:[#allocation2 + $0xbf] sm:$0xfe] %vm193_vm2, %v3466_v31 }
 0x1ee   : > { %1642 = vst.msk [vmem:[#allocation2 + $0xbe] sm:$0xfc] %vm5156_vm0, %v3476_v10  ;;  %v2325_v20 = vmax.f32 %v2265_v62, 0.0  ;;  %v2104_v21 = vld [vmem:[#allocation2 + $0xb0] sm:$0xff]  ;;  %v3485_v22 = vpop.permute.xlu1 %3484  ;;  %v3480_v28 = vpop.permute.xlu0 %3479  ;;  %vm5161_vm0 = vcmask 392512   ;;  %v3507_v10 = vunpack.i.h.bf16 %v4822_v57  ;;  %v3522_v57 = vunpack.i.h.bf16 %v4840_v12 }
 0x1ef   : > { %1643 = vst.msk [vmem:[#allocation2 + $0xc6] sm:$0xff] %vm210_vm5, %v3477_v17  ;;  %v2105_v23 = vld [vmem:[#allocation2 + $0xb8] sm:$0xff]  ;;  %v3486_v24 = vunpack.i.l.bf16 %v3485_v22  ;;  %v3482_v27 = vunpack.i.h.bf16 %v3480_v28  ;;  %v3535_v29 = vpop.permute.xlu2 %3534  ;;  %v3481_v35 = vunpack.i.l.bf16 %v3480_v28  ;;  %v3487_v38 = vunpack.i.h.bf16 %v3485_v22 }
 0x1f0   : > { %v2357_v30 = vpack.c.bf16 %v2325_v20, %v2325_v20  ;;  %v2125_v34 = vpack.c.bf16 %v2105_v23, %v2104_v21  ;;  %v3537_v16 = vunpack.i.h.bf16 %v3535_v29  ;;  %v3536_v6 = vunpack.i.l.bf16 %v3535_v29 }
 0x1f1   : > { %1658 = vst.msk [vmem:[#allocation2 + $0xc0] sm:$0xff] %vm228_vm6, %v3486_v24 }
 0x1f2   : > { %2390 = vst.msk [vmem:[%s4348_s15 + $0x34] sm:$0xf] %vm2376_vm14, %v2357_v30  ;;  %2640 = vmatmul.msk.bf16.gmra.mxu2 %vm2170_vm8, %v2125_v34 }
 0x1f3   : > { %1760 = vst.msk [vmem:[#allocation2 + $0xce] sm:$0xfc] %vm5157_vm10, %v3482_v27  ;;  %vm5162_vm10 = vcmask 319744  }
 0x1f4   : > { %1644 = vst.msk [vmem:[#allocation2 + $0xce] sm:$0x3] %vm212_vm9, %v3481_v35 }
 0x1f5   : > { %1659 = vst.msk [vmem:[#allocation2 + $0xc8] sm:$0xff] %vm228_vm6, %v3487_v38 }
 0x1f6   : > { %1671 = vst.msk [vmem:[#allocation2 + $0xbf] sm:$0xfe] %vm5158_vm13, %v3491_v39  ;;  %v3500_v40 = vpop.permute.xlu1 %3499  ;;  %v4864_v18 = vpop.permute.xlu0 %3494  ;;  %vm5163_vm13 = vcmask 386368  }
 0x1f7   : > { %1672 = vst.msk [vmem:[#allocation2 + $0xc7] sm:$0xff] %vm5159_vm7, %v3492_v41  ;;  %v3502_v19 = vunpack.i.h.bf16 %v3500_v40  ;;  %v3501_v42 = vunpack.i.l.bf16 %v3500_v40  ;;  %v3496_v43 = vunpack.i.l.bf16 %v4864_v18  ;;  %v4868_v47 = vpop.permute.xlu2 %3549  ;;  %vm5164_vm7 = vcmask 130112  }
 0x1f8   : > { %1750 = vst.msk [vmem:[#allocation2 + $0xdf] sm:$0x1] %vm5160_vm12, %v3537_v16  ;;  %vm5165_vm12 = vcmask 458112   ;;  %v3497_v9 = vunpack.i.h.bf16 %v4864_v18  ;;  %v3551_v14 = vunpack.i.l.bf16 %v4868_v47  ;;  %v3552_v17 = vunpack.i.h.bf16 %v4868_v47 }
 0x1f9   : > { %1683 = vst.msk [vmem:[#allocation2 + $0xbe] sm:$0xfc] %vm257_vm11, %v3501_v42 }
 0x1fa   : > { %1684 = vst.msk [vmem:[#allocation2 + $0xc6] sm:$0xff] %vm5161_vm0, %v3502_v19  ;;  %vm5166_vm0 = vmmov %vm5165_vm12 }
 0x1fb   : > { %1673 = vst.msk [vmem:[#allocation2 + $0xcf] sm:$0x1] %vm5162_vm10, %v3496_v43  ;;  %vm5167_vm10 = vcmask 523712  }
 0x1fc   : > { %1685 = vst.msk [vmem:[#allocation2 + $0xce] sm:$0x3] %vm5163_vm13, %v3506_v48  ;;  %v2267_v5 = vpop.f32.mrf.mxu1  ;;  %vm5168_vm13 = vcmask 516544  }
 0x1fd   : > { %v2268_v32 = vadd.f32 %v4742_v63, %v2267_v5  ;;  %1749 = vst.msk [vmem:[#allocation2 + $0xd7] sm:$0xff] %vm5164_vm7, %v3536_v6  ;;  %vm5169_vm7 = vcmask 122944  }
 0x1fe   : > { %v3515_v15 = vpop.permute.xlu1 %3514  ;;  %v3510_v8 = vpop.permute.xlu0 %3509 }
 0x1ff   : > { %v2326_v49 = vmax.f32 %v2268_v32, 0.0  ;;  %v3512_v36 = vunpack.i.h.bf16 %v3510_v8  ;;  %v4878_v44 = vpop.permute.xlu2 %3564  ;;  %v3516_v51 = vunpack.i.l.bf16 %v3515_v15  ;;  %v3511_v52 = vunpack.i.l.bf16 %v3510_v8 }
 0x200   : > { %v3517_v50 = vunpack.i.h.bf16 %v3515_v15  ;;  %v3566_v27 = vunpack.i.l.bf16 %v4878_v44  ;;  %v3567_v30 = vunpack.i.h.bf16 %v4878_v44 }
 0x201   : > { %v2358_v54 = vpack.c.bf16 %v2326_v49, %v2326_v49  ;;  %1701 = vst.msk [vmem:[#allocation2 + $0xc8] sm:$0xff] %vm5165_vm12, %v3512_v36  ;;  %vm5170_vm12 = vcmask 326913  }
 0x202   : > { %1700 = vst.msk [vmem:[#allocation2 + $0xc0] sm:$0xff] %vm5166_vm0, %v3511_v52  ;;  %vm5171_vm0 = vcmask 326912  }
 0x203   : > { %2391 = vst.msk [vmem:[%s4348_s15 + $0x38] sm:$0xf] %vm2376_vm14, %v2358_v54 }
 0x204   : > { %1713 = vst.msk [vmem:[#allocation2 + $0xbf] sm:$0xfe] %vm291_vm4, %v3516_v51  ;;  %v2269_v33 = vpop.f32.mrf.mxu1 }
 0x205   : > { %1714 = vst.msk [vmem:[#allocation2 + $0xc7] sm:$0xff] %vm5167_vm10, %v3517_v50  ;;  %v2270_v55 = vadd.f32 %v4742_v63, %v2269_v33  ;;  %vm5172_vm10 = vcmask 319744  }
 0x206   : > { %1715 = vst.msk [vmem:[#allocation2 + $0xcf] sm:$0x1] %vm5168_vm13, %v3521_v13  ;;  %v3530_v53 = vpop.permute.xlu1 %3529  ;;  %v3525_v37 = vpop.permute.xlu0 %3524  ;;  %vm5173_vm13 = vcmask 392512  }
 0x207   : > { %v2327_v56 = vmax.f32 %v2270_v55, 0.0  ;;  %v3531_v58 = vunpack.i.l.bf16 %v3530_v53  ;;  %v3580_v59 = vpop.permute.xlu2 %3579  ;;  %v3527_v60 = vunpack.i.h.bf16 %v3525_v37  ;;  %v3526_v0 = vunpack.i.l.bf16 %v3525_v37 }
 0x208   : > { %v3582_v45 = vunpack.i.h.bf16 %v3580_v59  ;;  %v3581_v26 = vunpack.i.l.bf16 %v3580_v59  ;;  %v3532_v24 = vunpack.i.h.bf16 %v3530_v53 }
 0x209   : > { %v2359_v1 = vpack.c.bf16 %v2327_v56, %v2327_v56  ;;  %1727 = vst.msk [vmem:[#allocation2 + $0xce] sm:$0x3] %vm310_vm15, %v3531_v58 }
 0x20a   : > { %1725 = vst.msk [vmem:[#allocation2 + $0xbe] sm:$0xfc] %vm306_vm3, %v3526_v0 }
 0x20b   : > { %2392 = vst.msk [vmem:[%s4348_s15 + $0x3c] sm:$0xf] %vm2376_vm14, %v2359_v1 }
 0x20c   : > { %1726 = vst.msk [vmem:[#allocation2 + $0xc6] sm:$0xff] %vm308_vm1, %v3527_v60 }
 0x20d   : > { %1984 = vst.msk [vmem:[#allocation2 + $0xef] sm:$0xfe] %vm193_vm2, %v3582_v45 }
 0x20e   : > { %v3540_v3 = vpop.permute.xlu0 %3539  ;;  %v3545_v25 = vpop.permute.xlu1 %3544  ;;  %1868 = vst.msk [vmem:[#allocation2 + $0xef] sm:$0x1] %vm5169_vm7, %v3581_v26  ;;  %vm5174_vm7 = vcmask 386368  }
 0x20f   : > { %v3542_v61 = vunpack.i.h.bf16 %v3540_v3  ;;  %v3541_v4 = vunpack.i.l.bf16 %v3540_v3  ;;  %v3546_v46 = vunpack.i.l.bf16 %v3545_v25  ;;  %v3547_v7 = vunpack.i.h.bf16 %v3545_v25  ;;  %v3595_v29 = vpop.permute.xlu2 %3594 }
 0x210   : > { %v3596_v36 = vunpack.i.l.bf16 %v3595_v29  ;;  %v3597_v52 = vunpack.i.h.bf16 %v3595_v29 }
 0x211   : > { %1762 = vst.msk [vmem:[#allocation2 + $0xde] sm:$0x3] %vm212_vm9, %v3542_v61 }
 0x212   : > { %1761 = vst.msk [vmem:[#allocation2 + $0xd6] sm:$0xff] %vm210_vm5, %v3541_v4 }
 0x213   : > { %1776 = vst.msk [vmem:[#allocation2 + $0xd0] sm:$0xff] %vm228_vm6, %v3546_v46  ;;  %v2106_v2 = vld [vmem:[#allocation2 + $0xc0] sm:$0xff]  ;;  %v2107_v31 = vld [vmem:[#allocation2 + $0xc8] sm:$0xff] }
 0x214   : > { %1789 = vst.msk [vmem:[#allocation2 + $0xcf] sm:$0xfe] %vm5170_vm12, %v3497_v9  ;;  %v2126_v11 = vpack.c.bf16 %v2107_v31, %v2106_v2  ;;  %vm5175_vm12 = vcmask 458112  }
 0x215   : > { %1777 = vst.msk [vmem:[#allocation2 + $0xd8] sm:$0xff] %vm228_vm6, %v3547_v7 }
 0x216   : > { %1801 = vst.msk [vmem:[#allocation2 + $0xce] sm:$0xfc] %vm257_vm11, %v3507_v10  ;;  %2641 = vmatmul.msk.bf16.vlgmr.msra.gmra.mxu3 %vm2170_vm8, %v2126_v11  ;;  %v3555_v62 = vpop.permute.xlu0 %3554  ;;  %v3560_v20 = vpop.permute.xlu1 %3559 }
 0x217   : > { %1790 = vst.msk [vmem:[#allocation2 + $0xd7] sm:$0xff] %vm5171_vm0, %v3551_v14  ;;  %v3557_v21 = vunpack.i.h.bf16 %v3555_v62  ;;  %v3556_v22 = vunpack.i.l.bf16 %v3555_v62  ;;  %v3561_v28 = vunpack.i.l.bf16 %v3560_v20  ;;  %v3562_v23 = vunpack.i.h.bf16 %v3560_v20  ;;  %vm5176_vm0 = vmmov %vm5175_vm12  ;;  %v3610_v19 = vpop.permute.xlu2 %3609 }
 0x218   : > { %1791 = vst.msk [vmem:[#allocation2 + $0xdf] sm:$0x1] %vm5172_vm10, %v3552_v17  ;;  %vm5177_vm10 = vcmask 523712   ;;  %v3611_v58 = vunpack.i.l.bf16 %v3610_v19  ;;  %v3612_v59 = vunpack.i.h.bf16 %v3610_v19 }
 0x219   : > { %1802 = vst.msk [vmem:[#allocation2 + $0xd6] sm:$0xff] %vm5173_vm13, %v3556_v22  ;;  %vm5178_vm13 = vcmask 516544  }
 0x21a   : > { %1803 = vst.msk [vmem:[#allocation2 + $0xde] sm:$0x3] %vm5174_vm7, %v3557_v21  ;;  %vm5179_vm7 = vcmask 130112  }
 0x21b   : > { %1818 = vst.msk [vmem:[#allocation2 + $0xd0] sm:$0xff] %vm5175_vm12, %v3561_v28 }
 0x21c   : > { %1831 = vst.msk [vmem:[#allocation2 + $0xcf] sm:$0xfe] %vm291_vm4, %v3522_v57 }
 0x21d   : > { %1843 = vst.msk [vmem:[#allocation2 + $0xce] sm:$0xfc] %vm306_vm3, %v3532_v24 }
 0x21e   : > { %1819 = vst.msk [vmem:[#allocation2 + $0xd8] sm:$0xff] %vm5176_vm0, %v3562_v23  ;;  %v3570_v34 = vpop.permute.xlu0 %3569  ;;  %v3575_v35 = vpop.permute.xlu1 %3574  ;;  %vm5182_vm0 = vcmask 326913  }
 0x21f   : > { %1832 = vst.msk [vmem:[#allocation2 + $0xd7] sm:$0xff] %vm5177_vm10, %v3566_v27  ;;  %v3572_v12 = vunpack.i.h.bf16 %v3570_v34  ;;  %v3571_v38 = vunpack.i.l.bf16 %v3570_v34  ;;  %v3576_v39 = vunpack.i.l.bf16 %v3575_v35  ;;  %v3577_v41 = vunpack.i.h.bf16 %v3575_v35  ;;  %v3625_v37 = vpop.permute.xlu2 %3624 }
 0x220   : > { %1833 = vst.msk [vmem:[#allocation2 + $0xdf] sm:$0x1] %vm5178_vm13, %v3567_v30  ;;  %vm5183_vm10 = vcmask 326912   ;;  %vm5184_vm13 = vcmask 319744   ;;  %v3626_v3 = vunpack.i.l.bf16 %v3625_v37  ;;  %v3627_v61 = vunpack.i.h.bf16 %v3625_v37 }
 0x221   : > { %1844 = vst.msk [vmem:[#allocation2 + $0xd6] sm:$0xff] %vm308_vm1, %v3571_v38 }
 0x222   : > { %1845 = vst.msk [vmem:[#allocation2 + $0xde] sm:$0x3] %vm310_vm15, %v3572_v12  ;;  %v2272_v16 = vpop.f32.mrf.mxu2 }
 0x223   : > { %1866 = vst.msk [vmem:[#allocation2 + $0xdf] sm:$0xfe] %vm193_vm2, %v3576_v39  ;;  %v2273_v40 = vadd.f32 %v4742_v63, %v2272_v16  ;;  %vm5180_vm2 = vcmask 195714  }
 0x224   : > { %1867 = vst.msk [vmem:[#allocation2 + $0xe7] sm:$0xff] %vm5179_vm7, %v3577_v41  ;;  %vm5181_vm12 = vmmov %vm5180_vm2  ;;  %vm5185_vm7 = vcmask 392512  }
 0x225   : > { %v2328_v18 = vmax.f32 %v2273_v40, 0.0 }
 0x226   : > { %v3585_v42 = vpop.permute.xlu0 %3584  ;;  %v3590_v43 = vpop.permute.xlu1 %3589 }
 0x227   : > { %v2360_v47 = vpack.c.bf16 %v2328_v18, %v2328_v18  ;;  %v3587_v48 = vunpack.i.h.bf16 %v3585_v42  ;;  %v3586_v6 = vunpack.i.l.bf16 %v3585_v42  ;;  %v3592_v5 = vunpack.i.h.bf16 %v3590_v43  ;;  %v1957_v4 = vpop.permute.xlu2 %1956 }
 0x228   : > { %v2108_v32 = vld [vmem:[#allocation2 + $0xd0] sm:$0xff]  ;;  %v3591_v15 = vunpack.i.l.bf16 %v3590_v43 }
 0x229   : > { %2393 = vst.msk [vmem:[%s4348_s15 + $0x40] sm:$0xf] %vm2376_vm14, %v2360_v47  ;;  %v2109_v8 = vld [vmem:[#allocation2 + $0xd8] sm:$0xff] }
 0x22a   : > { %1879 = vst.msk [vmem:[#allocation2 + $0xe6] sm:$0xff] %vm210_vm5, %v3587_v48  ;;  %v2274_v49 = vpop.f32.mrf.mxu2  ;;  %v2127_v44 = vpack.c.bf16 %v2109_v8, %v2108_v32 }
 0x22b   : > { %1878 = vst.msk [vmem:[#allocation2 + $0xde] sm:$0xfc] %vm5180_vm2, %v3586_v6  ;;  %v2275_v51 = vadd.f32 %v4742_v63, %v2274_v49  ;;  %vm5186_vm2 = vcmask 386368  }
 0x22c   : > { %1996 = vst.msk [vmem:[#allocation2 + $0xee] sm:$0xfc] %vm5181_vm12, %v3592_v5  ;;  %2642 = vmatmul.msk.bf16.gmra.mxu3 %vm2170_vm8, %v2127_v44  ;;  %vm5187_vm12 = vcmask 458112  }
 0x22d   : > { %1880 = vst.msk [vmem:[#allocation2 + $0xee] sm:$0x3] %vm212_vm9, %v3591_v15  ;;  %v2329_v54 = vmax.f32 %v2275_v51, 0.0 }
 0x22e   : > { %1894 = vst.msk [vmem:[#allocation2 + $0xe0] sm:$0xff] %vm228_vm6, %v3596_v36  ;;  %v3600_v50 = vpop.permute.xlu0 %3599  ;;  %v4934_v13 = vpop.permute.xlu1 %3604 }
 0x22f   : > { %v2361_v33 = vpack.c.bf16 %v2329_v54, %v2329_v54  ;;  %1895 = vst.msk [vmem:[#allocation2 + $0xe8] sm:$0xff] %vm228_vm6, %v3597_v52  ;;  %v3602_v55 = vunpack.i.h.bf16 %v3600_v50  ;;  %v3601_v53 = vunpack.i.l.bf16 %v3600_v50  ;;  %v3606_v56 = vunpack.i.l.bf16 %v4934_v13  ;;  %v3650_v20 = vpop.permute.xlu2 %3649 }
 0x230   : > { %v3651_v30 = vunpack.i.l.bf16 %v3650_v20  ;;  %v3652_v35 = vunpack.i.h.bf16 %v3650_v20  ;;  %v3607_v38 = vunpack.i.h.bf16 %v4934_v13 }
 0x231   : > { %2394 = vst.msk [vmem:[%s4348_s15 + $0x44] sm:$0xf] %vm2376_vm14, %v2361_v33 }
 0x232   : > { %1907 = vst.msk [vmem:[#allocation2 + $0xdf] sm:$0xfe] %vm5182_vm0, %v3601_v53  ;;  %vm5188_vm0 = vmmov %vm5187_vm12 }
 0x233   : > { %1908 = vst.msk [vmem:[#allocation2 + $0xe7] sm:$0xff] %vm5183_vm10, %v3602_v55  ;;  %vm5189_vm10 = vcmask 523712  }
 0x234   : > { %1909 = vst.msk [vmem:[#allocation2 + $0xef] sm:$0x1] %vm5184_vm13, %v3606_v56  ;;  %vm5190_vm13 = vcmask 516544  }
 0x235   : > { %1919 = vst.msk [vmem:[#allocation2 + $0xde] sm:$0xfc] %vm257_vm11, %v3611_v58 }
 0x236   : > { %1920 = vst.msk [vmem:[#allocation2 + $0xe6] sm:$0xff] %vm5185_vm7, %v3612_v59  ;;  %v3615_v60 = vpop.permute.xlu0 %3614  ;;  %v3620_v0 = vpop.permute.xlu1 %3619  ;;  %vm5191_vm7 = vcmask 122944  }
 0x237   : > { %v3616_v1 = vunpack.i.l.bf16 %v3615_v60  ;;  %v3622_v45 = vunpack.i.h.bf16 %v3620_v0  ;;  %v3621_v26 = vunpack.i.l.bf16 %v3620_v0  ;;  %v3665_v41 = vpop.permute.xlu2 %3664  ;;  %v3617_v16 = vunpack.i.h.bf16 %v3615_v60 }
 0x238   : > { %v3666_v48 = vunpack.i.l.bf16 %v3665_v41  ;;  %v3667_v6 = vunpack.i.h.bf16 %v3665_v41 }
 0x239   : > { %1921 = vst.msk [vmem:[#allocation2 + $0xee] sm:$0x3] %vm5186_vm2, %v3616_v1  ;;  %v2277_v25 = vpop.f32.mrf.mxu2  ;;  %vm5192_vm2 = vcmask 130112  }
 0x23a   : > { %1936 = vst.msk [vmem:[#allocation2 + $0xe0] sm:$0xff] %vm5187_vm12, %v3621_v26  ;;  %v2278_v46 = vadd.f32 %v4742_v63, %v2277_v25  ;;  %vm5193_vm12 = vcmask 326913  }
 0x23b   : > { %1937 = vst.msk [vmem:[#allocation2 + $0xe8] sm:$0xff] %vm5188_vm0, %v3622_v45  ;;  %vm5196_vm0 = vcmask 392512  }
 0x23c   : > { %v2330_v7 = vmax.f32 %v2278_v46, 0.0  ;;  %1949 = vst.msk [vmem:[#allocation2 + $0xdf] sm:$0xfe] %vm291_vm4, %v3626_v3 }
 0x23d   : > { %1950 = vst.msk [vmem:[#allocation2 + $0xe7] sm:$0xff] %vm5189_vm10, %v3627_v61  ;;  %vm5197_vm10 = vcmask 386368  }
 0x23e   : > { %v2362_v9 = vpack.c.bf16 %v2330_v7, %v2330_v7  ;;  %v3630_v14 = vpop.permute.xlu0 %3629  ;;  %v3635_v2 = vpop.permute.xlu1 %3634 }
 0x23f   : > { %v3631_v31 = vunpack.i.l.bf16 %v3630_v14  ;;  %v3637_v10 = vunpack.i.h.bf16 %v3635_v2  ;;  %v3636_v17 = vunpack.i.l.bf16 %v3635_v2  ;;  %v3632_v5 = vunpack.i.h.bf16 %v3630_v14  ;;  %v2075_v51 = vpop.permute.xlu2 %2074 }
 0x240   : > { %2395 = vst.msk [vmem:[%s4348_s15 + $0x48] sm:$0xf] %vm2376_vm14, %v2362_v9 }
 0x241   : > { %1951 = vst.msk [vmem:[#allocation2 + $0xef] sm:$0x1] %vm5190_vm13, %v3631_v31  ;;  %v2279_v11 = vpop.f32.mrf.mxu2  ;;  %vm5198_vm13 = vcmask 458112  }
 0x242   : > { %1961 = vst.msk [vmem:[#allocation2 + $0xde] sm:$0xfc] %vm306_vm3, %v3636_v17  ;;  %v2280_v62 = vadd.f32 %v4742_v63, %v2279_v11 }
 0x243   : > { %1962 = vst.msk [vmem:[#allocation2 + $0xe6] sm:$0xff] %vm308_vm1, %v3637_v10 }
 0x244   : > { %v2331_v21 = vmax.f32 %v2280_v62, 0.0  ;;  %1963 = vst.msk [vmem:[#allocation2 + $0xee] sm:$0x3] %vm310_vm15, %v1957_v4 }
 0x246   : > { %v2363_v22 = vpack.c.bf16 %v2331_v21, %v2331_v21  ;;  %v3640_v28 = vpop.permute.xlu0 %3639  ;;  %v3645_v57 = vpop.permute.xlu1 %3644 }
 0x247   : > { %v3642_v23 = vunpack.i.h.bf16 %v3640_v28  ;;  %v3641_v24 = vunpack.i.l.bf16 %v3640_v28  ;;  %v3646_v27 = vunpack.i.l.bf16 %v3645_v57  ;;  %v3647_v29 = vunpack.i.h.bf16 %v3645_v57 }
 0x248   : > { %2396 = vst.msk [vmem:[%s4348_s15 + $0x4c] sm:$0xf] %vm2376_vm14, %v2363_v22 }
 0x249   : > { %1986 = vst.msk [vmem:[#allocation2 + $0xff] sm:$0x1] %vm5191_vm7, %v3642_v23  ;;  %vm5201_vm7 = vcmask 523712  }
 0x24a   : > { %1985 = vst.msk [vmem:[#allocation2 + $0xf7] sm:$0xff] %vm5192_vm2, %v3641_v24  ;;  %v2110_v34 = vld [vmem:[#allocation2 + $0xe0] sm:$0xff] }
 0x24b   : > { %1997 = vst.msk [vmem:[#allocation2 + $0xf6] sm:$0xff] %vm210_vm5, %v3646_v27  ;;  %v2111_v12 = vld [vmem:[#allocation2 + $0xe8] sm:$0xff]  ;;  %vm5194_vm5 = vcmask 326912  }
 0x24c   : > { %1998 = vst.msk [vmem:[#allocation2 + $0xfe] sm:$0x3] %vm212_vm9, %v3647_v29  ;;  %v2128_v39 = vpack.c.bf16 %v2111_v12, %v2110_v34  ;;  %vm5195_vm9 = vcmask 319744  }
 0x24d   : > { %2012 = vst.msk [vmem:[#allocation2 + $0xf0] sm:$0xff] %vm228_vm6, %v3651_v30 }
 0x24e   : > { %2025 = vst.msk [vmem:[#allocation2 + $0xef] sm:$0xfe] %vm5193_vm12, %v3607_v38  ;;  %2643 = vmatmul.msk.bf16.gmra.mxu3 %vm2170_vm8, %v2128_v39  ;;  %v3655_v40 = vpop.permute.xlu0 %3654  ;;  %v3660_v18 = vpop.permute.xlu1 %3659 }
 0x24f   : > { %2013 = vst.msk [vmem:[#allocation2 + $0xf8] sm:$0xff] %vm228_vm6, %v3652_v35  ;;  %v3657_v19 = vunpack.i.h.bf16 %v3655_v40  ;;  %v3656_v42 = vunpack.i.l.bf16 %v3655_v40  ;;  %v3661_v43 = vunpack.i.l.bf16 %v3660_v18  ;;  %v3662_v47 = vunpack.i.h.bf16 %v3660_v18  ;;  %vm5199_vm6 = vmmov %vm5198_vm13 }
 0x250   : > { %2037 = vst.msk [vmem:[#allocation2 + $0xee] sm:$0xfc] %vm257_vm11, %v3617_v16  ;;  %vm5200_vm11 = vcmask 516544  }
 0x251   : > { %2026 = vst.msk [vmem:[#allocation2 + $0xf7] sm:$0xff] %vm5194_vm5, %v3656_v42 }
 0x252   : > { %2027 = vst.msk [vmem:[#allocation2 + $0xff] sm:$0x1] %vm5195_vm9, %v3657_v19 }
 0x253   : > { %2038 = vst.msk [vmem:[#allocation2 + $0xf6] sm:$0xff] %vm5196_vm0, %v3661_v43 }
 0x254   : > { %2039 = vst.msk [vmem:[#allocation2 + $0xfe] sm:$0x3] %vm5197_vm10, %v3662_v47 }
 0x255   : > { %2054 = vst.msk [vmem:[#allocation2 + $0xf0] sm:$0xff] %vm5198_vm13, %v3666_v48 }
 0x256   : > { %2055 = vst.msk [vmem:[#allocation2 + $0xf8] sm:$0xff] %vm5199_vm6, %v3667_v6  ;;  %v3670_v32 = vpop.permute.xlu0 %3669  ;;  %v3675_v15 = vpop.permute.xlu1 %3674 }
 0x257   : > { %v3672_v8 = vunpack.i.h.bf16 %v3670_v32  ;;  %v3671_v49 = vunpack.i.l.bf16 %v3670_v32  ;;  %2067 = vst.msk [vmem:[#allocation2 + $0xef] sm:$0xfe] %vm291_vm4, %v3632_v5  ;;  %v3676_v36 = vunpack.i.l.bf16 %v3675_v15  ;;  %v3677_v44 = vunpack.i.h.bf16 %v3675_v15 }
 0x259   : > { %2069 = vst.msk [vmem:[#allocation2 + $0xff] sm:$0x1] %vm5200_vm11, %v3672_v8 }
 0x25a   : > { %2068 = vst.msk [vmem:[#allocation2 + $0xf7] sm:$0xff] %vm5201_vm7, %v3671_v49 }
 0x25b   : > { %2079 = vst.msk [vmem:[#allocation2 + $0xee] sm:$0xfc] %vm306_vm3, %v3676_v36 }
 0x25c   : > { %2080 = vst.msk [vmem:[#allocation2 + $0xf6] sm:$0xff] %vm308_vm1, %v3677_v44 }
 0x25d   : > { %2081 = vst.msk [vmem:[#allocation2 + $0xfe] sm:$0x3] %vm310_vm15, %v2075_v51 }
 0x260   : > { %v2282_v52 = vpop.f32.mrf.mxu2 }
 0x261   : > { %v2283_v54 = vadd.f32 %v4742_v63, %v2282_v52 }
 0x263   : > { %v2332_v50 = vmax.f32 %v2283_v54, 0.0  ;;  %v2112_v13 = vld [vmem:[#allocation2 + $0xf0] sm:$0xff] }
 0x264   : > { %v2113_v33 = vld [vmem:[#allocation2 + $0xf8] sm:$0xff] }
 0x265   : > { %v2364_v55 = vpack.c.bf16 %v2332_v50, %v2332_v50  ;;  %v2129_v53 = vpack.c.bf16 %v2113_v33, %v2112_v13 }
 0x267   : > { %2397 = vst.msk [vmem:[%s4348_s15 + $0x50] sm:$0xf] %vm2376_vm14, %v2364_v55  ;;  %2644 = vmatmul.msk.bf16.gmra.mxu3 %vm2170_vm8, %v2129_v53 }
 0x268   : > { %v2284_v37 = vpop.f32.mrf.mxu2 }
 0x269   : > { %v2285_v56 = vadd.f32 %v4742_v63, %v2284_v37 }
 0x26b   : > { %v2333_v58 = vmax.f32 %v2285_v56, 0.0 }
 0x26d   : > { %v2365_v59 = vpack.c.bf16 %v2333_v58, %v2333_v58 }
 0x26f   : > { %2398 = vst.msk [vmem:[%s4348_s15 + $0x54] sm:$0xf] %vm2376_vm14, %v2365_v59 }
 0x275   : > { %v2287_v60 = vpop.f32.mrf.mxu2 }
 0x276   : > { %v2288_v0 = vadd.f32 %v4742_v63, %v2287_v60 }
 0x278   : > { %v2334_v1 = vmax.f32 %v2288_v0, 0.0 }
 0x27a   : > { %v2366_v45 = vpack.c.bf16 %v2334_v1, %v2334_v1 }
 0x27c   : > { %2399 = vst.msk [vmem:[%s4348_s15 + $0x58] sm:$0xf] %vm2376_vm14, %v2366_v45 }
 0x27d   : > { %v2289_v26 = vpop.f32.mrf.mxu2 }
 0x27e   : > { %v2290_v3 = vadd.f32 %v4742_v63, %v2289_v26 }
 0x280   : > { %v2335_v25 = vmax.f32 %v2290_v3, 0.0 }
 0x282   : > { %v2367_v61 = vpack.c.bf16 %v2335_v25, %v2335_v25 }
 0x284   : > { %2400 = vst.msk [vmem:[%s4348_s15 + $0x5c] sm:$0xf] %vm2376_vm14, %v2367_v61 }
 0x299   : > { %v2292_v4 = vpop.f32.mrf.mxu3 }
 0x29a   : > { %v2293_v46 = vadd.f32 %v4742_v63, %v2292_v4 }
 0x29c   : > { %v2336_v7 = vmax.f32 %v2293_v46, 0.0 }
 0x29e   : > { %v2368_v9 = vpack.c.bf16 %v2336_v7, %v2336_v7 }
 0x2a0   : > { %2401 = vst.msk [vmem:[%s4348_s15 + $0x60] sm:$0xf] %vm2376_vm14, %v2368_v9 }
 0x2a1   : > { %v2294_v14 = vpop.f32.mrf.mxu3 }
 0x2a2   : > { %v2295_v2 = vadd.f32 %v4742_v63, %v2294_v14 }
 0x2a4   : > { %v2337_v31 = vmax.f32 %v2295_v2, 0.0 }
 0x2a6   : > { %v2369_v10 = vpack.c.bf16 %v2337_v31, %v2337_v31 }
 0x2a8   : > { %2402 = vst.msk [vmem:[%s4348_s15 + $0x64] sm:$0xf] %vm2376_vm14, %v2369_v10 }
 0x2af   : > { %v2297_v17 = vpop.f32.mrf.mxu3 }
 0x2b0   : > { %v2298_v11 = vadd.f32 %v4742_v63, %v2297_v17 }
 0x2b2   : > { %v2338_v62 = vmax.f32 %v2298_v11, 0.0 }
 0x2b4   : > { %v2370_v20 = vpack.c.bf16 %v2338_v62, %v2338_v62 }
 0x2b6   : > { %2403 = vst.msk [vmem:[%s4348_s15 + $0x68] sm:$0xf] %vm2376_vm14, %v2370_v20 }
 0x2b7   : > { %v2299_v21 = vpop.f32.mrf.mxu3 }
 0x2b8   : > { %v2300_v22 = vadd.f32 %v4742_v63, %v2299_v21 }
 0x2ba   : > { %v2339_v28 = vmax.f32 %v2300_v22, 0.0 }
 0x2bc   : > { %v2371_v57 = vpack.c.bf16 %v2339_v28, %v2339_v28 }
 0x2be   : > { %2404 = vst.msk [vmem:[%s4348_s15 + $0x6c] sm:$0xf] %vm2376_vm14, %v2371_v57 }
 0x2d1   : > { %v2302_v23 = vpop.f32.mrf.mxu3 }
 0x2d2   : > { %v2303_v24 = vadd.f32 %v4742_v63, %v2302_v23 }
 0x2d4   : > { %v2340_v27 = vmax.f32 %v2303_v24, 0.0 }
 0x2d6   : > { %v2372_v29 = vpack.c.bf16 %v2340_v27, %v2340_v27 }
 0x2d8   : > { %2405 = vst.msk [vmem:[%s4348_s15 + $0x70] sm:$0xf] %vm2376_vm14, %v2372_v29 }
 0x2d9   : > { %v2304_v30 = vpop.f32.mrf.mxu3 }
 0x2da   : > { %v2305_v34 = vadd.f32 %v4742_v63, %v2304_v30 }
 0x2dc   : > { %v2341_v35 = vmax.f32 %v2305_v34, 0.0 }
 0x2de   : > { %v2373_v12 = vpack.c.bf16 %v2341_v35, %v2341_v35 }
 0x2e0   : > { %2406 = vst.msk [vmem:[%s4348_s15 + $0x74] sm:$0xf] %vm2376_vm14, %v2373_v12 }
 0x2ea   : > { %v2307_v38 = vpop.f32.mrf.mxu3 }
 0x2eb   : > { %v2308_v39 = vadd.f32 %v4742_v63, %v2307_v38 }
 0x2ed   : > { %v2342_v41 = vmax.f32 %v2308_v39, 0.0 }
 0x2ef   : > { %v2374_v16 = vpack.c.bf16 %v2342_v41, %v2342_v41 }
 0x2f1   : > { %2407 = vst.msk [vmem:[%s4348_s15 + $0x78] sm:$0xf] %vm2376_vm14, %v2374_v16 }
 0x2f2   : > { %v2309_v40 = vpop.f32.mrf.mxu3 }
 0x2f3   : > { %v2310_v18 = vadd.f32 %v4742_v63, %v2309_v40 }
 0x2f5   : > { %v2343_v19 = vmax.f32 %v2310_v18, 0.0 }
 0x2f7   : > { %v2375_v42 = vpack.c.bf16 %v2343_v19, %v2343_v19 }
 0x2f9   : > { %2408 = vst.msk [vmem:[%s4348_s15 + $0x7c] sm:$0xf] %vm2376_vm14, %v2375_v42 }
 0x2fa PF: > { %s13_s12 = sadd.s32 1, %s3686_s12  }
 0x2fb   : > { %p10_p4 = scmp.ge.s32.totalorder %s13_s12, 4  }
 0x2fd   :  { %12 = sbr.rel (!%p10_p4) target bundleno = 1 (0x1), region = 79 }

</bundles_post_ra>
